<compile_context>
chip_gen: v6e
topology: v6e:2x2x1
jax: 0.10.0
libtpu: 0.0.40
codegen_flags: <defaults>
</compile_context>

<pallas_src>
import functools
import math
import numpy as np
import jax
import jax.numpy as jnp
from jax import lax
from jax.experimental import pallas as pl
from jax.experimental.pallas import tpu as pltpu

BN_EPS = 1e-5
LANE = 128  # TPU lane width; channels are padded to a multiple of this.


def _round_up(x, m):
    return (x + m - 1) // m * m


def conv_stats_kernel(x_ref, w_ref, pns_ref, pnt_ref, z_ref, st_ref, *, apply_prenorm):
    """One conv layer for a block of images.

    x_ref  : (nb, H, W, Cp)   previous layer's pre-BN conv output (or padded input)
    w_ref  : (9*Cp, Cop)      conv weights, (kh, kw, cin) flattened into K
    pns_ref: (1, Cp)          previous layer's folded BN scale  (gamma * inv_std)
    pnt_ref: (1, Cp)          previous layer's folded BN shift  (beta - mean*scale)
    z_ref  : (nb, H, W, Cop)  this layer's pre-BN conv output (Cop multiple of 128)
    st_ref : (2, Cop)         [sum(z), sum(z*z)] over this block of images
    """
    nb, H, W, Cp = x_ref.shape
    Cop = z_ref.shape[-1]

    x = x_ref[...]
    if apply_prenorm:
        # Fused epilogue of the previous layer: BN(batch stats) + ReLU applied at
        # load time so normalized activations never round-trip HBM.  Kept in f32
        # (v5e has no bf16 VPU; also preserves the 1e-4 match with the reference).
        pns = pns_ref[...].reshape(1, 1, 1, Cp)
        pnt = pnt_ref[...].reshape(1, 1, 1, Cp)
        x = jnp.maximum(x * pns + pnt, 0.0)

    # Zero padding built in registers (no VMEM scratch zero + store + reload).
    zrow = jnp.zeros((nb, 1, W, Cp), x.dtype)
    xp = jnp.concatenate([zrow, x, zrow], axis=1)            # (nb, H+2, W,   Cp)
    zcol = jnp.zeros((nb, H + 2, 1, Cp), x.dtype)
    xp = jnp.concatenate([zcol, xp, zcol], axis=2)           # (nb, H+2, W+2, Cp)

    # Tap patch with channel order (kh, kw, cin), matching the HWIO weight reshape.
    # All channel concatenations land on 128-lane boundaries -> lane-aligned.
    shifted = jnp.concatenate([xp[:, :, kw:kw + W, :] for kw in range(3)], axis=-1)
    patch = jnp.concatenate([shifted[:, kh:kh + H] for kh in range(3)], axis=-1)
    # (nb, H, W, 9*Cp) -> (nb*H*W, 9*Cp): last dim multiple of 128 and W % 8 == 0,
    # so this collapse of leading dims is layout-preserving (no relayout copy).
    patch = patch.reshape(nb * H * W, 9 * Cp)

    # Single MXU matmul: M = nb*H*W, K = 9*Cp, N = Cop (both lane-width multiples).
    # TODO(synk): bf16 operands here for v6e/v7x MXU peak once MXU becomes binding.
    z = jnp.dot(patch, w_ref[...], preferred_element_type=jnp.float32)

    # Conv bias intentionally omitted: a per-channel constant is exactly cancelled
    # by the training-mode BatchNorm mean subtraction that follows (and is 0 anyway).

    # BN partials emitted once per block (single lane-dense (2, Cop) store).
    st_ref[...] = jnp.concatenate(
        [jnp.sum(z, axis=0, keepdims=True),
         jnp.sum(z * z, axis=0, keepdims=True)], axis=0)

    # Cop is a multiple of 128 -> free reshape, unmasked stores.
    z_ref[...] = z.reshape(nb, H, W, Cop)


def bn_relu_kernel(z_ref, scale_ref, shift_ref, o_ref):
    """Lane-dense BN apply + ReLU on (rows, C) tiles (C a multiple of 128)."""
    o_ref[...] = jnp.maximum(z_ref[...] * scale_ref[...] + shift_ref[...], 0.0)


def conv_stats_layer(x_nhwc, w_flat, pn_scale, pn_shift, apply_prenorm, *, images_per_block):
    """One conv layer: grid over image blocks, BN partials as a second output."""
    N, H, W, Cp = x_nhwc.shape
    K, Cop = w_flat.shape
    nb = images_per_block
    assert N % nb == 0
    kernel = functools.partial(conv_stats_kernel, apply_prenorm=apply_prenorm)

    # VMEM budget from actual block sizes (double-buffered IO + weights + im2col
    # patch and its temporaries), clamped to stay below v7x's 64 MiB per core.
    bytes_in = nb * H * W * Cp * 4
    bytes_out = nb * H * W * Cop * 4
    bytes_w = K * Cop * 4
    bytes_patch = nb * H * W * K * 4
    vmem_need = 2 * (bytes_in + bytes_out) + bytes_w + 3 * bytes_patch + (1 << 20)
    vmem_limit = int(min(max(vmem_need, 16 * 1024 * 1024), 60 * 1024 * 1024))
    # TODO(synk): at ResNet-scale H*W*C, tile H with a 1-row halo so the patch fits
    # v7x's 64 MiB VMEM while keeping >=4 grid steps per TensorCore for pipelining.

    cost = pl.CostEstimate(
        flops=2 * N * H * W * K * Cop,
        transcendentals=0,
        bytes_accessed=4 * (N * H * W * (Cp + Cop) + K * Cop + 2 * Cop * (N // nb)))

    return pl.pallas_call(
        kernel,
        out_shape=(jax.ShapeDtypeStruct((N, H, W, Cop), jnp.float32),
                   jax.ShapeDtypeStruct((N // nb, 2, Cop), jnp.float32)),
        grid=(N // nb,),
        in_specs=[
            pl.BlockSpec((nb, H, W, Cp), lambda n: (n, 0, 0, 0)),
            pl.BlockSpec((K, Cop), lambda n: (0, 0)),
            pl.BlockSpec((1, Cp), lambda n: (0, 0)),
            pl.BlockSpec((1, Cp), lambda n: (0, 0)),
        ],
        out_specs=[
            pl.BlockSpec((nb, H, W, Cop), lambda n: (n, 0, 0, 0)),
            pl.BlockSpec((None, 2, Cop), lambda n: (n, 0, 0)),
        ],
        compiler_params=pltpu.CompilerParams(
            dimension_semantics=("parallel",),
            vmem_limit_bytes=vmem_limit),
        cost_estimate=cost,
    )(x_nhwc, w_flat, pn_scale.reshape(1, Cp), pn_shift.reshape(1, Cp))


def bn_relu_apply(z_nhwc, scale, shift):
    """Final layer's BN+ReLU: lane-dense (rows, C) layout, large row tiles."""
    N, H, W, C = z_nhwc.shape
    rows = N * H * W
    z2 = z_nhwc.reshape(rows, C)                      # free view: C % 128 == 0
    tile_r = rows
    if rows > 1024:
        for cand in (1024, 512, 256, 128, 64, 32, 16, 8):
            if rows % cand == 0:
                tile_r = cand
                break
    out = pl.pallas_call(
        bn_relu_kernel,
        out_shape=jax.ShapeDtypeStruct((rows, C), jnp.float32),
        grid=(rows // tile_r,),
        in_specs=[pl.BlockSpec((tile_r, C), lambda r: (r, 0)),
                  pl.BlockSpec((1, C), lambda r: (0, 0)),
                  pl.BlockSpec((1, C), lambda r: (0, 0))],
        out_specs=pl.BlockSpec((tile_r, C), lambda r: (r, 0)),
        compiler_params=pltpu.CompilerParams(dimension_semantics=("parallel",)),
    )(z2, scale.reshape(1, C), shift.reshape(1, C))
    return out.reshape(N, H, W, C)


def make_convblock_params(key, inplanes, outplanes, nums=3):
    """Mirror ConvBlock.initial(): kaiming_normal(mode='fan_out') conv weights,
    conv bias = 0, BN gamma = 1, BN beta = 0."""
    params = []
    cin = inplanes
    for _ in range(nums):
        key, sub = jax.random.split(key)
        fan_out = outplanes * 3 * 3
        std = math.sqrt(2.0 / fan_out)
        w = jax.random.normal(sub, (3, 3, cin, outplanes), jnp.float32) * std
        b = jnp.zeros((outplanes,), jnp.float32)
        gamma = jnp.ones((outplanes,), jnp.float32)
        beta = jnp.zeros((outplanes,), jnp.float32)
        params.append((w, b, gamma, beta))
        cin = outplanes
    return params


def convblock_forward(x_nchw, params):
    """Full ConvBlock forward (input/output NCHW, PyTorch convention)."""
    N, _, H, W = x_nchw.shape
    net = jnp.transpose(x_nchw, (0, 2, 3, 1)).astype(jnp.float32)   # NHWC, once
    count = N * H * W

    # Images per grid step: largest divisor of N up to 8 (bigger blocks amortise
    # per-step overhead, enlarge the MXU M dim, still >1 step for megacore at real N).
    nb = max(d for d in range(1, min(N, 8) + 1) if N % d == 0)

    cin_real = net.shape[-1]
    cp = _round_up(cin_real, LANE)
    # Lane-dense input: pad channels once in HBM; padded channels stay exactly zero
    # through every layer (zero weight rows/cols, zero gamma/beta on padding).
    net = jnp.pad(net, ((0, 0), (0, 0), (0, 0), (0, cp - cin_real)))

    scale = shift = None
    cout_real = cin_real
    for (w, b, gamma, beta) in params:     # b unused: cancelled by train-mode BN
        cin, cout = w.shape[2], w.shape[3]
        cout_real = cout
        cop = _round_up(cout, LANE)
        w_p = jnp.zeros((3, 3, cp, cop), jnp.float32).at[:, :, :cin, :cout].set(w)
        w_flat = w_p.reshape(9 * cp, cop)                 # (kh, kw, cin) -> K
        if scale is None:                                 # first layer: no pre-norm
            pn_s = jnp.ones((cp,), jnp.float32)
            pn_t = jnp.zeros((cp,), jnp.float32)
            apply_pn = False
        else:                                             # fuse previous BN+ReLU
            pn_s, pn_t = scale, shift
            apply_pn = True
        net, stats = conv_stats_layer(net, w_flat, pn_s, pn_t, apply_pn,
                                      images_per_block=nb)
        # Global batch statistics for this layer's BN (training mode, biased var).
        ssum = jnp.sum(stats[:, 0, :], axis=0)
        ssq = jnp.sum(stats[:, 1, :], axis=0)
        mean = ssum / count
        var = jnp.maximum(ssq / count - mean * mean, 0.0)
        # TODO(synk): switch to a shifted/two-pass variance if N*H*W or activation
        # magnitudes grow enough for E[x^2]-E[x]^2 cancellation to exceed tolerance.
        inv_std = lax.rsqrt(var + BN_EPS)
        gamma_p = jnp.zeros((cop,), jnp.float32).at[:cout].set(gamma)
        beta_p = jnp.zeros((cop,), jnp.float32).at[:cout].set(beta)
        scale = gamma_p * inv_std
        shift = beta_p - mean * scale
        cp = cop

    out_nhwc = bn_relu_apply(net, scale, shift)           # last layer's BN+ReLU
    out_nhwc = out_nhwc[..., :cout_real]                  # drop channel padding
    return jnp.transpose(out_nhwc, (0, 3, 1, 2))          # back to NCHW


def convblock_reference(x_nchw, params):
    """Pure-JAX reference (lax conv + batch-stat BN + ReLU) for validation."""
    net = jnp.transpose(x_nchw, (0, 2, 3, 1))
    for (w, b, gamma, beta) in params:
        y = lax.conv_general_dilated(
            net, w, window_strides=(1, 1), padding="SAME",
            dimension_numbers=("NHWC", "HWIO", "NHWC"))
        y = y + b
        mean = jnp.mean(y, axis=(0, 1, 2), keepdims=True)
        var = jnp.mean((y - mean) ** 2, axis=(0, 1, 2), keepdims=True)
        y = (y - mean) * lax.rsqrt(var + BN_EPS) * gamma + beta
        net = jnp.maximum(y, 0.0)
    return jnp.transpose(net, (0, 3, 1, 2))


if __name__ == "__main__":
    key = jax.random.PRNGKey(0)
    key_x, key_p = jax.random.split(key)

    # ConvBlock(inplanes=4, outplanes=8, nums=3) at small shapes.
    N, Cin, H, W = 2, 4, 16, 16
    Cout = 8
    x = jax.random.normal(key_x, (N, Cin, H, W), jnp.float32)
    params = make_convblock_params(key_p, Cin, Cout, nums=3)

    fwd = jax.jit(lambda inp: convblock_forward(inp, params))
    out = jax.block_until_ready(fwd(x))

    ref = jax.block_until_ready(convblock_reference(x, params))
    assert out.shape == (N, Cout, H, W)
    np.testing.assert_allclose(np.asarray(out), np.asarray(ref),
                               rtol=1e-4, atol=1e-4)
    print("KERNEL_OK")
</pallas_src>

<mosaic_0001>
module attributes {stable_mosaic.version = 11 : i64} {
  func.func @conv_stats_kernel(%arg0: i32, %arg1: memref<2x16x16x128xf32, #tpu.memory_space<vmem>>, %arg2: memref<1152x128xf32, #tpu.memory_space<vmem>>, %arg3: memref<1x128xf32, #tpu.memory_space<vmem>>, %arg4: memref<1x128xf32, #tpu.memory_space<vmem>>, %arg5: memref<2x16x16x128xf32, #tpu.memory_space<vmem>>, %arg6: memref<1x2x128xf32, #tpu.memory_space<vmem>>) attributes {dimension_semantics = [#tpu.dimension_semantics<parallel>], iteration_bounds = array<i64: 1>, scalar_prefetch = 0 : i64, scratch_operands = 0 : i64, tpu.core_type = #tpu.core_type<tc>, window_params = [{transform_indices = @transform_0, window_bounds = array<i64: 2, 16, 16, 128>}, {pipeline_mode = #tpu.pipeline_mode<synchronous>, transform_indices = @transform_1, window_bounds = array<i64: 1152, 128>}, {pipeline_mode = #tpu.pipeline_mode<synchronous>, transform_indices = @transform_2, window_bounds = array<i64: 1, 128>}, {pipeline_mode = #tpu.pipeline_mode<synchronous>, transform_indices = @transform_3, window_bounds = array<i64: 1, 128>}, {transform_indices = @transform_4, window_bounds = array<i64: 2, 16, 16, 128>}, {transform_indices = @transform_5, window_bounds = array<i64: 1, 2, 128>}]} {
    %c0 = arith.constant 0 : index
    %c0_0 = arith.constant 0 : index
    %c0_1 = arith.constant 0 : index
    %c0_2 = arith.constant 0 : index
    %0 = vector.load %arg1[%c0, %c0_0, %c0_1, %c0_2] : memref<2x16x16x128xf32, #tpu.memory_space<vmem>>, vector<2x16x16x128xf32>
    %cst = arith.constant 0.000000e+00 : f32
    %1 = vector.broadcast %cst : f32 to vector<2x1x16x128xf32>
    %2 = tpu.concatenate %1, %0, %1 in 1 : vector<2x1x16x128xf32>, vector<2x16x16x128xf32>, vector<2x1x16x128xf32> -> vector<2x18x16x128xf32>
    %cst_3 = arith.constant 0.000000e+00 : f32
    %3 = vector.broadcast %cst_3 : f32 to vector<2x18x1x128xf32>
    %4 = tpu.concatenate %3, %2, %3 in 2 : vector<2x18x1x128xf32>, vector<2x18x16x128xf32>, vector<2x18x1x128xf32> -> vector<2x18x18x128xf32>
    %5 = vector.extract_strided_slice %4 {offsets = [0, 0, 0, 0], sizes = [2, 18, 16, 128], strides = [1, 1, 1, 1]} : vector<2x18x18x128xf32> to vector<2x18x16x128xf32>
    %6 = vector.extract_strided_slice %4 {offsets = [0, 0, 1, 0], sizes = [2, 18, 16, 128], strides = [1, 1, 1, 1]} : vector<2x18x18x128xf32> to vector<2x18x16x128xf32>
    %7 = vector.extract_strided_slice %4 {offsets = [0, 0, 2, 0], sizes = [2, 18, 16, 128], strides = [1, 1, 1, 1]} : vector<2x18x18x128xf32> to vector<2x18x16x128xf32>
    %8 = tpu.concatenate %5, %6, %7 in 3 : vector<2x18x16x128xf32>, vector<2x18x16x128xf32>, vector<2x18x16x128xf32> -> vector<2x18x16x384xf32>
    %9 = vector.extract_strided_slice %8 {offsets = [0, 0, 0, 0], sizes = [2, 16, 16, 384], strides = [1, 1, 1, 1]} : vector<2x18x16x384xf32> to vector<2x16x16x384xf32>
    %10 = vector.extract_strided_slice %8 {offsets = [0, 1, 0, 0], sizes = [2, 16, 16, 384], strides = [1, 1, 1, 1]} : vector<2x18x16x384xf32> to vector<2x16x16x384xf32>
    %11 = vector.extract_strided_slice %8 {offsets = [0, 2, 0, 0], sizes = [2, 16, 16, 384], strides = [1, 1, 1, 1]} : vector<2x18x16x384xf32> to vector<2x16x16x384xf32>
    %12 = tpu.concatenate %9, %10, %11 in 3 : vector<2x16x16x384xf32>, vector<2x16x16x384xf32>, vector<2x16x16x384xf32> -> vector<2x16x16x1152xf32>
    %13 = vector.shape_cast %12 : vector<2x16x16x1152xf32> to vector<512x1152xf32>
    %c0_4 = arith.constant 0 : index
    %c0_5 = arith.constant 0 : index
    %14 = vector.load %arg2[%c0_4, %c0_5] : memref<1152x128xf32, #tpu.memory_space<vmem>>, vector<1152x128xf32>
    %cst_6 = arith.constant dense<0.000000e+00> : vector<512x128xf32>
    %15 = tpu.matmul %13, %14, %cst_6 {dimension_numbers = #tpu.dot_dimension_numbers<[1], [0], [0], [1], [0, 0, 1, 1], [], []>} : vector<512x1152xf32>, vector<1152x128xf32>, vector<512x128xf32> -> vector<512x128xf32>
    %cst_7 = arith.constant dense<0.000000e+00> : vector<128xf32>
    %16 = vector.multi_reduction <add>, %15, %cst_7 [0] : vector<512x128xf32> to vector<128xf32>
    %17 = vector.shape_cast %16 : vector<128xf32> to vector<1x128xf32>
    %18 = arith.mulf %15, %15 : vector<512x128xf32>
    %cst_8 = arith.constant dense<0.000000e+00> : vector<128xf32>
    %19 = vector.multi_reduction <add>, %18, %cst_8 [0] : vector<512x128xf32> to vector<128xf32>
    %20 = vector.shape_cast %19 : vector<128xf32> to vector<1x128xf32>
    %21 = tpu.concatenate %17, %20 in 0 : vector<1x128xf32>, vector<1x128xf32> -> vector<2x128xf32>
    %c0_9 = arith.constant 0 : index
    %c0_10 = arith.constant 0 : index
    %c0_11 = arith.constant 0 : index
    %22 = vector.load %arg6[%c0_9, %c0_10, %c0_11] : memref<1x2x128xf32, #tpu.memory_space<vmem>>, vector<1x2x128xf32>
    %23 = vector.shape_cast %22 : vector<1x2x128xf32> to vector<2x128xf32>
    %24 = vector.shape_cast %21 : vector<2x128xf32> to vector<1x2x128xf32>
    tpu.vector_store %arg6[%c0_9, %c0_10, %c0_11], %24 {strides = array<i32>} : memref<1x2x128xf32, #tpu.memory_space<vmem>>, vector<1x2x128xf32>,
    %25 = vector.shape_cast %15 : vector<512x128xf32> to vector<2x16x16x128xf32>
    %c0_12 = arith.constant 0 : index
    %c0_13 = arith.constant 0 : index
    %c0_14 = arith.constant 0 : index
    %c0_15 = arith.constant 0 : index
    %26 = vector.load %arg5[%c0_12, %c0_13, %c0_14, %c0_15] : memref<2x16x16x128xf32, #tpu.memory_space<vmem>>, vector<2x16x16x128xf32>
    tpu.vector_store %arg5[%c0_12, %c0_13, %c0_14, %c0_15], %25 {strides = array<i32>} : memref<2x16x16x128xf32, #tpu.memory_space<vmem>>, vector<2x16x16x128xf32>,
    return
  }
  func.func @transform_0(%arg0: i32) -> (i32, i32, i32, i32) {
    %c0_i32 = arith.constant 0 : i32
    %c0_i32_0 = arith.constant 0 : i32
    %c0_i32_1 = arith.constant 0 : i32
    %c0_i32_2 = arith.constant 0 : i32
    return %arg0, %c0_i32, %c0_i32_0, %c0_i32_1 : i32, i32, i32, i32
  }
  func.func @transform_1(%arg0: i32) -> (i32, i32) {
    %c0_i32 = arith.constant 0 : i32
    %c0_i32_0 = arith.constant 0 : i32
    %c0_i32_1 = arith.constant 0 : i32
    return %c0_i32, %c0_i32_0 : i32, i32
  }
  func.func @transform_2(%arg0: i32) -> (i32, i32) {
    %c0_i32 = arith.constant 0 : i32
    %c0_i32_0 = arith.constant 0 : i32
    %c0_i32_1 = arith.constant 0 : i32
    return %c0_i32, %c0_i32_0 : i32, i32
  }
  func.func @transform_3(%arg0: i32) -> (i32, i32) {
    %c0_i32 = arith.constant 0 : i32
    %c0_i32_0 = arith.constant 0 : i32
    %c0_i32_1 = arith.constant 0 : i32
    return %c0_i32, %c0_i32_0 : i32, i32
  }
  func.func @transform_4(%arg0: i32) -> (i32, i32, i32, i32) {
    %c0_i32 = arith.constant 0 : i32
    %c0_i32_0 = arith.constant 0 : i32
    %c0_i32_1 = arith.constant 0 : i32
    %c0_i32_2 = arith.constant 0 : i32
    return %arg0, %c0_i32, %c0_i32_0, %c0_i32_1 : i32, i32, i32, i32
  }
  func.func @transform_5(%arg0: i32) -> (i32, i32, i32) {
    %c0_i32 = arith.constant 0 : i32
    %c0_i32_0 = arith.constant 0 : i32
    %c0_i32_1 = arith.constant 0 : i32
    return %arg0, %c0_i32, %c0_i32_0 : i32, i32, i32
  }
}

module attributes {stable_mosaic.version = 11 : i64} {
  func.func @bn_relu_kernel(%arg0: i32, %arg1: memref<512x128xf32, #tpu.memory_space<vmem>>, %arg2: memref<1x128xf32, #tpu.memory_space<vmem>>, %arg3: memref<1x128xf32, #tpu.memory_space<vmem>>, %arg4: memref<512x128xf32, #tpu.memory_space<vmem>>) attributes {dimension_semantics = [#tpu.dimension_semantics<parallel>], iteration_bounds = array<i64: 1>, scalar_prefetch = 0 : i64, scratch_operands = 0 : i64, tpu.core_type = #tpu.core_type<tc>, window_params = [{transform_indices = @transform_0, window_bounds = array<i64: 512, 128>}, {pipeline_mode = #tpu.pipeline_mode<synchronous>, transform_indices = @transform_1, window_bounds = array<i64: 1, 128>}, {pipeline_mode = #tpu.pipeline_mode<synchronous>, transform_indices = @transform_2, window_bounds = array<i64: 1, 128>}, {transform_indices = @transform_3, window_bounds = array<i64: 512, 128>}]} {
    %c0 = arith.constant 0 : index
    %c0_0 = arith.constant 0 : index
    %0 = vector.load %arg1[%c0, %c0_0] : memref<512x128xf32, #tpu.memory_space<vmem>>, vector<512x128xf32>
    %c0_1 = arith.constant 0 : index
    %c0_2 = arith.constant 0 : index
    %1 = vector.load %arg2[%c0_1, %c0_2] : memref<1x128xf32, #tpu.memory_space<vmem>>, vector<1x128xf32>
    %2 = vector.broadcast %1 : vector<1x128xf32> to vector<512x128xf32>
    %3 = arith.mulf %0, %2 : vector<512x128xf32>
    %c0_3 = arith.constant 0 : index
    %c0_4 = arith.constant 0 : index
    %4 = vector.load %arg3[%c0_3, %c0_4] : memref<1x128xf32, #tpu.memory_space<vmem>>, vector<1x128xf32>
    %5 = vector.broadcast %4 : vector<1x128xf32> to vector<512x128xf32>
    %6 = arith.addf %3, %5 : vector<512x128xf32>
    %cst = arith.constant 0.000000e+00 : f32
    %7 = vector.broadcast %cst : f32 to vector<512x128xf32>
    %8 = arith.maximumf %6, %7 : vector<512x128xf32>
    %c0_5 = arith.constant 0 : index
    %c0_6 = arith.constant 0 : index
    %9 = vector.load %arg4[%c0_5, %c0_6] : memref<512x128xf32, #tpu.memory_space<vmem>>, vector<512x128xf32>
    tpu.vector_store %arg4[%c0_5, %c0_6], %8 {strides = array<i32>} : memref<512x128xf32, #tpu.memory_space<vmem>>, vector<512x128xf32>,
    return
  }
  func.func @transform_0(%arg0: i32) -> (i32, i32) {
    %c0_i32 = arith.constant 0 : i32
    %c0_i32_0 = arith.constant 0 : i32
    return %arg0, %c0_i32 : i32, i32
  }
  func.func @transform_1(%arg0: i32) -> (i32, i32) {
    %c0_i32 = arith.constant 0 : i32
    %c0_i32_0 = arith.constant 0 : i32
    %c0_i32_1 = arith.constant 0 : i32
    return %c0_i32, %c0_i32_0 : i32, i32
  }
  func.func @transform_2(%arg0: i32) -> (i32, i32) {
    %c0_i32 = arith.constant 0 : i32
    %c0_i32_0 = arith.constant 0 : i32
    %c0_i32_1 = arith.constant 0 : i32
    return %c0_i32, %c0_i32_0 : i32, i32
  }
  func.func @transform_3(%arg0: i32) -> (i32, i32) {
    %c0_i32 = arith.constant 0 : i32
    %c0_i32_0 = arith.constant 0 : i32
    return %arg0, %c0_i32 : i32, i32
  }
}

module attributes {stable_mosaic.version = 11 : i64} {
  func.func @conv_stats_kernel(%arg0: i32, %arg1: memref<2x16x16x128xf32, #tpu.memory_space<vmem>>, %arg2: memref<1152x128xf32, #tpu.memory_space<vmem>>, %arg3: memref<1x128xf32, #tpu.memory_space<vmem>>, %arg4: memref<1x128xf32, #tpu.memory_space<vmem>>, %arg5: memref<2x16x16x128xf32, #tpu.memory_space<vmem>>, %arg6: memref<1x2x128xf32, #tpu.memory_space<vmem>>) attributes {dimension_semantics = [#tpu.dimension_semantics<parallel>], iteration_bounds = array<i64: 1>, scalar_prefetch = 0 : i64, scratch_operands = 0 : i64, tpu.core_type = #tpu.core_type<tc>, window_params = [{transform_indices = @transform_0, window_bounds = array<i64: 2, 16, 16, 128>}, {pipeline_mode = #tpu.pipeline_mode<synchronous>, transform_indices = @transform_1, window_bounds = array<i64: 1152, 128>}, {pipeline_mode = #tpu.pipeline_mode<synchronous>, transform_indices = @transform_2, window_bounds = array<i64: 1, 128>}, {pipeline_mode = #tpu.pipeline_mode<synchronous>, transform_indices = @transform_3, window_bounds = array<i64: 1, 128>}, {transform_indices = @transform_4, window_bounds = array<i64: 2, 16, 16, 128>}, {transform_indices = @transform_5, window_bounds = array<i64: 1, 2, 128>}]} {
    %c0 = arith.constant 0 : index
    %c0_0 = arith.constant 0 : index
    %c0_1 = arith.constant 0 : index
    %c0_2 = arith.constant 0 : index
    %0 = vector.load %arg1[%c0, %c0_0, %c0_1, %c0_2] : memref<2x16x16x128xf32, #tpu.memory_space<vmem>>, vector<2x16x16x128xf32>
    %c0_3 = arith.constant 0 : index
    %c0_4 = arith.constant 0 : index
    %1 = vector.load %arg3[%c0_3, %c0_4] : memref<1x128xf32, #tpu.memory_space<vmem>>, vector<1x128xf32>
    %2 = vector.shape_cast %1 : vector<1x128xf32> to vector<1x1x1x128xf32>
    %c0_5 = arith.constant 0 : index
    %c0_6 = arith.constant 0 : index
    %3 = vector.load %arg4[%c0_5, %c0_6] : memref<1x128xf32, #tpu.memory_space<vmem>>, vector<1x128xf32>
    %4 = vector.shape_cast %3 : vector<1x128xf32> to vector<1x1x1x128xf32>
    %5 = vector.broadcast %2 : vector<1x1x1x128xf32> to vector<2x16x16x128xf32>
    %6 = arith.mulf %0, %5 : vector<2x16x16x128xf32>
    %7 = vector.broadcast %4 : vector<1x1x1x128xf32> to vector<2x16x16x128xf32>
    %8 = arith.addf %6, %7 : vector<2x16x16x128xf32>
    %cst = arith.constant 0.000000e+00 : f32
    %9 = vector.broadcast %cst : f32 to vector<2x16x16x128xf32>
    %10 = arith.maximumf %8, %9 : vector<2x16x16x128xf32>
    %cst_7 = arith.constant 0.000000e+00 : f32
    %11 = vector.broadcast %cst_7 : f32 to vector<2x1x16x128xf32>
    %12 = tpu.concatenate %11, %10, %11 in 1 : vector<2x1x16x128xf32>, vector<2x16x16x128xf32>, vector<2x1x16x128xf32> -> vector<2x18x16x128xf32>
    %cst_8 = arith.constant 0.000000e+00 : f32
    %13 = vector.broadcast %cst_8 : f32 to vector<2x18x1x128xf32>
    %14 = tpu.concatenate %13, %12, %13 in 2 : vector<2x18x1x128xf32>, vector<2x18x16x128xf32>, vector<2x18x1x128xf32> -> vector<2x18x18x128xf32>
    %15 = vector.extract_strided_slice %14 {offsets = [0, 0, 0, 0], sizes = [2, 18, 16, 128], strides = [1, 1, 1, 1]} : vector<2x18x18x128xf32> to vector<2x18x16x128xf32>
    %16 = vector.extract_strided_slice %14 {offsets = [0, 0, 1, 0], sizes = [2, 18, 16, 128], strides = [1, 1, 1, 1]} : vector<2x18x18x128xf32> to vector<2x18x16x128xf32>
    %17 = vector.extract_strided_slice %14 {offsets = [0, 0, 2, 0], sizes = [2, 18, 16, 128], strides = [1, 1, 1, 1]} : vector<2x18x18x128xf32> to vector<2x18x16x128xf32>
    %18 = tpu.concatenate %15, %16, %17 in 3 : vector<2x18x16x128xf32>, vector<2x18x16x128xf32>, vector<2x18x16x128xf32> -> vector<2x18x16x384xf32>
    %19 = vector.extract_strided_slice %18 {offsets = [0, 0, 0, 0], sizes = [2, 16, 16, 384], strides = [1, 1, 1, 1]} : vector<2x18x16x384xf32> to vector<2x16x16x384xf32>
    %20 = vector.extract_strided_slice %18 {offsets = [0, 1, 0, 0], sizes = [2, 16, 16, 384], strides = [1, 1, 1, 1]} : vector<2x18x16x384xf32> to vector<2x16x16x384xf32>
    %21 = vector.extract_strided_slice %18 {offsets = [0, 2, 0, 0], sizes = [2, 16, 16, 384], strides = [1, 1, 1, 1]} : vector<2x18x16x384xf32> to vector<2x16x16x384xf32>
    %22 = tpu.concatenate %19, %20, %21 in 3 : vector<2x16x16x384xf32>, vector<2x16x16x384xf32>, vector<2x16x16x384xf32> -> vector<2x16x16x1152xf32>
    %23 = vector.shape_cast %22 : vector<2x16x16x1152xf32> to vector<512x1152xf32>
    %c0_9 = arith.constant 0 : index
    %c0_10 = arith.constant 0 : index
    %24 = vector.load %arg2[%c0_9, %c0_10] : memref<1152x128xf32, #tpu.memory_space<vmem>>, vector<1152x128xf32>
    %cst_11 = arith.constant dense<0.000000e+00> : vector<512x128xf32>
    %25 = tpu.matmul %23, %24, %cst_11 {dimension_numbers = #tpu.dot_dimension_numbers<[1], [0], [0], [1], [0, 0, 1, 1], [], []>} : vector<512x1152xf32>, vector<1152x128xf32>, vector<512x128xf32> -> vector<512x128xf32>
    %cst_12 = arith.constant dense<0.000000e+00> : vector<128xf32>
    %26 = vector.multi_reduction <add>, %25, %cst_12 [0] : vector<512x128xf32> to vector<128xf32>
    %27 = vector.shape_cast %26 : vector<128xf32> to vector<1x128xf32>
    %28 = arith.mulf %25, %25 : vector<512x128xf32>
    %cst_13 = arith.constant dense<0.000000e+00> : vector<128xf32>
    %29 = vector.multi_reduction <add>, %28, %cst_13 [0] : vector<512x128xf32> to vector<128xf32>
    %30 = vector.shape_cast %29 : vector<128xf32> to vector<1x128xf32>
    %31 = tpu.concatenate %27, %30 in 0 : vector<1x128xf32>, vector<1x128xf32> -> vector<2x128xf32>
    %c0_14 = arith.constant 0 : index
    %c0_15 = arith.constant 0 : index
    %c0_16 = arith.constant 0 : index
    %32 = vector.load %arg6[%c0_14, %c0_15, %c0_16] : memref<1x2x128xf32, #tpu.memory_space<vmem>>, vector<1x2x128xf32>
    %33 = vector.shape_cast %32 : vector<1x2x128xf32> to vector<2x128xf32>
    %34 = vector.shape_cast %31 : vector<2x128xf32> to vector<1x2x128xf32>
    tpu.vector_store %arg6[%c0_14, %c0_15, %c0_16], %34 {strides = array<i32>} : memref<1x2x128xf32, #tpu.memory_space<vmem>>, vector<1x2x128xf32>,
    %35 = vector.shape_cast %25 : vector<512x128xf32> to vector<2x16x16x128xf32>
    %c0_17 = arith.constant 0 : index
    %c0_18 = arith.constant 0 : index
    %c0_19 = arith.constant 0 : index
    %c0_20 = arith.constant 0 : index
    %36 = vector.load %arg5[%c0_17, %c0_18, %c0_19, %c0_20] : memref<2x16x16x128xf32, #tpu.memory_space<vmem>>, vector<2x16x16x128xf32>
    tpu.vector_store %arg5[%c0_17, %c0_18, %c0_19, %c0_20], %35 {strides = array<i32>} : memref<2x16x16x128xf32, #tpu.memory_space<vmem>>, vector<2x16x16x128xf32>,
    return
  }
  func.func @transform_0(%arg0: i32) -> (i32, i32, i32, i32) {
    %c0_i32 = arith.constant 0 : i32
    %c0_i32_0 = arith.constant 0 : i32
    %c0_i32_1 = arith.constant 0 : i32
    %c0_i32_2 = arith.constant 0 : i32
    return %arg0, %c0_i32, %c0_i32_0, %c0_i32_1 : i32, i32, i32, i32
  }
  func.func @transform_1(%arg0: i32) -> (i32, i32) {
    %c0_i32 = arith.constant 0 : i32
    %c0_i32_0 = arith.constant 0 : i32
    %c0_i32_1 = arith.constant 0 : i32
    return %c0_i32, %c0_i32_0 : i32, i32
  }
  func.func @transform_2(%arg0: i32) -> (i32, i32) {
    %c0_i32 = arith.constant 0 : i32
    %c0_i32_0 = arith.constant 0 : i32
    %c0_i32_1 = arith.constant 0 : i32
    return %c0_i32, %c0_i32_0 : i32, i32
  }
  func.func @transform_3(%arg0: i32) -> (i32, i32) {
    %c0_i32 = arith.constant 0 : i32
    %c0_i32_0 = arith.constant 0 : i32
    %c0_i32_1 = arith.constant 0 : i32
    return %c0_i32, %c0_i32_0 : i32, i32
  }
  func.func @transform_4(%arg0: i32) -> (i32, i32, i32, i32) {
    %c0_i32 = arith.constant 0 : i32
    %c0_i32_0 = arith.constant 0 : i32
    %c0_i32_1 = arith.constant 0 : i32
    %c0_i32_2 = arith.constant 0 : i32
    return %arg0, %c0_i32, %c0_i32_0, %c0_i32_1 : i32, i32, i32, i32
  }
  func.func @transform_5(%arg0: i32) -> (i32, i32, i32) {
    %c0_i32 = arith.constant 0 : i32
    %c0_i32_0 = arith.constant 0 : i32
    %c0_i32_1 = arith.constant 0 : i32
    return %arg0, %c0_i32, %c0_i32_0 : i32, i32, i32
  }
}

</mosaic_0001>

<bundles_post_ra>
// kernel: _lambda_.7
= control target key start
LH: loop header
LB: loop body
LE: loop exit
PB: predicated region body
PF: predicated region fallthrough
CT: control target
= control target key end

     0   :  { %s896_s0 = inlined_call_operand.vmem [shape: f32[512,128], index: 0, kind: input, shape index: {}]   ;;  %s897_s1 = inlined_call_operand.vmem [shape: f32[1,128], index: 1, kind: input, shape index: {}]   ;;  %s898_s2 = inlined_call_operand.vmem [shape: f32[1,128], index: 2, kind: input, shape index: {}]   ;;  %s899_s3 = inlined_call_operand.vmem [shape: f32[512,128], index: 3, kind: output, shape index: {}]  }
   0x1   :  { %v14_v0 = vld [vmem:[%s896_s0] sm:$0xff]  ;;  %v15_v4 = vld [vmem:[%s896_s0 + $0x8] sm:$0xff]  ;;  %v16_v5 = vld [vmem:[%s896_s0 + $0x10] sm:$0xff] }
   0x2   :  { %v380_v1 = vld [vmem:[%s897_s1] ss:$0 sm:$0xff]  ;;  %v17_v6 = vld [vmem:[%s896_s0 + $0x18] sm:$0xff]  ;;  %v19_v11 = vld [vmem:[%s896_s0 + $0x28] sm:$0xff] }
   0x3   :  { %v385_v2 = vld [vmem:[%s898_s2] ss:$0 sm:$0xff]  ;;  %v85_v3 = vmul.f32 %v380_v1, %v14_v0  ;;  %v86_v7 = vmul.f32 %v380_v1, %v15_v4  ;;  %v87_v8 = vmul.f32 %v380_v1, %v16_v5  ;;  %v88_v9 = vmul.f32 %v380_v1, %v17_v6  ;;  %v20_v12 = vld [vmem:[%s896_s0 + $0x30] sm:$0xff]  ;;  %v21_v17 = vld [vmem:[%s896_s0 + $0x38] sm:$0xff] }
   0x4   :  { %v18_v10 = vld [vmem:[%s896_s0 + $0x20] sm:$0xff]  ;;  %v90_v15 = vmul.f32 %v380_v1, %v19_v11  ;;  %v91_v16 = vmul.f32 %v380_v1, %v20_v12  ;;  %v92_v21 = vmul.f32 %v380_v1, %v21_v17  ;;  %v23_v27 = vld [vmem:[%s896_s0 + $0x48] sm:$0xff]  ;;  %v24_v28 = vld [vmem:[%s896_s0 + $0x50] sm:$0xff] }
   0x5   :  { %v156_v13 = vadd.f32 %v385_v2, %v85_v3  ;;  %v89_v14 = vmul.f32 %v380_v1, %v18_v10  ;;  %v157_v18 = vadd.f32 %v385_v2, %v86_v7  ;;  %v158_v19 = vadd.f32 %v385_v2, %v87_v8  ;;  %v22_v22 = vld [vmem:[%s896_s0 + $0x40] sm:$0xff]  ;;  %v25_v29 = vld [vmem:[%s896_s0 + $0x58] sm:$0xff]  ;;  %v27_v35 = vld [vmem:[%s896_s0 + $0x68] sm:$0xff] }
   0x6   :  { %v159_v20 = vadd.f32 %v385_v2, %v88_v9  ;;  %v161_v25 = vadd.f32 %v385_v2, %v90_v15  ;;  %v162_v26 = vadd.f32 %v385_v2, %v91_v16  ;;  %v163_v33 = vadd.f32 %v385_v2, %v92_v21  ;;  %v26_v34 = vld [vmem:[%s896_s0 + $0x60] sm:$0xff]  ;;  %v28_v36 = vld [vmem:[%s896_s0 + $0x70] sm:$0xff]  ;;  %v29_v41 = vld [vmem:[%s896_s0 + $0x78] sm:$0xff] }
   0x7   :  { %v220_v23 = vmax.f32 %v156_v13, 0.0  ;;  %v160_v24 = vadd.f32 %v385_v2, %v89_v14  ;;  %v221_v30 = vmax.f32 %v157_v18, 0.0  ;;  %v222_v31 = vmax.f32 %v158_v19, 0.0  ;;  %v30_v54 = vld [vmem:[%s896_s0 + $0x80] sm:$0xff]  ;;  %v31_v59 = vld [vmem:[%s896_s0 + $0x88] sm:$0xff]  ;;  %v32_v60 = vld [vmem:[%s896_s0 + $0x90] sm:$0xff] }
   0x8   :  { %v223_v32 = vmax.f32 %v159_v20, 0.0  ;;  %v225_v38 = vmax.f32 %v161_v25, 0.0  ;;  %v226_v39 = vmax.f32 %v162_v26, 0.0  ;;  %v93_v40 = vmul.f32 %v380_v1, %v22_v22  ;;  %v33_v61 = vld [vmem:[%s896_s0 + $0x98] sm:$0xff]  ;;  %v34_v4 = vld [vmem:[%s896_s0 + $0xa0] sm:$0xff]  ;;  %v35_v5 = vld [vmem:[%s896_s0 + $0xa8] sm:$0xff] }
   0x9   :  { %284 = vst [vmem:[%s899_s3] sm:$0xff] %v220_v23  ;;  %v224_v37 = vmax.f32 %v160_v24, 0.0  ;;  %285 = vst [vmem:[%s899_s3 + $0x8] sm:$0xff] %v221_v30  ;;  %v227_v42 = vmax.f32 %v163_v33, 0.0  ;;  %v94_v43 = vmul.f32 %v380_v1, %v23_v27  ;;  %v95_v44 = vmul.f32 %v380_v1, %v24_v28  ;;  %v36_v6 = vld [vmem:[%s896_s0 + $0xb0] sm:$0xff]  ;;  %v37_v11 = vld [vmem:[%s896_s0 + $0xb8] sm:$0xff] }
   0xa   :  { %286 = vst [vmem:[%s899_s3 + $0x10] sm:$0xff] %v222_v31  ;;  %287 = vst [vmem:[%s899_s3 + $0x18] sm:$0xff] %v223_v32  ;;  %v96_v45 = vmul.f32 %v380_v1, %v25_v29  ;;  %v164_v46 = vadd.f32 %v385_v2, %v93_v40  ;;  %v97_v47 = vmul.f32 %v380_v1, %v26_v34  ;;  %v38_v24 = vld [vmem:[%s896_s0 + $0xc0] sm:$0xff]  ;;  %v39_v29 = vld [vmem:[%s896_s0 + $0xc8] sm:$0xff] }
   0xb   :  { %288 = vst [vmem:[%s899_s3 + $0x20] sm:$0xff] %v224_v37  ;;  %289 = vst [vmem:[%s899_s3 + $0x28] sm:$0xff] %v225_v38  ;;  %v98_v48 = vmul.f32 %v380_v1, %v27_v35  ;;  %v99_v49 = vmul.f32 %v380_v1, %v28_v36  ;;  %v165_v50 = vadd.f32 %v385_v2, %v94_v43  ;;  %v40_v30 = vld [vmem:[%s896_s0 + $0xd0] sm:$0xff]  ;;  %v41_v31 = vld [vmem:[%s896_s0 + $0xd8] sm:$0xff] }
   0xc   :  { %290 = vst [vmem:[%s899_s3 + $0x30] sm:$0xff] %v226_v39  ;;  %291 = vst [vmem:[%s899_s3 + $0x38] sm:$0xff] %v227_v42  ;;  %v166_v51 = vadd.f32 %v385_v2, %v95_v44  ;;  %v167_v52 = vadd.f32 %v385_v2, %v96_v45  ;;  %v100_v53 = vmul.f32 %v380_v1, %v29_v41  ;;  %v228_v55 = vmax.f32 %v164_v46, 0.0  ;;  %v42_v36 = vld [vmem:[%s896_s0 + $0xe0] sm:$0xff]  ;;  %v43_v37 = vld [vmem:[%s896_s0 + $0xe8] sm:$0xff] }
   0xd   :  { %v168_v56 = vadd.f32 %v385_v2, %v97_v47  ;;  %v169_v57 = vadd.f32 %v385_v2, %v98_v48  ;;  %v170_v58 = vadd.f32 %v385_v2, %v99_v49  ;;  %v229_v62 = vmax.f32 %v165_v50, 0.0  ;;  %v44_v38 = vld [vmem:[%s896_s0 + $0xf0] sm:$0xff]  ;;  %v45_v43 = vld [vmem:[%s896_s0 + $0xf8] sm:$0xff] }
   0xe   :  { %v230_v63 = vmax.f32 %v166_v51, 0.0  ;;  %v231_v0 = vmax.f32 %v167_v52, 0.0  ;;  %v171_v3 = vadd.f32 %v385_v2, %v100_v53  ;;  %292 = vst [vmem:[%s899_s3 + $0x40] sm:$0xff] %v228_v55  ;;  %v101_v10 = vmul.f32 %v380_v1, %v30_v54 }
   0xf   :  { %v232_v7 = vmax.f32 %v168_v56, 0.0  ;;  %v233_v8 = vmax.f32 %v169_v57, 0.0  ;;  %v234_v9 = vmax.f32 %v170_v58, 0.0  ;;  %293 = vst [vmem:[%s899_s3 + $0x48] sm:$0xff] %v229_v62  ;;  %v102_v13 = vmul.f32 %v380_v1, %v31_v59  ;;  %v46_v56 = vld [vmem:[%s896_s0 + $0x100] sm:$0xff]  ;;  %v48_v62 = vld [vmem:[%s896_s0 + $0x110] sm:$0xff] }
  0x10   :  { %294 = vst [vmem:[%s899_s3 + $0x50] sm:$0xff] %v230_v63  ;;  %295 = vst [vmem:[%s899_s3 + $0x58] sm:$0xff] %v231_v0  ;;  %v235_v12 = vmax.f32 %v171_v3, 0.0  ;;  %v103_v14 = vmul.f32 %v380_v1, %v32_v60  ;;  %v104_v15 = vmul.f32 %v380_v1, %v33_v61  ;;  %v172_v16 = vadd.f32 %v385_v2, %v101_v10  ;;  %v47_v61 = vld [vmem:[%s896_s0 + $0x108] sm:$0xff]  ;;  %v49_v63 = vld [vmem:[%s896_s0 + $0x118] sm:$0xff] }
  0x11   :  { %296 = vst [vmem:[%s899_s3 + $0x60] sm:$0xff] %v232_v7  ;;  %297 = vst [vmem:[%s899_s3 + $0x68] sm:$0xff] %v233_v8  ;;  %v105_v17 = vmul.f32 %v380_v1, %v34_v4  ;;  %v106_v18 = vmul.f32 %v380_v1, %v35_v5  ;;  %v107_v19 = vmul.f32 %v380_v1, %v36_v6  ;;  %v50_v6 = vld [vmem:[%s896_s0 + $0x120] sm:$0xff]  ;;  %v51_v7 = vld [vmem:[%s896_s0 + $0x128] sm:$0xff] }
  0x12   :  { %298 = vst [vmem:[%s899_s3 + $0x70] sm:$0xff] %v234_v9  ;;  %299 = vst [vmem:[%s899_s3 + $0x78] sm:$0xff] %v235_v12  ;;  %v173_v20 = vadd.f32 %v385_v2, %v102_v13  ;;  %v174_v21 = vadd.f32 %v385_v2, %v103_v14  ;;  %v175_v22 = vadd.f32 %v385_v2, %v104_v15  ;;  %v236_v25 = vmax.f32 %v172_v16, 0.0  ;;  %v52_v8 = vld [vmem:[%s896_s0 + $0x130] sm:$0xff]  ;;  %v53_v13 = vld [vmem:[%s896_s0 + $0x138] sm:$0xff] }
  0x13   :  { %v108_v23 = vmul.f32 %v380_v1, %v37_v11  ;;  %v176_v26 = vadd.f32 %v385_v2, %v105_v17  ;;  %v177_v27 = vadd.f32 %v385_v2, %v106_v18  ;;  %v178_v28 = vadd.f32 %v385_v2, %v107_v19 }
  0x14   :  { %v237_v32 = vmax.f32 %v173_v20, 0.0  ;;  %v238_v33 = vmax.f32 %v174_v21, 0.0  ;;  %v239_v34 = vmax.f32 %v175_v22, 0.0  ;;  %300 = vst [vmem:[%s899_s3 + $0x80] sm:$0xff] %v236_v25  ;;  %v109_v42 = vmul.f32 %v380_v1, %v38_v24 }
  0x15   :  { %v179_v35 = vadd.f32 %v385_v2, %v108_v23  ;;  %v240_v39 = vmax.f32 %v176_v26, 0.0  ;;  %v241_v40 = vmax.f32 %v177_v27, 0.0  ;;  %v242_v41 = vmax.f32 %v178_v28, 0.0  ;;  %v54_v26 = vld [vmem:[%s896_s0 + $0x140] sm:$0xff] }
  0x16   :  { %301 = vst [vmem:[%s899_s3 + $0x88] sm:$0xff] %v237_v32  ;;  %302 = vst [vmem:[%s899_s3 + $0x90] sm:$0xff] %v238_v33  ;;  %v110_v45 = vmul.f32 %v380_v1, %v39_v29  ;;  %v111_v46 = vmul.f32 %v380_v1, %v40_v30  ;;  %v112_v47 = vmul.f32 %v380_v1, %v41_v31  ;;  %v55_v31 = vld [vmem:[%s896_s0 + $0x148] sm:$0xff]  ;;  %v56_v32 = vld [vmem:[%s896_s0 + $0x150] sm:$0xff] }
  0x17   :  { %303 = vst [vmem:[%s899_s3 + $0x98] sm:$0xff] %v239_v34  ;;  %v243_v44 = vmax.f32 %v179_v35, 0.0  ;;  %304 = vst [vmem:[%s899_s3 + $0xa0] sm:$0xff] %v240_v39  ;;  %v180_v48 = vadd.f32 %v385_v2, %v109_v42  ;;  %v113_v49 = vmul.f32 %v380_v1, %v42_v36  ;;  %v114_v50 = vmul.f32 %v380_v1, %v43_v37  ;;  %v57_v33 = vld [vmem:[%s896_s0 + $0x158] sm:$0xff]  ;;  %v59_v39 = vld [vmem:[%s896_s0 + $0x168] sm:$0xff] }
  0x18   :  { %305 = vst [vmem:[%s899_s3 + $0xa8] sm:$0xff] %v241_v40  ;;  %306 = vst [vmem:[%s899_s3 + $0xb0] sm:$0xff] %v242_v41  ;;  %v115_v51 = vmul.f32 %v380_v1, %v44_v38  ;;  %v181_v52 = vadd.f32 %v385_v2, %v110_v45  ;;  %v182_v53 = vadd.f32 %v385_v2, %v111_v46  ;;  %v58_v38 = vld [vmem:[%s896_s0 + $0x160] sm:$0xff]  ;;  %v60_v40 = vld [vmem:[%s896_s0 + $0x170] sm:$0xff] }
  0x19   :  { %307 = vst [vmem:[%s899_s3 + $0xb8] sm:$0xff] %v243_v44  ;;  %v183_v54 = vadd.f32 %v385_v2, %v112_v47  ;;  %v116_v55 = vmul.f32 %v380_v1, %v45_v43  ;;  %v244_v57 = vmax.f32 %v180_v48, 0.0  ;;  %v184_v58 = vadd.f32 %v385_v2, %v113_v49  ;;  %v61_v45 = vld [vmem:[%s896_s0 + $0x178] sm:$0xff] }
  0x1a   :  { %v185_v59 = vadd.f32 %v385_v2, %v114_v50  ;;  %v186_v60 = vadd.f32 %v385_v2, %v115_v51  ;;  %v245_v0 = vmax.f32 %v181_v52, 0.0  ;;  %v246_v3 = vmax.f32 %v182_v53, 0.0 }
  0x1b   :  { %v247_v4 = vmax.f32 %v183_v54, 0.0  ;;  %v187_v5 = vadd.f32 %v385_v2, %v116_v55  ;;  %308 = vst [vmem:[%s899_s3 + $0xc0] sm:$0xff] %v244_v57  ;;  %v248_v9 = vmax.f32 %v184_v58, 0.0  ;;  %v117_v12 = vmul.f32 %v380_v1, %v46_v56  ;;  %v62_v58 = vld [vmem:[%s896_s0 + $0x180] sm:$0xff] }
  0x1c   :  { %v249_v10 = vmax.f32 %v185_v59, 0.0  ;;  %v250_v11 = vmax.f32 %v186_v60, 0.0  ;;  %309 = vst [vmem:[%s899_s3 + $0xc8] sm:$0xff] %v245_v0  ;;  %310 = vst [vmem:[%s899_s3 + $0xd0] sm:$0xff] %v246_v3  ;;  %v118_v15 = vmul.f32 %v380_v1, %v47_v61  ;;  %v119_v16 = vmul.f32 %v380_v1, %v48_v62  ;;  %v64_v0 = vld [vmem:[%s896_s0 + $0x190] sm:$0xff]  ;;  %v65_v3 = vld [vmem:[%s896_s0 + $0x198] sm:$0xff] }
  0x1d   :  { %311 = vst [vmem:[%s899_s3 + $0xd8] sm:$0xff] %v247_v4  ;;  %v251_v14 = vmax.f32 %v187_v5, 0.0  ;;  %v120_v17 = vmul.f32 %v380_v1, %v49_v63  ;;  %312 = vst [vmem:[%s899_s3 + $0xe0] sm:$0xff] %v248_v9  ;;  %v188_v18 = vadd.f32 %v385_v2, %v117_v12  ;;  %v121_v19 = vmul.f32 %v380_v1, %v50_v6  ;;  %v63_v63 = vld [vmem:[%s896_s0 + $0x188] sm:$0xff] }
  0x1e   :  { %313 = vst [vmem:[%s899_s3 + $0xe8] sm:$0xff] %v249_v10  ;;  %314 = vst [vmem:[%s899_s3 + $0xf0] sm:$0xff] %v250_v11  ;;  %v122_v20 = vmul.f32 %v380_v1, %v51_v7  ;;  %v123_v21 = vmul.f32 %v380_v1, %v52_v8  ;;  %v189_v22 = vadd.f32 %v385_v2, %v118_v15  ;;  %v66_v8 = vld [vmem:[%s896_s0 + $0x1a0] sm:$0xff]  ;;  %v67_v9 = vld [vmem:[%s896_s0 + $0x1a8] sm:$0xff] }
  0x1f   :  { %315 = vst [vmem:[%s899_s3 + $0xf8] sm:$0xff] %v251_v14  ;;  %v190_v23 = vadd.f32 %v385_v2, %v119_v16  ;;  %v191_v24 = vadd.f32 %v385_v2, %v120_v17  ;;  %v124_v25 = vmul.f32 %v380_v1, %v53_v13  ;;  %v252_v27 = vmax.f32 %v188_v18, 0.0  ;;  %v68_v10 = vld [vmem:[%s896_s0 + $0x1b0] sm:$0xff]  ;;  %v69_v15 = vld [vmem:[%s896_s0 + $0x1b8] sm:$0xff] }
  0x20   :  { %v192_v28 = vadd.f32 %v385_v2, %v121_v19  ;;  %v193_v29 = vadd.f32 %v385_v2, %v122_v20  ;;  %v194_v30 = vadd.f32 %v385_v2, %v123_v21  ;;  %v253_v34 = vmax.f32 %v189_v22, 0.0 }
  0x21   :  { %v254_v35 = vmax.f32 %v190_v23, 0.0  ;;  %v255_v36 = vmax.f32 %v191_v24, 0.0  ;;  %v195_v37 = vadd.f32 %v385_v2, %v124_v25  ;;  %316 = vst [vmem:[%s899_s3 + $0x100] sm:$0xff] %v252_v27  ;;  %v125_v44 = vmul.f32 %v380_v1, %v54_v26 }
  0x22   :  { %v256_v41 = vmax.f32 %v192_v28, 0.0  ;;  %v257_v42 = vmax.f32 %v193_v29, 0.0  ;;  %v258_v43 = vmax.f32 %v194_v30, 0.0  ;;  %317 = vst [vmem:[%s899_s3 + $0x108] sm:$0xff] %v253_v34  ;;  %v126_v47 = vmul.f32 %v380_v1, %v55_v31  ;;  %v70_v28 = vld [vmem:[%s896_s0 + $0x1c0] sm:$0xff]  ;;  %v72_v34 = vld [vmem:[%s896_s0 + $0x1d0] sm:$0xff] }
  0x23   :  { %318 = vst [vmem:[%s899_s3 + $0x110] sm:$0xff] %v254_v35  ;;  %319 = vst [vmem:[%s899_s3 + $0x118] sm:$0xff] %v255_v36  ;;  %v259_v46 = vmax.f32 %v195_v37, 0.0  ;;  %v127_v48 = vmul.f32 %v380_v1, %v56_v32  ;;  %v128_v49 = vmul.f32 %v380_v1, %v57_v33  ;;  %v196_v50 = vadd.f32 %v385_v2, %v125_v44  ;;  %v71_v33 = vld [vmem:[%s896_s0 + $0x1c8] sm:$0xff]  ;;  %v73_v35 = vld [vmem:[%s896_s0 + $0x1d8] sm:$0xff] }
  0x24   :  { %320 = vst [vmem:[%s899_s3 + $0x120] sm:$0xff] %v256_v41  ;;  %321 = vst [vmem:[%s899_s3 + $0x128] sm:$0xff] %v257_v42  ;;  %v129_v51 = vmul.f32 %v380_v1, %v58_v38  ;;  %v130_v52 = vmul.f32 %v380_v1, %v59_v39  ;;  %v131_v53 = vmul.f32 %v380_v1, %v60_v40  ;;  %v74_v40 = vld [vmem:[%s896_s0 + $0x1e0] sm:$0xff]  ;;  %v75_v41 = vld [vmem:[%s896_s0 + $0x1e8] sm:$0xff] }
  0x25   :  { %322 = vst [vmem:[%s899_s3 + $0x130] sm:$0xff] %v258_v43  ;;  %323 = vst [vmem:[%s899_s3 + $0x138] sm:$0xff] %v259_v46  ;;  %v197_v54 = vadd.f32 %v385_v2, %v126_v47  ;;  %v198_v55 = vadd.f32 %v385_v2, %v127_v48  ;;  %v199_v56 = vadd.f32 %v385_v2, %v128_v49  ;;  %v260_v59 = vmax.f32 %v196_v50, 0.0  ;;  %v76_v42 = vld [vmem:[%s896_s0 + $0x1f0] sm:$0xff]  ;;  %v77_v47 = vld [vmem:[%s896_s0 + $0x1f8] sm:$0xff] }
  0x26   :  { %v132_v57 = vmul.f32 %v380_v1, %v61_v45  ;;  %v200_v60 = vadd.f32 %v385_v2, %v129_v51  ;;  %v201_v61 = vadd.f32 %v385_v2, %v130_v52  ;;  %v202_v62 = vadd.f32 %v385_v2, %v131_v53 }
  0x27   :  { %v261_v4 = vmax.f32 %v197_v54, 0.0  ;;  %v262_v5 = vmax.f32 %v198_v55, 0.0  ;;  %v263_v6 = vmax.f32 %v199_v56, 0.0  ;;  %324 = vst [vmem:[%s899_s3 + $0x140] sm:$0xff] %v260_v59  ;;  %v133_v14 = vmul.f32 %v380_v1, %v62_v58 }
  0x28   :  { %v203_v7 = vadd.f32 %v385_v2, %v132_v57  ;;  %v264_v11 = vmax.f32 %v200_v60, 0.0  ;;  %v265_v12 = vmax.f32 %v201_v61, 0.0  ;;  %v266_v13 = vmax.f32 %v202_v62, 0.0 }
  0x29   :  { %325 = vst [vmem:[%s899_s3 + $0x148] sm:$0xff] %v261_v4  ;;  %326 = vst [vmem:[%s899_s3 + $0x150] sm:$0xff] %v262_v5  ;;  %v134_v17 = vmul.f32 %v380_v1, %v63_v63  ;;  %v135_v18 = vmul.f32 %v380_v1, %v64_v0  ;;  %v136_v19 = vmul.f32 %v380_v1, %v65_v3 }
  0x2a   :  { %327 = vst [vmem:[%s899_s3 + $0x158] sm:$0xff] %v263_v6  ;;  %v267_v16 = vmax.f32 %v203_v7, 0.0  ;;  %328 = vst [vmem:[%s899_s3 + $0x160] sm:$0xff] %v264_v11  ;;  %v204_v20 = vadd.f32 %v385_v2, %v133_v14  ;;  %v137_v21 = vmul.f32 %v380_v1, %v66_v8  ;;  %v138_v22 = vmul.f32 %v380_v1, %v67_v9 }
  0x2b   :  { %329 = vst [vmem:[%s899_s3 + $0x168] sm:$0xff] %v265_v12  ;;  %330 = vst [vmem:[%s899_s3 + $0x170] sm:$0xff] %v266_v13  ;;  %v139_v23 = vmul.f32 %v380_v1, %v68_v10  ;;  %v205_v24 = vadd.f32 %v385_v2, %v134_v17  ;;  %v206_v25 = vadd.f32 %v385_v2, %v135_v18 }
  0x2c   :  { %331 = vst [vmem:[%s899_s3 + $0x178] sm:$0xff] %v267_v16  ;;  %v207_v26 = vadd.f32 %v385_v2, %v136_v19  ;;  %v140_v27 = vmul.f32 %v380_v1, %v69_v15  ;;  %v268_v29 = vmax.f32 %v204_v20, 0.0  ;;  %v208_v30 = vadd.f32 %v385_v2, %v137_v21 }
  0x2d   :  { %v209_v31 = vadd.f32 %v385_v2, %v138_v22  ;;  %v210_v32 = vadd.f32 %v385_v2, %v139_v23  ;;  %v269_v36 = vmax.f32 %v205_v24, 0.0  ;;  %v270_v37 = vmax.f32 %v206_v25, 0.0 }
  0x2e   :  { %v271_v38 = vmax.f32 %v207_v26, 0.0  ;;  %v211_v39 = vadd.f32 %v385_v2, %v140_v27  ;;  %332 = vst [vmem:[%s899_s3 + $0x180] sm:$0xff] %v268_v29  ;;  %v272_v43 = vmax.f32 %v208_v30, 0.0  ;;  %v141_v46 = vmul.f32 %v380_v1, %v70_v28 }
  0x2f   :  { %v273_v44 = vmax.f32 %v209_v31, 0.0  ;;  %v274_v45 = vmax.f32 %v210_v32, 0.0  ;;  %333 = vst [vmem:[%s899_s3 + $0x188] sm:$0xff] %v269_v36  ;;  %334 = vst [vmem:[%s899_s3 + $0x190] sm:$0xff] %v270_v37  ;;  %v142_v49 = vmul.f32 %v380_v1, %v71_v33  ;;  %v143_v50 = vmul.f32 %v380_v1, %v72_v34 }
  0x30   :  { %335 = vst [vmem:[%s899_s3 + $0x198] sm:$0xff] %v271_v38  ;;  %v275_v48 = vmax.f32 %v211_v39, 0.0  ;;  %v144_v51 = vmul.f32 %v380_v1, %v73_v35  ;;  %336 = vst [vmem:[%s899_s3 + $0x1a0] sm:$0xff] %v272_v43  ;;  %v212_v52 = vadd.f32 %v385_v2, %v141_v46  ;;  %v145_v53 = vmul.f32 %v380_v1, %v74_v40 }
  0x31   :  { %337 = vst [vmem:[%s899_s3 + $0x1a8] sm:$0xff] %v273_v44  ;;  %338 = vst [vmem:[%s899_s3 + $0x1b0] sm:$0xff] %v274_v45  ;;  %v146_v54 = vmul.f32 %v380_v1, %v75_v41  ;;  %v147_v55 = vmul.f32 %v380_v1, %v76_v42  ;;  %v213_v56 = vadd.f32 %v385_v2, %v142_v49 }
  0x32   :  { %339 = vst [vmem:[%s899_s3 + $0x1b8] sm:$0xff] %v275_v48  ;;  %v214_v57 = vadd.f32 %v385_v2, %v143_v50  ;;  %v215_v58 = vadd.f32 %v385_v2, %v144_v51  ;;  %v148_v59 = vmul.f32 %v380_v1, %v77_v47  ;;  %v276_v60 = vmax.f32 %v212_v52, 0.0 }
  0x33   :  { %v216_v61 = vadd.f32 %v385_v2, %v145_v53  ;;  %v217_v62 = vadd.f32 %v385_v2, %v146_v54  ;;  %v218_v63 = vadd.f32 %v385_v2, %v147_v55  ;;  %v277_v0 = vmax.f32 %v213_v56, 0.0 }
  0x34   :  { %v278_v3 = vmax.f32 %v214_v57, 0.0  ;;  %v279_v4 = vmax.f32 %v215_v58, 0.0  ;;  %v219_v5 = vadd.f32 %v385_v2, %v148_v59  ;;  %340 = vst [vmem:[%s899_s3 + $0x1c0] sm:$0xff] %v276_v60 }
  0x35   :  { %v280_v6 = vmax.f32 %v216_v61, 0.0  ;;  %v281_v7 = vmax.f32 %v217_v62, 0.0  ;;  %v282_v8 = vmax.f32 %v218_v63, 0.0  ;;  %341 = vst [vmem:[%s899_s3 + $0x1c8] sm:$0xff] %v277_v0 }
  0x36   :  { %342 = vst [vmem:[%s899_s3 + $0x1d0] sm:$0xff] %v278_v3  ;;  %343 = vst [vmem:[%s899_s3 + $0x1d8] sm:$0xff] %v279_v4  ;;  %v283_v1 = vmax.f32 %v219_v5, 0.0 }
  0x37   :  { %344 = vst [vmem:[%s899_s3 + $0x1e0] sm:$0xff] %v280_v6  ;;  %345 = vst [vmem:[%s899_s3 + $0x1e8] sm:$0xff] %v281_v7 }
  0x38   :  { %346 = vst [vmem:[%s899_s3 + $0x1f0] sm:$0xff] %v282_v8  ;;  %347 = vst [vmem:[%s899_s3 + $0x1f8] sm:$0xff] %v283_v1 }

// kernel: _lambda_.4
= control target key start
LH: loop header
LB: loop body
LE: loop exit
PB: predicated region body
PF: predicated region fallthrough
CT: control target
= control target key end

     0   :  { %v7320_v0 = vmov 0.0   ;;  %vm148_vm0 = vcmask 1040384   ;;  %vm477_vm1 = vcmask 1046528   ;;  %vm709_vm3 = vcmask 1045504   ;;  %s7314_s2 = inlined_call_operand.vmem [shape: f32[1,128], index: 2, kind: input, shape index: {}]   ;;  %s7315_s3 = inlined_call_operand.vmem [shape: f32[1,128], index: 3, kind: input, shape index: {}]   ;;  %s7316_s1 = inlined_call_operand.vmem [shape: f32[1152,128], index: 1, kind: input, shape index: {}]   ;;  %s7317_s0 = inlined_call_operand.vmem [shape: f32[2,16,16,128], index: 0, kind: input, shape index: {}]   ;;  %s7318_s4 = inlined_call_operand.vmem [shape: f32[2,16,16,128], index: 4, kind: output, shape index: {0}]   ;;  %s7319_s5 = inlined_call_operand.vmem [shape: f32[1,2,128], index: 5, kind: output, shape index: {1}]  }
   0x1   :  { %1085 = vmatprep.subr.mxu0 %v7320_v0  ;;  %3686 = vmatprep.subr.mxu1 %v7320_v0  ;;  %v956_v1 = vld [vmem:[%s7316_s1 + $0x78] sm:$0xff]  ;;  %v955_v2 = vld [vmem:[%s7316_s1 + $0x70] sm:$0xff]  ;;  %v954_v3 = vld [vmem:[%s7316_s1 + $0x68] sm:$0xff]  ;;  %v3922_v30 = vrot.slane %v7320_v0, 7 }
   0x2   :  { %1086 = vmatpush1.msra.mxu0 %v956_v1  ;;  %3718 = vmatpush1.msra.mxu1 %v956_v1  ;;  %v953_v4 = vld [vmem:[%s7316_s1 + $0x60] sm:$0xff]  ;;  %v952_v5 = vld [vmem:[%s7316_s1 + $0x58] sm:$0xff]  ;;  %v951_v6 = vld [vmem:[%s7316_s1 + $0x50] sm:$0xff] }
   0x3   :  { %1087 = vmatprep.subr.mxu0 %v7320_v0  ;;  %3687 = vmatprep.subr.mxu1 %v7320_v0  ;;  %v950_v7 = vld [vmem:[%s7316_s1 + $0x48] sm:$0xff]  ;;  %v949_v8 = vld [vmem:[%s7316_s1 + $0x40] sm:$0xff]  ;;  %v948_v9 = vld [vmem:[%s7316_s1 + $0x38] sm:$0xff]  ;;  %7632 = vst [vmem:[#allocation2_spill] sm:$0xff] %v3922_v30  ;;  %v3938_v35 = vsel %vm148_vm0, 0.0, %v3922_v30  ;;  %v479_v44 = vrot.slane %v3922_v30, 1 }
   0x4   :  { %1088 = vmatpush1.msra.mxu0 %v955_v2  ;;  %3719 = vmatpush1.msra.mxu1 %v955_v2  ;;  %v947_v10 = vld [vmem:[%s7316_s1 + $0x30] sm:$0xff]  ;;  %v946_v11 = vld [vmem:[%s7316_s1 + $0x28] sm:$0xff]  ;;  %v945_v12 = vld [vmem:[%s7316_s1 + $0x20] sm:$0xff]  ;;  %v478_v43 = vrot.slane %v3938_v35, 1  ;;  %v3976_v48 = vsel %vm148_vm0, %v3922_v30, 0.0 }
   0x5   :  { %1089 = vmatprep.subr.mxu0 %v7320_v0  ;;  %3688 = vmatprep.subr.mxu1 %v7320_v0  ;;  %v944_v13 = vld [vmem:[%s7316_s1 + $0x18] sm:$0xff]  ;;  %v943_v14 = vld [vmem:[%s7316_s1 + $0x10] sm:$0xff]  ;;  %v942_v15 = vld [vmem:[%s7316_s1 + $0x8] sm:$0xff]  ;;  %v481_v57 = vrot.slane %v3976_v48, 1 }
   0x6   :  { %1090 = vmatpush1.msra.mxu0 %v954_v3  ;;  %3720 = vmatpush1.msra.mxu1 %v954_v3  ;;  %v941_v16 = vld [vmem:[%s7316_s1] sm:$0xff]  ;;  %v972_v17 = vld [vmem:[%s7316_s1 + $0xf8] sm:$0xff]  ;;  %v971_v18 = vld [vmem:[%s7316_s1 + $0xf0] sm:$0xff]  ;;  %v3991_v55 = vsel %vm477_vm1, %v478_v43, %v479_v44 }
   0x7   :  { %1091 = vmatprep.subr.mxu0 %v7320_v0  ;;  %3689 = vmatprep.subr.mxu1 %v7320_v0  ;;  %v970_v19 = vld [vmem:[%s7316_s1 + $0xe8] sm:$0xff]  ;;  %v969_v20 = vld [vmem:[%s7316_s1 + $0xe0] sm:$0xff]  ;;  %v968_v21 = vld [vmem:[%s7316_s1 + $0xd8] sm:$0xff]  ;;  %7638 = vst [vmem:[#allocation8_spill] sm:$0xff] %v3991_v55  ;;  %v4036_v3 = vsel %vm477_vm1, %v479_v44, %v481_v57 }
   0x8   :  { %1092 = vmatpush1.msra.mxu0 %v953_v4  ;;  %3721 = vmatpush1.msra.mxu1 %v953_v4  ;;  %v967_v22 = vld [vmem:[%s7316_s1 + $0xd0] sm:$0xff]  ;;  %v966_v23 = vld [vmem:[%s7316_s1 + $0xc8] sm:$0xff]  ;;  %v965_v24 = vld [vmem:[%s7316_s1 + $0xc0] sm:$0xff]  ;;  %7644 = vst [vmem:[#allocation12_spill] sm:$0xff] %v4036_v3 }
   0x9   :  { %1093 = vmatprep.subr.mxu0 %v7320_v0  ;;  %3690 = vmatprep.subr.mxu1 %v7320_v0  ;;  %v964_v25 = vld [vmem:[%s7316_s1 + $0xb8] sm:$0xff]  ;;  %v65_v26 = vld [vmem:[%s7317_s0 + $0x170] sm:$0xff]  ;;  %v962_v29 = vld [vmem:[%s7316_s1 + $0xa8] sm:$0xff] }
   0xa   :  { %1094 = vmatpush1.msra.mxu0 %v952_v5  ;;  %3722 = vmatpush1.msra.mxu1 %v952_v5  ;;  %v66_v27 = vld [vmem:[%s7317_s0 + $0x178] sm:$0xff]  ;;  %v963_v28 = vld [vmem:[%s7316_s1 + $0xb0] sm:$0xff]  ;;  %v3924_v31 = vrot.slane %v65_v26, 7  ;;  %v961_v33 = vld [vmem:[%s7316_s1 + $0xa0] sm:$0xff] }
   0xb   :  { %1095 = vmatprep.subr.mxu0 %v7320_v0  ;;  %3691 = vmatprep.subr.mxu1 %v7320_v0  ;;  %v221_v32 = vrot.slane %v66_v27, 7  ;;  %v960_v34 = vld [vmem:[%s7316_s1 + $0x98] sm:$0xff]  ;;  %v19_v38 = vld [vmem:[%s7317_s0] sm:$0xff]  ;;  %v20_v39 = vld [vmem:[%s7317_s0 + $0x8] sm:$0xff] }
   0xc   :  { %1096 = vmatpush1.msra.mxu0 %v951_v6  ;;  %3723 = vmatpush1.msra.mxu1 %v951_v6  ;;  %7633 = vst [vmem:[#allocation3_spill] sm:$0xff] %v3924_v31  ;;  %v3946_v37 = vsel %vm148_vm0, 0.0, %v3924_v31  ;;  %v959_v40 = vld [vmem:[%s7316_s1 + $0x90] sm:$0xff]  ;;  %v67_v41 = vld [vmem:[%s7317_s0 + $0x180] sm:$0xff]  ;;  %v68_v42 = vld [vmem:[%s7317_s0 + $0x188] sm:$0xff]  ;;  %v3978_v49 = vrot.slane %v19_v38, 7 }
   0xd   :  { %1097 = vmatprep.subr.mxu0 %v7320_v0  ;;  %3692 = vmatprep.subr.mxu1 %v7320_v0  ;;  %v3942_v36 = vsel %vm148_vm0, %v3924_v31, %v221_v32  ;;  %7635 = vst [vmem:[#allocation5_spill] sm:$0xff] %v3946_v37  ;;  %v598_v45 = vrot.slane %v3946_v37, 1  ;;  %v958_v47 = vld [vmem:[%s7316_s1 + $0x88] sm:$0xff]  ;;  %v152_v50 = vrot.slane %v20_v39, 7  ;;  %v3981_v51 = vsel %vm148_vm0, %v221_v32, 0.0  ;;  %v957_v54 = vld [vmem:[%s7316_s1 + $0x80] sm:$0xff]  ;;  %vm4000_vm2 = vmneg %vm148_vm0 }
   0xe   :  { %1098 = vmatpush1.msra.mxu0 %v950_v7  ;;  %3724 = vmatpush1.msra.mxu1 %v950_v7  ;;  %7634 = vst [vmem:[#allocation4_spill] sm:$0xff] %v3942_v36  ;;  %v599_v46 = vrot.slane %v3942_v36, 1  ;;  %7636 = vst [vmem:[#allocation6_spill] sm:$0xff] %v3981_v51  ;;  %v3983_v52 = vrot.slane %v67_v41, 7  ;;  %v224_v53 = vrot.slane %v68_v42, 7  ;;  %v601_v59 = vrot.slane %v3981_v51, 1 }
   0xf   :  { %1099 = vmatprep.subr.mxu0 %v7320_v0  ;;  %3693 = vmatprep.subr.mxu1 %v7320_v0  ;;  %v4007_v60 = vsel %vm148_vm0, %v3978_v49, %v152_v50  ;;  %v4011_v61 = vsel %vm148_vm0, 0.0, %v3978_v49  ;;  %v988_v1 = vld [vmem:[%s7316_s1 + $0x178] sm:$0xff]  ;;  %v21_v6 = vld [vmem:[%s7317_s0 + $0x10] sm:$0xff]  ;;  %v4124_v38 = vld [vmem:[%s7317_s0 + $0x28] sm:$0xff] }
  0x10   :  { %1100 = vmatpush1.msra.mxu0 %v949_v8  ;;  %3725 = vmatpush1.msra.mxu1 %v949_v8  ;;  %7637 = vst [vmem:[#allocation7_spill] sm:$0xff] %v3983_v52  ;;  %v3994_v56 = vsel %vm477_vm1, %v598_v45, %v599_v46  ;;  %v4015_v62 = vsel %vm148_vm0, %v3983_v52, %v224_v53  ;;  %v4019_v63 = vsel %vm148_vm0, 0.0, %v3983_v52  ;;  %v1020_v2 = vld [vmem:[%s7316_s1 + $0x278] sm:$0xff]  ;;  %v483_v4 = vrot.slane %v4011_v61, 1  ;;  %v1019_v26 = vld [vmem:[%s7316_s1 + $0x270] sm:$0xff]  ;;  %v71_v41 = vld [vmem:[%s7317_s0 + $0x1a0] sm:$0xff] }
  0x11   :  { %1101 = vmatprep.subr.mxu0 %v7320_v0  ;;  %3694 = vmatprep.subr.mxu1 %v7320_v0  ;;  %7639 = vst [vmem:[#allocation9_spill] sm:$0xff] %v3994_v56  ;;  %7642 = vst [vmem:[#allocation10_spill] sm:$0xff] %v4015_v62  ;;  %v484_v5 = vrot.slane %v4007_v60, 1  ;;  %v22_v7 = vld [vmem:[%s7317_s0 + $0x18] sm:$0xff]  ;;  %v4049_v8 = vsel %vm477_vm1, %v599_v46, %v601_v59  ;;  %v4138_v42 = vld [vmem:[%s7317_s0 + $0x1a8] sm:$0xff]  ;;  %v4165_v59 = vrot.slane %v71_v41, 7 }
  0x12   :  { %1102 = vmatpush1.msra.mxu0 %v948_v9  ;;  %3726 = vmatpush1.msra.mxu1 %v948_v9  ;;  %7643 = vst [vmem:[#allocation11_spill] sm:$0xff] %v4019_v63  ;;  %7645 = vst [vmem:[#allocation13_spill] sm:$0xff] %v4049_v8  ;;  %v987_v9 = vld [vmem:[%s7316_s1 + $0x170] sm:$0xff]  ;;  %v984_v39 = vld [vmem:[%s7316_s1 + $0x158] sm:$0xff] }
  0x13   :  { %1103 = vmatprep.subr.mxu0 %v7320_v0  ;;  %3695 = vmatprep.subr.mxu1 %v7320_v0  ;;  %v983_v46 = vld [vmem:[%s7316_s1 + $0x150] sm:$0xff]  ;;  %7656 = vst [vmem:[#allocation24_spill] sm:$0xff] %v4165_v59 }
  0x14   :  { %1104 = vmatpush1.msra.mxu0 %v947_v10  ;;  %3727 = vmatpush1.msra.mxu1 %v947_v10  ;;  %v603_v10 = vrot.slane %v4019_v63, 1  ;;  %v73_v41 = vld [vmem:[%s7317_s0 + $0x1b0] sm:$0xff]  ;;  %v79_v63 = vld [vmem:[%s7317_s0 + $0x1e0] sm:$0xff] }
  0x15   :  { %1105 = vmatprep.subr.mxu0 %v7320_v0  ;;  %3696 = vmatprep.subr.mxu1 %v7320_v0 }
  0x16   :  { %1106 = vmatpush1.msra.mxu0 %v946_v11  ;;  %3728 = vmatpush1.msra.mxu1 %v946_v11  ;;  %v604_v11 = vrot.slane %v4015_v62, 1 }
  0x17   :  { %1107 = vmatprep.subr.mxu0 %v7320_v0  ;;  %3697 = vmatprep.subr.mxu1 %v7320_v0 }
  0x18   :  { %1108 = vmatpush1.msra.mxu0 %v945_v12  ;;  %3729 = vmatpush1.msra.mxu1 %v945_v12  ;;  %v4057_v12 = vsel %vm148_vm0, %v152_v50, 0.0 }
  0x19   :  { %1109 = vmatprep.subr.mxu0 %v7320_v0  ;;  %3698 = vmatprep.subr.mxu1 %v7320_v0 }
  0x1a   :  { %1110 = vmatpush1.msra.mxu0 %v944_v13  ;;  %3730 = vmatpush1.msra.mxu1 %v944_v13  ;;  %v69_v13 = vld [vmem:[%s7317_s0 + $0x190] sm:$0xff] }
  0x1b   :  { %1111 = vmatprep.subr.mxu0 %v7320_v0  ;;  %3699 = vmatprep.subr.mxu1 %v7320_v0 }
  0x1c   :  { %1112 = vmatpush1.msra.mxu0 %v943_v14  ;;  %3731 = vmatpush1.msra.mxu1 %v943_v14  ;;  %v70_v14 = vld [vmem:[%s7317_s0 + $0x198] sm:$0xff] }
  0x1d   :  { %1113 = vmatprep.subr.mxu0 %v7320_v0  ;;  %3700 = vmatprep.subr.mxu1 %v7320_v0 }
  0x1e   :  { %1114 = vmatpush1.msra.mxu0 %v942_v15  ;;  %3732 = vmatpush1.msra.mxu1 %v942_v15  ;;  %v4066_v15 = vsel %vm148_vm0, %v224_v53, 0.0 }
  0x1f   :  { %1115 = vmatprep.subr.mxu0 %v7320_v0  ;;  %3701 = vmatprep.subr.mxu1 %v7320_v0  ;;  %7646 = vst [vmem:[#allocation14_spill] sm:$0xff] %v4066_v15 }
  0x20   :  { %1116 = vmatpush1.msra.mxu0 %v941_v16  ;;  %3733 = vmatpush1.msra.mxu1 %v941_v16  ;;  %v4070_v16 = vrot.slane %v21_v6, 7 }
  0x21   :  { %1117 = vmatprep.subr.mxu0 %v7320_v0  ;;  %3702 = vmatprep.subr.mxu1 %v7320_v0 }
  0x22   :  { %1118 = vmatpush2.msra.mxu0 %v972_v17  ;;  %3734 = vmatpush2.msra.mxu1 %v972_v17  ;;  %7647 = vst [vmem:[#allocation15_spill] sm:$0xff] %v4070_v16  ;;  %v155_v17 = vrot.slane %v22_v7, 7 }
  0x23   :  { %1119 = vmatprep.subr.mxu0 %v7320_v0  ;;  %3703 = vmatprep.subr.mxu1 %v7320_v0 }
  0x24   :  { %1120 = vmatpush2.msra.mxu0 %v971_v18  ;;  %3735 = vmatpush2.msra.mxu1 %v971_v18  ;;  %v986_v18 = vld [vmem:[%s7316_s1 + $0x168] sm:$0xff]  ;;  %v4099_v27 = vsel %vm148_vm0, %v4070_v16, %v155_v17  ;;  %v4149_v45 = vsel %vm148_vm0, %v155_v17, 0.0  ;;  %v4204_v17 = vsel %vm148_vm0, 0.0, %v4165_v59 }
  0x25   :  { %1121 = vmatprep.subr.mxu0 %v7320_v0  ;;  %3704 = vmatprep.subr.mxu1 %v7320_v0  ;;  %7650 = vst [vmem:[#allocation18_spill] sm:$0xff] %v4099_v27  ;;  %v489_v44 = vrot.slane %v4099_v27, 1  ;;  %v491_v6 = vrot.slane %v4149_v45, 1  ;;  %7660 = vst [vmem:[#allocation28_spill] sm:$0xff] %v4204_v17 }
  0x26   :  { %1122 = vmatpush2.msra.mxu0 %v970_v19  ;;  %3736 = vmatpush2.msra.mxu1 %v970_v19  ;;  %v4077_v19 = vsel %vm477_vm1, %v483_v4, %v484_v5  ;;  %v1018_v4 = vld [vmem:[%s7316_s1 + $0x268] sm:$0xff] }
  0x27   :  { %1123 = vmatprep.subr.mxu0 %v7320_v0  ;;  %3705 = vmatprep.subr.mxu1 %v7320_v0 }
  0x28   :  { %1124 = vmatpush2.msra.mxu0 %v969_v20  ;;  %3737 = vmatpush2.msra.mxu1 %v969_v20  ;;  %v486_v20 = vrot.slane %v4057_v12, 1 }
  0x29   :  { %1125 = vmatprep.subr.mxu0 %v7320_v0  ;;  %3706 = vmatprep.subr.mxu1 %v7320_v0 }
  0x2a   :  { %1126 = vmatpush2.msra.mxu0 %v968_v21  ;;  %3738 = vmatpush2.msra.mxu1 %v968_v21  ;;  %v4080_v21 = vrot.slane %v69_v13, 7 }
  0x2b   :  { %1127 = vmatprep.subr.mxu0 %v7320_v0  ;;  %3707 = vmatprep.subr.mxu1 %v7320_v0 }
  0x2c   :  { %1128 = vmatpush2.msra.mxu0 %v967_v22  ;;  %3739 = vmatpush2.msra.mxu1 %v967_v22  ;;  %7648 = vst [vmem:[#allocation16_spill] sm:$0xff] %v4080_v21  ;;  %v227_v22 = vrot.slane %v70_v14, 7 }
  0x2d   :  { %1129 = vmatprep.subr.mxu0 %v7320_v0  ;;  %3708 = vmatprep.subr.mxu1 %v7320_v0 }
  0x2e   :  { %1130 = vmatpush2.msra.mxu0 %v966_v23  ;;  %3740 = vmatpush2.msra.mxu1 %v966_v23  ;;  %v4085_v23 = vsel %vm477_vm1, %v603_v10, %v604_v11  ;;  %v4112_v32 = vsel %vm148_vm0, %v4080_v21, %v227_v22  ;;  %v4163_v57 = vsel %vm148_vm0, %v227_v22, 0.0 }
  0x2f   :  { %1131 = vmatprep.subr.mxu0 %v7320_v0  ;;  %3709 = vmatprep.subr.mxu1 %v7320_v0  ;;  %7649 = vst [vmem:[#allocation17_spill] sm:$0xff] %v4085_v23  ;;  %7651 = vst [vmem:[#allocation19_spill] sm:$0xff] %v4112_v32  ;;  %v609_v50 = vrot.slane %v4112_v32, 1  ;;  %v611_v10 = vrot.slane %v4163_v57, 1 }
  0x30   :  { %1132 = vmatpush2.msra.mxu0 %v965_v24  ;;  %3741 = vmatpush2.msra.mxu1 %v965_v24  ;;  %v606_v24 = vrot.slane %v4066_v15, 1  ;;  %7655 = vst [vmem:[#allocation23_spill] sm:$0xff] %v4163_v57 }
  0x31   :  { %1133 = vmatprep.subr.mxu0 %v7320_v0  ;;  %3710 = vmatprep.subr.mxu1 %v7320_v0 }
  0x32   :  { %1134 = vmatpush2.msra.mxu0 %v964_v25  ;;  %3742 = vmatpush2.msra.mxu1 %v964_v25  ;;  %v985_v25 = vld [vmem:[%s7316_s1 + $0x160] sm:$0xff] }
  0x33   :  { %1135 = vmatprep.subr.mxu0 %v7320_v0  ;;  %3711 = vmatprep.subr.mxu1 %v7320_v0 }
  0x34   :  { %1136 = vmatpush2.msra.mxu0 %v963_v28  ;;  %3743 = vmatpush2.msra.mxu1 %v963_v28  ;;  %v4103_v28 = vsel %vm148_vm0, 0.0, %v4070_v16 }
  0x35   :  { %1137 = vmatprep.subr.mxu0 %v7320_v0  ;;  %3712 = vmatprep.subr.mxu1 %v7320_v0  ;;  %v488_v43 = vrot.slane %v4103_v28, 1 }
  0x36   :  { %1138 = vmatpush2.msra.mxu0 %v962_v29  ;;  %3744 = vmatpush2.msra.mxu1 %v962_v29  ;;  %v4108_v29 = vsel %vm477_vm1, %v484_v5, %v486_v20  ;;  %v4213_v20 = vsel %vm477_vm1, %v489_v44, %v491_v6  ;;  %v4262_v6 = vrot.slane %v73_v41, 7 }
  0x37   :  { %1139 = vmatprep.subr.mxu0 %v7320_v0  ;;  %3713 = vmatprep.subr.mxu1 %v7320_v0  ;;  %v4178_v5 = vsel %vm477_vm1, %v488_v43, %v489_v44  ;;  %7661 = vst [vmem:[#allocation29_spill] sm:$0xff] %v4213_v20  ;;  %v979_v43 = vld [vmem:[%s7316_s1 + $0x130] sm:$0xff]  ;;  %v1017_v44 = vld [vmem:[%s7316_s1 + $0x260] sm:$0xff] }
  0x38   :  { %1140 = vmatpush2.msra.mxu0 %v961_v33  ;;  %3745 = vmatpush2.msra.mxu1 %v961_v33  ;;  %v4116_v33 = vsel %vm148_vm0, 0.0, %v4080_v21  ;;  %7666 = vst [vmem:[#allocation34_spill] sm:$0xff] %v4262_v6  ;;  %v4294_v41 = vsel %vm148_vm0, 0.0, %v4262_v6 }
  0x39   :  { %1141 = vmatprep.subr.mxu0 %v7320_v0  ;;  %3714 = vmatprep.subr.mxu1 %v7320_v0  ;;  %7652 = vst [vmem:[#allocation20_spill] sm:$0xff] %v4116_v33  ;;  %7670 = vst [vmem:[#allocation38_spill] sm:$0xff] %v4294_v41 }
  0x3a   :  { %1142 = vmatpush2.msra.mxu0 %v960_v34  ;;  %3746 = vmatpush2.msra.mxu1 %v960_v34  ;;  %v23_v34 = vld [vmem:[%s7317_s0 + $0x20] sm:$0xff] }
  0x3b   :  { %1143 = vmatprep.subr.mxu0 %v7320_v0  ;;  %3715 = vmatprep.subr.mxu1 %v7320_v0  ;;  %v4158_v53 = vrot.slane %v23_v34, 7  ;;  %v4230_v34 = vsel %vm477_vm1, %v609_v50, %v611_v10 }
  0x3c   :  { %1144 = vmatpush2.msra.mxu0 %v959_v40  ;;  %3747 = vmatpush2.msra.mxu1 %v959_v40  ;;  %v4130_v40 = vsel %vm477_vm1, %v604_v11, %v606_v24  ;;  %7662 = vst [vmem:[#allocation30_spill] sm:$0xff] %v4230_v34 }
  0x3d   :  { %1145 = vmatprep.subr.mxu0 %v7320_v0  ;;  %3716 = vmatprep.subr.mxu1 %v7320_v0  ;;  %7653 = vst [vmem:[#allocation21_spill] sm:$0xff] %v4130_v40  ;;  %7654 = vst [vmem:[#allocation22_spill] sm:$0xff] %v4158_v53  ;;  %v4196_v13 = vsel %vm148_vm0, 0.0, %v4158_v53 }
  0x3e   :  { %1146 = vmatpush2.msra.mxu0 %v958_v47  ;;  %3748 = vmatpush2.msra.mxu1 %v958_v47  ;;  %v608_v47 = vrot.slane %v4116_v33, 1  ;;  %v493_v22 = vrot.slane %v4196_v13, 1 }
  0x3f   :  { %1147 = vmatprep.subr.mxu0 %v7320_v0  ;;  %3717 = vmatprep.subr.mxu1 %v7320_v0 }
  0x40   :  { %1148 = vmatpush2.msra.mxu0 %v957_v54  ;;  %3749 = vmatpush2.msra.mxu1 %v957_v54  ;;  %v158_v54 = vrot.slane %v4124_v38, 7  ;;  %v4184_v7 = vsel %vm477_vm1, %v608_v47, %v609_v50  ;;  %v613_v38 = vrot.slane %v4204_v17, 1  ;;  %v4398_v17 = vld [vmem:[%s7317_s0 + $0x58] sm:$0xff] }
  0x41   :  { %1149 = vmatprep.mubr.f32.mxu0 %v3991_v55  ;;  %1389 = vmatprep.mubr.f32.mxu1 %v3994_v56  ;;  %7657 = vst [vmem:[#allocation25_spill] sm:$0xff] %v4184_v7  ;;  %v167_v33 = vrot.slane %v4398_v17, 7  ;;  %v1014_v17 = vld [vmem:[%s7316_s1 + $0x248] sm:$0xff] }
  0x42   :  { %3287 = vmatmul.mubr.msk.f32.vlgmr.msra.gmra.mxu0 %vm4000_vm2, %v3922_v30  ;;  %3335 = vmatmul.mubr.msk.f32.vlgmr.msra.gmra.mxu1 %vm4000_vm2, %v3924_v31  ;;  %v4192_v11 = vsel %vm148_vm0, %v4158_v53, %v158_v54  ;;  %v34_v31 = vld [vmem:[%s7317_s0 + $0x78] sm:$0xff] }
  0x43   :  { %1470 = vmatprep.subr.mxu1 %v7320_v0  ;;  %1855 = vmatprep.subr.mxu0 %v7320_v0  ;;  %7658 = vst [vmem:[#allocation26_spill] sm:$0xff] %v4192_v11  ;;  %v494_v24 = vrot.slane %v4192_v11, 1 }
  0x44   :  { %1471 = vmatpush1.msra.mxu1 %v988_v1  ;;  %1856 = vmatpush1.msra.mxu0 %v1020_v2  ;;  %v230_v1 = vrot.slane %v4138_v42, 7  ;;  %v982_v2 = vld [vmem:[%s7316_s1 + $0x148] sm:$0xff]  ;;  %v74_v42 = vld [vmem:[%s7317_s0 + $0x1b8] sm:$0xff] }
  0x45   :  { %1472 = vmatprep.subr.mxu1 %v7320_v0  ;;  %1154 = vmatprep.mubr.f32.mxu0 %v4036_v3 }
  0x46   :  { %1394 = vmatprep.mubr.f32.mxu1 %v4049_v8  ;;  %1473 = vmatpush1.msra.mxu1 %v987_v9  ;;  %v981_v9 = vld [vmem:[%s7316_s1 + $0x140] sm:$0xff]  ;;  %v4200_v14 = vsel %vm148_vm0, %v4165_v59, %v230_v1 }
  0x47   :  { %1155 = vmatmul.mubr.f32.gmra.mxu0 %v3922_v30  ;;  %1395 = vmatmul.mubr.f32.gmra.mxu1 %v3942_v36  ;;  %7659 = vst [vmem:[#allocation27_spill] sm:$0xff] %v4200_v14  ;;  %v75_v8 = vld [vmem:[%s7317_s0 + $0x1c0] sm:$0xff]  ;;  %v4536_v36 = vrot.slane %v79_v63, 7 }
  0x48   :  { %1474 = vmatprep.subr.mxu1 %v7320_v0  ;;  %1857 = vmatprep.subr.mxu0 %v7320_v0 }
  0x49   :  { %1475 = vmatpush1.msra.mxu1 %v986_v18  ;;  %1159 = vmatprep.mubr.f32.mxu0 %v4077_v19  ;;  %v980_v18 = vld [vmem:[%s7316_s1 + $0x138] sm:$0xff]  ;;  %7697 = vst [vmem:[#allocation64_spill] sm:$0xff] %v4536_v36 }
  0x4a   :  { %1476 = vmatprep.subr.mxu1 %v7320_v0  ;;  %1399 = vmatprep.mubr.f32.mxu1 %v4085_v23 }
  0x4b   :  { %1477 = vmatpush1.msra.mxu1 %v985_v25  ;;  %1858 = vmatpush1.msra.mxu0 %v1019_v26  ;;  %v25_v25 = vld [vmem:[%s7317_s0 + $0x30] sm:$0xff]  ;;  %v26_v26 = vld [vmem:[%s7317_s0 + $0x38] sm:$0xff] }
  0x4c   :  { %3289 = vmatmul.mubr.msk.f32.gmra.mxu0 %vm4000_vm2, %v3978_v49  ;;  %3337 = vmatmul.mubr.msk.f32.gmra.mxu1 %vm4000_vm2, %v3983_v52  ;;  %v4252_v47 = vrot.slane %v25_v25, 7  ;;  %v161_v50 = vrot.slane %v26_v26, 7 }
  0x4d   :  { %1478 = vmatprep.subr.mxu1 %v7320_v0  ;;  %1164 = vmatprep.mubr.f32.mxu0 %v4108_v29 }
  0x4e   :  { %1479 = vmatpush1.msra.mxu1 %v984_v39  ;;  %1404 = vmatprep.mubr.f32.mxu1 %v4130_v40  ;;  %v614_v39 = vrot.slane %v4200_v14, 1  ;;  %7663 = vst [vmem:[#allocation31_spill] sm:$0xff] %v4252_v47  ;;  %v4281_v25 = vsel %vm148_vm0, %v4252_v47, %v161_v50  ;;  %v4285_v26 = vsel %vm148_vm0, 0.0, %v4252_v47  ;;  %v4331_v23 = vsel %vm148_vm0, %v161_v50, 0.0 }
  0x4f   :  { %1480 = vmatprep.subr.mxu1 %v7320_v0  ;;  %1859 = vmatprep.subr.mxu0 %v7320_v0  ;;  %7668 = vst [vmem:[#allocation36_spill] sm:$0xff] %v4281_v25 }
  0x50   :  { %1481 = vmatpush1.msra.mxu1 %v983_v46  ;;  %1165 = vmatmul.mubr.f32.gmra.mxu0 %v4007_v60  ;;  %v4250_v46 = vsel %vm148_vm0, %v158_v54, 0.0  ;;  %v978_v54 = vld [vmem:[%s7316_s1 + $0x128] sm:$0xff]  ;;  %v4268_v10 = vsel %vm477_vm1, %v613_v38, %v614_v39 }
  0x51   :  { %1405 = vmatmul.mubr.f32.gmra.mxu1 %v4015_v62  ;;  %1482 = vmatprep.subr.mxu1 %v7320_v0  ;;  %7667 = vst [vmem:[#allocation35_spill] sm:$0xff] %v4268_v10  ;;  %v80_v62 = vld [vmem:[%s7317_s0 + $0x1e8] sm:$0xff] }
  0x52   :  { %1483 = vmatpush1.msra.mxu1 %v982_v2  ;;  %1860 = vmatpush1.msra.mxu0 %v1018_v4  ;;  %v4257_v2 = vsel %vm477_vm1, %v493_v22, %v494_v24  ;;  %v4260_v4 = vsel %vm148_vm0, %v230_v1, 0.0  ;;  %v977_v1 = vld [vmem:[%s7316_s1 + $0x120] sm:$0xff] }
  0x53   :  { %1484 = vmatprep.subr.mxu1 %v7320_v0  ;;  %1169 = vmatprep.mubr.f32.mxu0 %v4178_v5  ;;  %7664 = vst [vmem:[#allocation32_spill] sm:$0xff] %v4257_v2  ;;  %7665 = vst [vmem:[#allocation33_spill] sm:$0xff] %v4260_v4  ;;  %v616_v22 = vrot.slane %v4260_v4, 1 }
  0x54   :  { %1409 = vmatprep.mubr.f32.mxu1 %v4184_v7  ;;  %1485 = vmatpush1.msra.mxu1 %v981_v9  ;;  %v233_v9 = vrot.slane %v74_v42, 7  ;;  %v976_v42 = vld [vmem:[%s7316_s1 + $0x118] sm:$0xff]  ;;  %v618_v7 = vrot.slane %v4294_v41, 1  ;;  %v974_v41 = vld [vmem:[%s7316_s1 + $0x108] sm:$0xff] }
  0x55   :  { %3291 = vmatmul.mubr.msk.f32.gmra.mxu0 %vm4000_vm2, %v4070_v16  ;;  %3339 = vmatmul.mubr.msk.f32.gmra.mxu1 %vm4000_vm2, %v4080_v21  ;;  %v31_v21 = vld [vmem:[%s7317_s0 + $0x60] sm:$0xff] }
  0x56   :  { %1486 = vmatprep.subr.mxu1 %v7320_v0  ;;  %1861 = vmatprep.subr.mxu0 %v7320_v0  ;;  %v4290_v38 = vsel %vm148_vm0, %v4262_v6, %v233_v9 }
  0x57   :  { %1487 = vmatpush1.msra.mxu1 %v980_v18  ;;  %1174 = vmatprep.mubr.f32.mxu0 %v4213_v20  ;;  %v496_v18 = vrot.slane %v4250_v46, 1  ;;  %7669 = vst [vmem:[#allocation37_spill] sm:$0xff] %v4290_v38  ;;  %v619_v40 = vrot.slane %v4290_v38, 1 }
  0x58   :  { %1488 = vmatprep.subr.mxu1 %v7320_v0  ;;  %1414 = vmatprep.mubr.f32.mxu1 %v4230_v34  ;;  %v28_v34 = vld [vmem:[%s7317_s0 + $0x48] sm:$0xff] }
  0x59   :  { %1489 = vmatpush1.msra.mxu1 %v979_v43  ;;  %1862 = vmatpush1.msra.mxu0 %v1017_v44  ;;  %v1016_v43 = vld [vmem:[%s7316_s1 + $0x258] sm:$0xff]  ;;  %v4308_v44 = vsel %vm477_vm1, %v494_v24, %v496_v18  ;;  %v4323_v24 = vsel %vm477_vm1, %v614_v39, %v616_v22  ;;  %v975_v18 = vld [vmem:[%s7316_s1 + $0x110] sm:$0xff]  ;;  %v76_v39 = vld [vmem:[%s7317_s0 + $0x1c8] sm:$0xff]  ;;  %v4340_v22 = vsel %vm148_vm0, %v233_v9, 0.0  ;;  %v164_v50 = vrot.slane %v28_v34, 7 }
  0x5a   :  { %1175 = vmatmul.mubr.f32.gmra.mxu0 %v4099_v27  ;;  %1415 = vmatmul.mubr.f32.gmra.mxu1 %v4112_v32  ;;  %7671 = vst [vmem:[#allocation39_spill] sm:$0xff] %v4308_v44  ;;  %7673 = vst [vmem:[#allocation40_spill] sm:$0xff] %v4323_v24  ;;  %v501_v9 = vrot.slane %v4331_v23, 1  ;;  %v236_v4 = vrot.slane %v76_v39, 7  ;;  %v4359_v34 = vsel %vm477_vm1, %v618_v7, %v619_v40 }
  0x5b   :  { %1490 = vmatprep.subr.mxu1 %v7320_v0  ;;  %1179 = vmatprep.mubr.f32.mxu0 %v4257_v2  ;;  %7674 = vst [vmem:[#allocation41_spill] sm:$0xff] %v4340_v22  ;;  %7678 = vst [vmem:[#allocation45_spill] sm:$0xff] %v4359_v34 }
  0x5c   :  { %1491 = vmatpush1.msra.mxu1 %v978_v54  ;;  %1419 = vmatprep.mubr.f32.mxu1 %v4268_v10  ;;  %v498_v54 = vrot.slane %v4285_v26, 1  ;;  %v27_v10 = vld [vmem:[%s7317_s0 + $0x40] sm:$0xff] }
  0x5d   :  { %1492 = vmatprep.subr.mxu1 %v7320_v0  ;;  %1863 = vmatprep.subr.mxu0 %v7320_v0  ;;  %v499_v0 = vrot.slane %v4281_v25, 1  ;;  %v4344_v56 = vrot.slane %v27_v10, 7  ;;  %v621_v10 = vrot.slane %v4340_v22, 1  ;;  %v29_v22 = vld [vmem:[%s7317_s0 + $0x50] sm:$0xff] }
  0x5e   :  { %1493 = vmatpush1.msra.mxu1 %v977_v1  ;;  %3293 = vmatmul.mubr.msk.f32.gmra.mxu0 %vm4000_vm2, %v4158_v53  ;;  %v7672_v1 = vmov 0.0  }
  0x5f   :  { %3341 = vmatmul.mubr.msk.f32.gmra.mxu1 %vm4000_vm2, %v4165_v59  ;;  %1494 = vmatprep.subr.mxu1 %v7672_v1  ;;  %7675 = vst [vmem:[#allocation42_spill] sm:$0xff] %v4344_v56  ;;  %v4373_v7 = vsel %vm148_vm0, %v4344_v56, %v164_v50  ;;  %v4382_v39 = vsel %vm477_vm1, %v499_v0, %v501_v9 }
  0x60   :  { %1495 = vmatpush1.msra.mxu1 %v976_v42  ;;  %1864 = vmatpush1.msra.mxu0 %v1016_v43  ;;  %v4351_v42 = vsel %vm477_vm1, %v498_v54, %v499_v0  ;;  %v4354_v43 = vrot.slane %v75_v8, 7  ;;  %v973_v54 = vld [vmem:[%s7316_s1 + $0x100] sm:$0xff]  ;;  %v1015_v8 = vld [vmem:[%s7316_s1 + $0x250] sm:$0xff]  ;;  %7679 = vst [vmem:[#allocation46_spill] sm:$0xff] %v4373_v7  ;;  %7680 = vst [vmem:[#allocation47_spill] sm:$0xff] %v4382_v39  ;;  %v4404_v9 = vsel %vm477_vm1, %v619_v40, %v621_v10 }
  0x61   :  { %1496 = vmatprep.subr.mxu1 %v7672_v1  ;;  %1184 = vmatprep.mubr.f32.mxu0 %v4308_v44  ;;  %7676 = vst [vmem:[#allocation43_spill] sm:$0xff] %v4351_v42  ;;  %v1004_v0 = vld [vmem:[%s7316_s1 + $0x1f8] sm:$0xff]  ;;  %7683 = vst [vmem:[#allocation50_spill] sm:$0xff] %v4404_v9  ;;  %v504_v10 = vrot.slane %v4373_v7, 1 }
  0x62   :  { %1424 = vmatprep.mubr.f32.mxu1 %v4323_v24  ;;  %1497 = vmatpush1.msra.mxu1 %v975_v18  ;;  %7677 = vst [vmem:[#allocation44_spill] sm:$0xff] %v4354_v43  ;;  %v4377_v18 = vsel %vm148_vm0, 0.0, %v4344_v56  ;;  %v4390_v24 = vsel %vm148_vm0, 0.0, %v4354_v43 }
  0x63   :  { %1185 = vmatmul.mubr.f32.gmra.mxu0 %v4192_v11  ;;  %1425 = vmatmul.mubr.f32.gmra.mxu1 %v4200_v14  ;;  %7682 = vst [vmem:[#allocation49_spill] sm:$0xff] %v4390_v24  ;;  %v4412_v14 = vld [vmem:[%s7317_s0 + $0x1d8] sm:$0xff]  ;;  %v503_v40 = vrot.slane %v4377_v18, 1  ;;  %v623_v57 = vrot.slane %v4390_v24, 1 }
  0x64   :  { %1498 = vmatprep.subr.mxu1 %v7672_v1  ;;  %1865 = vmatprep.subr.mxu0 %v7672_v1  ;;  %v239_v15 = vrot.slane %v4412_v14, 7 }
  0x65   :  { %1499 = vmatpush1.msra.mxu1 %v974_v41  ;;  %1189 = vmatprep.mubr.f32.mxu0 %v4351_v42  ;;  %v4386_v41 = vsel %vm148_vm0, %v4354_v43, %v236_v4 }
  0x66   :  { %1500 = vmatprep.subr.mxu1 %v7672_v1  ;;  %1429 = vmatprep.mubr.f32.mxu1 %v4359_v34  ;;  %7681 = vst [vmem:[#allocation48_spill] sm:$0xff] %v4386_v41  ;;  %v77_v34 = vld [vmem:[%s7317_s0 + $0x1d0] sm:$0xff]  ;;  %v624_v59 = vrot.slane %v4386_v41, 1  ;;  %v4534_v37 = vsel %vm148_vm0, %v239_v15, 0.0 }
  0x67   :  { %1501 = vmatpush1.msra.mxu1 %v973_v54  ;;  %1866 = vmatpush1.msra.mxu0 %v1015_v8  ;;  %v4423_v54 = vsel %vm148_vm0, %v164_v50, 0.0  ;;  %v1003_v8 = vld [vmem:[%s7316_s1 + $0x1f0] sm:$0xff]  ;;  %v4437_v50 = vsel %vm148_vm0, %v236_v4, 0.0  ;;  %v4439_v32 = vrot.slane %v77_v34, 7  ;;  %v4452_v4 = vsel %vm477_vm1, %v503_v40, %v504_v10  ;;  %7696 = vst [vmem:[#allocation63_spill] sm:$0xff] %v4534_v37 }
  0x68   :  { %3295 = vmatmul.mubr.msk.f32.gmra.mxu0 %vm4000_vm2, %v4252_v47  ;;  %3343 = vmatmul.mubr.msk.f32.gmra.mxu1 %vm4000_vm2, %v4262_v6  ;;  %v4432_v6 = vrot.slane %v29_v22, 7  ;;  %7685 = vst [vmem:[#allocation52_spill] sm:$0xff] %v4437_v50  ;;  %v1002_v22 = vld [vmem:[%s7316_s1 + $0x1e8] sm:$0xff]  ;;  %7687 = vst [vmem:[#allocation54_spill] sm:$0xff] %v4452_v4  ;;  %v506_v14 = vrot.slane %v4423_v54, 1  ;;  %v4458_v34 = vsel %vm477_vm1, %v623_v57, %v624_v59  ;;  %v631_v63 = vrot.slane %v4534_v37, 1 }
  0x69   :  { %1502 = vmatprep.subr.mxu1 %v7672_v1  ;;  %1194 = vmatprep.mubr.f32.mxu0 %v4382_v39  ;;  %7686 = vst [vmem:[#allocation53_spill] sm:$0xff] %v4439_v32  ;;  %7688 = vst [vmem:[#allocation55_spill] sm:$0xff] %v4458_v34  ;;  %v4474_v57 = vsel %vm148_vm0, %v4439_v32, %v239_v15  ;;  %v4478_v24 = vsel %vm148_vm0, 0.0, %v4439_v32 }
  0x6a   :  { %7684 = vst [vmem:[#allocation51_spill] sm:$0xff] %v4432_v6  ;;  %1503 = vmatpush2.msra.mxu1 %v1004_v0  ;;  %1434 = vmatprep.mubr.f32.mxu1 %v4404_v9  ;;  %v1001_v0 = vld [vmem:[%s7316_s1 + $0x1e0] sm:$0xff]  ;;  %v4466_v9 = vsel %vm148_vm0, %v4432_v6, %v167_v33  ;;  %v4470_v40 = vsel %vm148_vm0, 0.0, %v4432_v6  ;;  %7690 = vst [vmem:[#allocation57_spill] sm:$0xff] %v4474_v57 }
  0x6b   :  { %1504 = vmatprep.subr.mxu1 %v7672_v1  ;;  %1867 = vmatprep.subr.mxu0 %v7672_v1  ;;  %7689 = vst [vmem:[#allocation56_spill] sm:$0xff] %v4466_v9  ;;  %7691 = vst [vmem:[#allocation58_spill] sm:$0xff] %v4478_v24 }
  0x6c   :  { %1505 = vmatpush2.msra.mxu1 %v1003_v8  ;;  %1195 = vmatmul.mubr.f32.gmra.mxu0 %v4281_v25  ;;  %v626_v8 = vrot.slane %v4437_v50, 1  ;;  %v508_v50 = vrot.slane %v4470_v40, 1 }
  0x6d   :  { %1435 = vmatmul.mubr.f32.gmra.mxu1 %v4290_v38  ;;  %1506 = vmatprep.subr.mxu1 %v7672_v1  ;;  %v509_v38 = vrot.slane %v4466_v9, 1 }
  0x6e   :  { %1507 = vmatpush2.msra.mxu1 %v1002_v22  ;;  %1868 = vmatpush1.msra.mxu0 %v1014_v17  ;;  %v1000_v22 = vld [vmem:[%s7316_s1 + $0x1d8] sm:$0xff]  ;;  %v4487_v17 = vsel %vm477_vm1, %v504_v10, %v506_v14  ;;  %v4504_v10 = vsel %vm477_vm1, %v624_v59, %v626_v8  ;;  %v628_v14 = vrot.slane %v4478_v24, 1  ;;  %v999_v59 = vld [vmem:[%s7316_s1 + $0x1d0] sm:$0xff]  ;;  %v1013_v8 = vld [vmem:[%s7316_s1 + $0x240] sm:$0xff]  ;;  %v4524_v24 = vsel %vm148_vm0, %v167_v33, 0.0 }
  0x6f   :  { %1508 = vmatprep.subr.mxu1 %v7672_v1  ;;  %1199 = vmatprep.mubr.f32.mxu0 %v4452_v4  ;;  %7692 = vst [vmem:[#allocation59_spill] sm:$0xff] %v4487_v17  ;;  %7693 = vst [vmem:[#allocation60_spill] sm:$0xff] %v4504_v10  ;;  %v4531_v52 = vsel %vm477_vm1, %v508_v50, %v509_v38  ;;  %v511_v50 = vrot.slane %v4524_v24, 1 }
  0x70   :  { %1439 = vmatprep.mubr.f32.mxu1 %v4458_v34  ;;  %1509 = vmatpush2.msra.mxu1 %v1001_v0  ;;  %v32_v34 = vld [vmem:[%s7317_s0 + $0x68] sm:$0xff]  ;;  %v629_v0 = vrot.slane %v4474_v57, 1  ;;  %7695 = vst [vmem:[#allocation62_spill] sm:$0xff] %v4531_v52 }
  0x71   :  { %3297 = vmatmul.mubr.msk.f32.gmra.mxu0 %vm4000_vm2, %v4344_v56  ;;  %3345 = vmatmul.mubr.msk.f32.gmra.mxu1 %vm4000_vm2, %v4354_v43  ;;  %v4526_v43 = vrot.slane %v31_v21, 7  ;;  %v170_v51 = vrot.slane %v32_v34, 7  ;;  %v998_v21 = vld [vmem:[%s7316_s1 + $0x1c8] sm:$0xff] }
  0x72   :  { %1510 = vmatprep.subr.mxu1 %v7672_v1  ;;  %1869 = vmatprep.subr.mxu0 %v7672_v1  ;;  %v4542_v33 = vsel %vm477_vm1, %v628_v14, %v629_v0 }
  0x73   :  { %1511 = vmatpush2.msra.mxu1 %v1000_v22  ;;  %1204 = vmatprep.mubr.f32.mxu0 %v4487_v17  ;;  %7694 = vst [vmem:[#allocation61_spill] sm:$0xff] %v4526_v43  ;;  %v242_v22 = vrot.slane %v80_v62, 7  ;;  %7698 = vst [vmem:[#allocation65_spill] sm:$0xff] %v4542_v33  ;;  %v997_v62 = vld [vmem:[%s7316_s1 + $0x1c0] sm:$0xff]  ;;  %v4555_v15 = vsel %vm148_vm0, %v4526_v43, %v170_v51  ;;  %v4559_v34 = vsel %vm148_vm0, 0.0, %v4526_v43  ;;  %v4605_v17 = vsel %vm148_vm0, %v170_v51, 0.0 }
  0x74   :  { %1512 = vmatprep.subr.mxu1 %v7672_v1  ;;  %1444 = vmatprep.mubr.f32.mxu1 %v4504_v10  ;;  %7699 = vst [vmem:[#allocation66_spill] sm:$0xff] %v4555_v15  ;;  %v513_v10 = vrot.slane %v4559_v34, 1  ;;  %v514_v37 = vrot.slane %v4555_v15, 1  ;;  %v994_v51 = vld [vmem:[%s7316_s1 + $0x1a8] sm:$0xff] }
  0x75   :  { %1513 = vmatpush2.msra.mxu1 %v999_v59  ;;  %1870 = vmatpush1.msra.mxu0 %v1013_v8  ;;  %v4564_v14 = vsel %vm148_vm0, %v4536_v36, %v242_v22  ;;  %v4568_v59 = vsel %vm148_vm0, 0.0, %v4536_v36  ;;  %v996_v8 = vld [vmem:[%s7316_s1 + $0x1b8] sm:$0xff] }
  0x76   :  { %1205 = vmatmul.mubr.f32.gmra.mxu0 %v4373_v7  ;;  %1445 = vmatmul.mubr.f32.gmra.mxu1 %v4386_v41  ;;  %7700 = vst [vmem:[#allocation67_spill] sm:$0xff] %v4564_v14  ;;  %7701 = vst [vmem:[#allocation68_spill] sm:$0xff] %v4568_v59  ;;  %v33_v41 = vld [vmem:[%s7317_s0 + $0x70] sm:$0xff] }
  0x77   :  { %1514 = vmatprep.subr.mxu1 %v7672_v1  ;;  %1209 = vmatprep.mubr.f32.mxu0 %v4531_v52  ;;  %v634_v52 = vrot.slane %v4564_v14, 1 }
  0x78   :  { %1515 = vmatpush2.msra.mxu1 %v998_v21  ;;  %1449 = vmatprep.mubr.f32.mxu1 %v4542_v33  ;;  %v1012_v21 = vld [vmem:[%s7316_s1 + $0x238] sm:$0xff]  ;;  %v4582_v33 = vsel %vm477_vm1, %v509_v38, %v511_v50  ;;  %v4597_v38 = vsel %vm477_vm1, %v629_v0, %v631_v63  ;;  %v995_v50 = vld [vmem:[%s7316_s1 + $0x1b0] sm:$0xff]  ;;  %v4612_v0 = vrot.slane %v33_v41, 7  ;;  %v173_v63 = vrot.slane %v34_v31, 7 }
  0x79   :  { %1516 = vmatprep.subr.mxu1 %v7672_v1  ;;  %1871 = vmatprep.subr.mxu0 %v7672_v1  ;;  %7702 = vst [vmem:[#allocation69_spill] sm:$0xff] %v4582_v33  ;;  %7703 = vst [vmem:[#allocation70_spill] sm:$0xff] %v4597_v38 }
  0x7a   :  { %1517 = vmatpush2.msra.mxu1 %v997_v62  ;;  %3299 = vmatmul.mubr.msk.f32.gmra.mxu0 %vm4000_vm2, %v4432_v6  ;;  %v633_v62 = vrot.slane %v4568_v59, 1  ;;  %7705 = vst [vmem:[#allocation72_spill] sm:$0xff] %v4612_v0  ;;  %v992_v59 = vld [vmem:[%s7316_s1 + $0x198] sm:$0xff] }
  0x7b   :  { %3347 = vmatmul.mubr.msk.f32.gmra.mxu1 %vm4000_vm2, %v4439_v32  ;;  %1518 = vmatprep.subr.mxu1 %v7672_v1  ;;  %v4608_v32 = vsel %vm148_vm0, %v242_v22, 0.0  ;;  %v516_v22 = vrot.slane %v4605_v17, 1 }
  0x7c   :  { %1519 = vmatpush2.msra.mxu1 %v996_v8  ;;  %1872 = vmatpush1.msra.mxu0 %v1012_v21  ;;  %7704 = vst [vmem:[#allocation71_spill] sm:$0xff] %v4608_v32  ;;  %v4619_v8 = vsel %vm477_vm1, %v513_v10, %v514_v37  ;;  %v4625_v41 = vsel %vm477_vm1, %v633_v62, %v634_v52  ;;  %v636_v31 = vrot.slane %v4608_v32, 1  ;;  %v993_v10 = vld [vmem:[%s7316_s1 + $0x1a0] sm:$0xff]  ;;  %v1011_v21 = vld [vmem:[%s7316_s1 + $0x230] sm:$0xff]  ;;  %v4643_v62 = vsel %vm148_vm0, 0.0, %v4612_v0  ;;  %v36_v32 = vld [vmem:[%s7317_s0 + $0x88] sm:$0xff] }
  0x7d   :  { %1520 = vmatprep.subr.mxu1 %v7672_v1  ;;  %1214 = vmatprep.mubr.f32.mxu0 %v4582_v33  ;;  %7706 = vst [vmem:[#allocation73_spill] sm:$0xff] %v4619_v8  ;;  %7707 = vst [vmem:[#allocation74_spill] sm:$0xff] %v4625_v41 }
  0x7e   :  { %1454 = vmatprep.mubr.f32.mxu1 %v4597_v38  ;;  %1521 = vmatpush2.msra.mxu1 %v995_v50  ;;  %v4639_v50 = vsel %vm148_vm0, %v4612_v0, %v173_v63  ;;  %v35_v38 = vld [vmem:[%s7317_s0 + $0x80] sm:$0xff] }
  0x7f   :  { %1215 = vmatmul.mubr.f32.gmra.mxu0 %v4466_v9  ;;  %1455 = vmatmul.mubr.f32.gmra.mxu1 %v4474_v57  ;;  %7708 = vst [vmem:[#allocation75_spill] sm:$0xff] %v4639_v50  ;;  %v4660_v57 = vsel %vm477_vm1, %v634_v52, %v636_v31  ;;  %v991_v52 = vld [vmem:[%s7316_s1 + $0x190] sm:$0xff]  ;;  %v4678_v31 = vsel %vm148_vm0, %v173_v63, 0.0  ;;  %v1010_v63 = vld [vmem:[%s7316_s1 + $0x228] sm:$0xff] }
  0x80   :  { %1522 = vmatprep.subr.mxu1 %v7672_v1  ;;  %1873 = vmatprep.subr.mxu0 %v7672_v1  ;;  %7710 = vst [vmem:[#allocation77_spill] sm:$0xff] %v4660_v57 }
  0x81   :  { %1523 = vmatpush2.msra.mxu1 %v994_v51  ;;  %1219 = vmatprep.mubr.f32.mxu0 %v4619_v8  ;;  %v4654_v51 = vsel %vm477_vm1, %v514_v37, %v516_v22  ;;  %v518_v37 = vrot.slane %v4643_v62, 1  ;;  %v519_v22 = vrot.slane %v4639_v50, 1 }
  0x82   :  { %1524 = vmatprep.subr.mxu1 %v7672_v1  ;;  %1459 = vmatprep.mubr.f32.mxu1 %v4625_v41  ;;  %7709 = vst [vmem:[#allocation76_spill] sm:$0xff] %v4654_v51  ;;  %v710_v41 = vrot.slane %v3938_v35, 2 }
  0x83   :  { %1525 = vmatpush2.msra.mxu1 %v993_v10  ;;  %1874 = vmatpush1.msra.mxu0 %v1011_v21  ;;  %v4670_v10 = vrot.slane %v35_v38, 7  ;;  %v176_v21 = vrot.slane %v36_v32, 7  ;;  %v711_v38 = vrot.slane %v3922_v30, 2  ;;  %v990_v32 = vld [vmem:[%s7316_s1 + $0x188] sm:$0xff]  ;;  %v4693_v35 = vsel %vm477_vm1, %v518_v37, %v519_v22  ;;  %v37_v37 = vld [vmem:[%s7317_s0 + $0x90] sm:$0xff] }
  0x84   :  { %3301 = vmatmul.mubr.msk.f32.gmra.mxu0 %vm4000_vm2, %v4526_v43  ;;  %3349 = vmatmul.mubr.msk.f32.gmra.mxu1 %vm4000_vm2, %v4536_v36  ;;  %7712 = vst [vmem:[#allocation79_spill] sm:$0xff] %v4693_v35 }
  0x85   :  { %7711 = vst [vmem:[#allocation78_spill] sm:$0xff] %v4670_v10  ;;  %1526 = vmatprep.subr.mxu1 %v7672_v1  ;;  %1224 = vmatprep.mubr.f32.mxu0 %v4654_v51  ;;  %v4702_v36 = vsel %vm148_vm0, 0.0, %v4670_v10  ;;  %v38_v51 = vld [vmem:[%s7317_s0 + $0x98] sm:$0xff]  ;;  %v4716_v8 = vsel %vm709_vm3, %v710_v41, %v711_v38  ;;  %v4730_v41 = vsel %vm148_vm0, %v176_v21, 0.0 }
  0x86   :  { %1527 = vmatpush2.msra.mxu1 %v992_v59  ;;  %1464 = vmatprep.mubr.f32.mxu1 %v4660_v57  ;;  %v521_v59 = vrot.slane %v4678_v31, 1  ;;  %v4698_v57 = vsel %vm148_vm0, %v4670_v10, %v176_v21  ;;  %7714 = vst [vmem:[#allocation81_spill] sm:$0xff] %v4716_v8  ;;  %v523_v33 = vrot.slane %v4702_v36, 1  ;;  %v716_v21 = vrot.slane %v4007_v60, 2 }
  0x87   :  { %1528 = vmatprep.subr.mxu1 %v7672_v1  ;;  %1875 = vmatprep.subr.mxu0 %v7672_v1  ;;  %7713 = vst [vmem:[#allocation80_spill] sm:$0xff] %v4698_v57  ;;  %v524_v4 = vrot.slane %v4698_v57, 1 }
  0x88   :  { %1529 = vmatpush2.msra.mxu1 %v991_v52  ;;  %1225 = vmatmul.mubr.f32.gmra.mxu0 %v4555_v15  ;;  %v989_v52 = vld [vmem:[%s7316_s1 + $0x180] sm:$0xff] }
  0x89   :  { %1465 = vmatmul.mubr.f32.gmra.mxu1 %v4564_v14  ;;  %1530 = vmatprep.subr.mxu1 %v7672_v1  ;;  %v713_v14 = vrot.slane %v3976_v48, 2  ;;  %v4732_v48 = vrot.slane %v37_v37, 7  ;;  %v526_v37 = vrot.slane %v4730_v41, 1 }
  0x8a   :  { %1531 = vmatpush2.msra.mxu1 %v990_v32  ;;  %1876 = vmatpush1.msra.mxu0 %v1010_v63  ;;  %v4727_v32 = vsel %vm477_vm1, %v519_v22, %v521_v59  ;;  %v179_v63 = vrot.slane %v38_v51, 7  ;;  %v715_v22 = vrot.slane %v4011_v61, 2  ;;  %v4754_v59 = vsel %vm477_vm1, %v523_v33, %v524_v4  ;;  %v39_v33 = vld [vmem:[%s7317_s0 + $0xa0] sm:$0xff] }
  0x8b   :  { %1532 = vmatprep.subr.mxu1 %v7672_v1  ;;  %1229 = vmatprep.mubr.f32.mxu0 %v4693_v35  ;;  %7715 = vst [vmem:[#allocation82_spill] sm:$0xff] %v4727_v32  ;;  %7716 = vst [vmem:[#allocation83_spill] sm:$0xff] %v4732_v48  ;;  %v4747_v51 = vsel %vm709_vm3, %v711_v38, %v713_v14  ;;  %v1008_v14 = vld [vmem:[%s7316_s1 + $0x218] sm:$0xff]  ;;  %v4766_v38 = vsel %vm148_vm0, 0.0, %v4732_v48  ;;  %v4790_v35 = vsel %vm477_vm1, %v524_v4, %v526_v37  ;;  %v1050_v4 = vld [vmem:[%s7316_s1 + $0x368] sm:$0xff] }
  0x8c   :  { %1533 = vmatpush2.msra.mxu1 %v989_v52  ;;  %3351 = vmatprep.mubr.msk.f32.mxu1 %vm4000_vm2, %v3978_v49  ;;  %v1009_v52 = vld [vmem:[%s7316_s1 + $0x220] sm:$0xff]  ;;  %v1052_v49 = vld [vmem:[%s7316_s1 + $0x378] sm:$0xff]  ;;  %7717 = vst [vmem:[#allocation84_spill] sm:$0xff] %v4747_v51  ;;  %7718 = vst [vmem:[#allocation85_spill] sm:$0xff] %v4754_v59  ;;  %v4762_v61 = vsel %vm148_vm0, %v4732_v48, %v179_v63  ;;  %v528_v39 = vrot.slane %v4766_v38, 1  ;;  %v720_v37 = vrot.slane %v4103_v28, 2 }
  0x8d   :  { %3303 = vmatmul.mubr.msk.f32.gmra.mxu0 %vm4000_vm2, %v4612_v0  ;;  %1535 = vmatmul.mubr.f32.vlgmr.msra.gmra.mxu1 %v4716_v8  ;;  %7719 = vst [vmem:[#allocation86_spill] sm:$0xff] %v4762_v61  ;;  %7720 = vst [vmem:[#allocation87_spill] sm:$0xff] %v4790_v35 }
  0x8e   :  { %1877 = vmatprep.subr.mxu0 %v7672_v1  ;;  %2240 = vmatprep.subr.mxu1 %v7672_v1 }
  0x8f   :  { %1234 = vmatprep.mubr.f32.mxu0 %v4727_v32  ;;  %1539 = vmatprep.mubr.f32.mxu1 %v4007_v60  ;;  %v1051_v60 = vld [vmem:[%s7316_s1 + $0x370] sm:$0xff]  ;;  %v718_v32 = vrot.slane %v4057_v12, 2 }
  0x90   :  { %1878 = vmatpush1.msra.mxu0 %v1009_v52  ;;  %2241 = vmatpush1.msra.mxu1 %v1052_v49  ;;  %v40_v52 = vld [vmem:[%s7317_s0 + $0xa8] sm:$0xff]  ;;  %v4784_v49 = vsel %vm709_vm3, %v715_v22, %v716_v21  ;;  %v4797_v22 = vrot.slane %v39_v33, 7  ;;  %v1007_v12 = vld [vmem:[%s7316_s1 + $0x210] sm:$0xff] }
  0x91   :  { %1235 = vmatmul.mubr.f32.gmra.mxu0 %v4639_v50  ;;  %1540 = vmatmul.mubr.f32.gmra.mxu1 %v4747_v51  ;;  %v182_v42 = vrot.slane %v40_v52, 7  ;;  %v41_v52 = vld [vmem:[%s7317_s0 + $0xb0] sm:$0xff] }
  0x92   :  { %1239 = vmatprep.mubr.f32.mxu0 %v4754_v59  ;;  %3353 = vmatprep.mubr.msk.f32.mxu1 %vm4000_vm2, %v4070_v16  ;;  %v529_v59 = vrot.slane %v4762_v61, 1  ;;  %v4795_v16 = vsel %vm148_vm0, %v179_v63, 0.0  ;;  %7721 = vst [vmem:[#allocation88_spill] sm:$0xff] %v4797_v22  ;;  %v4812_v63 = vsel %vm709_vm3, %v716_v21, %v718_v32  ;;  %v1006_v32 = vld [vmem:[%s7316_s1 + $0x208] sm:$0xff]  ;;  %v4831_v21 = vsel %vm148_vm0, 0.0, %v4797_v22 }
  0x93   :  { %1879 = vmatprep.subr.mxu0 %v7672_v1  ;;  %2242 = vmatprep.subr.mxu1 %v7672_v1  ;;  %v531_v33 = vrot.slane %v4795_v16, 1  ;;  %v4827_v28 = vsel %vm148_vm0, %v4797_v22, %v182_v42  ;;  %v533_v44 = vrot.slane %v4831_v21, 1 }
  0x94   :  { %1880 = vmatpush1.msra.mxu0 %v1008_v14  ;;  %2243 = vmatpush1.msra.mxu1 %v1051_v60  ;;  %v721_v14 = vrot.slane %v4099_v27, 2  ;;  %v4818_v60 = vsel %vm477_vm1, %v528_v39, %v529_v59  ;;  %7723 = vst [vmem:[#allocation90_spill] sm:$0xff] %v4827_v28  ;;  %v1049_v39 = vld [vmem:[%s7316_s1 + $0x360] sm:$0xff]  ;;  %v534_v2 = vrot.slane %v4827_v28, 1 }
  0x95   :  { %3305 = vmatmul.mubr.msk.f32.gmra.mxu0 %vm4000_vm2, %v4670_v10  ;;  %1545 = vmatmul.mubr.f32.gmra.mxu1 %v4784_v49  ;;  %7722 = vst [vmem:[#allocation89_spill] sm:$0xff] %v4818_v60 }
  0x96   :  { %1244 = vmatprep.mubr.f32.mxu0 %v4790_v35  ;;  %1549 = vmatprep.mubr.f32.mxu1 %v4099_v27  ;;  %v723_v27 = vrot.slane %v4149_v45, 2  ;;  %v4853_v35 = vsel %vm477_vm1, %v529_v59, %v531_v33  ;;  %v1005_v45 = vld [vmem:[%s7316_s1 + $0x200] sm:$0xff]  ;;  %v1048_v59 = vld [vmem:[%s7316_s1 + $0x358] sm:$0xff]  ;;  %v725_v33 = vrot.slane %v4196_v13, 2 }
  0x97   :  { %1881 = vmatprep.subr.mxu0 %v7672_v1  ;;  %2244 = vmatprep.subr.mxu1 %v7672_v1  ;;  %7725 = vst [vmem:[#allocation92_spill] sm:$0xff] %v4853_v35  ;;  %v1036_v13 = vld [vmem:[%s7316_s1 + $0x2f8] sm:$0xff] }
  0x98   :  { %1882 = vmatpush1.msra.mxu0 %v1007_v12  ;;  %2245 = vmatpush1.msra.mxu1 %v1050_v4  ;;  %v42_v12 = vld [vmem:[%s7317_s0 + $0xb8] sm:$0xff]  ;;  %v4849_v4 = vsel %vm709_vm3, %v720_v37, %v721_v14  ;;  %v4862_v37 = vrot.slane %v41_v52, 7 }
  0x99   :  { %1245 = vmatmul.mubr.f32.gmra.mxu0 %v4698_v57  ;;  %1550 = vmatmul.mubr.f32.gmra.mxu1 %v4812_v63  ;;  %7724 = vst [vmem:[#allocation91_spill] sm:$0xff] %v4849_v4 }
  0x9a   :  { %1249 = vmatprep.mubr.f32.mxu0 %v4818_v60  ;;  %3355 = vmatprep.mubr.msk.f32.mxu1 %vm4000_vm2, %v4158_v53  ;;  %v4860_v60 = vsel %vm148_vm0, %v182_v42, 0.0  ;;  %7726 = vst [vmem:[#allocation93_spill] sm:$0xff] %v4862_v37  ;;  %v185_v53 = vrot.slane %v42_v12, 7  ;;  %v4877_v42 = vsel %vm709_vm3, %v721_v14, %v723_v27  ;;  %v4893_v27 = vsel %vm148_vm0, 0.0, %v4862_v37  ;;  %v44_v14 = vld [vmem:[%s7317_s0 + $0xc8] sm:$0xff] }
  0x9b   :  { %1883 = vmatprep.subr.mxu0 %v7672_v1  ;;  %2246 = vmatprep.subr.mxu1 %v7672_v1  ;;  %7727 = vst [vmem:[#allocation94_spill] sm:$0xff] %v4877_v42  ;;  %v536_v52 = vrot.slane %v4860_v60, 1  ;;  %v538_v20 = vrot.slane %v4893_v27, 1 }
  0x9c   :  { %1884 = vmatpush1.msra.mxu0 %v1006_v32  ;;  %2247 = vmatpush1.msra.mxu1 %v1049_v39  ;;  %v726_v32 = vrot.slane %v4192_v11, 2  ;;  %v4882_v39 = vsel %vm477_vm1, %v533_v44, %v534_v2  ;;  %v4889_v12 = vsel %vm148_vm0, %v4862_v37, %v185_v53  ;;  %v43_v44 = vld [vmem:[%s7317_s0 + $0xc0] sm:$0xff] }
  0x9d   :  { %3307 = vmatmul.mubr.msk.f32.gmra.mxu0 %vm4000_vm2, %v4732_v48  ;;  %1555 = vmatmul.mubr.f32.gmra.mxu1 %v4849_v4  ;;  %7728 = vst [vmem:[#allocation95_spill] sm:$0xff] %v4882_v39  ;;  %7729 = vst [vmem:[#allocation96_spill] sm:$0xff] %v4889_v12 }
  0x9e   :  { %1254 = vmatprep.mubr.f32.mxu0 %v4853_v35  ;;  %1559 = vmatprep.mubr.f32.mxu1 %v4192_v11  ;;  %v728_v11 = vrot.slane %v4250_v46, 2  ;;  %v4918_v35 = vsel %vm477_vm1, %v534_v2, %v536_v52  ;;  %v1035_v46 = vld [vmem:[%s7316_s1 + $0x2f0] sm:$0xff]  ;;  %v1046_v2 = vld [vmem:[%s7316_s1 + $0x348] sm:$0xff]  ;;  %v730_v52 = vrot.slane %v4285_v26, 2 }
  0x9f   :  { %1885 = vmatprep.subr.mxu0 %v7672_v1  ;;  %2248 = vmatprep.subr.mxu1 %v7672_v1  ;;  %7731 = vst [vmem:[#allocation98_spill] sm:$0xff] %v4918_v35  ;;  %v1034_v26 = vld [vmem:[%s7316_s1 + $0x2e8] sm:$0xff] }
  0xa0   :  { %1886 = vmatpush1.msra.mxu0 %v1005_v45  ;;  %2249 = vmatpush1.msra.mxu1 %v1048_v59  ;;  %v1047_v45 = vld [vmem:[%s7316_s1 + $0x350] sm:$0xff]  ;;  %v4914_v59 = vsel %vm709_vm3, %v725_v33, %v726_v32  ;;  %v188_v33 = vrot.slane %v44_v14, 7 }
  0xa1   :  { %1255 = vmatmul.mubr.f32.gmra.mxu0 %v4762_v61  ;;  %1560 = vmatmul.mubr.f32.gmra.mxu1 %v4877_v42  ;;  %7730 = vst [vmem:[#allocation97_spill] sm:$0xff] %v4914_v59  ;;  %v539_v42 = vrot.slane %v4889_v12, 1 }
  0xa2   :  { %1259 = vmatprep.mubr.f32.mxu0 %v4882_v39  ;;  %3357 = vmatprep.mubr.msk.f32.mxu1 %vm4000_vm2, %v4252_v47  ;;  %v4925_v39 = vsel %vm148_vm0, %v185_v53, 0.0  ;;  %v4927_v47 = vrot.slane %v43_v44, 7  ;;  %v4942_v53 = vsel %vm709_vm3, %v726_v32, %v728_v11  ;;  %v46_v32 = vld [vmem:[%s7317_s0 + $0xd8] sm:$0xff] }
  0xa3   :  { %1887 = vmatprep.subr.mxu0 %v7672_v1  ;;  %2250 = vmatprep.subr.mxu1 %v7672_v1  ;;  %7733 = vst [vmem:[#allocation100_spill] sm:$0xff] %v4942_v53  ;;  %v4947_v44 = vsel %vm477_vm1, %v538_v20, %v539_v42  ;;  %v541_v14 = vrot.slane %v4925_v39, 1  ;;  %v45_v20 = vld [vmem:[%s7317_s0 + $0xd0] sm:$0xff] }
  0xa4   :  { %1888 = vmatpush2.msra.mxu0 %v1036_v13  ;;  %7732 = vst [vmem:[#allocation99_spill] sm:$0xff] %v4927_v47  ;;  %2251 = vmatpush1.msra.mxu1 %v1047_v45  ;;  %v731_v13 = vrot.slane %v4281_v25, 2  ;;  %7734 = vst [vmem:[#allocation101_spill] sm:$0xff] %v4947_v44  ;;  %v4954_v45 = vsel %vm148_vm0, %v4927_v47, %v188_v33  ;;  %v4958_v11 = vsel %vm148_vm0, 0.0, %v4927_v47 }
  0xa5   :  { %3309 = vmatmul.mubr.msk.f32.gmra.mxu0 %vm4000_vm2, %v4797_v22  ;;  %1565 = vmatmul.mubr.f32.gmra.mxu1 %v4914_v59  ;;  %7735 = vst [vmem:[#allocation102_spill] sm:$0xff] %v4954_v45  ;;  %v544_v59 = vrot.slane %v4954_v45, 1 }
  0xa6   :  { %1264 = vmatprep.mubr.f32.mxu0 %v4918_v35  ;;  %1569 = vmatprep.mubr.f32.mxu1 %v4281_v25  ;;  %v733_v25 = vrot.slane %v4331_v23, 2  ;;  %v4983_v35 = vsel %vm477_vm1, %v539_v42, %v541_v14  ;;  %v1033_v23 = vld [vmem:[%s7316_s1 + $0x2e0] sm:$0xff]  ;;  %v1044_v42 = vld [vmem:[%s7316_s1 + $0x338] sm:$0xff]  ;;  %v735_v14 = vrot.slane %v4377_v18, 2 }
  0xa7   :  { %1889 = vmatprep.subr.mxu0 %v7672_v1  ;;  %2252 = vmatprep.subr.mxu1 %v7672_v1  ;;  %7737 = vst [vmem:[#allocation104_spill] sm:$0xff] %v4983_v35  ;;  %v47_v18 = vld [vmem:[%s7317_s0 + $0xe0] sm:$0xff] }
  0xa8   :  { %1890 = vmatpush2.msra.mxu0 %v1035_v46  ;;  %2253 = vmatpush1.msra.mxu1 %v1046_v2  ;;  %v1045_v46 = vld [vmem:[%s7316_s1 + $0x340] sm:$0xff]  ;;  %v4979_v2 = vsel %vm709_vm3, %v730_v52, %v731_v13  ;;  %v191_v52 = vrot.slane %v46_v32, 7 }
  0xa9   :  { %1265 = vmatmul.mubr.f32.gmra.mxu0 %v4827_v28  ;;  %1570 = vmatmul.mubr.f32.gmra.mxu1 %v4942_v53  ;;  %7736 = vst [vmem:[#allocation103_spill] sm:$0xff] %v4979_v2  ;;  %v543_v53 = vrot.slane %v4958_v11, 1 }
  0xaa   :  { %1269 = vmatprep.mubr.f32.mxu0 %v4947_v44  ;;  %3359 = vmatprep.mubr.msk.f32.mxu1 %vm4000_vm2, %v4344_v56  ;;  %v4990_v44 = vsel %vm148_vm0, %v188_v33, 0.0  ;;  %v4992_v56 = vrot.slane %v45_v20, 7  ;;  %v5007_v33 = vsel %vm709_vm3, %v731_v13, %v733_v25  ;;  %v736_v20 = vrot.slane %v4373_v7, 2  ;;  %v1032_v13 = vld [vmem:[%s7316_s1 + $0x2d8] sm:$0xff] }
  0xab   :  { %1891 = vmatprep.subr.mxu0 %v7672_v1  ;;  %2254 = vmatprep.subr.mxu1 %v7672_v1  ;;  %7739 = vst [vmem:[#allocation106_spill] sm:$0xff] %v5007_v33  ;;  %v546_v32 = vrot.slane %v4990_v44, 1 }
  0xac   :  { %1892 = vmatpush2.msra.mxu0 %v1034_v26  ;;  %7738 = vst [vmem:[#allocation105_spill] sm:$0xff] %v4992_v56  ;;  %2255 = vmatpush1.msra.mxu1 %v1045_v46  ;;  %v5012_v26 = vsel %vm477_vm1, %v543_v53, %v544_v59  ;;  %v5019_v46 = vsel %vm148_vm0, %v4992_v56, %v191_v52  ;;  %v5023_v25 = vsel %vm148_vm0, 0.0, %v4992_v56  ;;  %v48_v53 = vld [vmem:[%s7317_s0 + $0xe8] sm:$0xff] }
  0xad   :  { %3311 = vmatmul.mubr.msk.f32.gmra.mxu0 %vm4000_vm2, %v4862_v37  ;;  %1575 = vmatmul.mubr.f32.gmra.mxu1 %v4979_v2  ;;  %7740 = vst [vmem:[#allocation107_spill] sm:$0xff] %v5012_v26  ;;  %7741 = vst [vmem:[#allocation108_spill] sm:$0xff] %v5019_v46  ;;  %v549_v2 = vrot.slane %v5019_v46, 1 }
  0xae   :  { %1274 = vmatprep.mubr.f32.mxu0 %v4983_v35  ;;  %1579 = vmatprep.mubr.f32.mxu1 %v4373_v7  ;;  %v738_v7 = vrot.slane %v4423_v54, 2  ;;  %v5048_v35 = vsel %vm477_vm1, %v544_v59, %v546_v32  ;;  %v1031_v54 = vld [vmem:[%s7316_s1 + $0x2d0] sm:$0xff]  ;;  %v1042_v59 = vld [vmem:[%s7316_s1 + $0x328] sm:$0xff]  ;;  %v740_v32 = vrot.slane %v4470_v40, 2 }
  0xaf   :  { %1893 = vmatprep.subr.mxu0 %v7672_v1  ;;  %2256 = vmatprep.subr.mxu1 %v7672_v1  ;;  %7743 = vst [vmem:[#allocation110_spill] sm:$0xff] %v5048_v35  ;;  %v1030_v40 = vld [vmem:[%s7316_s1 + $0x2c8] sm:$0xff] }
  0xb0   :  { %1894 = vmatpush2.msra.mxu0 %v1033_v23  ;;  %2257 = vmatpush1.msra.mxu1 %v1044_v42  ;;  %v1043_v23 = vld [vmem:[%s7316_s1 + $0x330] sm:$0xff]  ;;  %v5044_v42 = vsel %vm709_vm3, %v735_v14, %v736_v20  ;;  %v194_v14 = vrot.slane %v48_v53, 7 }
  0xb1   :  { %1275 = vmatmul.mubr.f32.gmra.mxu0 %v4889_v12  ;;  %1580 = vmatmul.mubr.f32.gmra.mxu1 %v5007_v33  ;;  %7742 = vst [vmem:[#allocation109_spill] sm:$0xff] %v5044_v42  ;;  %v548_v33 = vrot.slane %v5023_v25, 1 }
  0xb2   :  { %1279 = vmatprep.mubr.f32.mxu0 %v5012_v26  ;;  %3361 = vmatprep.mubr.msk.f32.mxu1 %vm4000_vm2, %v4432_v6  ;;  %v5055_v26 = vsel %vm148_vm0, %v191_v52, 0.0  ;;  %v5057_v6 = vrot.slane %v47_v18, 7  ;;  %v5072_v52 = vsel %vm709_vm3, %v736_v20, %v738_v7  ;;  %v741_v18 = vrot.slane %v4466_v9, 2 }
  0xb3   :  { %1895 = vmatprep.subr.mxu0 %v7672_v1  ;;  %2258 = vmatprep.subr.mxu1 %v7672_v1  ;;  %7745 = vst [vmem:[#allocation112_spill] sm:$0xff] %v5072_v52  ;;  %v5077_v53 = vsel %vm477_vm1, %v548_v33, %v549_v2  ;;  %v1041_v33 = vld [vmem:[%s7316_s1 + $0x320] sm:$0xff] }
  0xb4   :  { %7744 = vst [vmem:[#allocation111_spill] sm:$0xff] %v5057_v6  ;;  %1896 = vmatpush2.msra.mxu0 %v1032_v13  ;;  %2259 = vmatpush1.msra.mxu1 %v1043_v23  ;;  %7746 = vst [vmem:[#allocation113_spill] sm:$0xff] %v5077_v53  ;;  %v551_v13 = vrot.slane %v5055_v26, 1  ;;  %v5084_v23 = vsel %vm148_vm0, %v5057_v6, %v194_v14  ;;  %v5088_v7 = vsel %vm148_vm0, 0.0, %v5057_v6 }
  0xb5   :  { %3313 = vmatmul.mubr.msk.f32.gmra.mxu0 %vm4000_vm2, %v4927_v47  ;;  %1585 = vmatmul.mubr.f32.gmra.mxu1 %v5044_v42  ;;  %7747 = vst [vmem:[#allocation114_spill] sm:$0xff] %v5084_v23  ;;  %v5103_v20 = vsel %vm709_vm3, %v740_v32, %v741_v18  ;;  %v745_v32 = vrot.slane %v4559_v34, 2  ;;  %v1028_v34 = vld [vmem:[%s7316_s1 + $0x2b8] sm:$0xff] }
  0xb6   :  { %1284 = vmatprep.mubr.f32.mxu0 %v5048_v35  ;;  %1589 = vmatprep.mubr.f32.mxu1 %v4466_v9  ;;  %7748 = vst [vmem:[#allocation115_spill] sm:$0xff] %v5103_v20  ;;  %v553_v9 = vrot.slane %v5088_v7, 1  ;;  %v554_v35 = vrot.slane %v5084_v23, 1 }
  0xb7   :  { %1897 = vmatprep.subr.mxu0 %v7672_v1  ;;  %2260 = vmatprep.subr.mxu1 %v7672_v1 }
  0xb8   :  { %1898 = vmatpush2.msra.mxu0 %v1031_v54  ;;  %2261 = vmatpush1.msra.mxu1 %v1042_v59  ;;  %v743_v54 = vrot.slane %v4524_v24, 2  ;;  %v5107_v59 = vsel %vm477_vm1, %v549_v2, %v551_v13  ;;  %v1029_v24 = vld [vmem:[%s7316_s1 + $0x2c0] sm:$0xff]  ;;  %v1040_v2 = vld [vmem:[%s7316_s1 + $0x318] sm:$0xff]  ;;  %v746_v13 = vrot.slane %v4555_v15, 2 }
  0xb9   :  { %1285 = vmatmul.mubr.f32.gmra.mxu0 %v4954_v45  ;;  %1590 = vmatmul.mubr.f32.gmra.mxu1 %v5072_v52  ;;  %7749 = vst [vmem:[#allocation116_spill] sm:$0xff] %v5107_v59 }
  0xba   :  { %1289 = vmatprep.mubr.f32.mxu0 %v5077_v53  ;;  %3363 = vmatprep.mubr.msk.f32.mxu1 %vm4000_vm2, %v4526_v43  ;;  %v5114_v53 = vsel %vm148_vm0, %v194_v14, 0.0  ;;  %v5129_v14 = vsel %vm709_vm3, %v741_v18, %v743_v54  ;;  %v51_v43 = vld [vmem:[%s7317_s0 + $0x100] sm:$0xff]  ;;  %v1039_v18 = vld [vmem:[%s7316_s1 + $0x310] sm:$0xff]  ;;  %v5158_v54 = vsel %vm709_vm3, %v745_v32, %v746_v13  ;;  %v750_v32 = vrot.slane %v4643_v62, 2  ;;  %v54_v62 = vld [vmem:[%s7317_s0 + $0x118] sm:$0xff] }
  0xbb   :  { %1899 = vmatprep.subr.mxu0 %v7672_v1  ;;  %2262 = vmatprep.subr.mxu1 %v7672_v1  ;;  %7750 = vst [vmem:[#allocation117_spill] sm:$0xff] %v5129_v14  ;;  %7752 = vst [vmem:[#allocation119_spill] sm:$0xff] %v5158_v54 }
  0xbc   :  { %1900 = vmatpush2.msra.mxu0 %v1030_v40  ;;  %2263 = vmatpush1.msra.mxu1 %v1041_v33  ;;  %v5134_v40 = vsel %vm477_vm1, %v553_v9, %v554_v35  ;;  %v556_v33 = vrot.slane %v5114_v53, 1  ;;  %v52_v9 = vld [vmem:[%s7317_s0 + $0x108] sm:$0xff] }
  0xbd   :  { %3315 = vmatmul.mubr.msk.f32.gmra.mxu0 %vm4000_vm2, %v4992_v56  ;;  %1595 = vmatmul.mubr.f32.gmra.mxu1 %v5103_v20  ;;  %7751 = vst [vmem:[#allocation118_spill] sm:$0xff] %v5134_v40 }
  0xbe   :  { %1294 = vmatprep.mubr.f32.mxu0 %v5107_v59  ;;  %1599 = vmatprep.mubr.f32.mxu1 %v4555_v15  ;;  %v5166_v15 = vrot.slane %v51_v43, 7  ;;  %v200_v59 = vrot.slane %v52_v9, 7 }
  0xbf   :  { %1901 = vmatprep.subr.mxu0 %v7672_v1  ;;  %2264 = vmatprep.subr.mxu1 %v7672_v1 }
  0xc0   :  { %1902 = vmatpush2.msra.mxu0 %v1029_v24  ;;  %2265 = vmatpush1.msra.mxu1 %v1040_v2  ;;  %v748_v24 = vrot.slane %v4605_v17, 2  ;;  %v5162_v2 = vsel %vm477_vm1, %v554_v35, %v556_v33  ;;  %v1027_v17 = vld [vmem:[%s7316_s1 + $0x2b0] sm:$0xff]  ;;  %v1038_v35 = vld [vmem:[%s7316_s1 + $0x308] sm:$0xff]  ;;  %v751_v33 = vrot.slane %v4639_v50, 2  ;;  %v5189_v9 = vsel %vm148_vm0, %v5166_v15, %v200_v59 }
  0xc1   :  { %1295 = vmatmul.mubr.f32.gmra.mxu0 %v5019_v46  ;;  %1600 = vmatmul.mubr.f32.gmra.mxu1 %v5129_v14  ;;  %7753 = vst [vmem:[#allocation120_spill] sm:$0xff] %v5162_v2 }
  0xc2   :  { %1299 = vmatprep.mubr.f32.mxu0 %v5134_v40  ;;  %3365 = vmatprep.mubr.msk.f32.mxu1 %vm4000_vm2, %v4612_v0  ;;  %v5181_v43 = vsel %vm709_vm3, %v746_v13, %v748_v24  ;;  %v53_v13 = vld [vmem:[%s7317_s0 + $0x110] sm:$0xff]  ;;  %v1037_v24 = vld [vmem:[%s7316_s1 + $0x300] sm:$0xff]  ;;  %v564_v0 = vrot.slane %v5189_v9, 1  ;;  %v203_v40 = vrot.slane %v54_v62, 7  ;;  %v756_v62 = vrot.slane %v4698_v57, 2 }
  0xc3   :  { %1903 = vmatprep.subr.mxu0 %v7672_v1  ;;  %2266 = vmatprep.subr.mxu1 %v7672_v1  ;;  %7754 = vst [vmem:[#allocation121_spill] sm:$0xff] %v5181_v43 }
  0xc4   :  { %1904 = vmatpush2.msra.mxu0 %v1028_v34  ;;  %2267 = vmatpush1.msra.mxu1 %v1039_v18  ;;  %v5193_v34 = vsel %vm148_vm0, 0.0, %v5166_v15  ;;  %v1026_v18 = vld [vmem:[%s7316_s1 + $0x2a8] sm:$0xff] }
  0xc5   :  { %3317 = vmatmul.mubr.msk.f32.gmra.mxu0 %vm4000_vm2, %v5057_v6  ;;  %1605 = vmatmul.mubr.f32.gmra.mxu1 %v5158_v54 }
  0xc6   :  { %1304 = vmatprep.mubr.f32.mxu0 %v5162_v2  ;;  %1609 = vmatprep.mubr.f32.mxu1 %v4639_v50  ;;  %v563_v50 = vrot.slane %v5193_v34, 1  ;;  %v5222_v2 = vsel %vm148_vm0, %v200_v59, 0.0  ;;  %v1068_v59 = vld [vmem:[%s7316_s1 + $0x3f8] sm:$0xff] }
  0xc7   :  { %1905 = vmatprep.subr.mxu0 %v7672_v1  ;;  %2268 = vmatprep.subr.mxu1 %v7672_v1 }
  0xc8   :  { %1906 = vmatpush2.msra.mxu0 %v1027_v17  ;;  %2269 = vmatpush1.msra.mxu1 %v1038_v35  ;;  %v5214_v17 = vsel %vm709_vm3, %v750_v32, %v751_v33  ;;  %v753_v35 = vrot.slane %v4678_v31, 2  ;;  %v1025_v31 = vld [vmem:[%s7316_s1 + $0x2a0] sm:$0xff] }
  0xc9   :  { %1305 = vmatmul.mubr.f32.gmra.mxu0 %v5084_v23  ;;  %1610 = vmatmul.mubr.f32.gmra.mxu1 %v5181_v43  ;;  %7755 = vst [vmem:[#allocation122_spill] sm:$0xff] %v5214_v17 }
  0xca   :  { %1309 = vmatprep.mubr.f32.mxu0 %v3991_v55  ;;  %3367 = vmatprep.mubr.msk.f32.mxu1 %vm4000_vm2, %v4670_v10  ;;  %v5224_v55 = vrot.slane %v53_v13, 7  ;;  %v5239_v32 = vsel %vm709_vm3, %v751_v33, %v753_v35  ;;  %v755_v13 = vrot.slane %v4702_v36, 2  ;;  %v55_v36 = vld [vmem:[%s7317_s0 + $0x120] sm:$0xff]  ;;  %v1024_v35 = vld [vmem:[%s7316_s1 + $0x298] sm:$0xff] }
  0xcb   :  { %1907 = vmatprep.subr.mxu0 %v7672_v1  ;;  %2270 = vmatprep.subr.mxu1 %v7672_v1  ;;  %7757 = vst [vmem:[#allocation124_spill] sm:$0xff] %v5239_v32 }
  0xcc   :  { %7756 = vst [vmem:[#allocation123_spill] sm:$0xff] %v5224_v55  ;;  %1908 = vmatpush2.msra.mxu0 %v1026_v18  ;;  %2271 = vmatpush1.msra.mxu1 %v1037_v24  ;;  %v5244_v18 = vsel %vm477_vm1, %v563_v50, %v564_v0  ;;  %v566_v24 = vrot.slane %v5222_v2, 1  ;;  %v5255_v33 = vsel %vm148_vm0, 0.0, %v5224_v55  ;;  %v56_v50 = vld [vmem:[%s7317_s0 + $0x128] sm:$0xff] }
  0xcd   :  { %3319 = vmatmul.mubr.msk.f32.gmra.mxu0 %vm4000_vm2, %v3922_v30  ;;  %1615 = vmatmul.mubr.f32.gmra.mxu1 %v5214_v17  ;;  %7758 = vst [vmem:[#allocation125_spill] sm:$0xff] %v5244_v18  ;;  %v568_v10 = vrot.slane %v5255_v33, 1 }
  0xce   :  { %1314 = vmatprep.mubr.f32.mxu0 %v4036_v3  ;;  %1619 = vmatprep.mubr.f32.mxu1 %v4698_v57  ;;  %v5251_v3 = vsel %vm148_vm0, %v5224_v55, %v203_v40  ;;  %v1067_v57 = vld [vmem:[%s7316_s1 + $0x3f0] sm:$0xff] }
  0xcf   :  { %1909 = vmatprep.subr.mxu0 %v7672_v1  ;;  %2272 = vmatprep.subr.mxu1 %v7672_v1  ;;  %7759 = vst [vmem:[#allocation126_spill] sm:$0xff] %v5251_v3 }
  0xd0   :  { %1910 = vmatpush2.msra.mxu0 %v1025_v31  ;;  %2273 = vmatpush2.msra.mxu1 %v1068_v59  ;;  %v5276_v31 = vsel %vm709_vm3, %v755_v13, %v756_v62  ;;  %v758_v59 = vrot.slane %v4730_v41, 2  ;;  %v206_v13 = vrot.slane %v56_v50, 7  ;;  %v1066_v41 = vld [vmem:[%s7316_s1 + $0x3e8] sm:$0xff] }
  0xd1   :  { %1315 = vmatmul.mubr.f32.gmra.mxu0 %v3922_v30  ;;  %1620 = vmatmul.mubr.f32.gmra.mxu1 %v5239_v32  ;;  %7760 = vst [vmem:[#allocation127_spill] sm:$0xff] %v5276_v31  ;;  %v5280_v30 = vsel %vm477_vm1, %v564_v0, %v566_v24  ;;  %v569_v32 = vrot.slane %v5251_v3, 1  ;;  %v1023_v0 = vld [vmem:[%s7316_s1 + $0x290] sm:$0xff]  ;;  %v761_v24 = vrot.slane %v4762_v61, 2 }
  0xd2   :  { %1319 = vmatprep.mubr.f32.mxu0 %v5244_v18  ;;  %3369 = vmatprep.mubr.msk.f32.mxu1 %vm4000_vm2, %v4732_v48  ;;  %7761 = vst [vmem:[#allocation128_spill] sm:$0xff] %v5280_v30  ;;  %v5287_v18 = vsel %vm148_vm0, %v203_v40, 0.0  ;;  %v5289_v48 = vrot.slane %v55_v36, 7  ;;  %v760_v40 = vrot.slane %v4766_v38, 2  ;;  %v57_v38 = vld [vmem:[%s7317_s0 + $0x130] sm:$0xff] }
  0xd3   :  { %1911 = vmatprep.subr.mxu0 %v7672_v1  ;;  %2274 = vmatprep.subr.mxu1 %v7672_v1  ;;  %v5309_v36 = vsel %vm477_vm1, %v568_v10, %v569_v32  ;;  %v571_v50 = vrot.slane %v5287_v18, 1  ;;  %v58_v10 = vld [vmem:[%s7317_s0 + $0x138] sm:$0xff] }
  0xd4   :  { %7762 = vst [vmem:[#allocation129_spill] sm:$0xff] %v5289_v48  ;;  %1912 = vmatpush2.msra.mxu0 %v1024_v35  ;;  %2275 = vmatpush2.msra.mxu1 %v1067_v57  ;;  %v5304_v57 = vsel %vm709_vm3, %v756_v62, %v758_v59  ;;  %7764 = vst [vmem:[#allocation131_spill] sm:$0xff] %v5309_v36  ;;  %v5316_v35 = vsel %vm148_vm0, %v5289_v48, %v206_v13  ;;  %v5320_v62 = vsel %vm148_vm0, 0.0, %v5289_v48  ;;  %v1022_v59 = vld [vmem:[%s7316_s1 + $0x288] sm:$0xff] }
  0xd5   :  { %3321 = vmatmul.mubr.msk.f32.gmra.mxu0 %vm4000_vm2, %v5166_v15  ;;  %1625 = vmatmul.mubr.f32.gmra.mxu1 %v5276_v31  ;;  %7763 = vst [vmem:[#allocation130_spill] sm:$0xff] %v5304_v57  ;;  %7765 = vst [vmem:[#allocation132_spill] sm:$0xff] %v5316_v35  ;;  %v574_v31 = vrot.slane %v5316_v35, 1 }
  0xd6   :  { %1324 = vmatprep.mubr.f32.mxu0 %v5280_v30  ;;  %1629 = vmatprep.mubr.f32.mxu1 %v4762_v61  ;;  %v1065_v61 = vld [vmem:[%s7316_s1 + $0x3e0] sm:$0xff]  ;;  %v5345_v30 = vsel %vm477_vm1, %v569_v32, %v571_v50  ;;  %v1064_v32 = vld [vmem:[%s7316_s1 + $0x3d8] sm:$0xff]  ;;  %v766_v50 = vrot.slane %v4827_v28, 2 }
  0xd7   :  { %1913 = vmatprep.subr.mxu0 %v7672_v1  ;;  %2276 = vmatprep.subr.mxu1 %v7672_v1  ;;  %7767 = vst [vmem:[#allocation134_spill] sm:$0xff] %v5345_v30 }
  0xd8   :  { %1914 = vmatpush2.msra.mxu0 %v1023_v0  ;;  %2277 = vmatpush2.msra.mxu1 %v1066_v41  ;;  %v5341_v0 = vsel %vm709_vm3, %v760_v40, %v761_v24  ;;  %v763_v41 = vrot.slane %v4795_v16, 2  ;;  %v209_v40 = vrot.slane %v58_v10, 7  ;;  %v1021_v16 = vld [vmem:[%s7316_s1 + $0x280] sm:$0xff] }
  0xd9   :  { %1325 = vmatmul.mubr.f32.gmra.mxu0 %v5189_v9  ;;  %1630 = vmatmul.mubr.f32.gmra.mxu1 %v5304_v57  ;;  %7766 = vst [vmem:[#allocation133_spill] sm:$0xff] %v5341_v0  ;;  %v573_v57 = vrot.slane %v5320_v62, 1 }
  0xda   :  { %1329 = vmatprep.mubr.f32.mxu0 %v5309_v36  ;;  %3371 = vmatprep.mubr.msk.f32.mxu1 %vm4000_vm2, %v4797_v22  ;;  %v5352_v36 = vsel %vm148_vm0, %v206_v13, 0.0  ;;  %v5354_v22 = vrot.slane %v57_v38, 7  ;;  %v765_v13 = vrot.slane %v4831_v21, 2  ;;  %v5390_v21 = vld [vmem:[%s7316_s1 + $0x478] sm:$0xff] }
  0xdb   :  { %1915 = vmatprep.subr.mxu0 %v7672_v1  ;;  %2278 = vmatprep.subr.mxu1 %v7672_v1  ;;  %v5374_v38 = vsel %vm477_vm1, %v573_v57, %v574_v31  ;;  %v576_v10 = vrot.slane %v5352_v36, 1  ;;  %v59_v57 = vld [vmem:[%s7317_s0 + $0x140] sm:$0xff] }
  0xdc   :  { %7768 = vst [vmem:[#allocation135_spill] sm:$0xff] %v5354_v22  ;;  %1916 = vmatpush2.msra.mxu0 %v1022_v59  ;;  %2279 = vmatpush2.msra.mxu1 %v1065_v61  ;;  %v5369_v61 = vsel %vm709_vm3, %v761_v24, %v763_v41  ;;  %7770 = vst [vmem:[#allocation137_spill] sm:$0xff] %v5374_v38  ;;  %v5381_v59 = vsel %vm148_vm0, %v5354_v22, %v209_v40  ;;  %v5385_v24 = vsel %vm148_vm0, 0.0, %v5354_v22  ;;  %v60_v41 = vld [vmem:[%s7317_s0 + $0x148] sm:$0xff] }
  0xdd   :  { %3323 = vmatmul.mubr.msk.f32.gmra.mxu0 %vm4000_vm2, %v5224_v55  ;;  %1635 = vmatmul.mubr.f32.gmra.mxu1 %v5341_v0  ;;  %7769 = vst [vmem:[#allocation136_spill] sm:$0xff] %v5369_v61  ;;  %7771 = vst [vmem:[#allocation138_spill] sm:$0xff] %v5381_v59  ;;  %v579_v0 = vrot.slane %v5381_v59, 1 }
  0xde   :  { %1334 = vmatprep.mubr.f32.mxu0 %v5345_v30  ;;  %1639 = vmatprep.mubr.f32.mxu1 %v4827_v28  ;;  %v768_v28 = vrot.slane %v4860_v60, 2  ;;  %v5412_v30 = vsel %vm477_vm1, %v574_v31, %v576_v10  ;;  %v1062_v60 = vld [vmem:[%s7316_s1 + $0x3c8] sm:$0xff]  ;;  %v771_v10 = vrot.slane %v4889_v12, 2 }
  0xdf   :  { %1917 = vmatprep.subr.mxu0 %v7672_v1  ;;  %2280 = vmatprep.subr.mxu1 %v7672_v1  ;;  %7773 = vst [vmem:[#allocation140_spill] sm:$0xff] %v5412_v30 }
  0xe0   :  { %1918 = vmatpush2.msra.mxu0 %v1021_v16  ;;  %2281 = vmatpush2.msra.mxu1 %v1064_v32  ;;  %v1063_v16 = vld [vmem:[%s7316_s1 + $0x3d0] sm:$0xff]  ;;  %v5408_v32 = vsel %vm709_vm3, %v765_v13, %v766_v50  ;;  %v212_v13 = vrot.slane %v60_v41, 7  ;;  %v5433_v31 = vsel %vm709_vm3, %v766_v50, %v768_v28 }
  0xe1   :  { %1335 = vmatmul.mubr.f32.gmra.mxu0 %v5251_v3  ;;  %1640 = vmatmul.mubr.f32.gmra.mxu1 %v5369_v61  ;;  %7772 = vst [vmem:[#allocation139_spill] sm:$0xff] %v5408_v32  ;;  %v578_v61 = vrot.slane %v5385_v24, 1  ;;  %7775 = vst [vmem:[#allocation142_spill] sm:$0xff] %v5433_v31  ;;  %v61_v28 = vld [vmem:[%s7317_s0 + $0x150] sm:$0xff] }
  0xe2   :  { %1339 = vmatprep.mubr.f32.mxu0 %v5374_v38  ;;  %3373 = vmatprep.mubr.msk.f32.mxu1 %vm4000_vm2, %v4862_v37  ;;  %v5419_v38 = vsel %vm148_vm0, %v209_v40, 0.0  ;;  %v5421_v37 = vrot.slane %v59_v57, 7  ;;  %v770_v40 = vrot.slane %v4893_v27, 2  ;;  %v62_v27 = vld [vmem:[%s7317_s0 + $0x158] sm:$0xff]  ;;  %v5478_v17 = vrot.slane %v61_v28, 7 }
  0xe3   :  { %3558 = vmatprep.subr.mxu0 %v5390_v21  ;;  %2282 = vmatprep.subr.mxu1 %v7672_v1  ;;  %v5438_v57 = vsel %vm477_vm1, %v578_v61, %v579_v0  ;;  %v581_v41 = vrot.slane %v5419_v38, 1  ;;  %v1061_v61 = vld [vmem:[%s7316_s1 + $0x3c0] sm:$0xff] }
  0xe4   :  { %7774 = vst [vmem:[#allocation141_spill] sm:$0xff] %v5421_v37  ;;  %2283 = vmatpush2.msra.mxu1 %v1063_v16  ;;  %7776 = vst [vmem:[#allocation143_spill] sm:$0xff] %v5438_v57  ;;  %v5444_v16 = vsel %vm148_vm0, %v5421_v37, %v212_v13  ;;  %v5466_v50 = vsel %vm709_vm3, %v770_v40, %v771_v10  ;;  %v776_v40 = vrot.slane %v4954_v45, 2 }
  0xe5   :  { %3325 = vmatmul.mubr.msk.f32.gmra.mxu0 %vm4000_vm2, %v5289_v48  ;;  %1645 = vmatmul.mubr.f32.gmra.mxu1 %v5408_v32  ;;  %7777 = vst [vmem:[#allocation144_spill] sm:$0xff] %v5444_v16  ;;  %7778 = vst [vmem:[#allocation145_spill] sm:$0xff] %v5466_v50  ;;  %v584_v32 = vrot.slane %v5444_v16, 1 }
  0xe6   :  { %1344 = vmatprep.mubr.f32.mxu0 %v5412_v30  ;;  %1649 = vmatprep.mubr.f32.mxu1 %v4889_v12  ;;  %v5448_v30 = vsel %vm148_vm0, 0.0, %v5421_v37  ;;  %v5470_v12 = vsel %vm477_vm1, %v579_v0, %v581_v41  ;;  %7780 = vst [vmem:[#allocation147_spill] sm:$0xff] %v5478_v17 }
  0xe7   :  { %2284 = vmatprep.subr.mxu1 %v7672_v1  ;;  %7779 = vst [vmem:[#allocation146_spill] sm:$0xff] %v5470_v12 }
  0xe8   :  { %2285 = vmatpush2.msra.mxu1 %v1062_v60  ;;  %v773_v60 = vrot.slane %v4925_v39, 2  ;;  %v1060_v39 = vld [vmem:[%s7316_s1 + $0x3b8] sm:$0xff] }
  0xe9   :  { %1345 = vmatmul.mubr.f32.gmra.mxu0 %v5316_v35  ;;  %1650 = vmatmul.mubr.f32.gmra.mxu1 %v5433_v31  ;;  %v583_v31 = vrot.slane %v5448_v30, 1 }
  0xea   :  { %1349 = vmatprep.mubr.f32.mxu0 %v5438_v57  ;;  %3375 = vmatprep.mubr.msk.f32.mxu1 %vm4000_vm2, %v4927_v47  ;;  %v5476_v57 = vsel %vm148_vm0, %v212_v13, 0.0  ;;  %v215_v47 = vrot.slane %v62_v27, 7  ;;  %v5490_v0 = vsel %vm709_vm3, %v771_v10, %v773_v60  ;;  %v775_v13 = vrot.slane %v4958_v11, 2  ;;  %v63_v11 = vld [vmem:[%s7317_s0 + $0x160] sm:$0xff]  ;;  %v1059_v10 = vld [vmem:[%s7316_s1 + $0x3b0] sm:$0xff] }
  0xeb   :  { %2286 = vmatprep.subr.mxu1 %v7672_v1  ;;  %7781 = vst [vmem:[#allocation148_spill] sm:$0xff] %v5490_v0  ;;  %v5495_v41 = vsel %vm477_vm1, %v583_v31, %v584_v32  ;;  %v586_v28 = vrot.slane %v5476_v57, 1  ;;  %v64_v31 = vld [vmem:[%s7317_s0 + $0x168] sm:$0xff] }
  0xec   :  { %2287 = vmatpush2.msra.mxu1 %v1061_v61  ;;  %7782 = vst [vmem:[#allocation149_spill] sm:$0xff] %v5495_v41  ;;  %v5501_v27 = vsel %vm148_vm0, %v5478_v17, %v215_v47  ;;  %v5505_v61 = vsel %vm148_vm0, 0.0, %v5478_v17  ;;  %v5523_v60 = vsel %vm709_vm3, %v775_v13, %v776_v40  ;;  %v781_v13 = vrot.slane %v5019_v46, 2 }
  0xed   :  { %3327 = vmatmul.mubr.msk.f32.gmra.mxu0 %vm4000_vm2, %v5354_v22  ;;  %1655 = vmatmul.mubr.f32.gmra.mxu1 %v5466_v50  ;;  %7783 = vst [vmem:[#allocation150_spill] sm:$0xff] %v5501_v27  ;;  %7784 = vst [vmem:[#allocation151_spill] sm:$0xff] %v5523_v60  ;;  %v5535_v50 = vrot.slane %v63_v11, 7 }
  0xee   :  { %1354 = vmatprep.mubr.f32.mxu0 %v5470_v12  ;;  %1659 = vmatprep.mubr.f32.mxu1 %v4954_v45  ;;  %v5527_v45 = vsel %vm477_vm1, %v584_v32, %v586_v28  ;;  %v588_v12 = vrot.slane %v5505_v61, 1  ;;  %v780_v32 = vrot.slane %v5023_v25, 2 }
  0xef   :  { %2288 = vmatprep.subr.mxu1 %v7672_v1  ;;  %7785 = vst [vmem:[#allocation152_spill] sm:$0xff] %v5527_v45  ;;  %7786 = vst [vmem:[#allocation153_spill] sm:$0xff] %v5535_v50 }
  0xf0   :  { %2289 = vmatpush2.msra.mxu1 %v1060_v39  ;;  %v778_v39 = vrot.slane %v4990_v44, 2  ;;  %v1058_v44 = vld [vmem:[%s7316_s1 + $0x3a8] sm:$0xff]  ;;  %v5574_v25 = vsel %vm709_vm3, %v780_v32, %v781_v13 }
  0xf1   :  { %1355 = vmatmul.mubr.f32.gmra.mxu0 %v5381_v59  ;;  %1660 = vmatmul.mubr.f32.gmra.mxu1 %v5490_v0  ;;  %v589_v0 = vrot.slane %v5501_v27, 1  ;;  %7790 = vst [vmem:[#allocation157_spill] sm:$0xff] %v5574_v25 }
  0xf2   :  { %1359 = vmatprep.mubr.f32.mxu0 %v5495_v41  ;;  %3377 = vmatprep.mubr.msk.f32.mxu1 %vm4000_vm2, %v4992_v56  ;;  %v5533_v41 = vsel %vm148_vm0, %v215_v47, 0.0  ;;  %v218_v56 = vrot.slane %v64_v31, 7  ;;  %v5547_v47 = vsel %vm709_vm3, %v776_v40, %v778_v39  ;;  %v783_v40 = vrot.slane %v5055_v26, 2  ;;  %v5592_v26 = vld [vmem:[%s7317_s0 + $0xf8] sm:$0xff] }
  0xf3   :  { %2290 = vmatprep.subr.mxu1 %v7672_v1  ;;  %7787 = vst [vmem:[#allocation154_spill] sm:$0xff] %v5547_v47  ;;  %v5552_v28 = vsel %vm477_vm1, %v588_v12, %v589_v0  ;;  %v591_v11 = vrot.slane %v5533_v41, 1  ;;  %v1057_v12 = vld [vmem:[%s7316_s1 + $0x3a0] sm:$0xff] }
  0xf4   :  { %2291 = vmatpush2.msra.mxu1 %v1059_v10  ;;  %7788 = vst [vmem:[#allocation155_spill] sm:$0xff] %v5552_v28  ;;  %v5558_v31 = vsel %vm148_vm0, %v5535_v50, %v218_v56  ;;  %v5562_v10 = vsel %vm148_vm0, 0.0, %v5535_v50 }
  0xf5   :  { %3329 = vmatmul.mubr.msk.f32.gmra.mxu0 %vm4000_vm2, %v5421_v37  ;;  %1665 = vmatmul.mubr.f32.gmra.mxu1 %v5523_v60  ;;  %7789 = vst [vmem:[#allocation156_spill] sm:$0xff] %v5558_v31  ;;  %v5578_v39 = vsel %vm477_vm1, %v589_v0, %v591_v11  ;;  %v1056_v0 = vld [vmem:[%s7316_s1 + $0x398] sm:$0xff]  ;;  %v785_v11 = vrot.slane %v5088_v7, 2  ;;  %v1055_v7 = vld [vmem:[%s7316_s1 + $0x390] sm:$0xff] }
  0xf6   :  { %1364 = vmatprep.mubr.f32.mxu0 %v5527_v45  ;;  %1669 = vmatprep.mubr.f32.mxu1 %v5019_v46  ;;  %v594_v46 = vrot.slane %v5558_v31, 1 }
  0xf7   :  { %2292 = vmatprep.subr.mxu1 %v7672_v1 }
  0xf8   :  { %2293 = vmatpush2.msra.mxu1 %v1058_v44  ;;  %v593_v44 = vrot.slane %v5562_v10, 1 }
  0xf9   :  { %1365 = vmatmul.mubr.f32.gmra.mxu0 %v5444_v16  ;;  %1670 = vmatmul.mubr.f32.gmra.mxu1 %v5547_v47  ;;  %v7546_v47 = vrot.slane %v5592_v26, 7 }
  0xfa   :  { %1369 = vmatprep.mubr.f32.mxu0 %v5552_v28  ;;  %3379 = vmatprep.mubr.msk.f32.mxu1 %vm4000_vm2, %v5057_v6  ;;  %v49_v28 = vld [vmem:[%s7317_s0 + $0xf0] sm:$0xff]  ;;  %v5587_v6 = vsel %vm148_vm0, %v218_v56, 0.0  ;;  %v5604_v56 = vsel %vm709_vm3, %v781_v13, %v783_v40  ;;  %v5611_v45 = vsel %vm477_vm1, %v593_v44, %v594_v46 }
  0xfb   :  { %2294 = vmatprep.subr.mxu1 %v7672_v1  ;;  %7791 = vst [vmem:[#allocation158_spill] sm:$0xff] %v5604_v56  ;;  %v5606_v32 = vrot.slane %v49_v28, 7  ;;  %7793 = vst [vmem:[#allocation160_spill] sm:$0xff] %v5611_v45  ;;  %v788_v28 = vrot.slane %v5114_v53, 2 }
  0xfc   :  { %2295 = vmatpush2.msra.mxu1 %v1057_v12  ;;  %v786_v12 = vrot.slane %v5084_v23, 2 }
  0xfd   :  { %3331 = vmatmul.mubr.msk.f32.gmra.mxu0 %vm4000_vm2, %v5478_v17  ;;  %1675 = vmatmul.mubr.f32.gmra.mxu1 %v5574_v25  ;;  %7792 = vst [vmem:[#allocation159_spill] sm:$0xff] %v5606_v32  ;;  %v596_v25 = vrot.slane %v5587_v6, 1 }
  0xfe   :  { %1374 = vmatprep.mubr.f32.mxu0 %v5578_v39  ;;  %1679 = vmatprep.mubr.f32.mxu1 %v5084_v23  ;;  %v5626_v13 = vsel %vm709_vm3, %v785_v11, %v786_v12  ;;  %v5640_v23 = vsel %vm148_vm0, %v5606_v32, %v7546_v47  ;;  %v5653_v53 = vsel %vm709_vm3, %v786_v12, %v788_v28  ;;  %v1053_v47 = vld [vmem:[%s7316_s1 + $0x380] sm:$0xff] }
  0xff   :  { %2296 = vmatprep.subr.mxu1 %v7672_v1  ;;  %7794 = vst [vmem:[#allocation161_spill] sm:$0xff] %v5626_v13  ;;  %7798 = vst [vmem:[#allocation165_spill] sm:$0xff] %v5640_v23 }
 0x100   :  { %2297 = vmatpush2.msra.mxu1 %v1056_v0  ;;  %v5634_v0 = vsel %vm477_vm1, %v594_v46, %v596_v25  ;;  %v1054_v46 = vld [vmem:[%s7316_s1 + $0x388] sm:$0xff]  ;;  %7799 = vst [vmem:[#allocation166_spill] sm:$0xff] %v5653_v53 }
 0x101   :  { %1375 = vmatmul.mubr.f32.gmra.mxu0 %v5501_v27  ;;  %1680 = vmatmul.mubr.f32.gmra.mxu1 %v5604_v56  ;;  %7797 = vst [vmem:[#allocation164_spill] sm:$0xff] %v5634_v0 }
 0x102   :  { %1379 = vmatprep.mubr.f32.mxu0 %v5611_v45  ;;  %3381 = vmatprep.mubr.msk.f32.mxu1 %vm4000_vm2, %v5606_v32  ;;  %v5629_v40 = vpop.f32.mrf.mxu0  ;;  %v5631_v44 = vpop.f32.mrf.mxu1 }
 0x103   :  { %7795 = vst [vmem:[#allocation162_spill] sm:$0xff] %v5629_v40  ;;  %7796 = vst [vmem:[#allocation163_spill] sm:$0xff] %v5631_v44  ;;  %2298 = vmatprep.subr.mxu1 %v7672_v1  ;;  %v7814_v44 = vld [vmem:[#allocation32_spill] sm:$0xff] }
 0x104   :  { %v1153_v45 = vpop.f32.mrf.mxu0  ;;  %v1393_v11 = vpop.f32.mrf.mxu1  ;;  %2299 = vmatpush2.msra.mxu1 %v1055_v7 }
 0x105   :  { %3333 = vmatmul.mubr.msk.f32.gmra.mxu0 %vm4000_vm2, %v5535_v50  ;;  %1685 = vmatmul.mubr.f32.gmra.mxu1 %v5626_v13 }
 0x106   :  { %1384 = vmatprep.mubr.f32.mxu0 %v5634_v0  ;;  %1689 = vmatprep.mubr.f32.mxu1 %v5640_v23 }
 0x107   :  { %v5655_v45 = vpop.f32.mrf.mxu0  ;;  %v5657_v25 = vpop.f32.mrf.mxu1  ;;  %2300 = vmatprep.subr.mxu1 %v7672_v1 }
 0x108   :  { %7800 = vst [vmem:[#allocation167_spill] sm:$0xff] %v5655_v45  ;;  %7801 = vst [vmem:[#allocation168_spill] sm:$0xff] %v5657_v25  ;;  %2301 = vmatpush2.msra.mxu1 %v1054_v46  ;;  %v1083_v46 = vld [vmem:[%s7316_s1 + $0x470] sm:$0xff] }
 0x109   :  { %1385 = vmatmul.mubr.f32.gmra.mxu0 %v5558_v31  ;;  %1690 = vmatmul.mubr.f32.gmra.mxu1 %v5653_v53  ;;  %v1158_v7 = vpop.f32.mrf.mxu0  ;;  %v1398_v11 = vpop.f32.mrf.mxu1  ;;  %v1079_v25 = vld [vmem:[%s7316_s1 + $0x450] sm:$0xff] }
 0x10a   :  { %3383 = vmatprep.mubr.msk.f32.mxu1 %vm4000_vm2, %v5166_v15  ;;  %1919 = vmatprep.mubr.f32.mxu0 %v4784_v49  ;;  %v795_v15 = vrot.slane %v5193_v34, 2  ;;  %v7886_v45 = vld [vmem:[#allocation92_spill] sm:$0xff] }
 0x10b   :  { %2302 = vmatprep.subr.mxu1 %v7672_v1  ;;  %v796_v1 = vrot.slane %v5189_v9, 2 }
 0x10c   :  { %v5670_v12 = vpop.f32.mrf.mxu0  ;;  %v5672_v28 = vpop.f32.mrf.mxu1  ;;  %2303 = vmatpush2.msra.mxu1 %v1053_v47 }
 0x10d   :  { %7802 = vst [vmem:[#allocation169_spill] sm:$0xff] %v5670_v12  ;;  %7803 = vst [vmem:[#allocation170_spill] sm:$0xff] %v5672_v28  ;;  %1695 = vmatmul.mubr.f32.gmra.mxu1 %v4716_v8  ;;  %1920 = vmatmul.mubr.f32.vlgmr.msra.gmra.mxu0 %v4077_v19  ;;  %v1082_v19 = vld [vmem:[%s7316_s1 + $0x468] sm:$0xff] }
 0x10e   :  { %3559 = vmatpush3.msra.mxu0 %v5390_v21  ;;  %1699 = vmatprep.mubr.f32.mxu1 %v5189_v9  ;;  %v1163_v49 = vpop.f32.mrf.mxu0  ;;  %v1403_v7 = vpop.f32.mrf.mxu1  ;;  %v798_v9 = vrot.slane %v5222_v2, 2  ;;  %v1078_v8 = vld [vmem:[%s7316_s1 + $0x448] sm:$0xff] }
 0x10f   :  { %1924 = vmatprep.mubr.f32.mxu0 %v4812_v63  ;;  %3560 = vmatprep.subr.mxu0 %v1083_v46  ;;  %v5698_v63 = vsel %vm709_vm3, %v795_v15, %v796_v1  ;;  %v7808_v15 = vld [vmem:[#allocation94_spill] sm:$0xff]  ;;  %v800_v7 = vrot.slane %v5255_v33, 2 }
 0x110   :  { %v5684_v11 = vpop.f32.mrf.mxu0  ;;  %3561 = vmatpush3.msra.mxu0 %v1083_v46  ;;  %v5713_v2 = vsel %vm709_vm3, %v796_v1, %v798_v9  ;;  %v7810_v1 = vld [vmem:[#allocation97_spill] sm:$0xff] }
 0x111   :  { %7804 = vst [vmem:[#allocation171_spill] sm:$0xff] %v5684_v11  ;;  %1700 = vmatmul.mubr.f32.gmra.mxu1 %v4747_v51  ;;  %1925 = vmatmul.mubr.f32.gmra.mxu0 %v4108_v29  ;;  %v5691_v21 = vpop.f32.mrf.mxu1  ;;  %v1081_v29 = vld [vmem:[%s7316_s1 + $0x460] sm:$0xff]  ;;  %v7881_v11 = vld [vmem:[#allocation19_spill] sm:$0xff] }
 0x112   :  { %7805 = vst [vmem:[#allocation172_spill] sm:$0xff] %v5691_v21  ;;  %3385 = vmatprep.mubr.msk.f32.mxu1 %vm4000_vm2, %v5224_v55  ;;  %1929 = vmatprep.mubr.f32.mxu0 %v4849_v4  ;;  %v1168_v34 = vpop.f32.mrf.mxu0  ;;  %v1080_v21 = vld [vmem:[%s7316_s1 + $0x458] sm:$0xff]  ;;  %v7862_v4 = vld [vmem:[#allocation82_spill] sm:$0xff] }
 0x113   :  { %v1408_v47 = vpop.f32.mrf.mxu1  ;;  %3562 = vmatprep.subr.mxu0 %v1082_v19 }
 0x114   :  { %3563 = vmatpush3.msra.mxu0 %v1082_v19  ;;  %v801_v19 = vrot.slane %v5251_v3, 2 }
 0x115   :  { %1705 = vmatmul.mubr.f32.gmra.mxu1 %v5698_v63  ;;  %1930 = vmatmul.mubr.f32.gmra.mxu0 %v4178_v5  ;;  %v5706_v46 = vpop.f32.mrf.mxu0  ;;  %v5708_v49 = vpop.f32.mrf.mxu1 }
 0x116   :  { %7806 = vst [vmem:[#allocation173_spill] sm:$0xff] %v5706_v46  ;;  %7807 = vst [vmem:[#allocation174_spill] sm:$0xff] %v5708_v49  ;;  %1709 = vmatprep.mubr.f32.mxu1 %v5251_v3  ;;  %1934 = vmatprep.mubr.f32.mxu0 %v7808_v15  ;;  %v7809_v49 = vld [vmem:[#allocation29_spill] sm:$0xff]  ;;  %v5727_v33 = vsel %vm709_vm3, %v800_v7, %v801_v19  ;;  %v7815_v7 = vld [vmem:[#allocation100_spill] sm:$0xff] }
 0x117   :  { %v1173_v34 = vpop.f32.mrf.mxu0  ;;  %v1413_v47 = vpop.f32.mrf.mxu1  ;;  %3564 = vmatprep.subr.mxu0 %v1081_v29  ;;  %7811 = vst [vmem:[#allocation29_spill] sm:$0xff] %v5727_v33  ;;  %v7880_v46 = vld [vmem:[#allocation89_spill] sm:$0xff] }
 0x118   :  { %3565 = vmatpush3.msra.mxu0 %v1081_v29  ;;  %v803_v34 = vrot.slane %v5287_v18, 2 }
 0x119   :  { %1710 = vmatmul.mubr.f32.gmra.mxu1 %v5713_v2  ;;  %1935 = vmatmul.mubr.f32.gmra.mxu0 %v7809_v49 }
 0x11a   :  { %3387 = vmatprep.mubr.msk.f32.mxu1 %vm4000_vm2, %v5289_v48  ;;  %1939 = vmatprep.mubr.f32.mxu0 %v7810_v1  ;;  %v5729_v9 = vpop.f32.mrf.mxu0  ;;  %v5731_v29 = vpop.f32.mrf.mxu1  ;;  %v7819_v48 = vld [vmem:[#allocation39_spill] sm:$0xff]  ;;  %v7857_v1 = vld [vmem:[#allocation4_spill] sm:$0xff] }
 0x11b   :  { %7812 = vst [vmem:[#allocation175_spill] sm:$0xff] %v5729_v9  ;;  %7813 = vst [vmem:[#allocation176_spill] sm:$0xff] %v5731_v29  ;;  %3566 = vmatprep.subr.mxu0 %v1080_v21  ;;  %v5742_v29 = vsel %vm709_vm3, %v801_v19, %v803_v34 }
 0x11c   :  { %v1178_v47 = vpop.f32.mrf.mxu0  ;;  %v1418_v28 = vpop.f32.mrf.mxu1  ;;  %3567 = vmatpush3.msra.mxu0 %v1080_v21  ;;  %7816 = vst [vmem:[#allocation32_spill] sm:$0xff] %v5742_v29  ;;  %v806_v21 = vrot.slane %v5316_v35, 2 }
 0x11d   :  { %1715 = vmatmul.mubr.f32.gmra.mxu1 %v5727_v33  ;;  %1940 = vmatmul.mubr.f32.gmra.mxu0 %v7814_v44  ;;  %v805_v28 = vrot.slane %v5320_v62, 2  ;;  %v7820_v62 = vld [vmem:[#allocation103_spill] sm:$0xff] }
 0x11e   :  { %1719 = vmatprep.mubr.f32.mxu1 %v5316_v35  ;;  %1944 = vmatprep.mubr.f32.mxu0 %v7815_v7  ;;  %v5744_v18 = vpop.f32.mrf.mxu0 }
 0x11f   :  { %7817 = vst [vmem:[#allocation177_spill] sm:$0xff] %v5744_v18  ;;  %v5748_v47 = vpop.f32.mrf.mxu1  ;;  %3568 = vmatprep.subr.mxu0 %v1079_v25  ;;  %v5760_v34 = vsel %vm709_vm3, %v805_v28, %v806_v21  ;;  %v7825_v28 = vld [vmem:[#allocation106_spill] sm:$0xff] }
 0x120   :  { %7818 = vst [vmem:[#allocation178_spill] sm:$0xff] %v5748_v47  ;;  %v1183_v51 = vpop.f32.mrf.mxu0  ;;  %3569 = vmatpush3.msra.mxu0 %v1079_v25  ;;  %7821 = vst [vmem:[#allocation39_spill] sm:$0xff] %v5760_v34 }
 0x121   :  { %1720 = vmatmul.mubr.f32.gmra.mxu1 %v5742_v29  ;;  %1945 = vmatmul.mubr.f32.gmra.mxu0 %v7819_v48  ;;  %v1423_v19 = vpop.f32.mrf.mxu1  ;;  %v808_v51 = vrot.slane %v5352_v36, 2 }
 0x122   :  { %3389 = vmatprep.mubr.msk.f32.mxu1 %vm4000_vm2, %v5354_v22  ;;  %1949 = vmatprep.mubr.f32.mxu0 %v7820_v62  ;;  %v1077_v19 = vld [vmem:[%s7316_s1 + $0x440] sm:$0xff]  ;;  %v7824_v22 = vld [vmem:[#allocation43_spill] sm:$0xff] }
 0x123   :  { %v5763_v25 = vpop.f32.mrf.mxu0  ;;  %v5765_v47 = vpop.f32.mrf.mxu1  ;;  %3570 = vmatprep.subr.mxu0 %v1078_v8  ;;  %v5775_v36 = vsel %vm709_vm3, %v806_v21, %v808_v51 }
 0x124   :  { %7822 = vst [vmem:[#allocation179_spill] sm:$0xff] %v5763_v25  ;;  %7823 = vst [vmem:[#allocation180_spill] sm:$0xff] %v5765_v47  ;;  %3571 = vmatpush3.msra.mxu0 %v1078_v8  ;;  %v810_v47 = vrot.slane %v5385_v24, 2  ;;  %v811_v8 = vrot.slane %v5381_v59, 2 }
 0x125   :  { %1725 = vmatmul.mubr.f32.gmra.mxu1 %v5760_v34  ;;  %1950 = vmatmul.mubr.f32.gmra.mxu0 %v7824_v22  ;;  %v1188_v35 = vpop.f32.mrf.mxu0  ;;  %v1428_v62 = vpop.f32.mrf.mxu1  ;;  %7826 = vst [vmem:[#allocation43_spill] sm:$0xff] %v5775_v36 }
 0x126   :  { %1729 = vmatprep.mubr.f32.mxu1 %v5381_v59  ;;  %1954 = vmatprep.mubr.f32.mxu0 %v7825_v28  ;;  %v1076_v35 = vld [vmem:[%s7316_s1 + $0x438] sm:$0xff]  ;;  %v7829_v62 = vld [vmem:[#allocation47_spill] sm:$0xff]  ;;  %v5793_v24 = vsel %vm709_vm3, %v810_v47, %v811_v8  ;;  %v1075_v59 = vld [vmem:[%s7316_s1 + $0x430] sm:$0xff] }
 0x127   :  { %3572 = vmatprep.subr.mxu0 %v1077_v19  ;;  %7830 = vst [vmem:[#allocation47_spill] sm:$0xff] %v5793_v24  ;;  %v1074_v28 = vld [vmem:[%s7316_s1 + $0x428] sm:$0xff] }
 0x128   :  { %v5779_v7 = vpop.f32.mrf.mxu0  ;;  %v5781_v3 = vpop.f32.mrf.mxu1  ;;  %3573 = vmatpush3.msra.mxu0 %v1077_v19  ;;  %v813_v19 = vrot.slane %v5419_v38, 2 }
 0x129   :  { %7827 = vst [vmem:[#allocation181_spill] sm:$0xff] %v5779_v7  ;;  %7828 = vst [vmem:[#allocation182_spill] sm:$0xff] %v5781_v3  ;;  %1730 = vmatmul.mubr.f32.gmra.mxu1 %v5775_v36  ;;  %1955 = vmatmul.mubr.f32.gmra.mxu0 %v7829_v62 }
 0x12a   :  { %3391 = vmatprep.mubr.msk.f32.mxu1 %vm4000_vm2, %v5421_v37  ;;  %1959 = vmatprep.mubr.f32.mxu0 %v5044_v42  ;;  %v1193_v21 = vpop.f32.mrf.mxu0  ;;  %v1433_v51 = vpop.f32.mrf.mxu1  ;;  %v7832_v37 = vld [vmem:[#allocation54_spill] sm:$0xff]  ;;  %v5808_v38 = vsel %vm709_vm3, %v811_v8, %v813_v19 }
 0x12b   :  { %3574 = vmatprep.subr.mxu0 %v1076_v35  ;;  %7834 = vst [vmem:[#allocation184_spill] sm:$0xff] %v5808_v38  ;;  %v816_v21 = vrot.slane %v5444_v16, 2 }
 0x12c   :  { %v5796_v3 = vpop.f32.mrf.mxu0  ;;  %3575 = vmatpush3.msra.mxu0 %v1076_v35  ;;  %v815_v35 = vrot.slane %v5448_v30, 2 }
 0x12d   :  { %7831 = vst [vmem:[#allocation183_spill] sm:$0xff] %v5796_v3  ;;  %1735 = vmatmul.mubr.f32.gmra.mxu1 %v5793_v24  ;;  %1960 = vmatmul.mubr.f32.gmra.mxu0 %v7832_v37  ;;  %v5803_v42 = vpop.f32.mrf.mxu1 }
 0x12e   :  { %7833 = vst [vmem:[#allocation54_spill] sm:$0xff] %v5803_v42  ;;  %1739 = vmatprep.mubr.f32.mxu1 %v5444_v16  ;;  %1964 = vmatprep.mubr.f32.mxu0 %v5072_v52  ;;  %v1198_v47 = vpop.f32.mrf.mxu0  ;;  %v7835_v42 = vld [vmem:[#allocation59_spill] sm:$0xff]  ;;  %v5826_v30 = vsel %vm709_vm3, %v815_v35, %v816_v21  ;;  %v7843_v16 = vld [vmem:[#allocation69_spill] sm:$0xff] }
 0x12f   :  { %v1438_v51 = vpop.f32.mrf.mxu1  ;;  %3576 = vmatprep.subr.mxu0 %v1075_v59  ;;  %7838 = vst [vmem:[#allocation186_spill] sm:$0xff] %v5826_v30 }
 0x130   :  { %3577 = vmatpush3.msra.mxu0 %v1075_v59  ;;  %v818_v59 = vrot.slane %v5476_v57, 2  ;;  %v7839_v51 = vld [vmem:[#allocation62_spill] sm:$0xff]  ;;  %v820_v57 = vrot.slane %v5505_v61, 2  ;;  %v823_v61 = vrot.slane %v5533_v41, 2 }
 0x131   :  { %1740 = vmatmul.mubr.f32.gmra.mxu1 %v5808_v38  ;;  %1965 = vmatmul.mubr.f32.gmra.mxu0 %v7835_v42  ;;  %v5817_v52 = vpop.f32.mrf.mxu0  ;;  %v5819_v8 = vpop.f32.mrf.mxu1  ;;  %v1073_v41 = vld [vmem:[%s7316_s1 + $0x420] sm:$0xff] }
 0x132   :  { %7836 = vst [vmem:[#allocation59_spill] sm:$0xff] %v5817_v52  ;;  %7837 = vst [vmem:[#allocation185_spill] sm:$0xff] %v5819_v8  ;;  %3393 = vmatprep.mubr.msk.f32.mxu1 %vm4000_vm2, %v5478_v17  ;;  %1969 = vmatprep.mubr.f32.mxu0 %v5103_v20  ;;  %v5838_v35 = vsel %vm709_vm3, %v816_v21, %v818_v59  ;;  %v7856_v20 = vld [vmem:[#allocation79_spill] sm:$0xff] }
 0x133   :  { %v1203_v19 = vpop.f32.mrf.mxu0  ;;  %v1443_v47 = vpop.f32.mrf.mxu1  ;;  %3578 = vmatprep.subr.mxu0 %v1074_v28  ;;  %7842 = vst [vmem:[#allocation188_spill] sm:$0xff] %v5838_v35 }
 0x134   :  { %3579 = vmatpush3.msra.mxu0 %v1074_v28  ;;  %v821_v19 = vrot.slane %v5501_v27, 2 }
 0x135   :  { %1745 = vmatmul.mubr.f32.gmra.mxu1 %v5826_v30  ;;  %1970 = vmatmul.mubr.f32.gmra.mxu0 %v7839_v51 }
 0x136   :  { %1749 = vmatprep.mubr.f32.mxu1 %v5501_v27  ;;  %1974 = vmatprep.mubr.f32.mxu0 %v5129_v14  ;;  %v5833_v8 = vpop.f32.mrf.mxu0  ;;  %v5835_v17 = vpop.f32.mrf.mxu1  ;;  %v5851_v21 = vsel %vm709_vm3, %v820_v57, %v821_v19  ;;  %v825_v57 = vrot.slane %v5562_v10, 2  ;;  %v7853_v10 = vld [vmem:[#allocation122_spill] sm:$0xff]  ;;  %v828_v14 = vrot.slane %v5587_v6, 2  ;;  %v831_v6 = vrot.slane %v7857_v1, 2 }
 0x137   :  { %7840 = vst [vmem:[#allocation62_spill] sm:$0xff] %v5833_v8  ;;  %7841 = vst [vmem:[#allocation187_spill] sm:$0xff] %v5835_v17  ;;  %3580 = vmatprep.subr.mxu0 %v1073_v41  ;;  %v7870_v8 = vld [vmem:[#allocation130_spill] sm:$0xff] }
 0x138   :  { %v1208_v28 = vpop.f32.mrf.mxu0  ;;  %v1448_v47 = vpop.f32.mrf.mxu1  ;;  %7845 = vst [vmem:[#allocation189_spill] sm:$0xff] %v5851_v21  ;;  %3581 = vmatpush3.msra.mxu0 %v1073_v41 }
 0x139   :  { %1750 = vmatmul.mubr.f32.gmra.mxu1 %v5838_v35  ;;  %1975 = vmatmul.mubr.f32.gmra.mxu0 %v7843_v16  ;;  %v7847_v47 = vld [vmem:[#allocation73_spill] sm:$0xff] }
 0x13a   :  { %3395 = vmatprep.mubr.msk.f32.mxu1 %vm4000_vm2, %v5535_v50  ;;  %1979 = vmatprep.mubr.f32.mxu0 %v5158_v54  ;;  %v5848_v17 = vpop.f32.mrf.mxu0  ;;  %v5861_v50 = vsel %vm709_vm3, %v821_v19, %v823_v61  ;;  %v826_v54 = vrot.slane %v5558_v31, 2 }
 0x13b   :  { %7844 = vst [vmem:[#allocation69_spill] sm:$0xff] %v5848_v17  ;;  %v5854_v59 = vpop.f32.mrf.mxu1  ;;  %7848 = vst [vmem:[#allocation73_spill] sm:$0xff] %v5861_v50  ;;  %v7868_v17 = vld [vmem:[#allocation85_spill] sm:$0xff] }
 0x13c   :  { %7846 = vst [vmem:[#allocation190_spill] sm:$0xff] %v5854_v59  ;;  %v1213_v28 = vpop.f32.mrf.mxu0 }
 0x13d   :  { %1755 = vmatmul.mubr.f32.gmra.mxu1 %v5851_v21  ;;  %1980 = vmatmul.mubr.f32.gmra.mxu0 %v7847_v47  ;;  %v1453_v27 = vpop.f32.mrf.mxu1 }
 0x13e   :  { %1759 = vmatprep.mubr.f32.mxu1 %v5558_v31  ;;  %1984 = vmatprep.mubr.f32.mxu0 %v5181_v43  ;;  %v7851_v27 = vld [vmem:[#allocation76_spill] sm:$0xff]  ;;  %v7852_v43 = vld [vmem:[#allocation3_spill] sm:$0xff]  ;;  %v5879_v31 = vsel %vm709_vm3, %v825_v57, %v826_v54  ;;  %v7860_v57 = vld [vmem:[#allocation5_spill] sm:$0xff] }
 0x13f   :  { %v5868_v28 = vpop.f32.mrf.mxu0  ;;  %v5870_v59 = vpop.f32.mrf.mxu1  ;;  %7854 = vst [vmem:[#allocation76_spill] sm:$0xff] %v5879_v31  ;;  %v830_v15 = vrot.slane %v7860_v57, 2 }
 0x140   :  { %7849 = vst [vmem:[#allocation191_spill] sm:$0xff] %v5868_v28  ;;  %7850 = vst [vmem:[#allocation192_spill] sm:$0xff] %v5870_v59 }
 0x141   :  { %1760 = vmatmul.mubr.f32.gmra.mxu1 %v5861_v50  ;;  %1985 = vmatmul.mubr.f32.gmra.mxu0 %v7851_v27  ;;  %v1218_v19 = vpop.f32.mrf.mxu0  ;;  %v1458_v61 = vpop.f32.mrf.mxu1 }
 0x142   :  { %3397 = vmatprep.mubr.msk.f32.mxu1 %vm4000_vm2, %v7852_v43  ;;  %1989 = vmatprep.mubr.f32.mxu0 %v7853_v10  ;;  %v7858_v43 = vld [vmem:[#allocation124_spill] sm:$0xff]  ;;  %v5891_v10 = vsel %vm709_vm3, %v826_v54, %v828_v14  ;;  %v5906_v14 = vsel %vm709_vm3, %v830_v15, %v831_v6  ;;  %v7866_v54 = vld [vmem:[#allocation6_spill] sm:$0xff]  ;;  %v7872_v15 = vld [vmem:[#allocation11_spill] sm:$0xff] }
 0x143   :  { %7859 = vst [vmem:[#allocation79_spill] sm:$0xff] %v5891_v10  ;;  %7865 = vst [vmem:[#allocation194_spill] sm:$0xff] %v5906_v14  ;;  %v833_v57 = vrot.slane %v7866_v54, 2 }
 0x144   :  { %v5882_v59 = vpop.f32.mrf.mxu0  ;;  %v5884_v41 = vpop.f32.mrf.mxu1 }
 0x145   :  { %7855 = vst [vmem:[#allocation193_spill] sm:$0xff] %v5884_v41  ;;  %1765 = vmatmul.mubr.f32.gmra.mxu1 %v5879_v31  ;;  %1990 = vmatmul.mubr.f32.gmra.mxu0 %v7856_v20 }
 0x146   :  { %v1223_v19 = vpop.f32.mrf.mxu0  ;;  %v1463_v61 = vpop.f32.mrf.mxu1  ;;  %1769 = vmatprep.mubr.f32.mxu1 %v7857_v1  ;;  %1994 = vmatprep.mubr.f32.mxu0 %v7858_v43  ;;  %v7864_v43 = vld [vmem:[#allocation127_spill] sm:$0xff] }
 0x147   :  { %v7863_v61 = vld [vmem:[#allocation7_spill] sm:$0xff] }
 0x148   :  { %v5895_v55 = vpop.f32.mrf.mxu0 }
 0x149   :  { %v5897_v41 = vpop.f32.mrf.mxu1  ;;  %1770 = vmatmul.mubr.f32.gmra.mxu1 %v5891_v10  ;;  %1995 = vmatmul.mubr.f32.gmra.mxu0 %v7862_v4 }
 0x14a   :  { %7861 = vst [vmem:[#allocation5_spill] sm:$0xff] %v5897_v41  ;;  %v1228_v19 = vpop.f32.mrf.mxu0  ;;  %3399 = vmatprep.mubr.msk.f32.mxu1 %vm4000_vm2, %v7863_v61  ;;  %1999 = vmatprep.mubr.f32.mxu0 %v7864_v43  ;;  %v5918_v61 = vsel %vm709_vm3, %v831_v6, %v833_v57  ;;  %v835_v43 = vrot.slane %v7872_v15, 2  ;;  %v7874_v6 = vld [vmem:[#allocation87_spill] sm:$0xff]  ;;  %v7875_v57 = vld [vmem:[#allocation16_spill] sm:$0xff]  ;;  %v7876_v15 = vld [vmem:[#allocation133_spill] sm:$0xff] }
 0x14b   :  { %v1468_v1 = vpop.f32.mrf.mxu1  ;;  %v7869_v19 = vld [vmem:[#allocation10_spill] sm:$0xff]  ;;  %7871 = vst [vmem:[#allocation195_spill] sm:$0xff] %v5918_v61 }
 0x14c   :  { %v836_v54 = vrot.slane %v7869_v19, 2  ;;  %v1072_v1 = vld [vmem:[%s7316_s1 + $0x418] sm:$0xff] }
 0x14d   :  { %v5909_v28 = vpop.f32.mrf.mxu0  ;;  %v5911_v41 = vpop.f32.mrf.mxu1  ;;  %1775 = vmatmul.mubr.f32.gmra.mxu1 %v5906_v14  ;;  %2000 = vmatmul.mubr.f32.gmra.mxu0 %v7868_v17  ;;  %v7940_v14 = vld [vmem:[#allocation67_spill] sm:$0xff] }
 0x14e   :  { %7867 = vst [vmem:[#allocation6_spill] sm:$0xff] %v5911_v41  ;;  %1779 = vmatprep.mubr.f32.mxu1 %v7869_v19  ;;  %2004 = vmatprep.mubr.f32.mxu0 %v7870_v8  ;;  %v5936_v19 = vsel %vm709_vm3, %v835_v43, %v836_v54  ;;  %v7884_v43 = vld [vmem:[#allocation20_spill] sm:$0xff] }
 0x14f   :  { %v1233_v52 = vpop.f32.mrf.mxu0  ;;  %v1538_v3 = vpop.f32.mrf.mxu1  ;;  %3582 = vmatprep.subr.mxu0 %v1072_v1  ;;  %7877 = vst [vmem:[#allocation196_spill] sm:$0xff] %v5936_v19  ;;  %v840_v12 = vrot.slane %v7884_v43, 2  ;;  %v7887_v41 = vld [vmem:[#allocation24_spill] sm:$0xff]  ;;  %v7890_v43 = vld [vmem:[#allocation23_spill] sm:$0xff] }
 0x150   :  { %3583 = vmatpush3.msra.mxu0 %v1072_v1  ;;  %v7878_v3 = vld [vmem:[#allocation14_spill] sm:$0xff] }
 0x151   :  { %v5925_v7 = vpop.f32.mrf.mxu0  ;;  %v5927_v25 = vpop.f32.mrf.mxu1  ;;  %1780 = vmatmul.mubr.f32.gmra.mxu1 %v5918_v61  ;;  %2005 = vmatmul.mubr.f32.gmra.mxu0 %v7874_v6  ;;  %v838_v52 = vrot.slane %v7878_v3, 2  ;;  %v841_v3 = vrot.slane %v7881_v11, 2 }
 0x152   :  { %7873 = vst [vmem:[#allocation11_spill] sm:$0xff] %v5927_v25  ;;  %3401 = vmatprep.mubr.msk.f32.mxu1 %vm4000_vm2, %v7875_v57  ;;  %2009 = vmatprep.mubr.f32.mxu0 %v7876_v15  ;;  %v7882_v57 = vld [vmem:[#allocation136_spill] sm:$0xff] }
 0x153   :  { %v1238_v1 = vpop.f32.mrf.mxu0  ;;  %v1543_v8 = vpop.f32.mrf.mxu1  ;;  %v5948_v15 = vsel %vm709_vm3, %v836_v54, %v838_v52  ;;  %v7888_v54 = vld [vmem:[#allocation139_spill] sm:$0xff]  ;;  %v5963_v52 = vsel %vm709_vm3, %v840_v12, %v841_v3  ;;  %v7896_v12 = vld [vmem:[#allocation28_spill] sm:$0xff] }
 0x154   :  { %7883 = vst [vmem:[#allocation197_spill] sm:$0xff] %v5948_v15  ;;  %7889 = vst [vmem:[#allocation198_spill] sm:$0xff] %v5963_v52  ;;  %v845_v40 = vrot.slane %v7896_v12, 2  ;;  %v7900_v12 = vld [vmem:[#allocation145_spill] sm:$0xff] }
 0x155   :  { %v5939_v18 = vpop.f32.mrf.mxu0  ;;  %v5941_v9 = vpop.f32.mrf.mxu1  ;;  %1785 = vmatmul.mubr.f32.gmra.mxu1 %v5936_v19  ;;  %2010 = vmatmul.mubr.f32.gmra.mxu0 %v7880_v46 }
 0x156   :  { %7879 = vst [vmem:[#allocation14_spill] sm:$0xff] %v5941_v9  ;;  %1789 = vmatprep.mubr.f32.mxu1 %v7881_v11  ;;  %2014 = vmatprep.mubr.f32.mxu0 %v7882_v57 }
 0x157   :  { %v1243_v8 = vpop.f32.mrf.mxu0  ;;  %v1548_v1 = vpop.f32.mrf.mxu1 }
 0x158   :  { %v843_v8 = vrot.slane %v7890_v43, 2 }
 0x159   :  { %v5952_v25 = vpop.f32.mrf.mxu0  ;;  %v5954_v9 = vpop.f32.mrf.mxu1  ;;  %1790 = vmatmul.mubr.f32.gmra.mxu1 %v5948_v15  ;;  %2015 = vmatmul.mubr.f32.gmra.mxu0 %v7886_v45  ;;  %v7892_v45 = vld [vmem:[#allocation95_spill] sm:$0xff] }
 0x15a   :  { %7885 = vst [vmem:[#allocation20_spill] sm:$0xff] %v5954_v9  ;;  %3403 = vmatprep.mubr.msk.f32.mxu1 %vm4000_vm2, %v7887_v41  ;;  %2019 = vmatprep.mubr.f32.mxu0 %v7888_v54  ;;  %v7893_v15 = vld [vmem:[#allocation27_spill] sm:$0xff]  ;;  %v7894_v41 = vld [vmem:[#allocation142_spill] sm:$0xff]  ;;  %v5975_v54 = vsel %vm709_vm3, %v841_v3, %v843_v8 }
 0x15b   :  { %v1248_v1 = vpop.f32.mrf.mxu0  ;;  %v1553_v11 = vpop.f32.mrf.mxu1  ;;  %7895 = vst [vmem:[#allocation199_spill] sm:$0xff] %v5975_v54  ;;  %v846_v43 = vrot.slane %v7893_v15, 2  ;;  %v7898_v3 = vld [vmem:[#allocation98_spill] sm:$0xff] }
 0x15c   :  { %v1071_v11 = vld [vmem:[%s7316_s1 + $0x410] sm:$0xff]  ;;  %v7899_v8 = vld [vmem:[#allocation34_spill] sm:$0xff] }
 0x15d   :  { %v5966_v57 = vpop.f32.mrf.mxu0  ;;  %v5968_v9 = vpop.f32.mrf.mxu1  ;;  %1795 = vmatmul.mubr.f32.gmra.mxu1 %v5963_v52  ;;  %2020 = vmatmul.mubr.f32.gmra.mxu0 %v7892_v45 }
 0x15e   :  { %7891 = vst [vmem:[#allocation23_spill] sm:$0xff] %v5968_v9  ;;  %1799 = vmatprep.mubr.f32.mxu1 %v7893_v15  ;;  %2024 = vmatprep.mubr.f32.mxu0 %v7894_v41  ;;  %v5993_v15 = vsel %vm709_vm3, %v845_v40, %v846_v43  ;;  %v7908_v40 = vld [vmem:[#allocation38_spill] sm:$0xff] }
 0x15f   :  { %v1253_v1 = vpop.f32.mrf.mxu0  ;;  %v1558_v9 = vpop.f32.mrf.mxu1  ;;  %3584 = vmatprep.subr.mxu0 %v1071_v11  ;;  %7901 = vst [vmem:[#allocation200_spill] sm:$0xff] %v5993_v15  ;;  %v850_v19 = vrot.slane %v7908_v40, 2 }
 0x160   :  { %3585 = vmatpush3.msra.mxu0 %v1071_v11  ;;  %v7902_v9 = vld [vmem:[#allocation33_spill] sm:$0xff] }
 0x161   :  { %v5982_v45 = vpop.f32.mrf.mxu0  ;;  %v5984_v52 = vpop.f32.mrf.mxu1  ;;  %1800 = vmatmul.mubr.f32.gmra.mxu1 %v5975_v54  ;;  %2025 = vmatmul.mubr.f32.gmra.mxu0 %v7898_v3  ;;  %v848_v1 = vrot.slane %v7902_v9, 2  ;;  %v7904_v3 = vld [vmem:[#allocation101_spill] sm:$0xff] }
 0x162   :  { %7897 = vst [vmem:[#allocation28_spill] sm:$0xff] %v5984_v52  ;;  %3405 = vmatprep.mubr.msk.f32.mxu1 %vm4000_vm2, %v7899_v8  ;;  %2029 = vmatprep.mubr.f32.mxu0 %v7900_v12  ;;  %v7905_v54 = vld [vmem:[#allocation37_spill] sm:$0xff]  ;;  %v7906_v8 = vld [vmem:[#allocation148_spill] sm:$0xff] }
 0x163   :  { %v1258_v11 = vpop.f32.mrf.mxu0  ;;  %v1563_v41 = vpop.f32.mrf.mxu1  ;;  %v6005_v12 = vsel %vm709_vm3, %v846_v43, %v848_v1  ;;  %v851_v9 = vrot.slane %v7905_v54, 2  ;;  %v7913_v1 = vld [vmem:[#allocation41_spill] sm:$0xff] }
 0x164   :  { %7907 = vst [vmem:[#allocation201_spill] sm:$0xff] %v6005_v12  ;;  %v853_v40 = vrot.slane %v7913_v1, 2 }
 0x165   :  { %v5996_v46 = vpop.f32.mrf.mxu0  ;;  %v5998_v52 = vpop.f32.mrf.mxu1  ;;  %1805 = vmatmul.mubr.f32.gmra.mxu1 %v5993_v15  ;;  %2030 = vmatmul.mubr.f32.gmra.mxu0 %v7904_v3  ;;  %v7910_v3 = vld [vmem:[#allocation104_spill] sm:$0xff]  ;;  %v6020_v43 = vsel %vm709_vm3, %v850_v19, %v851_v9  ;;  %v7919_v19 = vld [vmem:[#allocation49_spill] sm:$0xff] }
 0x166   :  { %7903 = vst [vmem:[#allocation33_spill] sm:$0xff] %v5998_v52  ;;  %1809 = vmatprep.mubr.f32.mxu1 %v7905_v54  ;;  %2034 = vmatprep.mubr.f32.mxu0 %v7906_v8  ;;  %v7911_v15 = vld [vmem:[#allocation44_spill] sm:$0xff]  ;;  %7912 = vst [vmem:[#allocation202_spill] sm:$0xff] %v6020_v43 }
 0x167   :  { %v1263_v41 = vpop.f32.mrf.mxu0  ;;  %v1568_v11 = vpop.f32.mrf.mxu1 }
 0x169   :  { %v6009_v6 = vpop.f32.mrf.mxu0  ;;  %v6011_v52 = vpop.f32.mrf.mxu1  ;;  %1810 = vmatmul.mubr.f32.gmra.mxu1 %v6005_v12  ;;  %2035 = vmatmul.mubr.f32.gmra.mxu0 %v7910_v3  ;;  %v7916_v3 = vld [vmem:[#allocation48_spill] sm:$0xff]  ;;  %v855_v12 = vrot.slane %v7919_v19, 2  ;;  %v7923_v19 = vld [vmem:[#allocation157_spill] sm:$0xff] }
 0x16a   :  { %7909 = vst [vmem:[#allocation38_spill] sm:$0xff] %v6011_v52  ;;  %3407 = vmatprep.mubr.msk.f32.mxu1 %vm4000_vm2, %v7911_v15  ;;  %2039 = vmatprep.mubr.f32.mxu0 %v5523_v60  ;;  %v7915_v52 = vld [vmem:[#allocation107_spill] sm:$0xff]  ;;  %v7917_v15 = vld [vmem:[#allocation154_spill] sm:$0xff]  ;;  %v6032_v60 = vsel %vm709_vm3, %v851_v9, %v853_v40  ;;  %v856_v1 = vrot.slane %v7916_v3, 2  ;;  %v7922_v40 = vld [vmem:[#allocation53_spill] sm:$0xff] }
 0x16b   :  { %v1268_v41 = vpop.f32.mrf.mxu0  ;;  %v1573_v11 = vpop.f32.mrf.mxu1  ;;  %7918 = vst [vmem:[#allocation203_spill] sm:$0xff] %v6032_v60  ;;  %v7921_v9 = vld [vmem:[#allocation110_spill] sm:$0xff] }
 0x16c   :  { %v1070_v41 = vld [vmem:[%s7316_s1 + $0x408] sm:$0xff] }
 0x16d   :  { %v6023_v54 = vpop.f32.mrf.mxu0  ;;  %v6025_v8 = vpop.f32.mrf.mxu1  ;;  %1815 = vmatmul.mubr.f32.gmra.mxu1 %v6020_v43  ;;  %2040 = vmatmul.mubr.f32.gmra.mxu0 %v7915_v52 }
 0x16e   :  { %7914 = vst [vmem:[#allocation41_spill] sm:$0xff] %v6025_v8  ;;  %1819 = vmatprep.mubr.f32.mxu1 %v7916_v3  ;;  %2044 = vmatprep.mubr.f32.mxu0 %v7917_v15  ;;  %v6050_v3 = vsel %vm709_vm3, %v855_v12, %v856_v1  ;;  %v7930_v12 = vld [vmem:[#allocation58_spill] sm:$0xff] }
 0x16f   :  { %v1273_v11 = vpop.f32.mrf.mxu0  ;;  %v1578_v8 = vpop.f32.mrf.mxu1  ;;  %3586 = vmatprep.subr.mxu0 %v1070_v41  ;;  %7924 = vst [vmem:[#allocation204_spill] sm:$0xff] %v6050_v3 }
 0x170   :  { %3587 = vmatpush3.msra.mxu0 %v1070_v41  ;;  %v7925_v8 = vld [vmem:[#allocation52_spill] sm:$0xff] }
 0x171   :  { %v6039_v52 = vpop.f32.mrf.mxu0  ;;  %v6041_v43 = vpop.f32.mrf.mxu1  ;;  %1820 = vmatmul.mubr.f32.gmra.mxu1 %v6032_v60  ;;  %2045 = vmatmul.mubr.f32.gmra.mxu0 %v7921_v9  ;;  %v858_v11 = vrot.slane %v7925_v8, 2  ;;  %v7927_v9 = vld [vmem:[#allocation113_spill] sm:$0xff] }
 0x172   :  { %7920 = vst [vmem:[#allocation49_spill] sm:$0xff] %v6041_v43  ;;  %3409 = vmatprep.mubr.msk.f32.mxu1 %vm4000_vm2, %v7922_v40  ;;  %2049 = vmatprep.mubr.f32.mxu0 %v7923_v19  ;;  %v7928_v60 = vld [vmem:[#allocation57_spill] sm:$0xff]  ;;  %v860_v19 = vrot.slane %v7930_v12, 2 }
 0x173   :  { %v1278_v41 = vpop.f32.mrf.mxu0  ;;  %v1583_v15 = vpop.f32.mrf.mxu1  ;;  %v6062_v40 = vsel %vm709_vm3, %v856_v1, %v858_v11  ;;  %v861_v8 = vrot.slane %v7928_v60, 2  ;;  %v7934_v11 = vld [vmem:[#allocation64_spill] sm:$0xff] }
 0x174   :  { %7929 = vst [vmem:[#allocation205_spill] sm:$0xff] %v6062_v40 }
 0x175   :  { %v6053_v61 = vpop.f32.mrf.mxu0  ;;  %v6055_v43 = vpop.f32.mrf.mxu1  ;;  %1825 = vmatmul.mubr.f32.gmra.mxu1 %v6050_v3  ;;  %2050 = vmatmul.mubr.f32.gmra.mxu0 %v7927_v9  ;;  %v7932_v9 = vld [vmem:[#allocation116_spill] sm:$0xff]  ;;  %v6080_v12 = vsel %vm709_vm3, %v860_v19, %v861_v8  ;;  %v559_v19 = vrot.slane %v5640_v23, 1 }
 0x176   :  { %7926 = vst [vmem:[#allocation52_spill] sm:$0xff] %v6055_v43  ;;  %1829 = vmatprep.mubr.f32.mxu1 %v7928_v60  ;;  %2054 = vmatprep.mubr.f32.mxu0 %v5604_v56  ;;  %v361_v43 = vsel %vm148_vm0, 0.0, %v5606_v32  ;;  %v7933_v56 = vld [vmem:[#allocation63_spill] sm:$0xff]  ;;  %v81_v60 = vld [vmem:[%s7317_s0 + $0x1f0] sm:$0xff] }
 0x177   :  { %v1283_v15 = vpop.f32.mrf.mxu0  ;;  %v1588_v41 = vpop.f32.mrf.mxu1  ;;  %v863_v1 = vrot.slane %v7933_v56, 2  ;;  %7935 = vst [vmem:[#allocation63_spill] sm:$0xff] %v6080_v12  ;;  %v790_v32 = vrot.slane %v361_v43, 2  ;;  %v6089_v56 = vld [vmem:[%s7317_s0 + $0x1f8] sm:$0xff]  ;;  %v558_v4 = vrot.slane %v361_v43, 1  ;;  %v7945_v43 = vld [vmem:[#allocation120_spill] sm:$0xff] }
 0x179   :  { %v6068_v17 = vpop.f32.mrf.mxu0  ;;  %v6070_v3 = vpop.f32.mrf.mxu1  ;;  %1830 = vmatmul.mubr.f32.gmra.mxu1 %v6062_v40  ;;  %2055 = vmatmul.mubr.f32.gmra.mxu0 %v7932_v9  ;;  %v7938_v9 = vld [vmem:[#allocation118_spill] sm:$0xff]  ;;  %v6102_v40 = vsel %vm709_vm3, %v861_v8, %v863_v1 }
 0x17a   :  { %7931 = vst [vmem:[#allocation58_spill] sm:$0xff] %v6070_v3  ;;  %3411 = vmatprep.mubr.msk.f32.mxu1 %vm4000_vm2, %v7934_v11  ;;  %2059 = vmatprep.mubr.f32.mxu0 %v5626_v13  ;;  %v791_v3 = vrot.slane %v5640_v23, 2  ;;  %v7936_v11 = vrot.slane %v5592_v26, 7  ;;  %7939 = vst [vmem:[#allocation207_spill] sm:$0xff] %v6102_v40  ;;  %v6106_v26 = vrot.slane %v81_v60, 7  ;;  %v866_v23 = vrot.slane %v7940_v14, 2 }
 0x17b   :  { %v1288_v15 = vpop.f32.mrf.mxu0  ;;  %v1593_v41 = vpop.f32.mrf.mxu1 }
 0x17c   :  { %v394_v13 = vsel %vm148_vm0, %v7936_v11, 0.0  ;;  %7941 = vst [vmem:[#allocation208_spill] sm:$0xff] %v6106_v26  ;;  %v7942_v11 = vld [vmem:[#allocation68_spill] sm:$0xff]  ;;  %v6114_v8 = vsel %vm709_vm3, %v790_v32, %v791_v3 }
 0x17d   :  { %v6095_v15 = vpop.f32.mrf.mxu0  ;;  %v6097_v41 = vpop.f32.mrf.mxu1  ;;  %1835 = vmatmul.mubr.f32.gmra.mxu1 %v6080_v12  ;;  %2060 = vmatmul.mubr.f32.gmra.mxu0 %v7938_v9  ;;  %v865_v0 = vrot.slane %v7942_v11, 2  ;;  %7943 = vst [vmem:[#allocation68_spill] sm:$0xff] %v6114_v8  ;;  %v793_v10 = vrot.slane %v394_v13, 2  ;;  %v561_v1 = vrot.slane %v394_v13, 1 }
 0x17e   :  { %7937 = vst [vmem:[#allocation206_spill] sm:$0xff] %v6097_v41  ;;  %1839 = vmatprep.mubr.f32.mxu1 %v7940_v14  ;;  %2064 = vmatprep.mubr.f32.mxu0 %v5653_v53  ;;  %v1069_v41 = vld [vmem:[%s7316_s1 + $0x400] sm:$0xff] }
 0x17f   :  { %v1293_v12 = vpop.f32.mrf.mxu0  ;;  %v1598_v9 = vpop.f32.mrf.mxu1  ;;  %3588 = vmatprep.subr.mxu0 %v1069_v41  ;;  %v6128_v32 = vsel %vm709_vm3, %v865_v0, %v866_v23 }
 0x180   :  { %3589 = vmatpush3.msra.mxu0 %v1069_v41  ;;  %7946 = vst [vmem:[#allocation210_spill] sm:$0xff] %v6128_v32  ;;  %v6131_v9 = vsel %vm477_vm1, %v558_v4, %v559_v19  ;;  %v7947_v12 = vld [vmem:[#allocation71_spill] sm:$0xff] }
 0x181   :  { %v6117_v60 = vpop.f32.mrf.mxu0  ;;  %v6119_v11 = vpop.f32.mrf.mxu1  ;;  %1840 = vmatmul.mubr.f32.gmra.mxu1 %v6102_v40  ;;  %2065 = vmatmul.mubr.f32.gmra.mxu0 %v7945_v43  ;;  %v868_v41 = vrot.slane %v7947_v12, 2  ;;  %v6141_v40 = vsel %vm709_vm3, %v791_v3, %v793_v10 }
 0x182   :  { %7944 = vst [vmem:[#allocation209_spill] sm:$0xff] %v6119_v11  ;;  %3413 = vmatprep.mubr.msk.f32.mxu1 %vm4000_vm2, %v6106_v26  ;;  %2069 = vmatprep.mubr.f32.mxu0 %v6114_v8  ;;  %v7948_v11 = vrot.slane %v6089_v56, 7  ;;  %7950 = vst [vmem:[#allocation211_spill] sm:$0xff] %v6141_v40 }
 0x183   :  { %v1298_v14 = vpop.f32.mrf.mxu0  ;;  %v1603_v53 = vpop.f32.mrf.mxu1  ;;  %v6153_v13 = vsel %vm709_vm3, %v866_v23, %v868_v41  ;;  %v7951_v41 = vld [vmem:[#allocation125_spill] sm:$0xff] }
 0x184   :  { %v6138_v43 = vsel %vm148_vm0, %v6106_v26, %v7948_v11  ;;  %v6156_v53 = vsel %vm477_vm1, %v559_v19, %v561_v1 }
 0x185   :  { %7949 = vst [vmem:[#allocation71_spill] sm:$0xff] %v6138_v43  ;;  %v6143_v8 = vpop.f32.mrf.mxu0  ;;  %v1606_v0 = vpop.f32.mrf.mxu1  ;;  %1845 = vmatmul.mubr.f32.gmra.mxu1 %v6128_v32  ;;  %2070 = vmatmul.mubr.f32.gmra.mxu0 %v6131_v9 }
 0x186   :  { %v6148_v4 = vadd.f32 %v1606_v0, %v5882_v59  ;;  %1849 = vmatprep.mubr.f32.mxu1 %v6138_v43  ;;  %2074 = vmatprep.mubr.f32.mxu0 %v6141_v40  ;;  %v7952_v0 = vld [vmem:[#allocation15_spill] sm:$0xff]  ;;  %v7991_v40 = vld [vmem:[#allocation13_spill] sm:$0xff] }
 0x187   :  { %v1303_v10 = vpop.f32.mrf.mxu0  ;;  %v1608_v14 = vpop.f32.mrf.mxu1 }
 0x189   :  { %v6158_v3 = vpop.f32.mrf.mxu0  ;;  %v1611_v11 = vpop.f32.mrf.mxu1  ;;  %1850 = vmatmul.mubr.f32.gmra.mxu1 %v6153_v13  ;;  %2075 = vmatmul.mubr.f32.gmra.mxu0 %v6156_v53 }
 0x18a   :  { %v6163_v59 = vadd.f32 %v1611_v11, %v5895_v55  ;;  %2079 = vmatprep.mubr.f32.mxu0 %v5698_v63  ;;  %2304 = vmatprep.mubr.f32.mxu1 %v4178_v5  ;;  %v7953_v11 = vld [vmem:[#allocation128_spill] sm:$0xff] }
 0x18b   :  { %v1308_v23 = vpop.f32.mrf.mxu0  ;;  %v1613_v12 = vpop.f32.mrf.mxu1 }
 0x18c   :  { %v7954_v23 = vld [vmem:[#allocation18_spill] sm:$0xff] }
 0x18d   :  { %v6167_v19 = vpop.f32.mrf.mxu0  ;;  %v1616_v1 = vpop.f32.mrf.mxu1  ;;  %2080 = vmatmul.mubr.f32.gmra.mxu0 %v7951_v41  ;;  %3415 = vmatmul.mubr.msk.f32.vlgmr.msra.gmra.mxu1 %vm4000_vm2, %v7952_v0  ;;  %v7955_v41 = vld [vmem:[#allocation131_spill] sm:$0xff]  ;;  %v7956_v0 = vld [vmem:[#allocation22_spill] sm:$0xff] }
 0x18e   :  { %v6174_v10 = vadd.f32 %v1616_v1, %v5909_v28  ;;  %2084 = vmatprep.mubr.f32.mxu0 %v5713_v2  ;;  %2309 = vmatprep.mubr.f32.mxu1 %v7809_v49 }
 0x18f   :  { %v1313_v55 = vpop.f32.mrf.mxu0  ;;  %v1618_v5 = vpop.f32.mrf.mxu1 }
 0x191   :  { %v6178_v63 = vpop.f32.mrf.mxu0  ;;  %v1621_v14 = vpop.f32.mrf.mxu1  ;;  %2085 = vmatmul.mubr.f32.gmra.mxu0 %v7953_v11  ;;  %2310 = vmatmul.mubr.f32.gmra.mxu1 %v7954_v23  ;;  %v7957_v11 = vld [vmem:[#allocation134_spill] sm:$0xff] }
 0x192   :  { %v6183_v12 = vadd.f32 %v1621_v14, %v5925_v7  ;;  %2089 = vmatprep.mubr.f32.mxu0 %v5727_v33  ;;  %2314 = vmatprep.mubr.f32.mxu1 %v7814_v44  ;;  %v7958_v23 = vld [vmem:[#allocation26_spill] sm:$0xff] }
 0x193   :  { %v1318_v28 = vpop.f32.mrf.mxu0  ;;  %v1623_v2 = vpop.f32.mrf.mxu1 }
 0x195   :  { %v6187_v1 = vpop.f32.mrf.mxu0  ;;  %v1626_v49 = vpop.f32.mrf.mxu1  ;;  %2090 = vmatmul.mubr.f32.gmra.mxu0 %v7955_v41  ;;  %3417 = vmatmul.mubr.msk.f32.gmra.mxu1 %vm4000_vm2, %v7956_v0  ;;  %v7959_v0 = vld [vmem:[#allocation137_spill] sm:$0xff] }
 0x196   :  { %v6194_v55 = vadd.f32 %v1626_v49, %v5939_v18  ;;  %2094 = vmatprep.mubr.f32.mxu0 %v5742_v29  ;;  %2319 = vmatprep.mubr.f32.mxu1 %v7819_v48 }
 0x197   :  { %v1323_v7 = vpop.f32.mrf.mxu0  ;;  %v1628_v44 = vpop.f32.mrf.mxu1 }
 0x198   :  { %v7960_v7 = vld [vmem:[#allocation31_spill] sm:$0xff] }
 0x199   :  { %v6198_v5 = vpop.f32.mrf.mxu0  ;;  %v1631_v14 = vpop.f32.mrf.mxu1  ;;  %2095 = vmatmul.mubr.f32.gmra.mxu0 %v7957_v11  ;;  %2320 = vmatmul.mubr.f32.gmra.mxu1 %v7958_v23 }
 0x19a   :  { %v6203_v28 = vadd.f32 %v1631_v14, %v5952_v25  ;;  %2099 = vmatprep.mubr.f32.mxu0 %v5760_v34  ;;  %2324 = vmatprep.mubr.f32.mxu1 %v7824_v22 }
 0x19b   :  { %v1328_v18 = vpop.f32.mrf.mxu0  ;;  %v1633_v2 = vpop.f32.mrf.mxu1 }
 0x19c   :  { %v7961_v18 = vld [vmem:[#allocation140_spill] sm:$0xff] }
 0x19d   :  { %v6207_v49 = vpop.f32.mrf.mxu0  ;;  %v1636_v48 = vpop.f32.mrf.mxu1  ;;  %2100 = vmatmul.mubr.f32.gmra.mxu0 %v7959_v0  ;;  %3419 = vmatmul.mubr.msk.f32.gmra.mxu1 %vm4000_vm2, %v7960_v7  ;;  %v7962_v2 = vld [vmem:[#allocation36_spill] sm:$0xff] }
 0x19e   :  { %v6214_v44 = vadd.f32 %v1636_v48, %v5966_v57  ;;  %2104 = vmatprep.mubr.f32.mxu0 %v5775_v36  ;;  %2329 = vmatprep.mubr.f32.mxu1 %v7829_v62 }
 0x19f   :  { %v1333_v25 = vpop.f32.mrf.mxu0  ;;  %v1638_v22 = vpop.f32.mrf.mxu1 }
 0x1a0   :  { %v7963_v25 = vld [vmem:[#allocation143_spill] sm:$0xff]  ;;  %v7964_v22 = vld [vmem:[#allocation42_spill] sm:$0xff] }
 0x1a1   :  { %v6218_v14 = vpop.f32.mrf.mxu0  ;;  %v1641_v23 = vpop.f32.mrf.mxu1  ;;  %2105 = vmatmul.mubr.f32.gmra.mxu0 %v7961_v18  ;;  %2330 = vmatmul.mubr.f32.gmra.mxu1 %v7962_v2 }
 0x1a2   :  { %v6223_v34 = vadd.f32 %v1641_v23, %v5982_v45  ;;  %2109 = vmatprep.mubr.f32.mxu0 %v5793_v24  ;;  %2334 = vmatprep.mubr.f32.mxu1 %v7832_v37  ;;  %v7966_v24 = vld [vmem:[#allocation46_spill] sm:$0xff] }
 0x1a3   :  { %v1338_v57 = vpop.f32.mrf.mxu0  ;;  %v1643_v48 = vpop.f32.mrf.mxu1 }
 0x1a4   :  { %v7965_v48 = vld [vmem:[#allocation146_spill] sm:$0xff] }
 0x1a5   :  { %v6227_v7 = vpop.f32.mrf.mxu0  ;;  %v1646_v62 = vpop.f32.mrf.mxu1  ;;  %2110 = vmatmul.mubr.f32.gmra.mxu0 %v7963_v25  ;;  %3421 = vmatmul.mubr.msk.f32.gmra.mxu1 %vm4000_vm2, %v7964_v22 }
 0x1a6   :  { %v6234_v2 = vadd.f32 %v1646_v62, %v5996_v46  ;;  %2114 = vmatprep.mubr.f32.mxu0 %v5808_v38  ;;  %2339 = vmatprep.mubr.f32.mxu1 %v7835_v42 }
 0x1a7   :  { %v1343_v45 = vpop.f32.mrf.mxu0  ;;  %v1648_v37 = vpop.f32.mrf.mxu1 }
 0x1a8   :  { %v7967_v45 = vld [vmem:[#allocation149_spill] sm:$0xff]  ;;  %v7968_v37 = vld [vmem:[#allocation51_spill] sm:$0xff] }
 0x1a9   :  { %v6238_v23 = vpop.f32.mrf.mxu0  ;;  %v1651_v57 = vpop.f32.mrf.mxu1  ;;  %2115 = vmatmul.mubr.f32.gmra.mxu0 %v7965_v48  ;;  %2340 = vmatmul.mubr.f32.gmra.mxu1 %v7966_v24 }
 0x1aa   :  { %v6243_v36 = vadd.f32 %v1651_v57, %v6009_v6  ;;  %2119 = vmatprep.mubr.f32.mxu0 %v5826_v30  ;;  %2344 = vmatprep.mubr.f32.mxu1 %v7839_v51  ;;  %v7970_v30 = vld [vmem:[#allocation56_spill] sm:$0xff] }
 0x1ab   :  { %v1348_v46 = vpop.f32.mrf.mxu0  ;;  %v1653_v62 = vpop.f32.mrf.mxu1 }
 0x1ac   :  { %v7969_v62 = vld [vmem:[#allocation152_spill] sm:$0xff] }
 0x1ad   :  { %v6247_v22 = vpop.f32.mrf.mxu0  ;;  %v1656_v42 = vpop.f32.mrf.mxu1  ;;  %2120 = vmatmul.mubr.f32.gmra.mxu0 %v7967_v45  ;;  %3423 = vmatmul.mubr.msk.f32.gmra.mxu1 %vm4000_vm2, %v7968_v37 }
 0x1ae   :  { %v6254_v24 = vadd.f32 %v1656_v42, %v6023_v54  ;;  %2124 = vmatprep.mubr.f32.mxu0 %v5838_v35  ;;  %2349 = vmatprep.mubr.f32.mxu1 %v7843_v16  ;;  %v7982_v35 = vld [vmem:[#allocation75_spill] sm:$0xff] }
 0x1af   :  { %v1353_v6 = vpop.f32.mrf.mxu0  ;;  %v1658_v51 = vpop.f32.mrf.mxu1 }
 0x1b0   :  { %v7971_v6 = vld [vmem:[#allocation155_spill] sm:$0xff]  ;;  %v7972_v51 = vld [vmem:[#allocation61_spill] sm:$0xff] }
 0x1b1   :  { %v6258_v57 = vpop.f32.mrf.mxu0  ;;  %v1661_v46 = vpop.f32.mrf.mxu1  ;;  %2125 = vmatmul.mubr.f32.gmra.mxu0 %v7969_v62  ;;  %2350 = vmatmul.mubr.f32.gmra.mxu1 %v7970_v30 }
 0x1b2   :  { %v6263_v38 = vadd.f32 %v1661_v46, %v6039_v52  ;;  %2129 = vmatprep.mubr.f32.mxu0 %v5851_v21  ;;  %2354 = vmatprep.mubr.f32.mxu1 %v7847_v47 }
 0x1b3   :  { %v1358_v54 = vpop.f32.mrf.mxu0  ;;  %v1663_v42 = vpop.f32.mrf.mxu1 }
 0x1b4   :  { %v7974_v42 = vld [vmem:[#allocation66_spill] sm:$0xff] }
 0x1b5   :  { %v6267_v37 = vpop.f32.mrf.mxu0  ;;  %v1666_v16 = vpop.f32.mrf.mxu1  ;;  %2130 = vmatmul.mubr.f32.gmra.mxu0 %v7971_v6  ;;  %3425 = vmatmul.mubr.msk.f32.gmra.mxu1 %vm4000_vm2, %v7972_v51 }
 0x1b6   :  { %v6274_v30 = vadd.f32 %v1666_v16, %v6053_v61  ;;  %2134 = vmatprep.mubr.f32.mxu0 %v5861_v50  ;;  %2359 = vmatprep.mubr.f32.mxu1 %v7851_v27  ;;  %v7981_v50 = vld [vmem:[#allocation164_spill] sm:$0xff] }
 0x1b7   :  { %v1363_v52 = vpop.f32.mrf.mxu0  ;;  %v1668_v47 = vpop.f32.mrf.mxu1 }
 0x1b8   :  { %7973 = vst [vmem:[#allocation125_spill] sm:$0xff] %v6274_v30  ;;  %v7976_v52 = vld [vmem:[#allocation160_spill] sm:$0xff]  ;;  %v8007_v30 = vld [vmem:[#allocation86_spill] sm:$0xff] }
 0x1b9   :  { %v6278_v46 = vpop.f32.mrf.mxu0  ;;  %v1671_v54 = vpop.f32.mrf.mxu1  ;;  %2135 = vmatmul.mubr.f32.gmra.mxu0 %v5578_v39  ;;  %2360 = vmatmul.mubr.f32.gmra.mxu1 %v7974_v42  ;;  %v7977_v47 = vld [vmem:[#allocation72_spill] sm:$0xff] }
 0x1ba   :  { %v6283_v21 = vadd.f32 %v1671_v54, %v6068_v17  ;;  %2139 = vmatprep.mubr.f32.mxu0 %v5879_v31  ;;  %2364 = vmatprep.mubr.f32.mxu1 %v7856_v20  ;;  %v7979_v17 = vld [vmem:[#allocation79_spill] sm:$0xff]  ;;  %v7980_v54 = vld [vmem:[#allocation82_spill] sm:$0xff] }
 0x1bb   :  { %v1368_v61 = vpop.f32.mrf.mxu0  ;;  %v1673_v16 = vpop.f32.mrf.mxu1 }
 0x1bc   :  { %7975 = vst [vmem:[#allocation15_spill] sm:$0xff] %v6283_v21  ;;  %v7998_v21 = vld [vmem:[#allocation17_spill] sm:$0xff] }
 0x1bd   :  { %v6287_v51 = vpop.f32.mrf.mxu0  ;;  %v1676_v27 = vpop.f32.mrf.mxu1  ;;  %2140 = vmatmul.mubr.f32.gmra.mxu0 %v7976_v52  ;;  %3427 = vmatmul.mubr.msk.f32.gmra.mxu1 %vm4000_vm2, %v7977_v47  ;;  %v7984_v47 = vld [vmem:[#allocation194_spill] sm:$0xff] }
 0x1be   :  { %v6294_v42 = vadd.f32 %v1676_v27, %v6095_v15  ;;  %2144 = vmatprep.mubr.f32.mxu0 %v7979_v17  ;;  %2369 = vmatprep.mubr.f32.mxu1 %v7980_v54  ;;  %v7985_v15 = vld [vmem:[#allocation85_spill] sm:$0xff] }
 0x1bf   :  { %v1373_v31 = vpop.f32.mrf.mxu0  ;;  %v1678_v20 = vpop.f32.mrf.mxu1  ;;  %v7986_v54 = vld [vmem:[#allocation9_spill] sm:$0xff] }
 0x1c0   :  { %7978 = vst [vmem:[#allocation128_spill] sm:$0xff] %v6294_v42  ;;  %v7987_v20 = vld [vmem:[#allocation78_spill] sm:$0xff] }
 0x1c1   :  { %v6298_v61 = vpop.f32.mrf.mxu0  ;;  %v1681_v16 = vpop.f32.mrf.mxu1  ;;  %2145 = vmatmul.mubr.f32.gmra.mxu0 %v7981_v50  ;;  %2370 = vmatmul.mubr.f32.gmra.mxu1 %v7982_v35  ;;  %v7999_v50 = vld [vmem:[#allocation83_spill] sm:$0xff] }
 0x1c2   :  { %v6303_v29 = vadd.f32 %v1681_v16, %v6117_v60  ;;  %2149 = vmatprep.mubr.f32.mxu0 %v7984_v47  ;;  %2374 = vmatprep.mubr.f32.mxu1 %v7985_v15  ;;  %v7989_v60 = vld [vmem:[#allocation195_spill] sm:$0xff] }
 0x1c3   :  { %v1378_v27 = vpop.f32.mrf.mxu0  ;;  %v1683_v17 = vpop.f32.mrf.mxu1  ;;  %v7990_v16 = vld [vmem:[#allocation87_spill] sm:$0xff] }
 0x1c4   :  { %7983 = vst [vmem:[#allocation18_spill] sm:$0xff] %v6303_v29  ;;  %v7992_v29 = vld [vmem:[#allocation80_spill] sm:$0xff] }
 0x1c5   :  { %v6307_v33 = vpop.f32.mrf.mxu0  ;;  %v1686_v31 = vpop.f32.mrf.mxu1  ;;  %2150 = vmatmul.mubr.f32.gmra.mxu0 %v7986_v54  ;;  %3429 = vmatmul.mubr.msk.f32.gmra.mxu1 %vm4000_vm2, %v7987_v20  ;;  %v7994_v20 = vld [vmem:[#allocation196_spill] sm:$0xff] }
 0x1c6   :  { %v6314_v35 = vadd.f32 %v1686_v31, %v6143_v8  ;;  %2154 = vmatprep.mubr.f32.mxu0 %v7989_v60  ;;  %2379 = vmatprep.mubr.f32.mxu1 %v7990_v16  ;;  %v7995_v8 = vld [vmem:[#allocation89_spill] sm:$0xff]  ;;  %v7997_v16 = vld [vmem:[#allocation6_spill] sm:$0xff] }
 0x1c7   :  { %v1383_v47 = vpop.f32.mrf.mxu0  ;;  %v1688_v15 = vpop.f32.mrf.mxu1 }
 0x1c8   :  { %7988 = vst [vmem:[#allocation131_spill] sm:$0xff] %v6314_v35  ;;  %v7996_v35 = vld [vmem:[#allocation162_spill] sm:$0xff] }
 0x1c9   :  { %v6318_v27 = vpop.f32.mrf.mxu0  ;;  %v1691_v17 = vpop.f32.mrf.mxu1  ;;  %2155 = vmatmul.mubr.f32.gmra.mxu0 %v7991_v40  ;;  %2380 = vmatmul.mubr.f32.gmra.mxu1 %v7992_v29  ;;  %v1537_v47 = vadd.f32 %v7997_v16, %v7996_v35  ;;  %v8004_v35 = vld [vmem:[#allocation167_spill] sm:$0xff]  ;;  %v8006_v40 = vld [vmem:[#allocation21_spill] sm:$0xff] }
 0x1ca   :  { %v6323_v42 = vadd.f32 %v1691_v17, %v6158_v3  ;;  %2159 = vmatprep.mubr.f32.mxu0 %v7994_v20  ;;  %2384 = vmatprep.mubr.f32.mxu1 %v7995_v8  ;;  %v8002_v17 = vld [vmem:[#allocation197_spill] sm:$0xff]  ;;  %v8003_v8 = vld [vmem:[#allocation92_spill] sm:$0xff]  ;;  %v8005_v16 = vld [vmem:[#allocation11_spill] sm:$0xff] }
 0x1cb   :  { %v1388_v31 = vpop.f32.mrf.mxu0  ;;  %v1693_v60 = vpop.f32.mrf.mxu1  ;;  %v1542_v20 = vadd.f32 %v8005_v16, %v8004_v35 }
 0x1cc   :  { %7993 = vst [vmem:[#allocation22_spill] sm:$0xff] %v6323_v42 }
 0x1cd   :  { %v1696_v15 = vpop.f32.mrf.mxu1  ;;  %v1921_v54 = vpop.f32.mrf.mxu0  ;;  %2160 = vmatmul.mubr.f32.gmra.mxu0 %v7998_v21  ;;  %3431 = vmatmul.mubr.msk.f32.gmra.mxu1 %vm4000_vm2, %v7999_v50 }
 0x1ce   :  { %v6334_v29 = vadd.f32 %v1696_v15, %v6167_v19  ;;  %v6336_v3 = vadd.f32 %v1921_v54, %v1537_v47  ;;  %2164 = vmatprep.mubr.f32.mxu0 %v8002_v17  ;;  %2389 = vmatprep.mubr.f32.mxu1 %v8003_v8  ;;  %v8010_v54 = vld [vmem:[#allocation198_spill] sm:$0xff]  ;;  %v8011_v47 = vld [vmem:[#allocation95_spill] sm:$0xff] }
 0x1cf   :  { %v1698_v60 = vpop.f32.mrf.mxu1  ;;  %v1923_v31 = vpop.f32.mrf.mxu0 }
 0x1d0   :  { %8000 = vst [vmem:[#allocation134_spill] sm:$0xff] %v6334_v29  ;;  %8001 = vst [vmem:[#allocation26_spill] sm:$0xff] %v6336_v3  ;;  %v8012_v60 = vld [vmem:[#allocation169_spill] sm:$0xff]  ;;  %v8013_v31 = vld [vmem:[#allocation14_spill] sm:$0xff] }
 0x1d1   :  { %v1701_v42 = vpop.f32.mrf.mxu1  ;;  %v1926_v21 = vpop.f32.mrf.mxu0  ;;  %2165 = vmatmul.mubr.f32.gmra.mxu0 %v8006_v40  ;;  %2390 = vmatmul.mubr.f32.gmra.mxu1 %v8007_v30  ;;  %v1547_v35 = vadd.f32 %v8013_v31, %v8012_v60  ;;  %v8014_v3 = vld [vmem:[#allocation25_spill] sm:$0xff]  ;;  %v8015_v29 = vld [vmem:[#allocation88_spill] sm:$0xff]  ;;  %v8018_v30 = vld [vmem:[#allocation199_spill] sm:$0xff] }
 0x1d2   :  { %v6345_v50 = vadd.f32 %v1701_v42, %v6178_v63  ;;  %v6347_v19 = vadd.f32 %v1926_v21, %v1542_v20  ;;  %2169 = vmatprep.mubr.f32.mxu0 %v8010_v54  ;;  %2394 = vmatprep.mubr.f32.mxu1 %v8011_v47  ;;  %v8019_v42 = vld [vmem:[#allocation98_spill] sm:$0xff] }
 0x1d3   :  { %v1703_v15 = vpop.f32.mrf.mxu1  ;;  %v1928_v8 = vpop.f32.mrf.mxu0 }
 0x1d4   :  { %8008 = vst [vmem:[#allocation137_spill] sm:$0xff] %v6345_v50  ;;  %8009 = vst [vmem:[#allocation31_spill] sm:$0xff] %v6347_v19  ;;  %v8020_v15 = vld [vmem:[#allocation171_spill] sm:$0xff]  ;;  %v8021_v8 = vld [vmem:[#allocation20_spill] sm:$0xff] }
 0x1d5   :  { %v1706_v16 = vpop.f32.mrf.mxu1  ;;  %v1931_v17 = vpop.f32.mrf.mxu0  ;;  %2170 = vmatmul.mubr.f32.gmra.mxu0 %v8014_v3  ;;  %3433 = vmatmul.mubr.msk.f32.gmra.mxu1 %vm4000_vm2, %v8015_v29  ;;  %v1552_v60 = vadd.f32 %v8021_v8, %v8020_v15  ;;  %v8022_v19 = vld [vmem:[#allocation30_spill] sm:$0xff] }
 0x1d6   :  { %v6358_v21 = vadd.f32 %v1706_v16, %v6187_v1  ;;  %v6360_v63 = vadd.f32 %v1931_v17, %v1547_v35  ;;  %2174 = vmatprep.mubr.f32.mxu0 %v8018_v30  ;;  %2399 = vmatprep.mubr.f32.mxu1 %v8019_v42  ;;  %v8023_v50 = vld [vmem:[#allocation90_spill] sm:$0xff]  ;;  %v8026_v17 = vld [vmem:[#allocation200_spill] sm:$0xff]  ;;  %v8027_v35 = vld [vmem:[#allocation101_spill] sm:$0xff] }
 0x1d7   :  { %v1708_v20 = vpop.f32.mrf.mxu1  ;;  %v1933_v47 = vpop.f32.mrf.mxu0 }
 0x1d8   :  { %8016 = vst [vmem:[#allocation140_spill] sm:$0xff] %v6358_v21  ;;  %8017 = vst [vmem:[#allocation36_spill] sm:$0xff] %v6360_v63  ;;  %v8028_v20 = vld [vmem:[#allocation173_spill] sm:$0xff]  ;;  %v8029_v47 = vld [vmem:[#allocation23_spill] sm:$0xff] }
 0x1d9   :  { %v1711_v31 = vpop.f32.mrf.mxu1  ;;  %v1936_v54 = vpop.f32.mrf.mxu0  ;;  %2175 = vmatmul.mubr.f32.gmra.mxu0 %v8022_v19  ;;  %2400 = vmatmul.mubr.f32.gmra.mxu1 %v8023_v50  ;;  %v1557_v15 = vadd.f32 %v8029_v47, %v8028_v20  ;;  %v8030_v63 = vld [vmem:[#allocation35_spill] sm:$0xff]  ;;  %v8031_v21 = vld [vmem:[#allocation93_spill] sm:$0xff] }
 0x1da   :  { %v6369_v1 = vadd.f32 %v1711_v31, %v6198_v5  ;;  %v6371_v29 = vadd.f32 %v1936_v54, %v1552_v60  ;;  %2179 = vmatprep.mubr.f32.mxu0 %v8026_v17  ;;  %2404 = vmatprep.mubr.f32.mxu1 %v8027_v35  ;;  %v8034_v54 = vld [vmem:[#allocation201_spill] sm:$0xff]  ;;  %v8035_v60 = vld [vmem:[#allocation104_spill] sm:$0xff] }
 0x1db   :  { %v1713_v16 = vpop.f32.mrf.mxu1  ;;  %v1938_v42 = vpop.f32.mrf.mxu0 }
 0x1dc   :  { %8024 = vst [vmem:[#allocation143_spill] sm:$0xff] %v6369_v1  ;;  %8025 = vst [vmem:[#allocation42_spill] sm:$0xff] %v6371_v29  ;;  %v8036_v16 = vld [vmem:[#allocation175_spill] sm:$0xff]  ;;  %v8037_v42 = vld [vmem:[#allocation28_spill] sm:$0xff] }
 0x1dd   :  { %v1716_v8 = vpop.f32.mrf.mxu1  ;;  %v1941_v30 = vpop.f32.mrf.mxu0  ;;  %2180 = vmatmul.mubr.f32.gmra.mxu0 %v8030_v63  ;;  %3435 = vmatmul.mubr.msk.f32.gmra.mxu1 %vm4000_vm2, %v8031_v21  ;;  %v1562_v20 = vadd.f32 %v8037_v42, %v8036_v16  ;;  %v8038_v29 = vld [vmem:[#allocation40_spill] sm:$0xff] }
 0x1de   :  { %v6382_v5 = vadd.f32 %v1716_v8, %v6207_v49  ;;  %v6384_v50 = vadd.f32 %v1941_v30, %v1557_v15  ;;  %2184 = vmatprep.mubr.f32.mxu0 %v8034_v54  ;;  %2409 = vmatprep.mubr.f32.mxu1 %v8035_v60  ;;  %v8039_v1 = vld [vmem:[#allocation96_spill] sm:$0xff]  ;;  %v8042_v30 = vld [vmem:[#allocation202_spill] sm:$0xff]  ;;  %v8043_v15 = vld [vmem:[#allocation107_spill] sm:$0xff] }
 0x1df   :  { %v1718_v31 = vpop.f32.mrf.mxu1  ;;  %v1943_v35 = vpop.f32.mrf.mxu0 }
 0x1e0   :  { %8032 = vst [vmem:[#allocation146_spill] sm:$0xff] %v6382_v5  ;;  %8033 = vst [vmem:[#allocation46_spill] sm:$0xff] %v6384_v50  ;;  %v8044_v31 = vld [vmem:[#allocation177_spill] sm:$0xff]  ;;  %v8047_v5 = vld [vmem:[#allocation99_spill] sm:$0xff] }
 0x1e1   :  { %v1721_v47 = vpop.f32.mrf.mxu1  ;;  %v1946_v17 = vpop.f32.mrf.mxu0  ;;  %2185 = vmatmul.mubr.f32.gmra.mxu0 %v8038_v29  ;;  %2410 = vmatmul.mubr.f32.gmra.mxu1 %v8039_v1  ;;  %v8045_v35 = vld [vmem:[#allocation33_spill] sm:$0xff] }
 0x1e2   :  { %v6393_v49 = vadd.f32 %v1721_v47, %v6218_v14  ;;  %v6395_v21 = vadd.f32 %v1946_v17, %v1562_v20  ;;  %2189 = vmatprep.mubr.f32.mxu0 %v8042_v30  ;;  %2414 = vmatprep.mubr.f32.mxu1 %v8043_v15  ;;  %v1567_v16 = vadd.f32 %v8045_v35, %v8044_v31  ;;  %v8046_v50 = vld [vmem:[#allocation45_spill] sm:$0xff]  ;;  %v8050_v17 = vld [vmem:[#allocation203_spill] sm:$0xff]  ;;  %v8051_v20 = vld [vmem:[#allocation110_spill] sm:$0xff] }
 0x1e3   :  { %v1723_v8 = vpop.f32.mrf.mxu1  ;;  %v1948_v60 = vpop.f32.mrf.mxu0 }
 0x1e4   :  { %8040 = vst [vmem:[#allocation149_spill] sm:$0xff] %v6393_v49  ;;  %8041 = vst [vmem:[#allocation51_spill] sm:$0xff] %v6395_v21  ;;  %v8052_v8 = vld [vmem:[#allocation179_spill] sm:$0xff]  ;;  %v8053_v60 = vld [vmem:[#allocation38_spill] sm:$0xff] }
 0x1e5   :  { %v1726_v42 = vpop.f32.mrf.mxu1  ;;  %v1951_v54 = vpop.f32.mrf.mxu0  ;;  %2190 = vmatmul.mubr.f32.gmra.mxu0 %v8046_v50  ;;  %3437 = vmatmul.mubr.msk.f32.gmra.mxu1 %vm4000_vm2, %v8047_v5  ;;  %v1572_v31 = vadd.f32 %v8053_v60, %v8052_v8  ;;  %v8054_v21 = vld [vmem:[#allocation50_spill] sm:$0xff] }
 0x1e6   :  { %v6406_v14 = vadd.f32 %v1726_v42, %v6227_v7  ;;  %v6408_v1 = vadd.f32 %v1951_v54, %v1567_v16  ;;  %2194 = vmatprep.mubr.f32.mxu0 %v8050_v17  ;;  %2419 = vmatprep.mubr.f32.mxu1 %v8051_v20  ;;  %v8055_v49 = vld [vmem:[#allocation102_spill] sm:$0xff]  ;;  %v8058_v54 = vld [vmem:[#allocation204_spill] sm:$0xff]  ;;  %v8059_v16 = vld [vmem:[#allocation113_spill] sm:$0xff] }
 0x1e7   :  { %v1728_v47 = vpop.f32.mrf.mxu1  ;;  %v1953_v15 = vpop.f32.mrf.mxu0 }
 0x1e8   :  { %8048 = vst [vmem:[#allocation152_spill] sm:$0xff] %v6406_v14  ;;  %8049 = vst [vmem:[#allocation56_spill] sm:$0xff] %v6408_v1  ;;  %v8060_v47 = vld [vmem:[#allocation181_spill] sm:$0xff]  ;;  %v8062_v1 = vld [vmem:[#allocation55_spill] sm:$0xff] }
 0x1e9   :  { %v1731_v35 = vpop.f32.mrf.mxu1  ;;  %v1956_v30 = vpop.f32.mrf.mxu0  ;;  %2195 = vmatmul.mubr.f32.gmra.mxu0 %v8054_v21  ;;  %2420 = vmatmul.mubr.f32.gmra.mxu1 %v8055_v49  ;;  %v8061_v15 = vld [vmem:[#allocation41_spill] sm:$0xff] }
 0x1ea   :  { %v6417_v7 = vadd.f32 %v1731_v35, %v6238_v23  ;;  %v6419_v5 = vadd.f32 %v1956_v30, %v1572_v31  ;;  %2199 = vmatprep.mubr.f32.mxu0 %v8058_v54  ;;  %2424 = vmatprep.mubr.f32.mxu1 %v8059_v16  ;;  %v1577_v8 = vadd.f32 %v8061_v15, %v8060_v47  ;;  %v8063_v14 = vld [vmem:[#allocation105_spill] sm:$0xff]  ;;  %v8067_v31 = vld [vmem:[#allocation116_spill] sm:$0xff] }
 0x1eb   :  { %v1733_v42 = vpop.f32.mrf.mxu1  ;;  %v1958_v20 = vpop.f32.mrf.mxu0  ;;  %v8066_v30 = vld [vmem:[#allocation205_spill] sm:$0xff] }
 0x1ec   :  { %8056 = vst [vmem:[#allocation155_spill] sm:$0xff] %v6417_v7  ;;  %8057 = vst [vmem:[#allocation61_spill] sm:$0xff] %v6419_v5  ;;  %v8068_v42 = vld [vmem:[#allocation183_spill] sm:$0xff]  ;;  %v8069_v20 = vld [vmem:[#allocation49_spill] sm:$0xff] }
 0x1ed   :  { %v1736_v60 = vpop.f32.mrf.mxu1  ;;  %v1961_v17 = vpop.f32.mrf.mxu0  ;;  %2200 = vmatmul.mubr.f32.gmra.mxu0 %v8062_v1  ;;  %3439 = vmatmul.mubr.msk.f32.gmra.mxu1 %vm4000_vm2, %v8063_v14  ;;  %v1582_v47 = vadd.f32 %v8069_v20, %v8068_v42  ;;  %v8070_v5 = vld [vmem:[#allocation60_spill] sm:$0xff] }
 0x1ee   :  { %v6430_v23 = vadd.f32 %v1736_v60, %v6247_v22  ;;  %v6432_v49 = vadd.f32 %v1961_v17, %v1577_v8  ;;  %2204 = vmatprep.mubr.f32.mxu0 %v8066_v30  ;;  %2429 = vmatprep.mubr.f32.mxu1 %v8067_v31  ;;  %v8071_v7 = vld [vmem:[#allocation108_spill] sm:$0xff]  ;;  %v8073_v17 = vld [vmem:[#allocation63_spill] sm:$0xff]  ;;  %v8074_v8 = vld [vmem:[#allocation118_spill] sm:$0xff] }
 0x1ef   :  { %v1738_v35 = vpop.f32.mrf.mxu1  ;;  %v1963_v16 = vpop.f32.mrf.mxu0 }
 0x1f0   :  { %8064 = vst [vmem:[#allocation66_spill] sm:$0xff] %v6430_v23  ;;  %8065 = vst [vmem:[#allocation160_spill] sm:$0xff] %v6432_v49  ;;  %v8075_v35 = vld [vmem:[#allocation59_spill] sm:$0xff]  ;;  %v8076_v16 = vld [vmem:[#allocation52_spill] sm:$0xff] }
 0x1f1   :  { %v1741_v15 = vpop.f32.mrf.mxu1  ;;  %v1966_v54 = vpop.f32.mrf.mxu0  ;;  %2205 = vmatmul.mubr.f32.gmra.mxu0 %v8070_v5  ;;  %2430 = vmatmul.mubr.f32.gmra.mxu1 %v8071_v7  ;;  %v1587_v42 = vadd.f32 %v8076_v16, %v8075_v35  ;;  %v8077_v49 = vld [vmem:[#allocation65_spill] sm:$0xff]  ;;  %v8078_v23 = vld [vmem:[#allocation111_spill] sm:$0xff]  ;;  %v377_v16 = vsel %vm148_vm0, 0.0, %v6106_v26  ;;  %v8090_v26 = vrot.slane %v6089_v56, 7 }
 0x1f2   :  { %v6441_v22 = vadd.f32 %v1741_v15, %v6258_v57  ;;  %v6443_v14 = vadd.f32 %v1966_v54, %v1582_v47  ;;  %2209 = vmatprep.mubr.f32.mxu0 %v8073_v17  ;;  %2434 = vmatprep.mubr.f32.mxu1 %v8074_v8  ;;  %v8080_v54 = vld [vmem:[#allocation207_spill] sm:$0xff]  ;;  %v8081_v47 = vld [vmem:[#allocation120_spill] sm:$0xff]  ;;  %v638_v56 = vrot.slane %v377_v16, 1 }
 0x1f3   :  { %v1743_v60 = vpop.f32.mrf.mxu1  ;;  %v1968_v31 = vpop.f32.mrf.mxu0 }
 0x1f4   :  { %8072 = vst [vmem:[#allocation72_spill] sm:$0xff] %v6443_v14  ;;  %v8082_v60 = vld [vmem:[#allocation62_spill] sm:$0xff] }
 0x1f5   :  { %v1746_v20 = vpop.f32.mrf.mxu1  ;;  %v1971_v30 = vpop.f32.mrf.mxu0  ;;  %2210 = vmatmul.mubr.f32.gmra.mxu0 %v8077_v49  ;;  %3441 = vmatmul.mubr.msk.f32.gmra.mxu1 %vm4000_vm2, %v8078_v23  ;;  %v8083_v31 = vld [vmem:[#allocation58_spill] sm:$0xff] }
 0x1f6   :  { %v6454_v57 = vadd.f32 %v1746_v20, %v6267_v37  ;;  %v6456_v7 = vadd.f32 %v1971_v30, %v1587_v42  ;;  %2214 = vmatprep.mubr.f32.mxu0 %v8080_v54  ;;  %2439 = vmatprep.mubr.f32.mxu1 %v8081_v47  ;;  %v1592_v35 = vadd.f32 %v8083_v31, %v8082_v60  ;;  %v8084_v23 = vld [vmem:[#allocation70_spill] sm:$0xff]  ;;  %v8088_v60 = vld [vmem:[#allocation69_spill] sm:$0xff] }
 0x1f7   :  { %v1748_v15 = vpop.f32.mrf.mxu1  ;;  %v1973_v8 = vpop.f32.mrf.mxu0  ;;  %v8085_v37 = vld [vmem:[#allocation114_spill] sm:$0xff] }
 0x1f8   :  { %8079 = vst [vmem:[#allocation82_spill] sm:$0xff] %v6456_v7  ;;  %v870_v15 = vrot.slane %v377_v16, 2  ;;  %v871_v8 = vrot.slane %v6138_v43, 2  ;;  %v8089_v31 = vld [vmem:[#allocation206_spill] sm:$0xff]  ;;  %v8097_v16 = vld [vmem:[#allocation8_spill] sm:$0xff] }
 0x1f9   :  { %v1751_v17 = vpop.f32.mrf.mxu1  ;;  %v1976_v14 = vpop.f32.mrf.mxu0  ;;  %2215 = vmatmul.mubr.f32.gmra.mxu0 %v8084_v23  ;;  %2440 = vmatmul.mubr.f32.gmra.mxu1 %v8085_v37  ;;  %v1597_v54 = vadd.f32 %v8089_v31, %v8088_v60  ;;  %v410_v37 = vsel %vm148_vm0, %v8090_v26, 0.0 }
 0x1fa   :  { %v6467_v30 = vadd.f32 %v1751_v17, %v6278_v46  ;;  %v6469_v42 = vadd.f32 %v1976_v14, %v1592_v35  ;;  %2219 = vmatprep.mubr.f32.mxu0 %v6128_v32  ;;  %2444 = vmatprep.mubr.f32.mxu1 %v6131_v9  ;;  %v8091_v14 = vld [vmem:[#allocation74_spill] sm:$0xff]  ;;  %v8092_v35 = vld [vmem:[#allocation159_spill] sm:$0xff]  ;;  %v639_v9 = vrot.slane %v6138_v43, 1  ;;  %v6492_v31 = vsel %vm709_vm3, %v870_v15, %v871_v8 }
 0x1fb   :  { %v1753_v20 = vpop.f32.mrf.mxu1  ;;  %v1978_v47 = vpop.f32.mrf.mxu0  ;;  %v873_v32 = vrot.slane %v410_v37, 2 }
 0x1fc   :  { %8086 = vst [vmem:[#allocation75_spill] sm:$0xff] %v6467_v30  ;;  %8087 = vst [vmem:[#allocation85_spill] sm:$0xff] %v6469_v42  ;;  %v8093_v42 = vld [vmem:[#allocation191_spill] sm:$0xff]  ;;  %v6506_v15 = vsel %vm477_vm1, %v638_v56, %v639_v9 }
 0x1fd   :  { %v1756_v46 = vpop.f32.mrf.mxu1  ;;  %v1981_v17 = vpop.f32.mrf.mxu0  ;;  %2220 = vmatmul.mubr.f32.gmra.mxu0 %v8091_v14  ;;  %3443 = vmatmul.mubr.msk.f32.gmra.mxu1 %vm4000_vm2, %v8092_v35  ;;  %v8094_v35 = vld [vmem:[#allocation209_spill] sm:$0xff] }
 0x1fe   :  { %v6485_v20 = vadd.f32 %v1756_v46, %v6287_v51  ;;  %v6487_v47 = vadd.f32 %v1981_v17, %v1597_v54  ;;  %2224 = vmatprep.mubr.f32.mxu0 %v6153_v13  ;;  %2449 = vmatprep.mubr.f32.mxu1 %v6156_v53  ;;  %v1602_v30 = vadd.f32 %v8094_v35, %v8093_v42  ;;  %v8095_v51 = vld [vmem:[#allocation77_spill] sm:$0xff]  ;;  %v641_v17 = vrot.slane %v410_v37, 1 }
 0x1ff   :  { %v1758_v26 = vpop.f32.mrf.mxu1  ;;  %v1983_v60 = vpop.f32.mrf.mxu0  ;;  %v8096_v54 = vld [vmem:[#allocation165_spill] sm:$0xff] }
 0x200   :  { %v6509_v60 = vsel %vm709_vm3, %v871_v8, %v873_v32  ;;  %v6524_v32 = vsel %vm477_vm1, %v639_v9, %v641_v17 }
 0x201   :  { %v1761_v43 = vpop.f32.mrf.mxu1  ;;  %v1986_v7 = vpop.f32.mrf.mxu0  ;;  %2225 = vmatmul.mubr.f32.gmra.mxu0 %v8095_v51  ;;  %2450 = vmatmul.mubr.f32.gmra.mxu1 %v8096_v54 }
 0x202   :  { %v6499_v46 = vadd.f32 %v1761_v43, %v6298_v61  ;;  %v6501_v53 = vadd.f32 %v1986_v7, %v1602_v30  ;;  %2229 = vmatprep.mubr.f32.mxu0 %v6492_v31  ;;  %2454 = vmatprep.mubr.f32.mxu1 %v8097_v16  ;;  %v8098_v43 = vld [vmem:[#allocation2_spill] sm:$0xff]  ;;  %v8099_v30 = vld [vmem:[#allocation12_spill] sm:$0xff] }
 0x203   :  { %v1763_v42 = vpop.f32.mrf.mxu1  ;;  %v1988_v26 = vpop.f32.mrf.mxu0 }
 0x204   :  { %v8100_v26 = vld [vmem:[#allocation91_spill] sm:$0xff] }
 0x205   :  { %v1766_v35 = vpop.f32.mrf.mxu1  ;;  %v1991_v54 = vpop.f32.mrf.mxu0  ;;  %2230 = vmatmul.mubr.f32.gmra.mxu0 %v6506_v15  ;;  %3445 = vmatmul.mubr.msk.f32.gmra.mxu1 %vm4000_vm2, %v8098_v43 }
 0x206   :  { %v6516_v61 = vadd.f32 %v1766_v35, %v6307_v33  ;;  %v6519_v7 = vadd.f32 %v1991_v54, %v6148_v4  ;;  %2234 = vmatprep.mubr.f32.mxu0 %v6509_v60  ;;  %2459 = vmatprep.mubr.f32.mxu1 %v8099_v30 }
 0x207   :  { %v1768_v8 = vpop.f32.mrf.mxu1  ;;  %v1993_v37 = vpop.f32.mrf.mxu0 }
 0x208   :  { %v8101_v8 = vld [vmem:[#allocation123_spill] sm:$0xff]  ;;  %v8102_v37 = vld [vmem:[#allocation94_spill] sm:$0xff] }
 0x209   :  { %v1771_v56 = vpop.f32.mrf.mxu1  ;;  %v1996_v42 = vpop.f32.mrf.mxu0  ;;  %2235 = vmatmul.mubr.f32.gmra.mxu0 %v6524_v32  ;;  %2460 = vmatmul.mubr.f32.gmra.mxu1 %v8098_v43 }
 0x20a   :  { %v6529_v33 = vadd.f32 %v1771_v56, %v6318_v27  ;;  %v6532_v4 = vadd.f32 %v1996_v42, %v6163_v59  ;;  %2464 = vmatprep.mubr.f32.mxu1 %v7955_v41  ;;  %3590 = vmatprep.mubr.f32.mxu0 %v8100_v26  ;;  %v8103_v59 = vld [vmem:[#allocation97_spill] sm:$0xff] }
 0x20b   :  { %v1773_v9 = vpop.f32.mrf.mxu1  ;;  %v1998_v17 = vpop.f32.mrf.mxu0 }
 0x20c   :  { %v8104_v9 = vld [vmem:[#allocation126_spill] sm:$0xff]  ;;  %v8105_v17 = vld [vmem:[#allocation100_spill] sm:$0xff] }
 0x20d   :  { %v6536_v35 = vpop.f32.mrf.mxu1  ;;  %v2001_v54 = vpop.f32.mrf.mxu0  ;;  %3447 = vmatmul.mubr.msk.f32.gmra.mxu1 %vm4000_vm2, %v8101_v8  ;;  %3591 = vmatmul.mubr.f32.vlgmr.msra.gmra.mxu0 %v8102_v37 }
 0x20e   :  { %v6543_v27 = vadd.f32 %v2001_v54, %v6174_v10  ;;  %2469 = vmatprep.mubr.f32.mxu1 %v7957_v11  ;;  %3593 = vmatprep.mubr.f32.mxu0 %v8103_v59  ;;  %v8106_v10 = vld [vmem:[#allocation103_spill] sm:$0xff] }
 0x20f   :  { %v1778_v41 = vpop.f32.mrf.mxu1  ;;  %v2003_v56 = vpop.f32.mrf.mxu0 }
 0x210   :  { %v8107_v41 = vld [vmem:[#allocation129_spill] sm:$0xff]  ;;  %v8108_v56 = vld [vmem:[#allocation106_spill] sm:$0xff] }
 0x211   :  { %v6547_v42 = vpop.f32.mrf.mxu1  ;;  %v2006_v26 = vpop.f32.mrf.mxu0  ;;  %2470 = vmatmul.mubr.f32.gmra.mxu1 %v8104_v9  ;;  %3594 = vmatmul.mubr.f32.gmra.mxu0 %v8105_v17 }
 0x212   :  { %v6552_v8 = vadd.f32 %v2006_v26, %v6183_v12  ;;  %2474 = vmatprep.mubr.f32.mxu1 %v7959_v0  ;;  %3596 = vmatprep.mubr.f32.mxu0 %v8106_v10  ;;  %v8109_v12 = vld [vmem:[#allocation109_spill] sm:$0xff] }
 0x213   :  { %v1783_v54 = vpop.f32.mrf.mxu1  ;;  %v2008_v11 = vpop.f32.mrf.mxu0 }
 0x214   :  { %v8110_v54 = vld [vmem:[#allocation132_spill] sm:$0xff] }
 0x215   :  { %v6556_v37 = vpop.f32.mrf.mxu1  ;;  %v2011_v59 = vpop.f32.mrf.mxu0  ;;  %3449 = vmatmul.mubr.msk.f32.gmra.mxu1 %vm4000_vm2, %v8107_v41  ;;  %3597 = vmatmul.mubr.f32.gmra.mxu0 %v8108_v56  ;;  %v8111_v11 = vld [vmem:[#allocation112_spill] sm:$0xff] }
 0x216   :  { %v6563_v9 = vadd.f32 %v2011_v59, %v6194_v55  ;;  %2479 = vmatprep.mubr.f32.mxu1 %v7961_v18  ;;  %3599 = vmatprep.mubr.f32.mxu0 %v8109_v12  ;;  %v8112_v55 = vld [vmem:[#allocation115_spill] sm:$0xff] }
 0x217   :  { %v1788_v0 = vpop.f32.mrf.mxu1  ;;  %v2013_v26 = vpop.f32.mrf.mxu0 }
 0x218   :  { %v8113_v0 = vld [vmem:[#allocation135_spill] sm:$0xff]  ;;  %v8114_v26 = vld [vmem:[#allocation117_spill] sm:$0xff] }
 0x219   :  { %v6567_v17 = vpop.f32.mrf.mxu1  ;;  %v2016_v10 = vpop.f32.mrf.mxu0  ;;  %2480 = vmatmul.mubr.f32.gmra.mxu1 %v8110_v54  ;;  %3600 = vmatmul.mubr.f32.gmra.mxu0 %v8111_v11 }
 0x21a   :  { %v6572_v41 = vadd.f32 %v2016_v10, %v6203_v28  ;;  %2484 = vmatprep.mubr.f32.mxu1 %v7963_v25  ;;  %3602 = vmatprep.mubr.f32.mxu0 %v8112_v55  ;;  %v8115_v28 = vld [vmem:[#allocation119_spill] sm:$0xff] }
 0x21b   :  { %v1793_v59 = vpop.f32.mrf.mxu1  ;;  %v2018_v18 = vpop.f32.mrf.mxu0 }
 0x21c   :  { %v8116_v59 = vld [vmem:[#allocation138_spill] sm:$0xff]  ;;  %v8117_v18 = vld [vmem:[#allocation121_spill] sm:$0xff] }
 0x21d   :  { %v6576_v56 = vpop.f32.mrf.mxu1  ;;  %v2021_v12 = vpop.f32.mrf.mxu0  ;;  %3451 = vmatmul.mubr.msk.f32.gmra.mxu1 %vm4000_vm2, %v8113_v0  ;;  %3603 = vmatmul.mubr.f32.gmra.mxu0 %v8114_v26 }
 0x21e   :  { %v6583_v54 = vadd.f32 %v2021_v12, %v6214_v44  ;;  %2489 = vmatprep.mubr.f32.mxu1 %v7965_v48  ;;  %3605 = vmatprep.mubr.f32.mxu0 %v8115_v28  ;;  %v8118_v44 = vld [vmem:[#allocation122_spill] sm:$0xff] }
 0x21f   :  { %v1798_v25 = vpop.f32.mrf.mxu1  ;;  %v2023_v10 = vpop.f32.mrf.mxu0 }
 0x220   :  { %v8119_v25 = vld [vmem:[#allocation141_spill] sm:$0xff]  ;;  %v8120_v10 = vld [vmem:[#allocation124_spill] sm:$0xff] }
 0x221   :  { %v6587_v11 = vpop.f32.mrf.mxu1  ;;  %v2026_v55 = vpop.f32.mrf.mxu0  ;;  %2490 = vmatmul.mubr.f32.gmra.mxu1 %v8116_v59  ;;  %3606 = vmatmul.mubr.f32.gmra.mxu0 %v8117_v18 }
 0x222   :  { %v6592_v0 = vadd.f32 %v2026_v55, %v6223_v34  ;;  %2494 = vmatprep.mubr.f32.mxu1 %v7967_v45  ;;  %3608 = vmatprep.mubr.f32.mxu0 %v8118_v44  ;;  %v8121_v34 = vld [vmem:[#allocation127_spill] sm:$0xff] }
 0x223   :  { %v1803_v12 = vpop.f32.mrf.mxu1  ;;  %v2028_v48 = vpop.f32.mrf.mxu0 }
 0x224   :  { %v8122_v12 = vld [vmem:[#allocation144_spill] sm:$0xff]  ;;  %v8123_v48 = vld [vmem:[#allocation130_spill] sm:$0xff] }
 0x225   :  { %v6596_v26 = vpop.f32.mrf.mxu1  ;;  %v2031_v28 = vpop.f32.mrf.mxu0  ;;  %3453 = vmatmul.mubr.msk.f32.gmra.mxu1 %vm4000_vm2, %v8119_v25  ;;  %3609 = vmatmul.mubr.f32.gmra.mxu0 %v8120_v10 }
 0x226   :  { %v6603_v59 = vadd.f32 %v2031_v28, %v6234_v2  ;;  %2499 = vmatprep.mubr.f32.mxu1 %v7969_v62  ;;  %3611 = vmatprep.mubr.f32.mxu0 %v8121_v34  ;;  %v8124_v2 = vld [vmem:[#allocation133_spill] sm:$0xff] }
 0x227   :  { %v1808_v45 = vpop.f32.mrf.mxu1  ;;  %v2033_v55 = vpop.f32.mrf.mxu0 }
 0x228   :  { %v8125_v45 = vld [vmem:[#allocation147_spill] sm:$0xff]  ;;  %v8126_v55 = vld [vmem:[#allocation136_spill] sm:$0xff] }
 0x229   :  { %v6607_v18 = vpop.f32.mrf.mxu1  ;;  %v2036_v44 = vpop.f32.mrf.mxu0  ;;  %2500 = vmatmul.mubr.f32.gmra.mxu1 %v8122_v12  ;;  %3612 = vmatmul.mubr.f32.gmra.mxu0 %v8123_v48 }
 0x22a   :  { %v6612_v25 = vadd.f32 %v2036_v44, %v6243_v36  ;;  %2504 = vmatprep.mubr.f32.mxu1 %v7971_v6  ;;  %3614 = vmatprep.mubr.f32.mxu0 %v8124_v2  ;;  %v8128_v36 = vld [vmem:[#allocation139_spill] sm:$0xff] }
 0x22b   :  { %v1813_v28 = vpop.f32.mrf.mxu1  ;;  %v2038_v62 = vpop.f32.mrf.mxu0 }
 0x22c   :  { %v8130_v28 = vld [vmem:[#allocation150_spill] sm:$0xff] }
 0x22d   :  { %v6616_v10 = vpop.f32.mrf.mxu1  ;;  %v2041_v34 = vpop.f32.mrf.mxu0  ;;  %3455 = vmatmul.mubr.msk.f32.gmra.mxu1 %vm4000_vm2, %v8125_v45  ;;  %3615 = vmatmul.mubr.f32.gmra.mxu0 %v8126_v55  ;;  %v8131_v62 = vld [vmem:[#allocation142_spill] sm:$0xff] }
 0x22e   :  { %v6623_v12 = vadd.f32 %v2041_v34, %v6254_v24  ;;  %2509 = vmatprep.mubr.f32.mxu1 %v5578_v39  ;;  %3617 = vmatprep.mubr.f32.mxu0 %v8128_v36  ;;  %v8133_v24 = vld [vmem:[#allocation145_spill] sm:$0xff] }
 0x22f   :  { %v1818_v6 = vpop.f32.mrf.mxu1  ;;  %v2043_v44 = vpop.f32.mrf.mxu0 }
 0x230   :  { %8127 = vst [vmem:[#allocation78_spill] sm:$0xff] %v6623_v12  ;;  %v8135_v6 = vld [vmem:[#allocation153_spill] sm:$0xff]  ;;  %v8136_v44 = vld [vmem:[#allocation148_spill] sm:$0xff]  ;;  %v8181_v12 = vld [vmem:[#allocation43_spill] sm:$0xff] }
 0x231   :  { %v6627_v48 = vpop.f32.mrf.mxu1  ;;  %v2046_v2 = vpop.f32.mrf.mxu0  ;;  %2510 = vmatmul.mubr.f32.gmra.mxu1 %v8130_v28  ;;  %3618 = vmatmul.mubr.f32.gmra.mxu0 %v8131_v62  ;;  %v8137_v28 = vld [vmem:[#allocation125_spill] sm:$0xff] }
 0x232   :  { %8129 = vst [vmem:[#allocation87_spill] sm:$0xff] %v6627_v48  ;;  %v6632_v45 = vadd.f32 %v2046_v2, %v6263_v38  ;;  %2514 = vmatprep.mubr.f32.mxu1 %v7976_v52  ;;  %3620 = vmatprep.mubr.f32.mxu0 %v8133_v24  ;;  %v8139_v38 = vld [vmem:[#allocation164_spill] sm:$0xff]  ;;  %v8140_v2 = vld [vmem:[#allocation151_spill] sm:$0xff] }
 0x233   :  { %v1823_v34 = vpop.f32.mrf.mxu1  ;;  %v2048_v39 = vpop.f32.mrf.mxu0  ;;  %v8144_v48 = vld [vmem:[#allocation15_spill] sm:$0xff] }
 0x234   :  { %8132 = vst [vmem:[#allocation80_spill] sm:$0xff] %v6632_v45  ;;  %v8143_v45 = vld [vmem:[#allocation154_spill] sm:$0xff] }
 0x235   :  { %v6636_v55 = vpop.f32.mrf.mxu1  ;;  %v2051_v36 = vpop.f32.mrf.mxu0  ;;  %3457 = vmatmul.mubr.msk.f32.gmra.mxu1 %vm4000_vm2, %v8135_v6  ;;  %3621 = vmatmul.mubr.f32.gmra.mxu0 %v8136_v44  ;;  %v8146_v44 = vld [vmem:[#allocation9_spill] sm:$0xff] }
 0x236   :  { %8134 = vst [vmem:[#allocation89_spill] sm:$0xff] %v6636_v55  ;;  %v6643_v62 = vadd.f32 %v2051_v36, %v8137_v28  ;;  %2519 = vmatprep.mubr.f32.mxu1 %v8139_v38  ;;  %3623 = vmatprep.mubr.f32.mxu0 %v8140_v2  ;;  %v8142_v55 = vld [vmem:[#allocation156_spill] sm:$0xff]  ;;  %v8147_v36 = vld [vmem:[#allocation157_spill] sm:$0xff] }
 0x237   :  { %v1828_v52 = vpop.f32.mrf.mxu1  ;;  %v2053_v24 = vpop.f32.mrf.mxu0 }
 0x238   :  { %8138 = vst [vmem:[#allocation162_spill] sm:$0xff] %v6643_v62  ;;  %v8149_v52 = vld [vmem:[#allocation3_spill] sm:$0xff]  ;;  %v8150_v24 = vld [vmem:[#allocation158_spill] sm:$0xff] }
 0x239   :  { %v6647_v34 = vpop.f32.mrf.mxu1  ;;  %v2056_v39 = vpop.f32.mrf.mxu0  ;;  %2520 = vmatmul.mubr.f32.gmra.mxu1 %v8142_v55  ;;  %3624 = vmatmul.mubr.f32.gmra.mxu0 %v8143_v45  ;;  %v8151_v55 = vld [vmem:[#allocation128_spill] sm:$0xff] }
 0x23a   :  { %8141 = vst [vmem:[#allocation6_spill] sm:$0xff] %v6647_v34  ;;  %v6652_v6 = vadd.f32 %v2056_v39, %v8144_v48  ;;  %2524 = vmatprep.mubr.f32.mxu1 %v8146_v44  ;;  %3626 = vmatprep.mubr.f32.mxu0 %v8147_v36  ;;  %v8153_v48 = vld [vmem:[#allocation13_spill] sm:$0xff]  ;;  %v8158_v34 = vld [vmem:[#allocation18_spill] sm:$0xff] }
 0x23b   :  { %v1833_v28 = vpop.f32.mrf.mxu1  ;;  %v2058_v38 = vpop.f32.mrf.mxu0  ;;  %v8154_v39 = vld [vmem:[#allocation161_spill] sm:$0xff] }
 0x23c   :  { %8145 = vst [vmem:[#allocation83_spill] sm:$0xff] %v6652_v6  ;;  %v8157_v6 = vld [vmem:[#allocation166_spill] sm:$0xff] }
 0x23d   :  { %v6656_v62 = vpop.f32.mrf.mxu1  ;;  %v2061_v2 = vpop.f32.mrf.mxu0  ;;  %3459 = vmatmul.mubr.msk.f32.gmra.mxu1 %vm4000_vm2, %v8149_v52  ;;  %3627 = vmatmul.mubr.f32.gmra.mxu0 %v8150_v24  ;;  %v8160_v24 = vld [vmem:[#allocation17_spill] sm:$0xff] }
 0x23e   :  { %8148 = vst [vmem:[#allocation92_spill] sm:$0xff] %v6656_v62  ;;  %v6663_v45 = vadd.f32 %v2061_v2, %v8151_v55  ;;  %2529 = vmatprep.mubr.f32.mxu1 %v8153_v48  ;;  %3629 = vmatprep.mubr.f32.mxu0 %v8154_v39  ;;  %v8156_v62 = vld [vmem:[#allocation4_spill] sm:$0xff] }
 0x23f   :  { %v1838_v44 = vpop.f32.mrf.mxu1  ;;  %v2063_v36 = vpop.f32.mrf.mxu0  ;;  %v8161_v2 = vld [vmem:[#allocation68_spill] sm:$0xff] }
 0x240   :  { %8152 = vst [vmem:[#allocation167_spill] sm:$0xff] %v6663_v45  ;;  %v8163_v44 = vld [vmem:[#allocation7_spill] sm:$0xff] }
 0x241   :  { %v6667_v28 = vpop.f32.mrf.mxu1  ;;  %v2066_v38 = vpop.f32.mrf.mxu0  ;;  %2530 = vmatmul.mubr.f32.gmra.mxu1 %v8156_v62  ;;  %3630 = vmatmul.mubr.f32.gmra.mxu0 %v8157_v6  ;;  %v8164_v36 = vld [vmem:[#allocation211_spill] sm:$0xff] }
 0x242   :  { %8155 = vst [vmem:[#allocation11_spill] sm:$0xff] %v6667_v28  ;;  %v6672_v52 = vadd.f32 %v2066_v38, %v8158_v34  ;;  %2534 = vmatprep.mubr.f32.mxu1 %v8160_v24  ;;  %3632 = vmatprep.mubr.f32.mxu0 %v8161_v2  ;;  %v8165_v62 = vld [vmem:[#allocation131_spill] sm:$0xff]  ;;  %v8167_v34 = vld [vmem:[#allocation81_spill] sm:$0xff]  ;;  %v8177_v28 = vld [vmem:[#allocation26_spill] sm:$0xff] }
 0x243   :  { %v1843_v55 = vpop.f32.mrf.mxu1  ;;  %v2068_v48 = vpop.f32.mrf.mxu0 }
 0x244   :  { %8159 = vst [vmem:[#allocation21_spill] sm:$0xff] %v6672_v52  ;;  %v8169_v48 = vld [vmem:[#allocation10_spill] sm:$0xff] }
 0x245   :  { %v6676_v45 = vpop.f32.mrf.mxu1  ;;  %v2071_v39 = vpop.f32.mrf.mxu0  ;;  %3461 = vmatmul.mubr.msk.f32.gmra.mxu1 %vm4000_vm2, %v8163_v44  ;;  %3633 = vmatmul.mubr.f32.gmra.mxu0 %v8164_v36  ;;  %v8171_v52 = vld [vmem:[#allocation22_spill] sm:$0xff] }
 0x246   :  { %8162 = vst [vmem:[#allocation86_spill] sm:$0xff] %v6676_v45  ;;  %v6683_v6 = vadd.f32 %v2071_v39, %v8165_v62  ;;  %2539 = vmatprep.mubr.f32.mxu1 %v8006_v40  ;;  %3635 = vmatprep.mubr.f32.mxu0 %v8167_v34  ;;  %v8170_v45 = vld [vmem:[#allocation84_spill] sm:$0xff]  ;;  %v8173_v39 = vld [vmem:[#allocation29_spill] sm:$0xff] }
 0x247   :  { %v1848_v38 = vpop.f32.mrf.mxu1  ;;  %v2073_v24 = vpop.f32.mrf.mxu0 }
 0x248   :  { %8166 = vst [vmem:[#allocation95_spill] sm:$0xff] %v6683_v6  ;;  %v8174_v38 = vld [vmem:[#allocation16_spill] sm:$0xff] }
 0x249   :  { %v6687_v2 = vpop.f32.mrf.mxu1  ;;  %v2076_v55 = vpop.f32.mrf.mxu0  ;;  %2540 = vmatmul.mubr.f32.gmra.mxu1 %v8169_v48  ;;  %3636 = vmatmul.mubr.f32.gmra.mxu0 %v8170_v45  ;;  %v8175_v24 = vld [vmem:[#allocation32_spill] sm:$0xff]  ;;  %v8176_v48 = vld [vmem:[#allocation134_spill] sm:$0xff] }
 0x24a   :  { %8168 = vst [vmem:[#allocation169_spill] sm:$0xff] %v6687_v2  ;;  %v6692_v44 = vadd.f32 %v2076_v55, %v8171_v52  ;;  %2544 = vmatprep.mubr.f32.mxu1 %v8014_v3  ;;  %3638 = vmatprep.mubr.f32.mxu0 %v8173_v39  ;;  %v8179_v3 = vld [vmem:[#allocation39_spill] sm:$0xff] }
 0x24b   :  { %v1853_v36 = vpop.f32.mrf.mxu1  ;;  %v2078_v40 = vpop.f32.mrf.mxu0 }
 0x24c   :  { %8172 = vst [vmem:[#allocation14_spill] sm:$0xff] %v6692_v44  ;;  %v8180_v44 = vld [vmem:[#allocation19_spill] sm:$0xff] }
 0x24d   :  { %v2081_v62 = vpop.f32.mrf.mxu0  ;;  %v2306_v6 = vpop.f32.mrf.mxu1  ;;  %3463 = vmatmul.mubr.msk.f32.gmra.mxu1 %vm4000_vm2, %v8174_v38  ;;  %3639 = vmatmul.mubr.f32.gmra.mxu0 %v8175_v24  ;;  %v8182_v38 = vld [vmem:[#allocation137_spill] sm:$0xff] }
 0x24e   :  { %v6701_v2 = vadd.f32 %v2081_v62, %v8176_v48  ;;  %v6704_v52 = vadd.f32 %v2306_v6, %v8177_v28  ;;  %2549 = vmatprep.mubr.f32.mxu1 %v8022_v19  ;;  %3641 = vmatprep.mubr.f32.mxu0 %v8179_v3  ;;  %v8184_v62 = vld [vmem:[#allocation31_spill] sm:$0xff] }
 0x24f   :  { %v2083_v55 = vpop.f32.mrf.mxu0  ;;  %v2308_v39 = vpop.f32.mrf.mxu1  ;;  %v8185_v28 = vld [vmem:[#allocation47_spill] sm:$0xff] }
 0x250   :  { %8178 = vst [vmem:[#allocation25_spill] sm:$0xff] %v6704_v52  ;;  %v8186_v39 = vld [vmem:[#allocation24_spill] sm:$0xff] }
 0x251   :  { %v2086_v36 = vpop.f32.mrf.mxu0  ;;  %v2311_v40 = vpop.f32.mrf.mxu1  ;;  %2550 = vmatmul.mubr.f32.gmra.mxu1 %v8180_v44  ;;  %3642 = vmatmul.mubr.f32.gmra.mxu0 %v8181_v12  ;;  %v8187_v44 = vld [vmem:[#allocation184_spill] sm:$0xff] }
 0x252   :  { %v6711_v24 = vadd.f32 %v2086_v36, %v8182_v38  ;;  %v6714_v48 = vadd.f32 %v2311_v40, %v8184_v62  ;;  %2554 = vmatprep.mubr.f32.mxu1 %v8030_v63  ;;  %3644 = vmatprep.mubr.f32.mxu0 %v8185_v28  ;;  %v8188_v12 = vld [vmem:[#allocation140_spill] sm:$0xff]  ;;  %v8191_v63 = vld [vmem:[#allocation186_spill] sm:$0xff] }
 0x253   :  { %v2088_v19 = vpop.f32.mrf.mxu0  ;;  %v2313_v6 = vpop.f32.mrf.mxu1  ;;  %v8190_v38 = vld [vmem:[#allocation36_spill] sm:$0xff] }
 0x254   :  { %8183 = vst [vmem:[#allocation88_spill] sm:$0xff] %v6711_v24  ;;  %v8192_v24 = vld [vmem:[#allocation27_spill] sm:$0xff]  ;;  %v8193_v52 = vld [vmem:[#allocation188_spill] sm:$0xff] }
 0x255   :  { %v2091_v3 = vpop.f32.mrf.mxu0  ;;  %v2316_v55 = vpop.f32.mrf.mxu1  ;;  %3465 = vmatmul.mubr.msk.f32.gmra.mxu1 %vm4000_vm2, %v8186_v39  ;;  %3645 = vmatmul.mubr.f32.gmra.mxu0 %v8187_v44  ;;  %v8194_v39 = vld [vmem:[#allocation143_spill] sm:$0xff] }
 0x256   :  { %v6723_v36 = vadd.f32 %v2091_v3, %v8188_v12  ;;  %v6726_v40 = vadd.f32 %v2316_v55, %v8190_v38  ;;  %2559 = vmatprep.mubr.f32.mxu1 %v8038_v29  ;;  %3647 = vmatprep.mubr.f32.mxu0 %v8191_v63  ;;  %v8196_v3 = vld [vmem:[#allocation42_spill] sm:$0xff]  ;;  %v8197_v55 = vld [vmem:[#allocation189_spill] sm:$0xff] }
 0x257   :  { %v2093_v62 = vpop.f32.mrf.mxu0  ;;  %v2318_v28 = vpop.f32.mrf.mxu1 }
 0x258   :  { %8189 = vst [vmem:[#allocation98_spill] sm:$0xff] %v6723_v36  ;;  %v8198_v28 = vld [vmem:[#allocation34_spill] sm:$0xff]  ;;  %v8204_v36 = vld [vmem:[#allocation37_spill] sm:$0xff] }
 0x259   :  { %v2096_v19 = vpop.f32.mrf.mxu0  ;;  %v2321_v6 = vpop.f32.mrf.mxu1  ;;  %2560 = vmatmul.mubr.f32.gmra.mxu1 %v8192_v24  ;;  %3648 = vmatmul.mubr.f32.gmra.mxu0 %v8193_v52  ;;  %v8199_v24 = vld [vmem:[#allocation73_spill] sm:$0xff]  ;;  %v8200_v52 = vld [vmem:[#allocation146_spill] sm:$0xff] }
 0x25a   :  { %v6733_v44 = vadd.f32 %v2096_v19, %v8194_v39  ;;  %v6736_v12 = vadd.f32 %v2321_v6, %v8196_v3  ;;  %2564 = vmatprep.mubr.f32.mxu1 %v8046_v50  ;;  %3650 = vmatprep.mubr.f32.mxu0 %v8197_v55  ;;  %v8202_v39 = vld [vmem:[#allocation46_spill] sm:$0xff]  ;;  %v8203_v50 = vld [vmem:[#allocation76_spill] sm:$0xff] }
 0x25b   :  { %v2098_v29 = vpop.f32.mrf.mxu0  ;;  %v2323_v38 = vpop.f32.mrf.mxu1 }
 0x25c   :  { %8195 = vst [vmem:[#allocation171_spill] sm:$0xff] %v6733_v44  ;;  %v8205_v44 = vld [vmem:[#allocation79_spill] sm:$0xff] }
 0x25d   :  { %v2101_v63 = vpop.f32.mrf.mxu0  ;;  %v2326_v62 = vpop.f32.mrf.mxu1  ;;  %3467 = vmatmul.mubr.msk.f32.gmra.mxu1 %vm4000_vm2, %v8198_v28  ;;  %3651 = vmatmul.mubr.f32.gmra.mxu0 %v8199_v24  ;;  %v8206_v28 = vld [vmem:[#allocation149_spill] sm:$0xff] }
 0x25e   :  { %v6745_v19 = vadd.f32 %v2101_v63, %v8200_v52  ;;  %v6748_v6 = vadd.f32 %v2326_v62, %v8202_v39  ;;  %2569 = vmatprep.mubr.f32.mxu1 %v8054_v21  ;;  %3653 = vmatprep.mubr.f32.mxu0 %v8203_v50  ;;  %v8208_v63 = vld [vmem:[#allocation51_spill] sm:$0xff]  ;;  %v8209_v62 = vld [vmem:[#allocation194_spill] sm:$0xff] }
 0x25f   :  { %v2103_v3 = vpop.f32.mrf.mxu0  ;;  %v2328_v55 = vpop.f32.mrf.mxu1 }
 0x260   :  { %8201 = vst [vmem:[#allocation20_spill] sm:$0xff] %v6745_v19  ;;  %v8210_v55 = vld [vmem:[#allocation44_spill] sm:$0xff] }
 0x261   :  { %v2106_v29 = vpop.f32.mrf.mxu0  ;;  %v2331_v38 = vpop.f32.mrf.mxu1  ;;  %2570 = vmatmul.mubr.f32.gmra.mxu1 %v8204_v36  ;;  %3654 = vmatmul.mubr.f32.gmra.mxu0 %v8205_v44  ;;  %v8211_v36 = vld [vmem:[#allocation195_spill] sm:$0xff]  ;;  %v8212_v44 = vld [vmem:[#allocation152_spill] sm:$0xff] }
 0x262   :  { %v6755_v24 = vadd.f32 %v2106_v29, %v8206_v28  ;;  %v6758_v52 = vadd.f32 %v2331_v38, %v8208_v63  ;;  %2574 = vmatprep.mubr.f32.mxu1 %v8062_v1  ;;  %3656 = vmatprep.mubr.f32.mxu0 %v8209_v62  ;;  %v8214_v28 = vld [vmem:[#allocation56_spill] sm:$0xff] }
 0x263   :  { %v2108_v21 = vpop.f32.mrf.mxu0  ;;  %v2333_v39 = vpop.f32.mrf.mxu1  ;;  %v8215_v1 = vld [vmem:[#allocation196_spill] sm:$0xff] }
 0x264   :  { %8207 = vst [vmem:[#allocation30_spill] sm:$0xff] %v6755_v24  ;;  %v8216_v19 = vld [vmem:[#allocation48_spill] sm:$0xff]  ;;  %v8217_v24 = vld [vmem:[#allocation197_spill] sm:$0xff] }
 0x265   :  { %v2111_v50 = vpop.f32.mrf.mxu0  ;;  %v2336_v3 = vpop.f32.mrf.mxu1  ;;  %3469 = vmatmul.mubr.msk.f32.gmra.mxu1 %vm4000_vm2, %v8210_v55  ;;  %3657 = vmatmul.mubr.f32.gmra.mxu0 %v8211_v36  ;;  %v8218_v55 = vld [vmem:[#allocation155_spill] sm:$0xff] }
 0x266   :  { %v6767_v29 = vadd.f32 %v2111_v50, %v8212_v44  ;;  %v6770_v38 = vadd.f32 %v2336_v3, %v8214_v28  ;;  %2579 = vmatprep.mubr.f32.mxu1 %v8070_v5  ;;  %3659 = vmatprep.mubr.f32.mxu0 %v8215_v1  ;;  %v8220_v50 = vld [vmem:[#allocation61_spill] sm:$0xff]  ;;  %v8221_v3 = vld [vmem:[#allocation198_spill] sm:$0xff] }
 0x267   :  { %v2113_v63 = vpop.f32.mrf.mxu0  ;;  %v2338_v62 = vpop.f32.mrf.mxu1 }
 0x268   :  { %8213 = vst [vmem:[#allocation90_spill] sm:$0xff] %v6767_v29  ;;  %v8222_v62 = vld [vmem:[#allocation53_spill] sm:$0xff] }
 0x269   :  { %v2116_v21 = vpop.f32.mrf.mxu0  ;;  %v2341_v39 = vpop.f32.mrf.mxu1  ;;  %2580 = vmatmul.mubr.f32.gmra.mxu1 %v8216_v19  ;;  %3660 = vmatmul.mubr.f32.gmra.mxu0 %v8217_v24  ;;  %v8223_v19 = vld [vmem:[#allocation199_spill] sm:$0xff]  ;;  %v8224_v24 = vld [vmem:[#allocation66_spill] sm:$0xff]  ;;  %v8227_v29 = vld [vmem:[#allocation57_spill] sm:$0xff] }
 0x26a   :  { %v6777_v36 = vadd.f32 %v2116_v21, %v8218_v55  ;;  %v6780_v44 = vadd.f32 %v2341_v39, %v8220_v50  ;;  %2584 = vmatprep.mubr.f32.mxu1 %v8077_v49  ;;  %3662 = vmatprep.mubr.f32.mxu0 %v8221_v3  ;;  %v8225_v55 = vld [vmem:[#allocation160_spill] sm:$0xff] }
 0x26b   :  { %v2118_v5 = vpop.f32.mrf.mxu0  ;;  %v2343_v28 = vpop.f32.mrf.mxu1  ;;  %v8226_v49 = vld [vmem:[#allocation200_spill] sm:$0xff] }
 0x26c   :  { %8219 = vst [vmem:[#allocation101_spill] sm:$0xff] %v6777_v36  ;;  %v8228_v36 = vld [vmem:[#allocation201_spill] sm:$0xff] }
 0x26d   :  { %v2121_v1 = vpop.f32.mrf.mxu0  ;;  %v2346_v63 = vpop.f32.mrf.mxu1  ;;  %3471 = vmatmul.mubr.msk.f32.gmra.mxu1 %vm4000_vm2, %v8222_v62  ;;  %3663 = vmatmul.mubr.f32.gmra.mxu0 %v8223_v19 }
 0x26e   :  { %v6789_v21 = vadd.f32 %v2121_v1, %v8224_v24  ;;  %v6792_v39 = vadd.f32 %v2346_v63, %v8225_v55  ;;  %2589 = vmatprep.mubr.f32.mxu1 %v8084_v23  ;;  %3665 = vmatprep.mubr.f32.mxu0 %v8226_v49  ;;  %v8229_v1 = vld [vmem:[#allocation72_spill] sm:$0xff]  ;;  %v8230_v63 = vld [vmem:[#allocation202_spill] sm:$0xff] }
 0x26f   :  { %v2123_v50 = vpop.f32.mrf.mxu0  ;;  %v2348_v3 = vpop.f32.mrf.mxu1 }
 0x270   :  { %v8231_v50 = vld [vmem:[#allocation64_spill] sm:$0xff] }
 0x271   :  { %v2126_v5 = vpop.f32.mrf.mxu0  ;;  %v2351_v28 = vpop.f32.mrf.mxu1  ;;  %2590 = vmatmul.mubr.f32.gmra.mxu1 %v8227_v29  ;;  %3666 = vmatmul.mubr.f32.gmra.mxu0 %v8228_v36  ;;  %v8232_v29 = vld [vmem:[#allocation203_spill] sm:$0xff]  ;;  %v8233_v36 = vld [vmem:[#allocation82_spill] sm:$0xff] }
 0x272   :  { %v6799_v62 = vadd.f32 %v2126_v5, %v6441_v22  ;;  %v6802_v19 = vadd.f32 %v2351_v28, %v8229_v1  ;;  %2594 = vmatprep.mubr.f32.mxu1 %v8091_v14  ;;  %3668 = vmatprep.mubr.f32.mxu0 %v8230_v63  ;;  %v8234_v14 = vld [vmem:[#allocation204_spill] sm:$0xff] }
 0x273   :  { %v2128_v23 = vpop.f32.mrf.mxu0  ;;  %v2353_v24 = vpop.f32.mrf.mxu1 }
 0x274   :  { %v8235_v23 = vld [vmem:[#allocation67_spill] sm:$0xff]  ;;  %v8236_v24 = vld [vmem:[#allocation205_spill] sm:$0xff] }
 0x275   :  { %v2131_v55 = vpop.f32.mrf.mxu0  ;;  %v2356_v49 = vpop.f32.mrf.mxu1  ;;  %3473 = vmatmul.mubr.msk.f32.gmra.mxu1 %vm4000_vm2, %v8231_v50  ;;  %3669 = vmatmul.mubr.f32.gmra.mxu0 %v8232_v29  ;;  %v8237_v50 = vld [vmem:[#allocation75_spill] sm:$0xff] }
 0x276   :  { %v6811_v22 = vadd.f32 %v2131_v55, %v6454_v57  ;;  %v6814_v3 = vadd.f32 %v2356_v49, %v8233_v36  ;;  %2599 = vmatprep.mubr.f32.mxu1 %v8095_v51  ;;  %3671 = vmatprep.mubr.f32.mxu0 %v8234_v14  ;;  %v8238_v57 = vld [vmem:[#allocation85_spill] sm:$0xff]  ;;  %v8239_v49 = vld [vmem:[#allocation63_spill] sm:$0xff] }
 0x277   :  { %v2133_v5 = vpop.f32.mrf.mxu0  ;;  %v2358_v28 = vpop.f32.mrf.mxu1 }
 0x278   :  { %v8240_v28 = vld [vmem:[#allocation208_spill] sm:$0xff] }
 0x279   :  { %v2136_v1 = vpop.f32.mrf.mxu0  ;;  %v2361_v63 = vpop.f32.mrf.mxu1  ;;  %2600 = vmatmul.mubr.f32.gmra.mxu1 %v8235_v23  ;;  %3672 = vmatmul.mubr.f32.gmra.mxu0 %v8236_v24  ;;  %v8241_v23 = vld [vmem:[#allocation207_spill] sm:$0xff] }
 0x27a   :  { %v6821_v29 = vadd.f32 %v2136_v1, %v8237_v50  ;;  %v6824_v55 = vadd.f32 %v2361_v63, %v8238_v57  ;;  %2604 = vmatprep.mubr.f32.mxu1 %v6506_v15  ;;  %3674 = vmatprep.mubr.f32.mxu0 %v8239_v49  ;;  %v8242_v15 = vld [vmem:[#allocation210_spill] sm:$0xff] }
 0x27b   :  { %v2138_v51 = vpop.f32.mrf.mxu0  ;;  %v2363_v36 = vpop.f32.mrf.mxu1 }
 0x27c   :  { %v8243_v51 = vld [vmem:[#allocation71_spill] sm:$0xff] }
 0x27d   :  { %v2141_v14 = vpop.f32.mrf.mxu0  ;;  %v2366_v5 = vpop.f32.mrf.mxu1  ;;  %3475 = vmatmul.mubr.msk.f32.gmra.mxu1 %vm4000_vm2, %v8240_v28  ;;  %3675 = vmatmul.mubr.f32.gmra.mxu0 %v8241_v23  ;;  %v8244_v23 = vld [vmem:[#allocation163_spill] sm:$0xff] }
 0x27e   :  { %v6833_v1 = vadd.f32 %v2141_v14, %v6485_v20  ;;  %v6836_v63 = vadd.f32 %v2366_v5, %v6487_v47  ;;  %2609 = vmatprep.mubr.f32.mxu1 %v6524_v32  ;;  %3677 = vmatprep.mubr.f32.mxu0 %v8242_v15 }
 0x27f   :  { %v2143_v24 = vpop.f32.mrf.mxu0  ;;  %v2368_v50 = vpop.f32.mrf.mxu1 }
 0x281   :  { %v2146_v57 = vpop.f32.mrf.mxu0  ;;  %v2371_v49 = vpop.f32.mrf.mxu1  ;;  %2610 = vmatmul.mubr.f32.gmra.mxu1 %v8243_v51  ;;  %3678 = vmatmul.mubr.f32.gmra.mxu0 %v6153_v13 }
 0x282   :  { %v6843_v36 = vadd.f32 %v2146_v57, %v6499_v46  ;;  %v6846_v20 = vadd.f32 %v2371_v49, %v6501_v53  ;;  %2614 = vmatprep.mubr.f32.mxu1 %v8097_v16  ;;  %3680 = vmatprep.mubr.f32.mxu0 %v6492_v31  ;;  %v8245_v57 = vld [vmem:[#allocation168_spill] sm:$0xff] }
 0x283   :  { %v2148_v47 = vpop.f32.mrf.mxu0  ;;  %v2373_v32 = vpop.f32.mrf.mxu1 }
 0x285   :  { %v2151_v14 = vpop.f32.mrf.mxu0  ;;  %v2376_v5 = vpop.f32.mrf.mxu1  ;;  %3477 = vmatmul.mubr.msk.f32.gmra.mxu1 %vm4000_vm2, %v8098_v43  ;;  %3681 = vmatmul.mubr.f32.gmra.mxu0 %v6509_v60 }
 0x286   :  { %v6855_v13 = vadd.f32 %v2151_v14, %v6516_v61  ;;  %v6858_v46 = vadd.f32 %v2376_v5, %v6519_v7  ;;  %2619 = vmatprep.mubr.f32.mxu1 %v8099_v30  ;;  %3683 = vmatprep.mubr.f32.mxu0 %v8167_v34  ;;  %v1777_v30 = vadd.f32 %v6536_v35, %v8244_v23  ;;  %v8246_v14 = vld [vmem:[#allocation170_spill] sm:$0xff] }
 0x287   :  { %v2153_v31 = vpop.f32.mrf.mxu0  ;;  %v2378_v53 = vpop.f32.mrf.mxu1  ;;  %v1787_v5 = vadd.f32 %v6556_v37, %v8246_v14 }
 0x289   :  { %v2156_v16 = vpop.f32.mrf.mxu0  ;;  %v2381_v28 = vpop.f32.mrf.mxu1  ;;  %2620 = vmatmul.mubr.f32.gmra.mxu1 %v8098_v43  ;;  %3684 = vmatmul.mubr.f32.gmra.mxu0 %v8170_v45 }
 0x28a   :  { %v6865_v58 = vadd.f32 %v2156_v16, %v6529_v33  ;;  %v6868_v60 = vadd.f32 %v2381_v28, %v6532_v4  ;;  %v1782_v33 = vadd.f32 %v6547_v42, %v8245_v57 }
 0x28b   :  { %v2158_v61 = vpop.f32.mrf.mxu0  ;;  %v2383_v7 = vpop.f32.mrf.mxu1 }
 0x28c   :  { %v8247_v61 = vld [vmem:[#allocation172_spill] sm:$0xff] }
 0x28d   :  { %v2161_v34 = vpop.f32.mrf.mxu0  ;;  %v2386_v15 = vpop.f32.mrf.mxu1  ;;  %v1792_v7 = vadd.f32 %v6567_v17, %v8247_v61 }
 0x28e   :  { %v6872_v24 = vadd.f32 %v2161_v34, %v1777_v30  ;;  %v6875_v50 = vadd.f32 %v2386_v15, %v6543_v27 }
 0x28f   :  { %v2163_v43 = vpop.f32.mrf.mxu0  ;;  %v2388_v45 = vpop.f32.mrf.mxu1 }
 0x290   :  { %v8248_v43 = vld [vmem:[#allocation174_spill] sm:$0xff] }
 0x291   :  { %v2166_v49 = vpop.f32.mrf.mxu0  ;;  %v2391_v4 = vpop.f32.mrf.mxu1  ;;  %v1797_v45 = vadd.f32 %v6576_v56, %v8248_v43 }
 0x292   :  { %v6879_v51 = vadd.f32 %v2166_v49, %v1782_v33  ;;  %v6882_v47 = vadd.f32 %v2391_v4, %v6552_v8 }
 0x293   :  { %v2168_v35 = vpop.f32.mrf.mxu0  ;;  %v2393_v32 = vpop.f32.mrf.mxu1 }
 0x294   :  { %v8249_v35 = vld [vmem:[#allocation176_spill] sm:$0xff] }
 0x295   :  { %v2171_v31 = vpop.f32.mrf.mxu0  ;;  %v2396_v27 = vpop.f32.mrf.mxu1  ;;  %v1802_v32 = vadd.f32 %v6587_v11, %v8249_v35 }
 0x296   :  { %v6886_v53 = vadd.f32 %v2171_v31, %v1787_v5  ;;  %v6889_v16 = vadd.f32 %v2396_v27, %v6563_v9 }
 0x297   :  { %v2173_v42 = vpop.f32.mrf.mxu0  ;;  %v2398_v28 = vpop.f32.mrf.mxu1 }
 0x298   :  { %v8250_v42 = vld [vmem:[#allocation178_spill] sm:$0xff] }
 0x299   :  { %v2176_v23 = vpop.f32.mrf.mxu0  ;;  %v2401_v8 = vpop.f32.mrf.mxu1  ;;  %v1807_v28 = vadd.f32 %v6596_v26, %v8250_v42  ;;  %v8257_v42 = vld [vmem:[#allocation87_spill] sm:$0xff] }
 0x29a   :  { %v6893_v30 = vadd.f32 %v2176_v23, %v1792_v7  ;;  %v6896_v34 = vadd.f32 %v2401_v8, %v6572_v41 }
 0x29b   :  { %v2178_v37 = vpop.f32.mrf.mxu0  ;;  %v2403_v15 = vpop.f32.mrf.mxu1 }
 0x29c   :  { %v8252_v37 = vld [vmem:[#allocation180_spill] sm:$0xff] }
 0x29d   :  { %v2181_v57 = vpop.f32.mrf.mxu0  ;;  %v2406_v9 = vpop.f32.mrf.mxu1  ;;  %v1812_v15 = vadd.f32 %v6607_v18, %v8252_v37 }
 0x29e   :  { %v6900_v33 = vadd.f32 %v2181_v57, %v1797_v45  ;;  %v6903_v49 = vadd.f32 %v2406_v9, %v6583_v54 }
 0x29f   :  { %v2183_v17 = vpop.f32.mrf.mxu0  ;;  %v2408_v4 = vpop.f32.mrf.mxu1 }
 0x2a0   :  { %v8253_v17 = vld [vmem:[#allocation182_spill] sm:$0xff] }
 0x2a1   :  { %v2186_v14 = vpop.f32.mrf.mxu0  ;;  %v2411_v41 = vpop.f32.mrf.mxu1  ;;  %v1817_v4 = vadd.f32 %v6616_v10, %v8253_v17 }
 0x2a2   :  { %v6907_v5 = vadd.f32 %v2186_v14, %v1802_v32  ;;  %v6910_v31 = vadd.f32 %v2411_v41, %v6592_v0  ;;  %v8255_v14 = vld [vmem:[#allocation78_spill] sm:$0xff] }
 0x2a3   :  { %v2188_v56 = vpop.f32.mrf.mxu0  ;;  %v2413_v27 = vpop.f32.mrf.mxu1 }
 0x2a4   :  { %v8256_v27 = vld [vmem:[#allocation54_spill] sm:$0xff] }
 0x2a5   :  { %v2191_v61 = vpop.f32.mrf.mxu0  ;;  %v2416_v54 = vpop.f32.mrf.mxu1 }
 0x2a6   :  { %v6914_v7 = vadd.f32 %v2191_v61, %v1807_v28  ;;  %v6917_v23 = vadd.f32 %v2416_v54, %v6603_v59  ;;  %v1822_v28 = vadd.f32 %v8257_v42, %v8256_v27 }
 0x2a7   :  { %v2193_v11 = vpop.f32.mrf.mxu0  ;;  %v2418_v8 = vpop.f32.mrf.mxu1 }
 0x2a8   :  { %8251 = vst [vmem:[#allocation173_spill] sm:$0xff] %v6914_v7  ;;  %v8259_v11 = vld [vmem:[#allocation80_spill] sm:$0xff] }
 0x2a9   :  { %v2196_v43 = vpop.f32.mrf.mxu0  ;;  %v2421_v0 = vpop.f32.mrf.mxu1 }
 0x2aa   :  { %v6921_v45 = vadd.f32 %v2196_v43, %v1812_v15  ;;  %v6924_v57 = vadd.f32 %v2421_v0, %v6612_v25  ;;  %v8260_v15 = vld [vmem:[#allocation185_spill] sm:$0xff] }
 0x2ab   :  { %v2198_v26 = vpop.f32.mrf.mxu0  ;;  %v2423_v9 = vpop.f32.mrf.mxu1  ;;  %v8261_v43 = vld [vmem:[#allocation89_spill] sm:$0xff] }
 0x2ac   :  { %v1827_v0 = vadd.f32 %v8261_v43, %v8260_v15  ;;  %v8268_v15 = vld [vmem:[#allocation190_spill] sm:$0xff]  ;;  %v8269_v43 = vld [vmem:[#allocation92_spill] sm:$0xff] }
 0x2ad   :  { %v2201_v35 = vpop.f32.mrf.mxu0  ;;  %v2426_v59 = vpop.f32.mrf.mxu1 }
 0x2ae   :  { %v6928_v32 = vadd.f32 %v2201_v35, %v1817_v4  ;;  %v6931_v41 = vadd.f32 %v2426_v59, %v8255_v14  ;;  %v8263_v4 = vld [vmem:[#allocation162_spill] sm:$0xff] }
 0x2af   :  { %v2203_v18 = vpop.f32.mrf.mxu0  ;;  %v2428_v56 = vpop.f32.mrf.mxu1 }
 0x2b0   :  { %8254 = vst [vmem:[#allocation23_spill] sm:$0xff] %v6928_v32  ;;  %v8264_v18 = vld [vmem:[#allocation187_spill] sm:$0xff]  ;;  %v8265_v56 = vld [vmem:[#allocation6_spill] sm:$0xff]  ;;  %v8276_v32 = vld [vmem:[#allocation193_spill] sm:$0xff] }
 0x2b1   :  { %v2206_v61 = vpop.f32.mrf.mxu0  ;;  %v2431_v25 = vpop.f32.mrf.mxu1  ;;  %v1832_v27 = vadd.f32 %v8265_v56, %v8264_v18 }
 0x2b2   :  { %v6935_v54 = vadd.f32 %v2206_v61, %v1822_v28  ;;  %v6938_v8 = vadd.f32 %v2431_v25, %v8259_v11  ;;  %v8267_v25 = vld [vmem:[#allocation83_spill] sm:$0xff] }
 0x2b3   :  { %v2208_v10 = vpop.f32.mrf.mxu0  ;;  %v2433_v37 = vpop.f32.mrf.mxu1 }
 0x2b4   :  { %8258 = vst [vmem:[#allocation35_spill] sm:$0xff] %v6935_v54  ;;  %v8280_v54 = vld [vmem:[#allocation5_spill] sm:$0xff] }
 0x2b5   :  { %v2211_v26 = vpop.f32.mrf.mxu0  ;;  %v2436_v9 = vpop.f32.mrf.mxu1 }
 0x2b6   :  { %v6942_v17 = vadd.f32 %v2211_v26, %v1827_v0  ;;  %v6945_v35 = vadd.f32 %v2436_v9, %v8263_v4  ;;  %v1837_v0 = vadd.f32 %v8269_v43, %v8268_v15 }
 0x2b7   :  { %v2213_v59 = vpop.f32.mrf.mxu0  ;;  %v2438_v14 = vpop.f32.mrf.mxu1 }
 0x2b8   :  { %8262 = vst [vmem:[#allocation93_spill] sm:$0xff] %v6942_v17  ;;  %v8271_v59 = vld [vmem:[#allocation167_spill] sm:$0xff]  ;;  %v8272_v17 = vld [vmem:[#allocation192_spill] sm:$0xff] }
 0x2b9   :  { %v2216_v42 = vpop.f32.mrf.mxu0  ;;  %v2441_v28 = vpop.f32.mrf.mxu1 }
 0x2ba   :  { %v6949_v61 = vadd.f32 %v2216_v42, %v1832_v27  ;;  %v6952_v11 = vadd.f32 %v2441_v28, %v8267_v25  ;;  %v8273_v27 = vld [vmem:[#allocation11_spill] sm:$0xff] }
 0x2bb   :  { %v2218_v10 = vpop.f32.mrf.mxu0  ;;  %v2443_v37 = vpop.f32.mrf.mxu1  ;;  %v1842_v42 = vadd.f32 %v8273_v27, %v8272_v17 }
 0x2bc   :  { %8266 = vst [vmem:[#allocation104_spill] sm:$0xff] %v6949_v61  ;;  %v8275_v10 = vld [vmem:[#allocation21_spill] sm:$0xff] }
 0x2bd   :  { %v2221_v26 = vpop.f32.mrf.mxu0  ;;  %v2446_v9 = vpop.f32.mrf.mxu1 }
 0x2be   :  { %v6956_v4 = vadd.f32 %v2221_v26, %v1837_v0  ;;  %v6959_v14 = vadd.f32 %v2446_v9, %v8271_v59  ;;  %v8277_v0 = vld [vmem:[#allocation86_spill] sm:$0xff] }
 0x2bf   :  { %v2223_v18 = vpop.f32.mrf.mxu0  ;;  %v2448_v56 = vpop.f32.mrf.mxu1  ;;  %v1847_v26 = vadd.f32 %v8277_v0, %v8276_v32 }
 0x2c0   :  { %8270 = vst [vmem:[#allocation175_spill] sm:$0xff] %v6956_v4  ;;  %v8279_v18 = vld [vmem:[#allocation95_spill] sm:$0xff] }
 0x2c1   :  { %v2226_v61 = vpop.f32.mrf.mxu0  ;;  %v2451_v28 = vpop.f32.mrf.mxu1 }
 0x2c2   :  { %v6963_v25 = vadd.f32 %v2226_v61, %v1842_v42  ;;  %v6966_v37 = vadd.f32 %v2451_v28, %v8275_v10  ;;  %v8281_v61 = vld [vmem:[#allocation169_spill] sm:$0xff] }
 0x2c3   :  { %v2228_v15 = vpop.f32.mrf.mxu0  ;;  %v2453_v43 = vpop.f32.mrf.mxu1  ;;  %v1852_v42 = vadd.f32 %v8281_v61, %v8280_v54  ;;  %v8283_v54 = vld [vmem:[#allocation25_spill] sm:$0xff] }
 0x2c4   :  { %8274 = vst [vmem:[#allocation28_spill] sm:$0xff] %v6963_v25 }
 0x2c5   :  { %v2231_v4 = vpop.f32.mrf.mxu0  ;;  %v2456_v9 = vpop.f32.mrf.mxu1 }
 0x2c6   :  { %v6970_v59 = vadd.f32 %v2231_v4, %v1847_v26  ;;  %v6973_v56 = vadd.f32 %v2456_v9, %v8279_v18 }
 0x2c7   :  { %v2233_v17 = vpop.f32.mrf.mxu0  ;;  %v2458_v27 = vpop.f32.mrf.mxu1 }
 0x2c8   :  { %8278 = vst [vmem:[#allocation40_spill] sm:$0xff] %v6970_v59 }
 0x2c9   :  { %v2236_v25 = vpop.f32.mrf.mxu0  ;;  %v6977_v28 = vpop.f32.mrf.mxu1 }
 0x2ca   :  { %v6979_v10 = vadd.f32 %v2236_v25, %v1852_v42 }
 0x2cb   :  { %v2238_v15 = vpop.f32.mrf.mxu0  ;;  %v2463_v43 = vpop.f32.mrf.mxu1 }
 0x2cc   :  { %8282 = vst [vmem:[#allocation96_spill] sm:$0xff] %v6979_v10 }
 0x2cd   :  { %v2466_v32 = vpop.f32.mrf.mxu1  ;;  %v3592_v0 = vpop.f32.mrf.mxu0 }
 0x2ce   :  { %v6982_v4 = vadd.f32 %v2466_v32, %v6701_v2  ;;  %v2697_v26 = vadd.f32 %v3592_v0, %v6714_v48 }
 0x2cf   :  { %v2468_v9 = vpop.f32.mrf.mxu1  ;;  %v2691_v18 = vpop.f32.mrf.mxu0 }
 0x2d0   :  { %3215 = vst [vmem:[%s7318_s4 + $0x8] sm:$0xff] %v2697_v26  ;;  %v2692_v17 = vadd.f32 %v2691_v18, %v8283_v54  ;;  %v3080_v61 = vmul.f32 %v2697_v26, %v2697_v26 }
 0x2d1   :  { %v6989_v27 = vpop.f32.mrf.mxu1  ;;  %v3595_v25 = vpop.f32.mrf.mxu0 }
 0x2d2   :  { %v3010_v42 = vadd.f32 %v2697_v26, %v2692_v17  ;;  %v3079_v15 = vmul.f32 %v2692_v17, %v2692_v17  ;;  %3214 = vst [vmem:[%s7318_s4] sm:$0xff] %v2692_v17  ;;  %v2707_v2 = vadd.f32 %v3595_v25, %v6736_v12 }
 0x2d3   :  { %v2473_v48 = vpop.f32.mrf.mxu1  ;;  %v2701_v43 = vpop.f32.mrf.mxu0 }
 0x2d4   :  { %v3143_v32 = vadd.f32 %v3080_v61, %v3079_v15  ;;  %3217 = vst [vmem:[%s7318_s4 + $0x18] sm:$0xff] %v2707_v2  ;;  %v2702_v0 = vadd.f32 %v2701_v43, %v6726_v40  ;;  %v3082_v61 = vmul.f32 %v2707_v2, %v2707_v2 }
 0x2d5   :  { %v6999_v9 = vpop.f32.mrf.mxu1  ;;  %v3598_v18 = vpop.f32.mrf.mxu0 }
 0x2d6   :  { %v3011_v26 = vadd.f32 %v3010_v42, %v2702_v0  ;;  %v3081_v54 = vmul.f32 %v2702_v0, %v2702_v0  ;;  %3216 = vst [vmem:[%s7318_s4 + $0x10] sm:$0xff] %v2702_v0  ;;  %v2717_v12 = vadd.f32 %v3598_v18, %v6758_v52 }
 0x2d7   :  { %v2478_v17 = vpop.f32.mrf.mxu1  ;;  %v2711_v25 = vpop.f32.mrf.mxu0 }
 0x2d8   :  { %v3144_v15 = vadd.f32 %v3143_v32, %v3081_v54  ;;  %3219 = vst [vmem:[%s7318_s4 + $0x28] sm:$0xff] %v2717_v12  ;;  %v2712_v40 = vadd.f32 %v2711_v25, %v6748_v6  ;;  %v3012_v48 = vadd.f32 %v3011_v26, %v2707_v2  ;;  %v3084_v18 = vmul.f32 %v2717_v12, %v2717_v12 }
 0x2d9   :  { %v7009_v43 = vpop.f32.mrf.mxu1  ;;  %v3601_v42 = vpop.f32.mrf.mxu0 }
 0x2da   :  { %v3013_v10 = vadd.f32 %v3012_v48, %v2712_v40  ;;  %v3083_v59 = vmul.f32 %v2712_v40, %v2712_v40  ;;  %v3145_v7 = vadd.f32 %v3144_v15, %v3082_v61  ;;  %3218 = vst [vmem:[%s7318_s4 + $0x20] sm:$0xff] %v2712_v40  ;;  %v2727_v52 = vadd.f32 %v3601_v42, %v6780_v44 }
 0x2db   :  { %v2483_v32 = vpop.f32.mrf.mxu1  ;;  %v2721_v0 = vpop.f32.mrf.mxu0 }
 0x2dc   :  { %v3146_v54 = vadd.f32 %v3145_v7, %v3083_v59  ;;  %v2722_v17 = vadd.f32 %v2721_v0, %v6770_v38  ;;  %v3014_v6 = vadd.f32 %v3013_v10, %v2717_v12  ;;  %3221 = vst [vmem:[%s7318_s4 + $0x38] sm:$0xff] %v2727_v52  ;;  %v3086_v38 = vmul.f32 %v2727_v52, %v2727_v52 }
 0x2dd   :  { %v7019_v2 = vpop.f32.mrf.mxu1  ;;  %v3604_v26 = vpop.f32.mrf.mxu0 }
 0x2de   :  { %v3015_v25 = vadd.f32 %v3014_v6, %v2722_v17  ;;  %v3085_v61 = vmul.f32 %v2722_v17, %v2722_v17  ;;  %v3147_v15 = vadd.f32 %v3146_v54, %v3084_v18  ;;  %3220 = vst [vmem:[%s7318_s4 + $0x30] sm:$0xff] %v2722_v17  ;;  %v2737_v44 = vadd.f32 %v3604_v26, %v6802_v19 }
 0x2df   :  { %v2488_v7 = vpop.f32.mrf.mxu1  ;;  %v2731_v59 = vpop.f32.mrf.mxu0 }
 0x2e0   :  { %v3148_v10 = vadd.f32 %v3147_v15, %v3085_v61  ;;  %v2732_v12 = vadd.f32 %v2731_v59, %v6792_v39  ;;  %v3016_v40 = vadd.f32 %v3015_v25, %v2727_v52  ;;  %3223 = vst [vmem:[%s7318_s4 + $0x48] sm:$0xff] %v2737_v44  ;;  %v3088_v39 = vmul.f32 %v2737_v44, %v2737_v44 }
 0x2e1   :  { %v7029_v48 = vpop.f32.mrf.mxu1  ;;  %v3607_v42 = vpop.f32.mrf.mxu0 }
 0x2e2   :  { %v3017_v32 = vadd.f32 %v3016_v40, %v2732_v12  ;;  %v3087_v0 = vmul.f32 %v2732_v12, %v2732_v12  ;;  %v3149_v18 = vadd.f32 %v3148_v10, %v3086_v38  ;;  %3222 = vst [vmem:[%s7318_s4 + $0x40] sm:$0xff] %v2732_v12  ;;  %v2747_v19 = vadd.f32 %v3607_v42, %v6824_v55 }
 0x2e3   :  { %v2493_v54 = vpop.f32.mrf.mxu1  ;;  %v2741_v17 = vpop.f32.mrf.mxu0 }
 0x2e4   :  { %v3150_v52 = vadd.f32 %v3149_v18, %v3087_v0  ;;  %v2742_v6 = vadd.f32 %v2741_v17, %v6814_v3  ;;  %v3018_v26 = vadd.f32 %v3017_v32, %v2737_v44  ;;  %3225 = vst [vmem:[%s7318_s4 + $0x58] sm:$0xff] %v2747_v19  ;;  %v3090_v3 = vmul.f32 %v2747_v19, %v2747_v19 }
 0x2e5   :  { %v7039_v25 = vpop.f32.mrf.mxu1  ;;  %v3610_v61 = vpop.f32.mrf.mxu0 }
 0x2e6   :  { %v3019_v15 = vadd.f32 %v3018_v26, %v2742_v6  ;;  %v3089_v7 = vmul.f32 %v2742_v6, %v2742_v6  ;;  %v3151_v59 = vadd.f32 %v3150_v52, %v3088_v39  ;;  %3224 = vst [vmem:[%s7318_s4 + $0x50] sm:$0xff] %v2742_v6  ;;  %v2757_v55 = vadd.f32 %v3610_v61, %v6846_v20 }
 0x2e7   :  { %v2498_v38 = vpop.f32.mrf.mxu1  ;;  %v2751_v10 = vpop.f32.mrf.mxu0 }
 0x2e8   :  { %v3152_v44 = vadd.f32 %v3151_v59, %v3089_v7  ;;  %v2752_v12 = vadd.f32 %v2751_v10, %v6836_v63  ;;  %v3020_v40 = vadd.f32 %v3019_v15, %v2747_v19  ;;  %3227 = vst [vmem:[%s7318_s4 + $0x68] sm:$0xff] %v2757_v55  ;;  %v3092_v63 = vmul.f32 %v2757_v55, %v2757_v55 }
 0x2e9   :  { %v7049_v42 = vpop.f32.mrf.mxu1  ;;  %v3613_v32 = vpop.f32.mrf.mxu0 }
 0x2ea   :  { %v3021_v0 = vadd.f32 %v3020_v40, %v2752_v12  ;;  %v3091_v18 = vmul.f32 %v2752_v12, %v2752_v12  ;;  %v3153_v54 = vadd.f32 %v3152_v44, %v3090_v3  ;;  %3226 = vst [vmem:[%s7318_s4 + $0x60] sm:$0xff] %v2752_v12  ;;  %v2767_v20 = vadd.f32 %v3613_v32, %v6868_v60 }
 0x2eb   :  { %v2503_v17 = vpop.f32.mrf.mxu1  ;;  %v2761_v39 = vpop.f32.mrf.mxu0 }
 0x2ec   :  { %v3154_v19 = vadd.f32 %v3153_v54, %v3091_v18  ;;  %v2762_v52 = vadd.f32 %v2761_v39, %v6858_v46  ;;  %v3022_v6 = vadd.f32 %v3021_v0, %v2757_v55  ;;  %3229 = vst [vmem:[%s7318_s4 + $0x78] sm:$0xff] %v2767_v20  ;;  %v3094_v46 = vmul.f32 %v2767_v20, %v2767_v20 }
 0x2ed   :  { %v7059_v26 = vpop.f32.mrf.mxu1  ;;  %v3616_v61 = vpop.f32.mrf.mxu0 }
 0x2ee   :  { %v3023_v15 = vadd.f32 %v3022_v6, %v2762_v52  ;;  %v3093_v7 = vmul.f32 %v2762_v52, %v2762_v52  ;;  %v3155_v59 = vadd.f32 %v3154_v19, %v3092_v63  ;;  %3228 = vst [vmem:[%s7318_s4 + $0x70] sm:$0xff] %v2762_v52  ;;  %v2777_v60 = vadd.f32 %v3616_v61, %v6882_v47 }
 0x2ef   :  { %v2508_v38 = vpop.f32.mrf.mxu1  ;;  %v2771_v10 = vpop.f32.mrf.mxu0 }
 0x2f0   :  { %v3156_v55 = vadd.f32 %v3155_v59, %v3093_v7  ;;  %v2772_v3 = vadd.f32 %v2771_v10, %v6875_v50  ;;  %v3024_v44 = vadd.f32 %v3023_v15, %v2767_v20  ;;  %3231 = vst [vmem:[%s7318_s4 + $0x88] sm:$0xff] %v2777_v60  ;;  %v3096_v50 = vmul.f32 %v2777_v60, %v2777_v60 }
 0x2f1   :  { %v7069_v12 = vpop.f32.mrf.mxu1  ;;  %v3619_v40 = vpop.f32.mrf.mxu0 }
 0x2f2   :  { %v3025_v32 = vadd.f32 %v3024_v44, %v2772_v3  ;;  %v3095_v0 = vmul.f32 %v2772_v3, %v2772_v3  ;;  %v3157_v18 = vadd.f32 %v3156_v55, %v3094_v46  ;;  %3230 = vst [vmem:[%s7318_s4 + $0x80] sm:$0xff] %v2772_v3  ;;  %v2787_v47 = vadd.f32 %v3619_v40, %v6896_v34 }
 0x2f3   :  { %v2513_v54 = vpop.f32.mrf.mxu1  ;;  %v2781_v17 = vpop.f32.mrf.mxu0 }
 0x2f4   :  { %v3158_v20 = vadd.f32 %v3157_v18, %v3095_v0  ;;  %v2782_v39 = vadd.f32 %v2781_v17, %v6889_v16  ;;  %v3026_v63 = vadd.f32 %v3025_v32, %v2777_v60  ;;  %3233 = vst [vmem:[%s7318_s4 + $0x98] sm:$0xff] %v2787_v47  ;;  %v3098_v16 = vmul.f32 %v2787_v47, %v2787_v47 }
 0x2f5   :  { %v7079_v19 = vpop.f32.mrf.mxu1  ;;  %v3622_v52 = vpop.f32.mrf.mxu0 }
 0x2f6   :  { %v3027_v6 = vadd.f32 %v3026_v63, %v2782_v39  ;;  %v3097_v61 = vmul.f32 %v2782_v39, %v2782_v39  ;;  %v3159_v15 = vadd.f32 %v3158_v20, %v3096_v50  ;;  %3232 = vst [vmem:[%s7318_s4 + $0x90] sm:$0xff] %v2782_v39  ;;  %v2797_v34 = vadd.f32 %v3622_v52, %v6910_v31 }
 0x2f7   :  { %v2518_v7 = vpop.f32.mrf.mxu1  ;;  %v2791_v59 = vpop.f32.mrf.mxu0 }
 0x2f8   :  { %v3160_v60 = vadd.f32 %v3159_v15, %v3097_v61  ;;  %v2792_v38 = vadd.f32 %v2791_v59, %v6903_v49  ;;  %v3028_v10 = vadd.f32 %v3027_v6, %v2787_v47  ;;  %3235 = vst [vmem:[%s7318_s4 + $0xa8] sm:$0xff] %v2797_v34  ;;  %v3100_v49 = vmul.f32 %v2797_v34, %v2797_v34 }
 0x2f9   :  { %v7089_v46 = vpop.f32.mrf.mxu1  ;;  %v3625_v55 = vpop.f32.mrf.mxu0 }
 0x2fa   :  { %v3029_v3 = vadd.f32 %v3028_v10, %v2792_v38  ;;  %v3099_v44 = vmul.f32 %v2792_v38, %v2792_v38  ;;  %v3161_v40 = vadd.f32 %v3160_v60, %v3098_v16  ;;  %3234 = vst [vmem:[%s7318_s4 + $0xa0] sm:$0xff] %v2792_v38  ;;  %v2807_v31 = vadd.f32 %v3625_v55, %v6924_v57 }
 0x2fb   :  { %v2523_v32 = vpop.f32.mrf.mxu1  ;;  %v2801_v0 = vpop.f32.mrf.mxu0 }
 0x2fc   :  { %v3162_v18 = vadd.f32 %v3161_v40, %v3099_v44  ;;  %v2802_v47 = vadd.f32 %v2801_v0, %v6917_v23  ;;  %v3030_v54 = vadd.f32 %v3029_v3, %v2797_v34  ;;  %3237 = vst [vmem:[%s7318_s4 + $0xb8] sm:$0xff] %v2807_v31  ;;  %v3102_v23 = vmul.f32 %v2807_v31, %v2807_v31 }
 0x2fd   :  { %v7099_v17 = vpop.f32.mrf.mxu1  ;;  %v3628_v50 = vpop.f32.mrf.mxu0 }
 0x2fe   :  { %v3031_v20 = vadd.f32 %v3030_v54, %v2802_v47  ;;  %v3101_v39 = vmul.f32 %v2802_v47, %v2802_v47  ;;  %v3163_v63 = vadd.f32 %v3162_v18, %v3100_v49  ;;  %3236 = vst [vmem:[%s7318_s4 + $0xb0] sm:$0xff] %v2802_v47  ;;  %v2817_v57 = vadd.f32 %v3628_v50, %v6938_v8 }
 0x2ff   :  { %v2528_v52 = vpop.f32.mrf.mxu1  ;;  %v2811_v6 = vpop.f32.mrf.mxu0 }
 0x300   :  { %v3164_v61 = vadd.f32 %v3163_v63, %v3101_v39  ;;  %v2812_v15 = vadd.f32 %v2811_v6, %v6931_v41  ;;  %v3032_v34 = vadd.f32 %v3031_v20, %v2807_v31  ;;  %3239 = vst [vmem:[%s7318_s4 + $0xc8] sm:$0xff] %v2817_v57  ;;  %v3104_v41 = vmul.f32 %v2817_v57, %v2817_v57  ;;  %v8284_v63 = vld [vmem:[#allocation14_spill] sm:$0xff] }
 0x301   :  { %v7109_v7 = vpop.f32.mrf.mxu1  ;;  %v3631_v59 = vpop.f32.mrf.mxu0 }
 0x302   :  { %v3033_v16 = vadd.f32 %v3032_v34, %v2812_v15  ;;  %v3103_v60 = vmul.f32 %v2812_v15, %v2812_v15  ;;  %v3165_v38 = vadd.f32 %v3164_v61, %v3102_v23  ;;  %3238 = vst [vmem:[%s7318_s4 + $0xc0] sm:$0xff] %v2812_v15  ;;  %v2827_v8 = vadd.f32 %v3631_v59, %v6952_v11 }
 0x303   :  { %v2533_v10 = vpop.f32.mrf.mxu1  ;;  %v2821_v55 = vpop.f32.mrf.mxu0 }
 0x304   :  { %v3166_v3 = vadd.f32 %v3165_v38, %v3103_v60  ;;  %v2822_v44 = vadd.f32 %v2821_v55, %v6945_v35  ;;  %v3034_v40 = vadd.f32 %v3033_v16, %v2817_v57  ;;  %3241 = vst [vmem:[%s7318_s4 + $0xd8] sm:$0xff] %v2827_v8  ;;  %v3106_v35 = vmul.f32 %v2827_v8, %v2827_v8  ;;  %v8285_v38 = vld [vmem:[#allocation88_spill] sm:$0xff] }
 0x305   :  { %v7119_v31 = vpop.f32.mrf.mxu1  ;;  %v3634_v32 = vpop.f32.mrf.mxu0  ;;  %v2462_v57 = vadd.f32 %v6977_v28, %v8284_v63 }
 0x306   :  { %v3035_v0 = vadd.f32 %v3034_v40, %v2822_v44  ;;  %v3105_v49 = vmul.f32 %v2822_v44, %v2822_v44  ;;  %v3167_v18 = vadd.f32 %v3166_v3, %v3104_v41  ;;  %3240 = vst [vmem:[%s7318_s4 + $0xd0] sm:$0xff] %v2822_v44  ;;  %v2837_v11 = vadd.f32 %v3634_v32, %v6966_v37 }
 0x307   :  { %v2538_v47 = vpop.f32.mrf.mxu1  ;;  %v2831_v54 = vpop.f32.mrf.mxu0 }
 0x308   :  { %v3168_v50 = vadd.f32 %v3167_v18, %v3105_v49  ;;  %v2832_v20 = vadd.f32 %v2831_v54, %v6959_v14  ;;  %v3036_v39 = vadd.f32 %v3035_v0, %v2827_v8  ;;  %3243 = vst [vmem:[%s7318_s4 + $0xe8] sm:$0xff] %v2837_v11  ;;  %v3108_v59 = vmul.f32 %v2837_v11, %v2837_v11 }
 0x309   :  { %v7131_v52 = vpop.f32.mrf.mxu1  ;;  %v3637_v6 = vpop.f32.mrf.mxu0  ;;  %v2472_v8 = vadd.f32 %v6989_v27, %v8285_v38 }
 0x30a   :  { %v3037_v23 = vadd.f32 %v3036_v39, %v2832_v20  ;;  %v3107_v61 = vmul.f32 %v2832_v20, %v2832_v20  ;;  %v3169_v37 = vadd.f32 %v3168_v50, %v3106_v35  ;;  %3242 = vst [vmem:[%s7318_s4 + $0xe0] sm:$0xff] %v2832_v20  ;;  %v2847_v15 = vadd.f32 %v3637_v6, %v2462_v57  ;;  %v8287_v50 = vld [vmem:[#allocation98_spill] sm:$0xff] }
 0x30b   :  { %v2543_v14 = vpop.f32.mrf.mxu1  ;;  %v2841_v34 = vpop.f32.mrf.mxu0  ;;  %v2477_v20 = vadd.f32 %v6999_v9, %v8287_v50 }
 0x30c   :  { %v3170_v16 = vadd.f32 %v3169_v37, %v3107_v61  ;;  %v2842_v28 = vadd.f32 %v2841_v34, %v6973_v56  ;;  %v3038_v60 = vadd.f32 %v3037_v23, %v2837_v11  ;;  %3245 = vst [vmem:[%s7318_s4 + $0xf8] sm:$0xff] %v2847_v15  ;;  %v3110_v0 = vmul.f32 %v2847_v15, %v2847_v15  ;;  %v8286_v11 = vld [vmem:[#allocation171_spill] sm:$0xff]  ;;  %v8288_v14 = vld [vmem:[#allocation30_spill] sm:$0xff] }
 0x30d   :  { %v7142_v10 = vpop.f32.mrf.mxu1  ;;  %v3640_v55 = vpop.f32.mrf.mxu0  ;;  %v2482_v47 = vadd.f32 %v7009_v43, %v8286_v11  ;;  %v2492_v34 = vadd.f32 %v7029_v48, %v8288_v14 }
 0x30e   :  { %v3039_v41 = vadd.f32 %v3038_v60, %v2842_v28  ;;  %v3109_v3 = vmul.f32 %v2842_v28, %v2842_v28  ;;  %v3171_v44 = vadd.f32 %v3170_v16, %v3108_v59  ;;  %3244 = vst [vmem:[%s7318_s4 + $0xf0] sm:$0xff] %v2842_v28  ;;  %v2857_v40 = vadd.f32 %v3640_v55, %v2472_v8  ;;  %v8289_v16 = vld [vmem:[#allocation20_spill] sm:$0xff] }
 0x30f   :  { %v2548_v56 = vpop.f32.mrf.mxu1  ;;  %v2851_v32 = vpop.f32.mrf.mxu0  ;;  %v2487_v28 = vadd.f32 %v7019_v2, %v8289_v16 }
 0x310   :  { %v3172_v49 = vadd.f32 %v3171_v44, %v3109_v3  ;;  %v2852_v27 = vadd.f32 %v2851_v32, %v6982_v4  ;;  %v3040_v18 = vadd.f32 %v3039_v41, %v2847_v15  ;;  %3247 = vst [vmem:[%s7318_s4 + $0x108] sm:$0xff] %v2857_v40  ;;  %v3112_v23 = vmul.f32 %v2857_v40, %v2857_v40  ;;  %v8290_v32 = vld [vmem:[#allocation101_spill] sm:$0xff] }
 0x311   :  { %v7153_v54 = vpop.f32.mrf.mxu1  ;;  %v3643_v35 = vpop.f32.mrf.mxu0 }
 0x312   :  { %v3041_v39 = vadd.f32 %v3040_v18, %v2852_v27  ;;  %v3111_v63 = vmul.f32 %v2852_v27, %v2852_v27  ;;  %v3173_v57 = vadd.f32 %v3172_v49, %v3110_v0  ;;  %3246 = vst [vmem:[%s7318_s4 + $0x100] sm:$0xff] %v2852_v27  ;;  %v2867_v4 = vadd.f32 %v3643_v35, %v2482_v47  ;;  %v8291_v27 = vld [vmem:[#allocation90_spill] sm:$0xff] }
 0x313   :  { %v2553_v6 = vpop.f32.mrf.mxu1  ;;  %v2861_v43 = vpop.f32.mrf.mxu0  ;;  %v2502_v0 = vadd.f32 %v7049_v42, %v8290_v32  ;;  %v2497_v18 = vadd.f32 %v7039_v25, %v8291_v27  ;;  %v2532_v32 = vadd.f32 %v7109_v7, %v6843_v36 }
 0x314   :  { %v3174_v61 = vadd.f32 %v3173_v57, %v3111_v63  ;;  %v2862_v37 = vadd.f32 %v2861_v43, %v2477_v20  ;;  %v3042_v15 = vadd.f32 %v3041_v39, %v2857_v40  ;;  %3249 = vst [vmem:[%s7318_s4 + $0x118] sm:$0xff] %v2867_v4  ;;  %v3114_v3 = vmul.f32 %v2867_v4, %v2867_v4 }
 0x315   :  { %v7165_v9 = vpop.f32.mrf.mxu1  ;;  %v3646_v59 = vpop.f32.mrf.mxu0  ;;  %v2512_v6 = vadd.f32 %v7069_v12, %v6799_v62 }
 0x316   :  { %v3043_v60 = vadd.f32 %v3042_v15, %v2862_v37  ;;  %v3113_v38 = vmul.f32 %v2862_v37, %v2862_v37  ;;  %v3175_v8 = vadd.f32 %v3174_v61, %v3112_v23  ;;  %3248 = vst [vmem:[%s7318_s4 + $0x110] sm:$0xff] %v2862_v37  ;;  %v2877_v55 = vadd.f32 %v3646_v59, %v2492_v34 }
 0x317   :  { %v2558_v41 = vpop.f32.mrf.mxu1  ;;  %v2871_v48 = vpop.f32.mrf.mxu0  ;;  %v2507_v23 = vadd.f32 %v7059_v26, %v6789_v21 }
 0x318   :  { %v3176_v44 = vadd.f32 %v3175_v8, %v3113_v38  ;;  %v2872_v40 = vadd.f32 %v2871_v48, %v2487_v28  ;;  %v3044_v56 = vadd.f32 %v3043_v60, %v2867_v4  ;;  %3251 = vst [vmem:[%s7318_s4 + $0x128] sm:$0xff] %v2877_v55  ;;  %v3116_v39 = vmul.f32 %v2877_v55, %v2877_v55 }
 0x319   :  { %v7177_v2 = vpop.f32.mrf.mxu1  ;;  %v3649_v49 = vpop.f32.mrf.mxu0  ;;  %v2522_v60 = vadd.f32 %v7089_v46, %v6821_v29  ;;  %v2517_v38 = vadd.f32 %v7079_v19, %v6811_v22 }
 0x31a   :  { %v3045_v11 = vadd.f32 %v3044_v56, %v2872_v40  ;;  %v3115_v47 = vmul.f32 %v2872_v40, %v2872_v40  ;;  %v3177_v35 = vadd.f32 %v3176_v44, %v3114_v3  ;;  %3250 = vst [vmem:[%s7318_s4 + $0x120] sm:$0xff] %v2872_v40  ;;  %v2887_v50 = vadd.f32 %v3649_v49, %v2502_v0 }
 0x31b   :  { %v2563_v20 = vpop.f32.mrf.mxu1  ;;  %v2881_v42 = vpop.f32.mrf.mxu0  ;;  %v2527_v0 = vadd.f32 %v7099_v17, %v6833_v1 }
 0x31c   :  { %v3178_v63 = vadd.f32 %v3177_v35, %v3115_v47  ;;  %v2882_v57 = vadd.f32 %v2881_v42, %v2497_v18  ;;  %v3046_v4 = vadd.f32 %v3045_v11, %v2877_v55  ;;  %3253 = vst [vmem:[%s7318_s4 + $0x138] sm:$0xff] %v2887_v50  ;;  %v3118_v12 = vmul.f32 %v2887_v50, %v2887_v50 }
 0x31d   :  { %v7189_v25 = vpop.f32.mrf.mxu1  ;;  %v3652_v43 = vpop.f32.mrf.mxu0  ;;  %v2542_v42 = vadd.f32 %v7131_v52, %v6865_v58 }
 0x31e   :  { %v3047_v61 = vadd.f32 %v3046_v4, %v2882_v57  ;;  %v3117_v37 = vmul.f32 %v2882_v57, %v2882_v57  ;;  %v3179_v15 = vadd.f32 %v3178_v63, %v3116_v39  ;;  %3252 = vst [vmem:[%s7318_s4 + $0x130] sm:$0xff] %v2882_v57  ;;  %v2897_v14 = vadd.f32 %v3652_v43, %v2512_v6 }
 0x31f   :  { %v2568_v34 = vpop.f32.mrf.mxu1  ;;  %v2891_v62 = vpop.f32.mrf.mxu0  ;;  %v2537_v39 = vadd.f32 %v7119_v31, %v6855_v13 }
 0x320   :  { %v3180_v59 = vadd.f32 %v3179_v15, %v3117_v37  ;;  %v2892_v16 = vadd.f32 %v2891_v62, %v2507_v23  ;;  %v3048_v28 = vadd.f32 %v3047_v61, %v2887_v50  ;;  %3255 = vst [vmem:[%s7318_s4 + $0x148] sm:$0xff] %v2897_v14  ;;  %v3120_v46 = vmul.f32 %v2897_v14, %v2897_v14 }
 0x321   :  { %v7201_v21 = vpop.f32.mrf.mxu1  ;;  %v3655_v26 = vpop.f32.mrf.mxu0  ;;  %v2552_v15 = vadd.f32 %v7153_v54, %v6879_v51 }
 0x322   :  { %v3049_v8 = vadd.f32 %v3048_v28, %v2892_v16  ;;  %v3119_v55 = vmul.f32 %v2892_v16, %v2892_v16  ;;  %v3181_v41 = vadd.f32 %v3180_v59, %v3118_v12  ;;  %3254 = vst [vmem:[%s7318_s4 + $0x140] sm:$0xff] %v2892_v16  ;;  %v2907_v48 = vadd.f32 %v3655_v26, %v2522_v60 }
 0x323   :  { %v2573_v3 = vpop.f32.mrf.mxu1  ;;  %v2901_v29 = vpop.f32.mrf.mxu0 }
 0x324   :  { %v3182_v44 = vadd.f32 %v3181_v41, %v3119_v55  ;;  %v2902_v40 = vadd.f32 %v2901_v29, %v2517_v38  ;;  %v3050_v56 = vadd.f32 %v3049_v8, %v2897_v14  ;;  %3257 = vst [vmem:[%s7318_s4 + $0x158] sm:$0xff] %v2907_v48  ;;  %v3122_v7 = vmul.f32 %v2907_v48, %v2907_v48 }
 0x325   :  { %v7213_v22 = vpop.f32.mrf.mxu1  ;;  %v3658_v19 = vpop.f32.mrf.mxu0  ;;  %v2547_v14 = vadd.f32 %v7142_v10, %v6872_v24  ;;  %v2562_v38 = vadd.f32 %v7177_v2, %v6893_v30  ;;  %v2557_v8 = vadd.f32 %v7165_v9, %v6886_v53 }
 0x326   :  { %v3051_v49 = vadd.f32 %v3050_v56, %v2902_v40  ;;  %v3121_v27 = vmul.f32 %v2902_v40, %v2902_v40  ;;  %v3183_v18 = vadd.f32 %v3182_v44, %v3120_v46  ;;  %3256 = vst [vmem:[%s7318_s4 + $0x150] sm:$0xff] %v2902_v40  ;;  %v2917_v11 = vadd.f32 %v3658_v19, %v2532_v32 }
 0x327   :  { %v2578_v47 = vpop.f32.mrf.mxu1  ;;  %v2911_v36 = vpop.f32.mrf.mxu0  ;;  %v2572_v56 = vadd.f32 %v7201_v21, %v6907_v5  ;;  %v2567_v32 = vadd.f32 %v7189_v25, %v6900_v33 }
 0x328   :  { %v3184_v35 = vadd.f32 %v3183_v18, %v3121_v27  ;;  %v2912_v50 = vadd.f32 %v2911_v36, %v2527_v0  ;;  %v3052_v20 = vadd.f32 %v3051_v49, %v2907_v48  ;;  %3259 = vst [vmem:[%s7318_s4 + $0x168] sm:$0xff] %v2917_v11  ;;  %v3124_v58 = vmul.f32 %v2917_v11, %v2917_v11 }
 0x329   :  { %v2581_v1 = vpop.f32.mrf.mxu1  ;;  %v3661_v17 = vpop.f32.mrf.mxu0 }
 0x32a   :  { %v3053_v63 = vadd.f32 %v3052_v20, %v2912_v50  ;;  %v3123_v57 = vmul.f32 %v2912_v50, %v2912_v50  ;;  %v3185_v4 = vadd.f32 %v3184_v35, %v3122_v7  ;;  %3258 = vst [vmem:[%s7318_s4 + $0x160] sm:$0xff] %v2912_v50  ;;  %v2927_v6 = vadd.f32 %v3661_v17, %v2542_v42  ;;  %v8292_v35 = vld [vmem:[#allocation173_spill] sm:$0xff] }
 0x32b   :  { %v2583_v43 = vpop.f32.mrf.mxu1  ;;  %v2921_v23 = vpop.f32.mrf.mxu0  ;;  %v2582_v7 = vadd.f32 %v2581_v1, %v6921_v45  ;;  %v2577_v50 = vadd.f32 %v7213_v22, %v8292_v35 }
 0x32c   :  { %v3186_v52 = vadd.f32 %v3185_v4, %v3123_v57  ;;  %v2922_v61 = vadd.f32 %v2921_v23, %v2537_v39  ;;  %v3054_v37 = vadd.f32 %v3053_v63, %v2917_v11  ;;  %3261 = vst [vmem:[%s7318_s4 + $0x178] sm:$0xff] %v2927_v6  ;;  %v3126_v54 = vmul.f32 %v2927_v6, %v2927_v6  ;;  %v8293_v43 = vld [vmem:[#allocation35_spill] sm:$0xff] }
 0x32d   :  { %v7235_v13 = vpop.f32.mrf.mxu1  ;;  %v3664_v31 = vpop.f32.mrf.mxu0 }
 0x32e   :  { %v3055_v34 = vadd.f32 %v3054_v37, %v2922_v61  ;;  %v3125_v62 = vmul.f32 %v2922_v61, %v2922_v61  ;;  %v3187_v12 = vadd.f32 %v3186_v52, %v3124_v58  ;;  %3260 = vst [vmem:[%s7318_s4 + $0x170] sm:$0xff] %v2922_v61  ;;  %v2937_v59 = vadd.f32 %v3664_v31, %v2552_v15  ;;  %v8294_v52 = vld [vmem:[#allocation23_spill] sm:$0xff] }
 0x32f   :  { %v2588_v16 = vpop.f32.mrf.mxu1  ;;  %v2931_v51 = vpop.f32.mrf.mxu0  ;;  %v2587_v61 = vadd.f32 %v7235_v13, %v8294_v52 }
 0x330   :  { %v3188_v28 = vadd.f32 %v3187_v12, %v3125_v62  ;;  %v2932_v60 = vadd.f32 %v2931_v51, %v2547_v14  ;;  %v3056_v26 = vadd.f32 %v3055_v34, %v2927_v6  ;;  %3263 = vst [vmem:[%s7318_s4 + $0x188] sm:$0xff] %v2937_v59  ;;  %v3128_v30 = vmul.f32 %v2937_v59, %v2937_v59 }
 0x331   :  { %v2591_v24 = vpop.f32.mrf.mxu1  ;;  %v3667_v10 = vpop.f32.mrf.mxu0 }
 0x332   :  { %v3057_v55 = vadd.f32 %v3056_v26, %v2932_v60  ;;  %v3127_v41 = vmul.f32 %v2932_v60, %v2932_v60  ;;  %v3189_v48 = vadd.f32 %v3188_v28, %v3126_v54  ;;  %3262 = vst [vmem:[%s7318_s4 + $0x180] sm:$0xff] %v2932_v60  ;;  %v2947_v3 = vadd.f32 %v3667_v10, %v2562_v38  ;;  %v8295_v54 = vld [vmem:[#allocation104_spill] sm:$0xff]  ;;  %v8296_v26 = vld [vmem:[#allocation93_spill] sm:$0xff] }
 0x333   :  { %v2593_v29 = vpop.f32.mrf.mxu1  ;;  %v2941_v46 = vpop.f32.mrf.mxu0  ;;  %v2592_v23 = vadd.f32 %v2591_v24, %v8293_v43 }
 0x334   :  { %v3190_v2 = vadd.f32 %v3189_v48, %v3127_v41  ;;  %v2942_v44 = vadd.f32 %v2941_v46, %v2557_v8  ;;  %v3058_v40 = vadd.f32 %v3057_v55, %v2937_v59  ;;  %3265 = vst [vmem:[%s7318_s4 + $0x198] sm:$0xff] %v2947_v3  ;;  %v3130_v5 = vmul.f32 %v2947_v3, %v2947_v3 }
 0x335   :  { %v2596_v53 = vpop.f32.mrf.mxu1  ;;  %v3670_v9 = vpop.f32.mrf.mxu0 }
 0x336   :  { %v3059_v19 = vadd.f32 %v3058_v40, %v2942_v44  ;;  %v3129_v0 = vmul.f32 %v2942_v44, %v2942_v44  ;;  %v3191_v49 = vadd.f32 %v3190_v2, %v3128_v30  ;;  %3264 = vst [vmem:[%s7318_s4 + $0x190] sm:$0xff] %v2942_v44  ;;  %v2957_v27 = vadd.f32 %v3670_v9, %v2572_v56  ;;  %v8297_v2 = vld [vmem:[#allocation28_spill] sm:$0xff] }
 0x337   :  { %v2598_v18 = vpop.f32.mrf.mxu1  ;;  %v2951_v11 = vpop.f32.mrf.mxu0  ;;  %v2597_v38 = vadd.f32 %v2596_v53, %v8296_v26  ;;  %v8298_v53 = vld [vmem:[#allocation175_spill] sm:$0xff] }
 0x338   :  { %v3192_v21 = vadd.f32 %v3191_v49, %v3129_v0  ;;  %v2952_v47 = vadd.f32 %v2951_v11, %v2567_v32  ;;  %v3060_v36 = vadd.f32 %v3059_v19, %v2947_v3  ;;  %3267 = vst [vmem:[%s7318_s4 + $0x1a8] sm:$0xff] %v2957_v27  ;;  %v3132_v45 = vmul.f32 %v2957_v27, %v2957_v27 }
 0x339   :  { %v2601_v33 = vpop.f32.mrf.mxu1  ;;  %v3673_v25 = vpop.f32.mrf.mxu0 }
 0x33a   :  { %v3061_v20 = vadd.f32 %v3060_v36, %v2952_v47  ;;  %v3131_v42 = vmul.f32 %v2952_v47, %v2952_v47  ;;  %v3193_v17 = vadd.f32 %v3192_v21, %v3130_v5  ;;  %3266 = vst [vmem:[%s7318_s4 + $0x1a0] sm:$0xff] %v2952_v47  ;;  %v2967_v39 = vadd.f32 %v3673_v25, %v2582_v7  ;;  %v8299_v36 = vld [vmem:[#allocation40_spill] sm:$0xff] }
 0x33b   :  { %v2603_v63 = vpop.f32.mrf.mxu1  ;;  %v2961_v57 = vpop.f32.mrf.mxu0  ;;  %v2602_v28 = vadd.f32 %v2601_v33, %v8295_v54 }
 0x33c   :  { %v3194_v1 = vadd.f32 %v3193_v17, %v3131_v42  ;;  %v2962_v4 = vadd.f32 %v2961_v57, %v2577_v50  ;;  %v3062_v6 = vadd.f32 %v3061_v20, %v2957_v27  ;;  %3269 = vst [vmem:[%s7318_s4 + $0x1b8] sm:$0xff] %v2967_v39  ;;  %v3134_v12 = vmul.f32 %v2967_v39, %v2967_v39  ;;  %v8300_v42 = vld [vmem:[#allocation96_spill] sm:$0xff] }
 0x33d   :  { %v2606_v22 = vpop.f32.mrf.mxu1  ;;  %v3676_v58 = vpop.f32.mrf.mxu0 }
 0x33e   :  { %v3063_v37 = vadd.f32 %v3062_v6, %v2962_v4  ;;  %v3133_v15 = vmul.f32 %v2962_v4, %v2962_v4  ;;  %v3195_v31 = vadd.f32 %v3194_v1, %v3132_v45  ;;  %3268 = vst [vmem:[%s7318_s4 + $0x1b0] sm:$0xff] %v2962_v4  ;;  %v2977_v14 = vadd.f32 %v3676_v58, %v2592_v23 }
 0x33f   :  { %v2608_v34 = vpop.f32.mrf.mxu1  ;;  %v2971_v62 = vpop.f32.mrf.mxu0  ;;  %v2607_v9 = vadd.f32 %v2606_v22, %v8298_v53 }
 0x340   :  { %v3196_v59 = vadd.f32 %v3195_v31, %v3133_v15  ;;  %v2972_v16 = vadd.f32 %v2971_v62, %v2587_v61  ;;  %v3064_v51 = vadd.f32 %v3063_v37, %v2967_v39  ;;  %3271 = vst [vmem:[%s7318_s4 + $0x1c8] sm:$0xff] %v2977_v14  ;;  %v3136_v3 = vmul.f32 %v2977_v14, %v2977_v14 }
 0x341   :  { %v2611_v13 = vpop.f32.mrf.mxu1  ;;  %v3679_v60 = vpop.f32.mrf.mxu0 }
 0x342   :  { %v3065_v24 = vadd.f32 %v3064_v51, %v2972_v16  ;;  %v3135_v10 = vmul.f32 %v2972_v16, %v2972_v16  ;;  %v3197_v8 = vadd.f32 %v3196_v59, %v3134_v12  ;;  %3270 = vst [vmem:[%s7318_s4 + $0x1c0] sm:$0xff] %v2972_v16  ;;  %v2987_v55 = vadd.f32 %v3679_v60, %v2602_v28 }
 0x343   :  { %v2613_v41 = vpop.f32.mrf.mxu1  ;;  %v2981_v48 = vpop.f32.mrf.mxu0  ;;  %v2612_v44 = vadd.f32 %v2611_v13, %v8297_v2 }
 0x344   :  { %v3198_v29 = vadd.f32 %v3197_v8, %v3135_v10  ;;  %v2982_v46 = vadd.f32 %v2981_v48, %v2597_v38  ;;  %v3066_v30 = vadd.f32 %v3065_v24, %v2977_v14  ;;  %3273 = vst [vmem:[%s7318_s4 + $0x1d8] sm:$0xff] %v2987_v55  ;;  %v3138_v11 = vmul.f32 %v2987_v55, %v2987_v55 }
 0x345   :  { %v2616_v40 = vpop.f32.mrf.mxu1  ;;  %v3682_v56 = vpop.f32.mrf.mxu0 }
 0x346   :  { %v3067_v32 = vadd.f32 %v3066_v30, %v2982_v46  ;;  %v3137_v19 = vmul.f32 %v2982_v46, %v2982_v46  ;;  %v3199_v0 = vadd.f32 %v3198_v29, %v3136_v3  ;;  %3272 = vst [vmem:[%s7318_s4 + $0x1d0] sm:$0xff] %v2982_v46  ;;  %v2997_v49 = vadd.f32 %v3682_v56, %v2612_v44 }
 0x347   :  { %v2618_v27 = vpop.f32.mrf.mxu1  ;;  %v2991_v18 = vpop.f32.mrf.mxu0  ;;  %v2617_v7 = vadd.f32 %v2616_v40, %v8299_v36 }
 0x348   :  { %v3200_v5 = vadd.f32 %v3199_v0, %v3137_v19  ;;  %v2992_v21 = vadd.f32 %v2991_v18, %v2607_v9  ;;  %v3068_v47 = vadd.f32 %v3067_v32, %v2987_v55  ;;  %3275 = vst [vmem:[%s7318_s4 + $0x1e8] sm:$0xff] %v2997_v49  ;;  %v3140_v39 = vmul.f32 %v2997_v49, %v2997_v49 }
 0x349   :  { %v2621_v33 = vpop.f32.mrf.mxu1  ;;  %v3685_v25 = vpop.f32.mrf.mxu0 }
 0x34a   :  { %v3069_v35 = vadd.f32 %v3068_v47, %v2992_v21  ;;  %v3139_v50 = vmul.f32 %v2992_v21, %v2992_v21  ;;  %v3201_v20 = vadd.f32 %v3200_v5, %v3138_v11  ;;  %3274 = vst [vmem:[%s7318_s4 + $0x1e0] sm:$0xff] %v2992_v21  ;;  %v2622_v17 = vadd.f32 %v2621_v33, %v8300_v42 }
 0x34b   :  { %v3001_v63 = vpop.f32.mrf.mxu0  ;;  %v2623_v57 = vpop.f32.mrf.mxu1 }
 0x34c   :  { %v3202_v45 = vadd.f32 %v3201_v20, %v3139_v50  ;;  %v3007_v1 = vadd.f32 %v3685_v25, %v2622_v17  ;;  %v3002_v4 = vadd.f32 %v3001_v63, %v2617_v7  ;;  %v3070_v6 = vadd.f32 %v3069_v35, %v2997_v49 }
 0x34e   :  { %3277 = vst [vmem:[%s7318_s4 + $0x1f8] sm:$0xff] %v3007_v1  ;;  %v3071_v43 = vadd.f32 %v3070_v6, %v3002_v4  ;;  %v3141_v23 = vmul.f32 %v3002_v4, %v3002_v4  ;;  %v3203_v22 = vadd.f32 %v3202_v45, %v3140_v39  ;;  %3276 = vst [vmem:[%s7318_s4 + $0x1f0] sm:$0xff] %v3002_v4 }
 0x34f   :  { %v3142_v58 = vmul.f32 %v3007_v1, %v3007_v1 }
 0x350   :  { %v3072_v52 = vadd.f32 %v3071_v43, %v3007_v1  ;;  %v3204_v61 = vadd.f32 %v3203_v22, %v3141_v23 }
 0x352   :  { %v3073_v37 = vrot.slane %v3072_v52, 4  ;;  %v3205_v15 = vadd.f32 %v3204_v61, %v3142_v58 }
 0x354   :  { %v3074_v31 = vadd.f32 %v3073_v37, %v3072_v52  ;;  %v3206_v14 = vrot.slane %v3205_v15, 4 }
 0x356   :  { %v3075_v34 = vrot.slane %v3074_v31, 2  ;;  %v3207_v62 = vadd.f32 %v3206_v14, %v3205_v15 }
 0x358   :  { %v3076_v12 = vadd.f32 %v3075_v34, %v3074_v31  ;;  %v3208_v59 = vrot.slane %v3207_v62, 2 }
 0x35a   :  { %v3077_v16 = vrot.slane %v3076_v12, 1  ;;  %v3209_v51 = vadd.f32 %v3208_v59, %v3207_v62 }
 0x35c   :  { %v3210_v54 = vrot.slane %v3209_v51, 1  ;;  %v3078_v28 = vadd.f32 %v3077_v16, %v3076_v12 }
 0x35e   :  { %v3211_v13 = vadd.f32 %v3210_v54, %v3209_v51 }
 0x360   :  { %v3212_v60 = vsel %vm148_vm0, %v3078_v28, %v3211_v13 }
 0x361   :  { %3213 = vst [vmem:[%s7319_s5] sm:$0x3] %v3212_v60 }

// kernel: _lambda_.5
= control target key start
LH: loop header
LB: loop body
LE: loop exit
PB: predicated region body
PF: predicated region fallthrough
CT: control target
= control target key end

     0   :  { %v7680_v0 = vmov 0.0   ;;  %vm354_vm0 = vcmask 1040384   ;;  %vm683_vm1 = vcmask 1046528   ;;  %vm915_vm3 = vcmask 1045504   ;;  %s7674_s1 = inlined_call_operand.vmem [shape: f32[1152,128], index: 1, kind: input, shape index: {}]   ;;  %s7675_s0 = inlined_call_operand.vmem [shape: f32[2,16,16,128], index: 0, kind: input, shape index: {}]   ;;  %s7676_s2 = inlined_call_operand.vmem [shape: f32[1,128], index: 2, kind: input, shape index: {}]   ;;  %s7677_s3 = inlined_call_operand.vmem [shape: f32[1,128], index: 3, kind: input, shape index: {}]   ;;  %s7678_s4 = inlined_call_operand.vmem [shape: f32[2,16,16,128], index: 4, kind: output, shape index: {0}]   ;;  %s7679_s5 = inlined_call_operand.vmem [shape: f32[1,2,128], index: 5, kind: output, shape index: {1}]  }
   0x1   :  { %1291 = vmatprep.subr.mxu0 %v7680_v0  ;;  %3894 = vmatprep.subr.mxu1 %v7680_v0  ;;  %v1162_v1 = vld [vmem:[%s7674_s1 + $0x78] sm:$0xff]  ;;  %v1161_v2 = vld [vmem:[%s7674_s1 + $0x70] sm:$0xff]  ;;  %v1160_v3 = vld [vmem:[%s7674_s1 + $0x68] sm:$0xff]  ;;  %v4160_v46 = vrot.slane %v7680_v0, 7 }
   0x2   :  { %1292 = vmatpush1.msra.mxu0 %v1162_v1  ;;  %3926 = vmatpush1.msra.mxu1 %v1162_v1  ;;  %v1159_v4 = vld [vmem:[%s7674_s1 + $0x60] sm:$0xff]  ;;  %v1158_v5 = vld [vmem:[%s7674_s1 + $0x58] sm:$0xff]  ;;  %v1157_v6 = vld [vmem:[%s7674_s1 + $0x50] sm:$0xff] }
   0x3   :  { %1293 = vmatprep.subr.mxu0 %v7680_v0  ;;  %3895 = vmatprep.subr.mxu1 %v7680_v0  ;;  %v1156_v7 = vld [vmem:[%s7674_s1 + $0x48] sm:$0xff]  ;;  %v1155_v8 = vld [vmem:[%s7674_s1 + $0x40] sm:$0xff]  ;;  %v1154_v9 = vld [vmem:[%s7674_s1 + $0x38] sm:$0xff]  ;;  %7993 = vst [vmem:[#allocation2_spill] sm:$0xff] %v4160_v46  ;;  %v4186_v58 = vsel %vm354_vm0, 0.0, %v4160_v46  ;;  %v685_v63 = vrot.slane %v4160_v46, 1 }
   0x4   :  { %1294 = vmatpush1.msra.mxu0 %v1161_v2  ;;  %3927 = vmatpush1.msra.mxu1 %v1161_v2  ;;  %v1153_v10 = vld [vmem:[%s7674_s1 + $0x30] sm:$0xff]  ;;  %v1152_v11 = vld [vmem:[%s7674_s1 + $0x28] sm:$0xff]  ;;  %v1151_v12 = vld [vmem:[%s7674_s1 + $0x20] sm:$0xff]  ;;  %v4204_v1 = vsel %vm354_vm0, %v4160_v46, 0.0 }
   0x5   :  { %1295 = vmatprep.subr.mxu0 %v7680_v0  ;;  %3896 = vmatprep.subr.mxu1 %v7680_v0  ;;  %v1150_v13 = vld [vmem:[%s7674_s1 + $0x18] sm:$0xff]  ;;  %v1149_v14 = vld [vmem:[%s7674_s1 + $0x10] sm:$0xff]  ;;  %v1148_v15 = vld [vmem:[%s7674_s1 + $0x8] sm:$0xff] }
   0x6   :  { %1296 = vmatpush1.msra.mxu0 %v1160_v3  ;;  %3928 = vmatpush1.msra.mxu1 %v1160_v3  ;;  %v1147_v16 = vld [vmem:[%s7674_s1] sm:$0xff]  ;;  %v1178_v17 = vld [vmem:[%s7674_s1 + $0xf8] sm:$0xff]  ;;  %v1177_v18 = vld [vmem:[%s7674_s1 + $0xf0] sm:$0xff] }
   0x7   :  { %1297 = vmatprep.subr.mxu0 %v7680_v0  ;;  %3897 = vmatprep.subr.mxu1 %v7680_v0  ;;  %v1176_v19 = vld [vmem:[%s7674_s1 + $0xe8] sm:$0xff]  ;;  %v65_v20 = vld [vmem:[%s7675_s0 + $0x170] sm:$0xff]  ;;  %v66_v21 = vld [vmem:[%s7675_s0 + $0x178] sm:$0xff] }
   0x8   :  { %1298 = vmatpush1.msra.mxu0 %v1159_v4  ;;  %3929 = vmatpush1.msra.mxu1 %v1159_v4  ;;  %v4096_v22 = vld [vmem:[%s7676_s2] ss:$0 sm:$0xff]  ;;  %v1174_v26 = vld [vmem:[%s7674_s1 + $0xd8] sm:$0xff]  ;;  %v1173_v28 = vld [vmem:[%s7674_s1 + $0xd0] sm:$0xff] }
   0x9   :  { %1299 = vmatprep.subr.mxu0 %v7680_v0  ;;  %3898 = vmatprep.subr.mxu1 %v7680_v0  ;;  %v1175_v23 = vld [vmem:[%s7674_s1 + $0xe0] sm:$0xff]  ;;  %v137_v24 = vmul.f32 %v4096_v22, %v65_v20  ;;  %v138_v25 = vmul.f32 %v4096_v22, %v66_v21  ;;  %v1172_v32 = vld [vmem:[%s7674_s1 + $0xc8] sm:$0xff]  ;;  %v1170_v41 = vld [vmem:[%s7674_s1 + $0xb8] sm:$0xff] }
   0xa   :  { %1300 = vmatpush1.msra.mxu0 %v1158_v5  ;;  %3930 = vmatpush1.msra.mxu1 %v1158_v5  ;;  %v4113_v27 = vld [vmem:[%s7677_s3] ss:$0 sm:$0xff]  ;;  %v20_v33 = vld [vmem:[%s7675_s0 + $0x8] sm:$0xff]  ;;  %v1169_v45 = vld [vmem:[%s7674_s1 + $0xb0] sm:$0xff] }
   0xb   :  { %1301 = vmatprep.subr.mxu0 %v7680_v0  ;;  %3899 = vmatprep.subr.mxu1 %v7680_v0  ;;  %v19_v29 = vld [vmem:[%s7675_s0] sm:$0xff]  ;;  %v207_v30 = vadd.f32 %v4113_v27, %v137_v24  ;;  %v208_v31 = vadd.f32 %v4113_v27, %v138_v25  ;;  %v68_v37 = vld [vmem:[%s7675_s0 + $0x188] sm:$0xff]  ;;  %v92_v40 = vmul.f32 %v4096_v22, %v20_v33  ;;  %v21_v50 = vld [vmem:[%s7675_s0 + $0x10] sm:$0xff] }
   0xc   :  { %1302 = vmatpush1.msra.mxu0 %v1157_v6  ;;  %3931 = vmatpush1.msra.mxu1 %v1157_v6  ;;  %v91_v34 = vmul.f32 %v4096_v22, %v19_v29  ;;  %v1171_v35 = vld [vmem:[%s7674_s1 + $0xc0] sm:$0xff]  ;;  %v140_v44 = vmul.f32 %v4096_v22, %v68_v37  ;;  %v1168_v51 = vld [vmem:[%s7674_s1 + $0xa8] sm:$0xff]  ;;  %v22_v56 = vld [vmem:[%s7675_s0 + $0x18] sm:$0xff]  ;;  %v93_v57 = vmul.f32 %v4096_v22, %v21_v50 }
   0xd   :  { %1303 = vmatprep.subr.mxu0 %v7680_v0  ;;  %3900 = vmatprep.subr.mxu1 %v7680_v0  ;;  %v67_v36 = vld [vmem:[%s7675_s0 + $0x180] sm:$0xff]  ;;  %v271_v38 = vmax.f32 %v207_v30, 0.0  ;;  %v272_v39 = vmax.f32 %v208_v31, 0.0  ;;  %v162_v49 = vadd.f32 %v4113_v27, %v92_v40  ;;  %v1166_v62 = vld [vmem:[%s7674_s1 + $0x98] sm:$0xff]  ;;  %v69_v2 = vld [vmem:[%s7675_s0 + $0x190] sm:$0xff] }
   0xe   :  { %1304 = vmatpush1.msra.mxu0 %v1156_v7  ;;  %3932 = vmatpush1.msra.mxu1 %v1156_v7  ;;  %v161_v42 = vadd.f32 %v4113_v27, %v91_v34  ;;  %v139_v43 = vmul.f32 %v4096_v22, %v67_v36  ;;  %v210_v54 = vadd.f32 %v4113_v27, %v140_v44  ;;  %v1167_v55 = vld [vmem:[%s7674_s1 + $0xa0] sm:$0xff]  ;;  %v70_v3 = vld [vmem:[%s7675_s0 + $0x198] sm:$0xff]  ;;  %v24_v30 = vld [vmem:[%s7675_s0 + $0x28] sm:$0xff] }
   0xf   :  { %1305 = vmatprep.subr.mxu0 %v7680_v0  ;;  %3901 = vmatprep.subr.mxu1 %v7680_v0  ;;  %v4162_v47 = vrot.slane %v271_v38, 7  ;;  %v427_v48 = vrot.slane %v272_v39, 7  ;;  %v226_v61 = vmax.f32 %v162_v49, 0.0  ;;  %v94_v7 = vmul.f32 %v4096_v22, %v22_v56  ;;  %v23_v24 = vld [vmem:[%s7675_s0 + $0x20] sm:$0xff]  ;;  %vm4270_vm2 = vmneg %vm354_vm0  ;;  %v72_v40 = vld [vmem:[%s7675_s0 + $0x1a8] sm:$0xff] }
  0x10   :  { %1306 = vmatpush1.msra.mxu0 %v1155_v8  ;;  %3933 = vmatpush1.msra.mxu1 %v1155_v8  ;;  %v225_v52 = vmax.f32 %v161_v42, 0.0  ;;  %v209_v53 = vadd.f32 %v4113_v27, %v139_v43  ;;  %v274_v6 = vmax.f32 %v210_v54, 0.0  ;;  %v1165_v8 = vld [vmem:[%s7674_s1 + $0x90] sm:$0xff]  ;;  %v1163_v25 = vld [vmem:[%s7674_s1 + $0x80] sm:$0xff]  ;;  %v95_v38 = vmul.f32 %v4096_v22, %v23_v24 }
  0x11   :  { %1307 = vmatprep.subr.mxu0 %v7680_v0  ;;  %3902 = vmatprep.subr.mxu1 %v7680_v0  ;;  %7994 = vst [vmem:[#allocation3_spill] sm:$0xff] %v4162_v47  ;;  %v4190_v59 = vsel %vm354_vm0, %v4162_v47, %v427_v48  ;;  %v4194_v60 = vsel %vm354_vm0, 0.0, %v4162_v47  ;;  %v71_v39 = vld [vmem:[%s7675_s0 + $0x1a0] sm:$0xff]  ;;  %v96_v44 = vmul.f32 %v4096_v22, %v24_v30  ;;  %v1225_v24 = vld [vmem:[%s7674_s1 + $0x270] sm:$0xff] }
  0x12   :  { %1308 = vmatpush1.msra.mxu0 %v1154_v9  ;;  %3934 = vmatpush1.msra.mxu1 %v1154_v9  ;;  %7995 = vst [vmem:[#allocation4_spill] sm:$0xff] %v4190_v59  ;;  %7996 = vst [vmem:[#allocation5_spill] sm:$0xff] %v4194_v60  ;;  %v4212_v4 = vrot.slane %v225_v52, 7  ;;  %v273_v5 = vmax.f32 %v209_v53, 0.0  ;;  %v684_v9 = vrot.slane %v4186_v58, 1  ;;  %v430_v21 = vrot.slane %v274_v6, 7 }
  0x13   :  { %1309 = vmatprep.subr.mxu0 %v7680_v0  ;;  %3903 = vmatprep.subr.mxu1 %v7680_v0  ;;  %v144_v56 = vmul.f32 %v4096_v22, %v72_v40 }
  0x14   :  { %1310 = vmatpush1.msra.mxu0 %v1153_v10  ;;  %3935 = vmatpush1.msra.mxu1 %v1153_v10  ;;  %v804_v10 = vrot.slane %v4194_v60, 1  ;;  %v4239_v20 = vrot.slane %v273_v5, 7  ;;  %v166_v5 = vadd.f32 %v4113_v27, %v96_v44 }
  0x15   :  { %1311 = vmatprep.subr.mxu0 %v7680_v0  ;;  %3904 = vmatprep.subr.mxu1 %v7680_v0 }
  0x16   :  { %1312 = vmatpush1.msra.mxu0 %v1152_v11  ;;  %3936 = vmatpush1.msra.mxu1 %v1152_v11  ;;  %v805_v11 = vrot.slane %v4190_v59, 1  ;;  %7998 = vst [vmem:[#allocation7_spill] sm:$0xff] %v4239_v20  ;;  %v4292_v42 = vsel %vm354_vm0, 0.0, %v4239_v20 }
  0x17   :  { %1313 = vmatprep.subr.mxu0 %v7680_v0  ;;  %3905 = vmatprep.subr.mxu1 %v7680_v0  ;;  %8005 = vst [vmem:[#allocation12_spill] sm:$0xff] %v4292_v42 }
  0x18   :  { %1314 = vmatpush1.msra.mxu0 %v1151_v12  ;;  %3937 = vmatpush1.msra.mxu1 %v1151_v12  ;;  %v163_v12 = vadd.f32 %v4113_v27, %v93_v57 }
  0x19   :  { %1315 = vmatprep.subr.mxu0 %v7680_v0  ;;  %3906 = vmatprep.subr.mxu1 %v7680_v0 }
  0x1a   :  { %1316 = vmatpush1.msra.mxu0 %v1150_v13  ;;  %3938 = vmatpush1.msra.mxu1 %v1150_v13  ;;  %v358_v13 = vrot.slane %v226_v61, 7  ;;  %v227_v29 = vmax.f32 %v163_v12, 0.0  ;;  %v1193_v61 = vld [vmem:[%s7674_s1 + $0x170] sm:$0xff] }
  0x1b   :  { %1317 = vmatprep.subr.mxu0 %v7680_v0  ;;  %3907 = vmatprep.subr.mxu1 %v7680_v0 }
  0x1c   :  { %1318 = vmatpush1.msra.mxu0 %v1149_v14  ;;  %3939 = vmatpush1.msra.mxu1 %v1149_v14  ;;  %v141_v14 = vmul.f32 %v4096_v22, %v69_v2  ;;  %v4263_v31 = vsel %vm354_vm0, %v4212_v4, %v358_v13  ;;  %v4305_v50 = vsel %vm354_vm0, %v358_v13, 0.0  ;;  %v4310_v52 = vrot.slane %v227_v29, 7 }
  0x1d   :  { %1319 = vmatprep.subr.mxu0 %v7680_v0  ;;  %3908 = vmatprep.subr.mxu1 %v7680_v0  ;;  %v690_v49 = vrot.slane %v4263_v31, 1  ;;  %v165_v2 = vadd.f32 %v4113_v27, %v95_v38  ;;  %v230_v29 = vmax.f32 %v166_v5, 0.0  ;;  %v73_v38 = vld [vmem:[%s7675_s0 + $0x1b0] sm:$0xff] }
  0x1e   :  { %1320 = vmatpush1.msra.mxu0 %v1148_v15  ;;  %3940 = vmatpush1.msra.mxu1 %v1148_v15  ;;  %v142_v15 = vmul.f32 %v4096_v22, %v70_v3  ;;  %8007 = vst [vmem:[#allocation14_spill] sm:$0xff] %v4310_v52 }
  0x1f   :  { %1321 = vmatprep.subr.mxu0 %v7680_v0  ;;  %3909 = vmatprep.subr.mxu1 %v7680_v0 }
  0x20   :  { %1322 = vmatpush1.msra.mxu0 %v1147_v16  ;;  %3941 = vmatpush1.msra.mxu1 %v1147_v16  ;;  %v1164_v16 = vld [vmem:[%s7674_s1 + $0x88] sm:$0xff]  ;;  %v212_v33 = vadd.f32 %v4113_v27, %v142_v15  ;;  %v214_v15 = vadd.f32 %v4113_v27, %v144_v56  ;;  %v364_v56 = vrot.slane %v230_v29, 7 }
  0x21   :  { %1323 = vmatprep.subr.mxu0 %v7680_v0  ;;  %3910 = vmatprep.subr.mxu1 %v7680_v0 }
  0x22   :  { %1324 = vmatpush2.msra.mxu0 %v1178_v17  ;;  %3942 = vmatpush2.msra.mxu1 %v1178_v17  ;;  %v687_v17 = vrot.slane %v4204_v1, 1  ;;  %v276_v54 = vmax.f32 %v212_v33, 0.0 }
  0x23   :  { %1325 = vmatprep.subr.mxu0 %v7680_v0  ;;  %3911 = vmatprep.subr.mxu1 %v7680_v0 }
  0x24   :  { %1326 = vmatpush2.msra.mxu0 %v1177_v18  ;;  %3943 = vmatpush2.msra.mxu1 %v1177_v18  ;;  %v4233_v18 = vsel %vm354_vm0, %v427_v48, 0.0  ;;  %v1226_v48 = vld [vmem:[%s7674_s1 + $0x278] sm:$0xff]  ;;  %v433_v13 = vrot.slane %v276_v54, 7 }
  0x25   :  { %1327 = vmatprep.subr.mxu0 %v7680_v0  ;;  %3912 = vmatprep.subr.mxu1 %v7680_v0  ;;  %7997 = vst [vmem:[#allocation6_spill] sm:$0xff] %v4233_v18  ;;  %v807_v36 = vrot.slane %v4233_v18, 1 }
  0x26   :  { %1328 = vmatpush2.msra.mxu0 %v1176_v19  ;;  %3944 = vmatpush2.msra.mxu1 %v1176_v19  ;;  %v4237_v19 = vsel %vm354_vm0, 0.0, %v4212_v4  ;;  %v4410_v54 = vsel %vm354_vm0, %v433_v13, 0.0 }
  0x27   :  { %1329 = vmatprep.subr.mxu0 %v7680_v0  ;;  %3913 = vmatprep.subr.mxu1 %v7680_v0  ;;  %v689_v37 = vrot.slane %v4237_v19, 1  ;;  %v4325_v57 = vsel %vm683_vm1, %v805_v11, %v807_v36  ;;  %8016 = vst [vmem:[#allocation23_spill] sm:$0xff] %v4410_v54 }
  0x28   :  { %1330 = vmatpush2.msra.mxu0 %v1175_v23  ;;  %3945 = vmatpush2.msra.mxu1 %v1175_v23  ;;  %v164_v23 = vadd.f32 %v4113_v27, %v94_v7  ;;  %8008 = vst [vmem:[#allocation15_spill] sm:$0xff] %v4325_v57  ;;  %v692_v7 = vrot.slane %v4305_v50, 1 }
  0x29   :  { %1331 = vmatprep.subr.mxu0 %v7680_v0  ;;  %3914 = vmatprep.subr.mxu1 %v7680_v0  ;;  %v4337_v6 = vsel %vm683_vm1, %v689_v37, %v690_v49 }
  0x2a   :  { %1332 = vmatpush2.msra.mxu0 %v1174_v26  ;;  %3946 = vmatpush2.msra.mxu1 %v1174_v26  ;;  %v4251_v26 = vsel %vm683_vm1, %v684_v9, %v685_v63  ;;  %v228_v43 = vmax.f32 %v164_v23, 0.0  ;;  %v4343_v9 = vsel %vm354_vm0, 0.0, %v4310_v52  ;;  %v1191_v23 = vld [vmem:[%s7674_s1 + $0x160] sm:$0xff] }
  0x2b   :  { %1333 = vmatprep.subr.mxu0 %v7680_v0  ;;  %3915 = vmatprep.subr.mxu1 %v7680_v0  ;;  %7999 = vst [vmem:[#allocation8_spill] sm:$0xff] %v4251_v26  ;;  %v694_v36 = vrot.slane %v4343_v9, 1 }
  0x2c   :  { %1334 = vmatpush2.msra.mxu0 %v1173_v28  ;;  %3947 = vmatpush2.msra.mxu1 %v1173_v28  ;;  %v4256_v28 = vsel %vm683_vm1, %v804_v10, %v805_v11  ;;  %v361_v3 = vrot.slane %v228_v43, 7  ;;  %v25_v10 = vld [vmem:[%s7675_s0 + $0x30] sm:$0xff]  ;;  %v1192_v11 = vld [vmem:[%s7674_s1 + $0x168] sm:$0xff] }
  0x2d   :  { %1335 = vmatprep.subr.mxu0 %v7680_v0  ;;  %3916 = vmatprep.subr.mxu1 %v7680_v0  ;;  %8000 = vst [vmem:[#allocation9_spill] sm:$0xff] %v4256_v28  ;;  %v97_v30 = vmul.f32 %v4096_v22, %v25_v10 }
  0x2e   :  { %1336 = vmatpush2.msra.mxu0 %v1172_v32  ;;  %3948 = vmatpush2.msra.mxu1 %v1172_v32  ;;  %v211_v32 = vadd.f32 %v4113_v27, %v141_v14 }
  0x2f   :  { %1337 = vmatprep.subr.mxu0 %v7680_v0  ;;  %3917 = vmatprep.subr.mxu1 %v7680_v0 }
  0x30   :  { %1338 = vmatpush2.msra.mxu0 %v1171_v35  ;;  %3949 = vmatpush2.msra.mxu1 %v1171_v35  ;;  %v4275_v35 = vsel %vm683_vm1, %v685_v63, %v687_v17  ;;  %v275_v53 = vmax.f32 %v211_v32, 0.0  ;;  %v4379_v32 = vsel %vm683_vm1, %v690_v49, %v692_v7 }
  0x31   :  { %1339 = vmatprep.subr.mxu0 %v7680_v0  ;;  %3918 = vmatprep.subr.mxu1 %v7680_v0  ;;  %8003 = vst [vmem:[#allocation10_spill] sm:$0xff] %v4275_v35  ;;  %8012 = vst [vmem:[#allocation19_spill] sm:$0xff] %v4379_v32 }
  0x32   :  { %1340 = vmatpush2.msra.mxu0 %v1170_v41  ;;  %3950 = vmatpush2.msra.mxu1 %v1170_v41  ;;  %v4288_v41 = vsel %vm354_vm0, %v4239_v20, %v430_v21  ;;  %v4352_v12 = vrot.slane %v275_v53, 7  ;;  %v4407_v53 = vsel %vm354_vm0, %v361_v3, 0.0 }
  0x33   :  { %1341 = vmatprep.subr.mxu0 %v7680_v0  ;;  %3919 = vmatprep.subr.mxu1 %v7680_v0  ;;  %8004 = vst [vmem:[#allocation11_spill] sm:$0xff] %v4288_v41  ;;  %v810_v63 = vrot.slane %v4288_v41, 1 }
  0x34   :  { %1342 = vmatpush2.msra.mxu0 %v1169_v45  ;;  %3951 = vmatpush2.msra.mxu1 %v1169_v45  ;;  %v1194_v45 = vld [vmem:[%s7674_s1 + $0x178] sm:$0xff]  ;;  %8009 = vst [vmem:[#allocation16_spill] sm:$0xff] %v4352_v12  ;;  %v4396_v40 = vsel %vm354_vm0, %v4352_v12, %v433_v13  ;;  %v4400_v43 = vsel %vm354_vm0, 0.0, %v4352_v12  ;;  %v1188_v13 = vld [vmem:[%s7674_s1 + $0x148] sm:$0xff] }
  0x35   :  { %1343 = vmatprep.subr.mxu0 %v7680_v0  ;;  %3920 = vmatprep.subr.mxu1 %v7680_v0  ;;  %8014 = vst [vmem:[#allocation21_spill] sm:$0xff] %v4396_v40  ;;  %8015 = vst [vmem:[#allocation22_spill] sm:$0xff] %v4400_v43  ;;  %v815_v5 = vrot.slane %v4396_v40, 1 }
  0x36   :  { %1344 = vmatpush2.msra.mxu0 %v1168_v51  ;;  %3952 = vmatpush2.msra.mxu1 %v1168_v51  ;;  %v4308_v51 = vsel %vm354_vm0, %v430_v21, 0.0  ;;  %v229_v21 = vmax.f32 %v165_v2, 0.0  ;;  %v1189_v2 = vld [vmem:[%s7674_s1 + $0x150] sm:$0xff] }
  0x37   :  { %1345 = vmatprep.subr.mxu0 %v7680_v0  ;;  %3921 = vmatprep.subr.mxu1 %v7680_v0  ;;  %8006 = vst [vmem:[#allocation13_spill] sm:$0xff] %v4308_v51 }
  0x38   :  { %1346 = vmatpush2.msra.mxu0 %v1167_v55  ;;  %3953 = vmatpush2.msra.mxu1 %v1167_v55  ;;  %v143_v55 = vmul.f32 %v4096_v22, %v71_v39  ;;  %v74_v39 = vld [vmem:[%s7675_s0 + $0x1b8] sm:$0xff] }
  0x39   :  { %1347 = vmatprep.subr.mxu0 %v7680_v0  ;;  %3922 = vmatprep.subr.mxu1 %v7680_v0 }
  0x3a   :  { %1348 = vmatpush2.msra.mxu0 %v1166_v62  ;;  %3954 = vmatpush2.msra.mxu1 %v1166_v62  ;;  %v809_v62 = vrot.slane %v4292_v42, 1  ;;  %v213_v14 = vadd.f32 %v4113_v27, %v143_v55  ;;  %v4412_v55 = vrot.slane %v229_v21, 7 }
  0x3b   :  { %1349 = vmatprep.subr.mxu0 %v7680_v0  ;;  %3923 = vmatprep.subr.mxu1 %v7680_v0 }
  0x3c   :  { %1350 = vmatpush2.msra.mxu0 %v1165_v8  ;;  %3955 = vmatpush2.msra.mxu1 %v1165_v8  ;;  %v812_v8 = vrot.slane %v4308_v51, 1  ;;  %v4362_v17 = vsel %vm683_vm1, %v809_v62, %v810_v63  ;;  %v277_v44 = vmax.f32 %v213_v14, 0.0  ;;  %8017 = vst [vmem:[#allocation24_spill] sm:$0xff] %v4412_v55  ;;  %v145_v62 = vmul.f32 %v4096_v22, %v73_v38  ;;  %v1224_v14 = vld [vmem:[%s7674_s1 + $0x268] sm:$0xff]  ;;  %v1187_v38 = vld [vmem:[%s7674_s1 + $0x140] sm:$0xff] }
  0x3d   :  { %1351 = vmatprep.subr.mxu0 %v7680_v0  ;;  %3924 = vmatprep.subr.mxu1 %v7680_v0  ;;  %8010 = vst [vmem:[#allocation17_spill] sm:$0xff] %v4362_v17  ;;  %v4449_v21 = vsel %vm354_vm0, 0.0, %v4412_v55 }
  0x3e   :  { %1352 = vmatpush2.msra.mxu0 %v1164_v16  ;;  %3956 = vmatpush2.msra.mxu1 %v1164_v16  ;;  %v26_v16 = vld [vmem:[%s7675_s0 + $0x38] sm:$0xff]  ;;  %v4382_v33 = vsel %vm683_vm1, %v810_v63, %v812_v8  ;;  %v146_v63 = vmul.f32 %v4096_v22, %v74_v39  ;;  %v697_v8 = vrot.slane %v4407_v53, 1  ;;  %v4433_v10 = vrot.slane %v277_v44, 7 }
  0x3f   :  { %1353 = vmatprep.subr.mxu0 %v7680_v0  ;;  %3925 = vmatprep.subr.mxu1 %v7680_v0  ;;  %8013 = vst [vmem:[#allocation20_spill] sm:$0xff] %v4382_v33  ;;  %v98_v37 = vmul.f32 %v4096_v22, %v26_v16  ;;  %v817_v16 = vrot.slane %v4410_v54, 1  ;;  %v215_v29 = vadd.f32 %v4113_v27, %v145_v62  ;;  %v699_v62 = vrot.slane %v4449_v21, 1 }
  0x40   :  { %1354 = vmatpush2.msra.mxu0 %v1163_v25  ;;  %3957 = vmatpush2.msra.mxu1 %v1163_v25  ;;  %v4374_v25 = vsel %vm354_vm0, %v4310_v52, %v361_v3  ;;  %v814_v3 = vrot.slane %v4400_v43, 1  ;;  %8018 = vst [vmem:[#allocation25_spill] sm:$0xff] %v4433_v10 }
  0x41   :  { %1355 = vmatprep.mubr.f32.mxu0 %v4251_v26  ;;  %1595 = vmatprep.mubr.f32.mxu1 %v4256_v28  ;;  %8011 = vst [vmem:[#allocation18_spill] sm:$0xff] %v4374_v25  ;;  %v695_v49 = vrot.slane %v4374_v25, 1  ;;  %v168_v7 = vadd.f32 %v4113_v27, %v98_v37  ;;  %v77_v28 = vld [vmem:[%s7675_s0 + $0x1d0] sm:$0xff] }
  0x42   :  { %3495 = vmatmul.mubr.msk.f32.vlgmr.msra.gmra.mxu0 %vm4270_vm2, %v4160_v46  ;;  %3543 = vmatmul.mubr.msk.f32.vlgmr.msra.gmra.mxu1 %vm4270_vm2, %v4162_v47  ;;  %v4464_v37 = vsel %vm683_vm1, %v814_v3, %v815_v5  ;;  %v75_v3 = vld [vmem:[%s7675_s0 + $0x1c0] sm:$0xff]  ;;  %v149_v42 = vmul.f32 %v4096_v22, %v77_v28 }
  0x43   :  { %1676 = vmatprep.subr.mxu1 %v7680_v0  ;;  %2061 = vmatprep.subr.mxu0 %v7680_v0  ;;  %8021 = vst [vmem:[#allocation28_spill] sm:$0xff] %v4464_v37  ;;  %v232_v39 = vmax.f32 %v168_v7, 0.0  ;;  %v4470_v44 = vsel %vm683_vm1, %v695_v49, %v697_v8  ;;  %v76_v7 = vld [vmem:[%s7675_s0 + $0x1c8] sm:$0xff]  ;;  %v1186_v8 = vld [vmem:[%s7674_s1 + $0x138] sm:$0xff] }
  0x44   :  { %1677 = vmatpush1.msra.mxu1 %v1194_v45  ;;  %2062 = vmatpush1.msra.mxu0 %v1226_v48  ;;  %v278_v45 = vmax.f32 %v214_v15, 0.0  ;;  %v1190_v48 = vld [vmem:[%s7674_s1 + $0x158] sm:$0xff]  ;;  %v4444_v15 = vsel %vm683_vm1, %v694_v36, %v695_v49  ;;  %v27_v36 = vld [vmem:[%s7675_s0 + $0x40] sm:$0xff]  ;;  %8022 = vst [vmem:[#allocation29_spill] sm:$0xff] %v4470_v44 }
  0x45   :  { %1678 = vmatprep.subr.mxu1 %v7680_v0  ;;  %1360 = vmatprep.mubr.f32.mxu0 %v4275_v35  ;;  %8019 = vst [vmem:[#allocation26_spill] sm:$0xff] %v4444_v15 }
  0x46   :  { %1600 = vmatprep.mubr.f32.mxu1 %v4325_v57  ;;  %1679 = vmatpush1.msra.mxu1 %v1193_v61  ;;  %v167_v61 = vadd.f32 %v4113_v27, %v97_v30  ;;  %v216_v30 = vadd.f32 %v4113_v27, %v146_v63  ;;  %v4488_v63 = vsel %vm354_vm0, %v364_v56, 0.0 }
  0x47   :  { %1361 = vmatmul.mubr.f32.gmra.mxu0 %v4160_v46  ;;  %1601 = vmatmul.mubr.f32.gmra.mxu1 %v4190_v59 }
  0x48   :  { %1680 = vmatprep.subr.mxu1 %v7680_v0  ;;  %2063 = vmatprep.subr.mxu0 %v7680_v0 }
  0x49   :  { %1681 = vmatpush1.msra.mxu1 %v1192_v11  ;;  %1365 = vmatprep.mubr.f32.mxu0 %v4337_v6  ;;  %v436_v11 = vrot.slane %v278_v45, 7 }
  0x4a   :  { %1682 = vmatprep.subr.mxu1 %v7680_v0  ;;  %1605 = vmatprep.mubr.f32.mxu1 %v4362_v17 }
  0x4b   :  { %1683 = vmatpush1.msra.mxu1 %v1191_v23  ;;  %2064 = vmatpush1.msra.mxu0 %v1225_v24  ;;  %v4454_v23 = vsel %vm354_vm0, %v4412_v55, %v364_v56  ;;  %v231_v24 = vmax.f32 %v167_v61, 0.0  ;;  %v4474_v45 = vsel %vm354_vm0, %v4433_v10, %v436_v11  ;;  %v28_v61 = vld [vmem:[%s7675_s0 + $0x48] sm:$0xff]  ;;  %v4502_v56 = vsel %vm683_vm1, %v815_v5, %v817_v16 }
  0x4c   :  { %3497 = vmatmul.mubr.msk.f32.gmra.mxu0 %vm4270_vm2, %v4212_v4  ;;  %3545 = vmatmul.mubr.msk.f32.gmra.mxu1 %vm4270_vm2, %v4239_v20  ;;  %8020 = vst [vmem:[#allocation27_spill] sm:$0xff] %v4454_v23  ;;  %8023 = vst [vmem:[#allocation30_spill] sm:$0xff] %v4474_v45  ;;  %v700_v49 = vrot.slane %v4454_v23, 1  ;;  %v100_v5 = vmul.f32 %v4096_v22, %v28_v61  ;;  %v8027_v16 = vmov 0.0   ;;  %v702_v61 = vrot.slane %v4488_v63, 1 }
  0x4d   :  { %1684 = vmatprep.subr.mxu1 %v7680_v0  ;;  %1370 = vmatprep.mubr.f32.mxu0 %v4379_v32  ;;  %8025 = vst [vmem:[#allocation32_spill] sm:$0xff] %v4502_v56  ;;  %v4534_v17 = vsel %vm354_vm0, %v436_v11, 0.0 }
  0x4e   :  { %1685 = vmatpush1.msra.mxu1 %v1190_v48  ;;  %1610 = vmatprep.mubr.f32.mxu1 %v4382_v33  ;;  %v4478_v48 = vsel %vm354_vm0, 0.0, %v4433_v10  ;;  %v148_v33 = vmul.f32 %v4096_v22, %v76_v7  ;;  %8029 = vst [vmem:[#allocation35_spill] sm:$0xff] %v4534_v17  ;;  %v170_v57 = vadd.f32 %v4113_v27, %v100_v5  ;;  %v1183_v5 = vld [vmem:[%s7674_s1 + $0x120] sm:$0xff] }
  0x4f   :  { %1686 = vmatprep.subr.mxu1 %v7680_v0  ;;  %2065 = vmatprep.subr.mxu0 %v7680_v0  ;;  %8024 = vst [vmem:[#allocation31_spill] sm:$0xff] %v4478_v48 }
  0x50   :  { %1687 = vmatpush1.msra.mxu1 %v1189_v2  ;;  %1371 = vmatmul.mubr.f32.gmra.mxu0 %v4263_v31  ;;  %v99_v2 = vmul.f32 %v4096_v22, %v27_v36  ;;  %v280_v36 = vmax.f32 %v216_v30, 0.0  ;;  %v147_v30 = vmul.f32 %v4096_v22, %v75_v3 }
  0x51   :  { %1611 = vmatmul.mubr.f32.gmra.mxu1 %v4288_v41  ;;  %1688 = vmatprep.subr.mxu1 %v7680_v0 }
  0x52   :  { %1689 = vmatpush1.msra.mxu1 %v1188_v13  ;;  %2066 = vmatpush1.msra.mxu0 %v1224_v14  ;;  %v4504_v13 = vrot.slane %v231_v24, 7  ;;  %v279_v14 = vmax.f32 %v215_v29, 0.0  ;;  %v1185_v24 = vld [vmem:[%s7674_s1 + $0x130] sm:$0xff]  ;;  %v1223_v29 = vld [vmem:[%s7674_s1 + $0x260] sm:$0xff] }
  0x53   :  { %1690 = vmatprep.subr.mxu1 %v7680_v0  ;;  %1375 = vmatprep.mubr.f32.mxu0 %v4444_v15  ;;  %v169_v0 = vadd.f32 %v4113_v27, %v99_v2  ;;  %v8031_v2 = vrot.slane %v4474_v45, 1  ;;  %v919_v15 = vrot.slane %v4204_v1, 2 }
  0x54   :  { %1615 = vmatprep.mubr.f32.mxu1 %v4464_v37  ;;  %1691 = vmatpush1.msra.mxu1 %v1187_v38  ;;  %8026 = vst [vmem:[#allocation33_spill] sm:$0xff] %v4504_v13  ;;  %v819_v38 = vrot.slane %v4478_v48, 1  ;;  %v367_v37 = vrot.slane %v232_v39, 7  ;;  %v4527_v39 = vsel %vm683_vm1, %v699_v62, %v700_v49  ;;  %v4538_v3 = vsel %vm354_vm0, 0.0, %v4504_v13  ;;  %v1184_v62 = vld [vmem:[%s7674_s1 + $0x128] sm:$0xff]  ;;  %v78_v48 = vld [vmem:[%s7675_s0 + $0x1d8] sm:$0xff] }
  0x55   :  { %3499 = vmatmul.mubr.msk.f32.gmra.mxu0 %vm4270_vm2, %v4310_v52  ;;  %3547 = vmatmul.mubr.msk.f32.gmra.mxu1 %vm4270_vm2, %v4352_v12  ;;  %8028 = vst [vmem:[#allocation34_spill] sm:$0xff] %v4527_v39  ;;  %v4540_v7 = vrot.slane %v279_v14, 7  ;;  %v29_v14 = vld [vmem:[%s7675_s0 + $0x50] sm:$0xff]  ;;  %v150_v41 = vmul.f32 %v4096_v22, %v78_v48 }
  0x56   :  { %1692 = vmatprep.subr.mxu1 %v8027_v16  ;;  %2067 = vmatprep.subr.mxu0 %v8027_v16  ;;  %v4552_v11 = vsel %vm354_vm0, %v4504_v13, %v367_v37 }
  0x57   :  { %1693 = vmatpush1.msra.mxu1 %v1186_v8  ;;  %1380 = vmatprep.mubr.f32.mxu0 %v4470_v44  ;;  %8030 = vst [vmem:[#allocation36_spill] sm:$0xff] %v4540_v7  ;;  %v439_v8 = vrot.slane %v280_v36, 7  ;;  %8033 = vst [vmem:[#allocation38_spill] sm:$0xff] %v4552_v11  ;;  %v217_v36 = vadd.f32 %v4113_v27, %v147_v30  ;;  %v704_v30 = vrot.slane %v4538_v3, 1  ;;  %v705_v54 = vrot.slane %v4552_v11, 1 }
  0x58   :  { %1694 = vmatprep.subr.mxu1 %v8027_v16  ;;  %1620 = vmatprep.mubr.f32.mxu1 %v4502_v56  ;;  %v4548_v56 = vsel %vm683_vm1, %v819_v38, %v8031_v2  ;;  %v30_v38 = vld [vmem:[%s7675_s0 + $0x58] sm:$0xff]  ;;  %v822_v2 = vrot.slane %v4534_v17, 1  ;;  %v4601_v17 = vsel %vm354_vm0, %v367_v37, 0.0 }
  0x59   :  { %1695 = vmatpush1.msra.mxu1 %v1185_v24  ;;  %2068 = vmatpush1.msra.mxu0 %v1223_v29  ;;  %8032 = vst [vmem:[#allocation37_spill] sm:$0xff] %v4548_v56  ;;  %v218_v24 = vadd.f32 %v4113_v27, %v148_v33  ;;  %v4571_v29 = vsel %vm683_vm1, %v700_v49, %v702_v61  ;;  %v233_v33 = vmax.f32 %v169_v0, 0.0  ;;  %v4589_v0 = vsel %vm354_vm0, 0.0, %v4540_v7 }
  0x5a   :  { %1381 = vmatmul.mubr.f32.gmra.mxu0 %v4374_v25  ;;  %1621 = vmatmul.mubr.f32.gmra.mxu1 %v4396_v40  ;;  %8034 = vst [vmem:[#allocation39_spill] sm:$0xff] %v4571_v29  ;;  %v4585_v49 = vsel %vm354_vm0, %v4540_v7, %v439_v8  ;;  %8036 = vst [vmem:[#allocation41_spill] sm:$0xff] %v4589_v0  ;;  %v101_v61 = vmul.f32 %v4096_v22, %v29_v14  ;;  %v4604_v43 = vsel %vm354_vm0, %v439_v8, 0.0  ;;  %v1181_v8 = vld [vmem:[%s7674_s1 + $0x110] sm:$0xff] }
  0x5b   :  { %1696 = vmatprep.subr.mxu1 %v8027_v16  ;;  %1385 = vmatprep.mubr.f32.mxu0 %v4527_v39  ;;  %8035 = vst [vmem:[#allocation40_spill] sm:$0xff] %v4585_v49  ;;  %8037 = vst [vmem:[#allocation42_spill] sm:$0xff] %v4604_v43  ;;  %v234_v40 = vmax.f32 %v170_v57, 0.0  ;;  %v102_v14 = vmul.f32 %v4096_v22, %v30_v38  ;;  %v281_v51 = vmax.f32 %v217_v36, 0.0  ;;  %v282_v12 = vmax.f32 %v218_v24, 0.0 }
  0x5c   :  { %1697 = vmatpush1.msra.mxu1 %v1184_v62  ;;  %1625 = vmatprep.mubr.f32.mxu1 %v4548_v56  ;;  %v1182_v62 = vld [vmem:[%s7674_s1 + $0x118] sm:$0xff]  ;;  %v8038_v57 = vrot.slane %v4474_v45, 1  ;;  %v824_v36 = vrot.slane %v4589_v0, 1  ;;  %v825_v28 = vrot.slane %v4585_v49, 1  ;;  %v4627_v48 = vsel %vm683_vm1, %v704_v30, %v705_v54 }
  0x5d   :  { %1698 = vmatprep.subr.mxu1 %v8027_v16  ;;  %2069 = vmatprep.subr.mxu0 %v8027_v16  ;;  %v1222_v56 = vld [vmem:[%s7674_s1 + $0x258] sm:$0xff]  ;;  %8040 = vst [vmem:[#allocation44_spill] sm:$0xff] %v4627_v48  ;;  %v707_v24 = vrot.slane %v4601_v17, 1  ;;  %v171_v38 = vadd.f32 %v4113_v27, %v101_v61  ;;  %v172_v0 = vadd.f32 %v4113_v27, %v102_v14  ;;  %v4641_v30 = vrot.slane %v281_v51, 7  ;;  %v1221_v51 = vld [vmem:[%s7674_s1 + $0x250] sm:$0xff]  ;;  %v32_v14 = vld [vmem:[%s7675_s0 + $0x68] sm:$0xff] }
  0x5e   :  { %1699 = vmatpush1.msra.mxu1 %v1183_v5  ;;  %3501 = vmatmul.mubr.msk.f32.gmra.mxu0 %vm4270_vm2, %v4412_v55  ;;  %v4619_v37 = vsel %vm683_vm1, %v8038_v57, %v822_v2  ;;  %v827_v5 = vrot.slane %v4604_v43, 1  ;;  %v4634_v2 = vrot.slane %v233_v33, 7  ;;  %v370_v57 = vrot.slane %v234_v40, 7  ;;  %v1179_v33 = vld [vmem:[%s7674_s1 + $0x100] sm:$0xff] }
  0x5f   :  { %3549 = vmatmul.mubr.msk.f32.gmra.mxu1 %vm4270_vm2, %v4433_v10  ;;  %1700 = vmatprep.subr.mxu1 %v8027_v16  ;;  %8039 = vst [vmem:[#allocation43_spill] sm:$0xff] %v4619_v37  ;;  %8042 = vst [vmem:[#allocation46_spill] sm:$0xff] %v4641_v30  ;;  %v442_v61 = vrot.slane %v282_v12, 7  ;;  %v220_v10 = vadd.f32 %v4113_v27, %v150_v41  ;;  %v4648_v40 = vsel %vm683_vm1, %v824_v36, %v825_v28  ;;  %v31_v12 = vld [vmem:[%s7675_s0 + $0x60] sm:$0xff] }
  0x60   :  { %1701 = vmatpush1.msra.mxu1 %v1182_v62  ;;  %2070 = vmatpush1.msra.mxu0 %v1222_v56  ;;  %8041 = vst [vmem:[#allocation45_spill] sm:$0xff] %v4634_v2  ;;  %v1180_v56 = vld [vmem:[%s7674_s1 + $0x108] sm:$0xff]  ;;  %v219_v62 = vadd.f32 %v4113_v27, %v149_v42  ;;  %8043 = vst [vmem:[#allocation47_spill] sm:$0xff] %v4648_v40  ;;  %v4659_v41 = vsel %vm683_vm1, %v705_v54, %v707_v24  ;;  %v235_v42 = vmax.f32 %v171_v38, 0.0 }
  0x61   :  { %1702 = vmatprep.subr.mxu1 %v8027_v16  ;;  %1390 = vmatprep.mubr.f32.mxu0 %v4571_v29  ;;  %8044 = vst [vmem:[#allocation48_spill] sm:$0xff] %v4659_v41  ;;  %v4672_v36 = vsel %vm683_vm1, %v825_v28, %v827_v5  ;;  %v4676_v54 = vsel %vm354_vm0, %v4634_v2, %v370_v57  ;;  %v4680_v24 = vsel %vm354_vm0, 0.0, %v4634_v2  ;;  %v236_v38 = vmax.f32 %v172_v0, 0.0  ;;  %v1210_v0 = vld [vmem:[%s7674_s1 + $0x1f8] sm:$0xff] }
  0x62   :  { %1630 = vmatprep.mubr.f32.mxu1 %v4619_v37  ;;  %1703 = vmatpush1.msra.mxu1 %v1181_v8  ;;  %v79_v8 = vld [vmem:[%s7675_s0 + $0x1e0] sm:$0xff]  ;;  %8045 = vst [vmem:[#allocation49_spill] sm:$0xff] %v4672_v36  ;;  %8046 = vst [vmem:[#allocation50_spill] sm:$0xff] %v4676_v54  ;;  %v80_v37 = vld [vmem:[%s7675_s0 + $0x1e8] sm:$0xff]  ;;  %v4689_v28 = vsel %vm354_vm0, %v4641_v30, %v442_v61  ;;  %v4693_v5 = vsel %vm354_vm0, 0.0, %v4641_v30  ;;  %v284_v43 = vmax.f32 %v220_v10, 0.0 }
  0x63   :  { %1391 = vmatmul.mubr.f32.gmra.mxu0 %v4454_v23  ;;  %1631 = vmatmul.mubr.f32.gmra.mxu1 %v4474_v45  ;;  %8047 = vst [vmem:[#allocation51_spill] sm:$0xff] %v4689_v28  ;;  %8048 = vst [vmem:[#allocation52_spill] sm:$0xff] %v4693_v5  ;;  %v4699_v45 = vsel %vm354_vm0, %v370_v57, 0.0  ;;  %v104_v18 = vmul.f32 %v4096_v22, %v32_v14  ;;  %v151_v20 = vmul.f32 %v4096_v22, %v79_v8 }
  0x64   :  { %1704 = vmatprep.subr.mxu1 %v8027_v16  ;;  %2071 = vmatprep.subr.mxu0 %v8027_v16  ;;  %v709_v10 = vrot.slane %v4680_v24, 1  ;;  %v4712_v57 = vrot.slane %v235_v42, 7  ;;  %v830_v14 = vrot.slane %v4689_v28, 1  ;;  %v373_v8 = vrot.slane %v236_v38, 7  ;;  %v1220_v38 = vld [vmem:[%s7674_s1 + $0x248] sm:$0xff] }
  0x65   :  { %1705 = vmatpush1.msra.mxu1 %v1180_v56  ;;  %1395 = vmatprep.mubr.f32.mxu0 %v4627_v48  ;;  %v283_v56 = vmax.f32 %v219_v62, 0.0  ;;  %v710_v62 = vrot.slane %v4676_v54, 1  ;;  %v712_v42 = vrot.slane %v4699_v45, 1  ;;  %v445_v60 = vrot.slane %v284_v43, 7 }
  0x66   :  { %1706 = vmatprep.subr.mxu1 %v8027_v16  ;;  %1635 = vmatprep.mubr.f32.mxu1 %v4648_v40  ;;  %v103_v40 = vmul.f32 %v4096_v22, %v31_v12  ;;  %8049 = vst [vmem:[#allocation53_spill] sm:$0xff] %v4712_v57  ;;  %v829_v12 = vrot.slane %v4693_v5, 1  ;;  %v1208_v5 = vld [vmem:[%s7674_s1 + $0x1e8] sm:$0xff] }
  0x67   :  { %1707 = vmatpush1.msra.mxu1 %v1179_v33  ;;  %2072 = vmatpush1.msra.mxu0 %v1221_v51  ;;  %v152_v33 = vmul.f32 %v4096_v22, %v80_v37  ;;  %v1209_v51 = vld [vmem:[%s7674_s1 + $0x1f0] sm:$0xff]  ;;  %v4725_v37 = vsel %vm354_vm0, %v442_v61, 0.0  ;;  %v174_v61 = vadd.f32 %v4113_v27, %v104_v18  ;;  %v4742_v43 = vsel %vm683_vm1, %v709_v10, %v710_v62 }
  0x68   :  { %3503 = vmatmul.mubr.msk.f32.gmra.mxu0 %vm4270_vm2, %v4504_v13  ;;  %3551 = vmatmul.mubr.msk.f32.gmra.mxu1 %vm4270_vm2, %v4540_v7  ;;  %8050 = vst [vmem:[#allocation54_spill] sm:$0xff] %v4725_v37  ;;  %v4727_v7 = vrot.slane %v283_v56, 7  ;;  %v221_v56 = vadd.f32 %v4113_v27, %v151_v20  ;;  %8052 = vst [vmem:[#allocation56_spill] sm:$0xff] %v4742_v43  ;;  %v4752_v18 = vsel %vm683_vm1, %v829_v12, %v830_v14  ;;  %v1207_v20 = vld [vmem:[%s7674_s1 + $0x1e0] sm:$0xff] }
  0x69   :  { %1708 = vmatprep.subr.mxu1 %v8027_v16  ;;  %1400 = vmatprep.mubr.f32.mxu0 %v4659_v41  ;;  %v222_v59 = vadd.f32 %v4113_v27, %v152_v33  ;;  %8053 = vst [vmem:[#allocation57_spill] sm:$0xff] %v4752_v18  ;;  %v4760_v10 = vsel %vm354_vm0, %v4712_v57, %v373_v8  ;;  %v33_v33 = vld [vmem:[%s7675_s0 + $0x70] sm:$0xff] }
  0x6a   :  { %1709 = vmatpush2.msra.mxu1 %v1210_v0  ;;  %1640 = vmatprep.mubr.f32.mxu1 %v4672_v36  ;;  %8051 = vst [vmem:[#allocation55_spill] sm:$0xff] %v4727_v7  ;;  %v173_v0 = vadd.f32 %v4113_v27, %v103_v40  ;;  %v4746_v36 = vsel %vm354_vm0, 0.0, %v4712_v57  ;;  %v832_v40 = vrot.slane %v4725_v37, 1  ;;  %8054 = vst [vmem:[#allocation58_spill] sm:$0xff] %v4760_v10 }
  0x6b   :  { %1710 = vmatprep.subr.mxu1 %v8027_v16  ;;  %2073 = vmatprep.subr.mxu0 %v8027_v16  ;;  %v4769_v12 = vsel %vm683_vm1, %v710_v62, %v712_v42  ;;  %v4773_v37 = vsel %vm354_vm0, %v4727_v7, %v445_v60  ;;  %v714_v47 = vrot.slane %v4746_v36, 1  ;;  %v1206_v62 = vld [vmem:[%s7674_s1 + $0x1d8] sm:$0xff]  ;;  %v715_v42 = vrot.slane %v4760_v10, 1 }
  0x6c   :  { %1711 = vmatpush2.msra.mxu1 %v1209_v51  ;;  %1401 = vmatmul.mubr.f32.gmra.mxu0 %v4552_v11  ;;  %v34_v51 = vld [vmem:[%s7675_s0 + $0x78] sm:$0xff]  ;;  %8055 = vst [vmem:[#allocation59_spill] sm:$0xff] %v4769_v12  ;;  %8056 = vst [vmem:[#allocation60_spill] sm:$0xff] %v4773_v37  ;;  %v237_v41 = vmax.f32 %v173_v0, 0.0  ;;  %v286_v48 = vmax.f32 %v222_v59, 0.0  ;;  %v105_v29 = vmul.f32 %v4096_v22, %v33_v33  ;;  %v1205_v59 = vld [vmem:[%s7674_s1 + $0x1d0] sm:$0xff] }
  0x6d   :  { %1641 = vmatmul.mubr.f32.gmra.mxu1 %v4585_v49  ;;  %1712 = vmatprep.subr.mxu1 %v8027_v16  ;;  %v4777_v49 = vsel %vm354_vm0, 0.0, %v4727_v7  ;;  %v106_v39 = vmul.f32 %v4096_v22, %v34_v51  ;;  %v4796_v0 = vsel %vm683_vm1, %v830_v14, %v832_v40  ;;  %v4809_v33 = vsel %vm354_vm0, %v373_v8, 0.0 }
  0x6e   :  { %1713 = vmatpush2.msra.mxu1 %v1208_v5  ;;  %2074 = vmatpush1.msra.mxu0 %v1220_v38  ;;  %8057 = vst [vmem:[#allocation61_spill] sm:$0xff] %v4777_v49  ;;  %v238_v5 = vmax.f32 %v174_v61, 0.0  ;;  %v285_v38 = vmax.f32 %v221_v56, 0.0  ;;  %8058 = vst [vmem:[#allocation62_spill] sm:$0xff] %v4796_v0  ;;  %v834_v61 = vrot.slane %v4777_v49, 1  ;;  %v835_v56 = vrot.slane %v4773_v37, 1 }
  0x6f   :  { %1714 = vmatprep.subr.mxu1 %v8027_v16  ;;  %1405 = vmatprep.mubr.f32.mxu0 %v4742_v43  ;;  %v4813_v14 = vsel %vm354_vm0, %v445_v60, 0.0  ;;  %v4815_v40 = vrot.slane %v237_v41, 7  ;;  %v4822_v49 = vsel %vm683_vm1, %v714_v47, %v715_v42  ;;  %v448_v8 = vrot.slane %v286_v48, 7  ;;  %v35_v60 = vld [vmem:[%s7675_s0 + $0x80] sm:$0xff]  ;;  %v1204_v41 = vld [vmem:[%s7674_s1 + $0x1c8] sm:$0xff]  ;;  %v37_v43 = vld [vmem:[%s7675_s0 + $0x90] sm:$0xff] }
  0x70   :  { %1645 = vmatprep.mubr.f32.mxu1 %v4752_v18  ;;  %1715 = vmatpush2.msra.mxu1 %v1207_v20  ;;  %v1219_v20 = vld [vmem:[%s7674_s1 + $0x240] sm:$0xff]  ;;  %8059 = vst [vmem:[#allocation63_spill] sm:$0xff] %v4813_v14  ;;  %v376_v51 = vrot.slane %v238_v5, 7  ;;  %v4817_v18 = vrot.slane %v285_v38, 7  ;;  %8062 = vst [vmem:[#allocation66_spill] sm:$0xff] %v4822_v49  ;;  %v4833_v5 = vsel %vm683_vm1, %v834_v61, %v835_v56  ;;  %v717_v47 = vrot.slane %v4809_v33, 1 }
  0x71   :  { %3505 = vmatmul.mubr.msk.f32.gmra.mxu0 %vm4270_vm2, %v4634_v2  ;;  %3553 = vmatmul.mubr.msk.f32.gmra.mxu1 %vm4270_vm2, %v4641_v30  ;;  %8060 = vst [vmem:[#allocation64_spill] sm:$0xff] %v4815_v40  ;;  %v176_v30 = vadd.f32 %v4113_v27, %v106_v39  ;;  %8063 = vst [vmem:[#allocation67_spill] sm:$0xff] %v4833_v5  ;;  %v837_v39 = vrot.slane %v4813_v14, 1  ;;  %v1203_v48 = vld [vmem:[%s7674_s1 + $0x1c0] sm:$0xff]  ;;  %v4853_v61 = vsel %vm354_vm0, 0.0, %v4815_v40 }
  0x72   :  { %1716 = vmatprep.subr.mxu1 %v8027_v16  ;;  %2075 = vmatprep.subr.mxu0 %v8027_v16  ;;  %8061 = vst [vmem:[#allocation65_spill] sm:$0xff] %v4817_v18  ;;  %v4849_v38 = vsel %vm354_vm0, %v4815_v40, %v376_v51 }
  0x73   :  { %1717 = vmatpush2.msra.mxu1 %v1206_v62  ;;  %1410 = vmatprep.mubr.f32.mxu0 %v4769_v12  ;;  %v175_v62 = vadd.f32 %v4113_v27, %v105_v29  ;;  %v36_v29 = vld [vmem:[%s7675_s0 + $0x88] sm:$0xff]  ;;  %8064 = vst [vmem:[#allocation68_spill] sm:$0xff] %v4849_v38  ;;  %v1202_v12 = vld [vmem:[%s7674_s1 + $0x1b8] sm:$0xff] }
  0x74   :  { %1718 = vmatprep.subr.mxu1 %v8027_v16  ;;  %1650 = vmatprep.mubr.f32.mxu1 %v4796_v0  ;;  %v4863_v0 = vsel %vm354_vm0, %v4817_v18, %v448_v8 }
  0x75   :  { %1719 = vmatpush2.msra.mxu1 %v1205_v59  ;;  %2076 = vmatpush1.msra.mxu0 %v1219_v20  ;;  %v4857_v59 = vsel %vm354_vm0, 0.0, %v4817_v18  ;;  %v107_v20 = vmul.f32 %v4096_v22, %v35_v60  ;;  %8066 = vst [vmem:[#allocation70_spill] sm:$0xff] %v4863_v0  ;;  %v239_v14 = vmax.f32 %v175_v62, 0.0  ;;  %v1218_v60 = vld [vmem:[%s7674_s1 + $0x238] sm:$0xff]  ;;  %v720_v62 = vrot.slane %v4849_v38, 1 }
  0x76   :  { %1411 = vmatmul.mubr.f32.gmra.mxu0 %v4676_v54  ;;  %1651 = vmatmul.mubr.f32.gmra.mxu1 %v4689_v28  ;;  %8065 = vst [vmem:[#allocation69_spill] sm:$0xff] %v4857_v59  ;;  %v240_v28 = vmax.f32 %v176_v30, 0.0  ;;  %v719_v30 = vrot.slane %v4853_v61, 1 }
  0x77   :  { %1720 = vmatprep.subr.mxu1 %v8027_v16  ;;  %1415 = vmatprep.mubr.f32.mxu0 %v4822_v49  ;;  %v108_v49 = vmul.f32 %v4096_v22, %v36_v29  ;;  %v4881_v22 = vsel %vm683_vm1, %v835_v56, %v837_v39  ;;  %v4886_v29 = vsel %vm354_vm0, %v376_v51, 0.0  ;;  %v839_v56 = vrot.slane %v4857_v59, 1 }
  0x78   :  { %1721 = vmatpush2.msra.mxu1 %v1204_v41  ;;  %1655 = vmatprep.mubr.f32.mxu1 %v4833_v5  ;;  %v4875_v41 = vsel %vm683_vm1, %v715_v42, %v717_v47  ;;  %8068 = vst [vmem:[#allocation72_spill] sm:$0xff] %v4881_v22  ;;  %v1201_v42 = vld [vmem:[%s7674_s1 + $0x1b0] sm:$0xff]  ;;  %v840_v47 = vrot.slane %v4863_v0, 1  ;;  %v4898_v39 = vsel %vm354_vm0, %v448_v8, 0.0  ;;  %v177_v51 = vadd.f32 %v4113_v27, %v107_v20  ;;  %v38_v8 = vld [vmem:[%s7675_s0 + $0x98] sm:$0xff] }
  0x79   :  { %1722 = vmatprep.subr.mxu1 %v8027_v16  ;;  %2077 = vmatprep.subr.mxu0 %v8027_v16  ;;  %8067 = vst [vmem:[#allocation71_spill] sm:$0xff] %v4875_v41  ;;  %8069 = vst [vmem:[#allocation73_spill] sm:$0xff] %v4898_v39  ;;  %v379_v5 = vrot.slane %v240_v28, 7  ;;  %v1200_v28 = vld [vmem:[%s7674_s1 + $0x1a8] sm:$0xff] }
  0x7a   :  { %1723 = vmatpush2.msra.mxu1 %v1203_v48  ;;  %3507 = vmatmul.mubr.msk.f32.gmra.mxu0 %vm4270_vm2, %v4712_v57  ;;  %v4901_v48 = vrot.slane %v239_v14, 7  ;;  %v4924_v14 = vsel %vm683_vm1, %v839_v56, %v840_v47  ;;  %v241_v20 = vmax.f32 %v177_v51, 0.0  ;;  %v1217_v56 = vld [vmem:[%s7674_s1 + $0x230] sm:$0xff] }
  0x7b   :  { %3555 = vmatmul.mubr.msk.f32.gmra.mxu1 %vm4270_vm2, %v4727_v7  ;;  %1724 = vmatprep.subr.mxu1 %v8027_v16  ;;  %v178_v7 = vadd.f32 %v4113_v27, %v108_v49  ;;  %v4917_v27 = vsel %vm683_vm1, %v719_v30, %v720_v62  ;;  %v722_v49 = vrot.slane %v4886_v29, 1  ;;  %8072 = vst [vmem:[#allocation76_spill] sm:$0xff] %v4924_v14 }
  0x7c   :  { %1725 = vmatpush2.msra.mxu1 %v1202_v12  ;;  %2078 = vmatpush1.msra.mxu0 %v1218_v60  ;;  %8070 = vst [vmem:[#allocation74_spill] sm:$0xff] %v4901_v48  ;;  %8071 = vst [vmem:[#allocation75_spill] sm:$0xff] %v4917_v27  ;;  %v842_v12 = vrot.slane %v4898_v39, 1  ;;  %v4929_v60 = vld [vmem:[%s7676_s2] ss:$0 sm:$0xff]  ;;  %v4942_v51 = vsel %vm354_vm0, %v4901_v48, %v379_v5 }
  0x7d   :  { %1726 = vmatprep.subr.mxu1 %v8027_v16  ;;  %1420 = vmatprep.mubr.f32.mxu0 %v4875_v41  ;;  %v109_v30 = vmul.f32 %v4929_v60, %v37_v43  ;;  %8073 = vst [vmem:[#allocation77_spill] sm:$0xff] %v4942_v51  ;;  %v242_v43 = vmax.f32 %v178_v7, 0.0  ;;  %v110_v39 = vmul.f32 %v4929_v60, %v38_v8  ;;  %v1198_v7 = vld [vmem:[%s7674_s1 + $0x198] sm:$0xff] }
  0x7e   :  { %1660 = vmatprep.mubr.f32.mxu1 %v4881_v22  ;;  %1727 = vmatpush2.msra.mxu1 %v1201_v42  ;;  %v1199_v42 = vld [vmem:[%s7674_s1 + $0x1a0] sm:$0xff]  ;;  %v4946_v22 = vsel %vm354_vm0, 0.0, %v4901_v48  ;;  %v4953_v59 = vsel %vm683_vm1, %v720_v62, %v722_v49  ;;  %v4978_v49 = vsel %vm354_vm0, %v379_v5, 0.0  ;;  %v40_v5 = vld [vmem:[%s7675_s0 + $0xa8] sm:$0xff] }
  0x7f   :  { %1421 = vmatmul.mubr.f32.gmra.mxu0 %v4760_v10  ;;  %1661 = vmatmul.mubr.f32.gmra.mxu1 %v4773_v37  ;;  %8074 = vst [vmem:[#allocation78_spill] sm:$0xff] %v4953_v59  ;;  %v4956_v37 = vsel %vm683_vm1, %v840_v47, %v842_v12  ;;  %v724_v8 = vrot.slane %v4946_v22, 1  ;;  %v4968_v62 = vld [vmem:[%s7677_s3] ss:$0 sm:$0xff]  ;;  %v382_v12 = vrot.slane %v242_v43, 7  ;;  %v1196_v43 = vld [vmem:[%s7674_s1 + $0x188] sm:$0xff] }
  0x80   :  { %1728 = vmatprep.subr.mxu1 %v8027_v16  ;;  %2079 = vmatprep.subr.mxu0 %v8027_v16  ;;  %8075 = vst [vmem:[#allocation79_spill] sm:$0xff] %v4956_v37  ;;  %v179_v47 = vadd.f32 %v4968_v62, %v109_v30  ;;  %v1197_v30 = vld [vmem:[%s7674_s1 + $0x190] sm:$0xff] }
  0x81   :  { %1729 = vmatpush2.msra.mxu1 %v1200_v28  ;;  %1425 = vmatprep.mubr.f32.mxu0 %v4917_v27  ;;  %v725_v28 = vrot.slane %v4942_v51, 1  ;;  %v4963_v27 = vrot.slane %v241_v20, 7  ;;  %v180_v20 = vadd.f32 %v4968_v62, %v110_v39  ;;  %v917_v39 = vrot.slane %v4160_v46, 2 }
  0x82   :  { %1730 = vmatprep.subr.mxu1 %v8027_v16  ;;  %1665 = vmatprep.mubr.f32.mxu1 %v4924_v14  ;;  %v1216_v14 = vld [vmem:[%s7674_s1 + $0x228] sm:$0xff] }
  0x83   :  { %1731 = vmatpush2.msra.mxu1 %v1199_v42  ;;  %2080 = vmatpush1.msra.mxu0 %v1217_v56  ;;  %8076 = vst [vmem:[#allocation80_spill] sm:$0xff] %v4963_v27  ;;  %v39_v42 = vld [vmem:[%s7675_s0 + $0xa0] sm:$0xff]  ;;  %v916_v56 = vrot.slane %v4186_v58, 2  ;;  %v5004_v58 = vsel %vm683_vm1, %v724_v8, %v725_v28  ;;  %v244_v41 = vmax.f32 %v180_v20, 0.0  ;;  %v112_v8 = vmul.f32 %v4929_v60, %v40_v5 }
  0x84   :  { %3509 = vmatmul.mubr.msk.f32.gmra.mxu0 %vm4270_vm2, %v4815_v40  ;;  %3557 = vmatmul.mubr.msk.f32.gmra.mxu1 %vm4270_vm2, %v4817_v18  ;;  %8077 = vst [vmem:[#allocation81_spill] sm:$0xff] %v5004_v58  ;;  %v243_v18 = vmax.f32 %v179_v47, 0.0  ;;  %v111_v44 = vmul.f32 %v4929_v60, %v39_v42  ;;  %v1195_v47 = vld [vmem:[%s7674_s1 + $0x180] sm:$0xff]  ;;  %v5032_v5 = vsel %vm354_vm0, %v382_v12, 0.0 }
  0x85   :  { %1732 = vmatprep.subr.mxu1 %v8027_v16  ;;  %1430 = vmatprep.mubr.f32.mxu0 %v4953_v59  ;;  %v5014_v59 = vsel %vm354_vm0, %v4963_v27, %v382_v12  ;;  %v41_v12 = vld [vmem:[%s7675_s0 + $0xb0] sm:$0xff] }
  0x86   :  { %1733 = vmatpush2.msra.mxu1 %v1198_v7  ;;  %1670 = vmatprep.mubr.f32.mxu1 %v4956_v37  ;;  %v727_v7 = vrot.slane %v4978_v49, 1  ;;  %v5009_v37 = vsel %vm354_vm0, 0.0, %v4963_v27  ;;  %8078 = vst [vmem:[#allocation82_spill] sm:$0xff] %v5014_v59  ;;  %v730_v42 = vrot.slane %v5014_v59, 1 }
  0x87   :  { %1734 = vmatprep.subr.mxu1 %v8027_v16  ;;  %2081 = vmatprep.subr.mxu0 %v8027_v16  ;;  %v729_v20 = vrot.slane %v5009_v37, 1 }
  0x88   :  { %1735 = vmatpush2.msra.mxu1 %v1197_v30  ;;  %1431 = vmatmul.mubr.f32.gmra.mxu0 %v4849_v38  ;;  %v5024_v30 = vsel %vm915_vm3, %v916_v56, %v917_v39  ;;  %v5040_v1 = vsel %vm683_vm1, %v725_v28, %v727_v7  ;;  %v181_v56 = vadd.f32 %v4968_v62, %v111_v44  ;;  %v1258_v44 = vld [vmem:[%s7674_s1 + $0x378] sm:$0xff]  ;;  %v921_v28 = vrot.slane %v4237_v19, 2 }
  0x89   :  { %1671 = vmatmul.mubr.f32.gmra.mxu1 %v4863_v0  ;;  %1736 = vmatprep.subr.mxu1 %v8027_v16  ;;  %8079 = vst [vmem:[#allocation83_spill] sm:$0xff] %v5024_v30  ;;  %v5034_v0 = vrot.slane %v243_v18, 7  ;;  %8081 = vst [vmem:[#allocation85_spill] sm:$0xff] %v5040_v1  ;;  %v42_v18 = vld [vmem:[%s7675_s0 + $0xb8] sm:$0xff]  ;;  %v922_v7 = vrot.slane %v4263_v31, 2 }
  0x8a   :  { %1737 = vmatpush2.msra.mxu1 %v1196_v43  ;;  %2082 = vmatpush1.msra.mxu0 %v1216_v14  ;;  %v385_v14 = vrot.slane %v244_v41, 7  ;;  %v182_v43 = vadd.f32 %v4968_v62, %v112_v8  ;;  %v5063_v41 = vsel %vm915_vm3, %v917_v39, %v919_v15  ;;  %v732_v8 = vrot.slane %v5032_v5, 1 }
  0x8b   :  { %1738 = vmatprep.subr.mxu1 %v8027_v16  ;;  %1435 = vmatprep.mubr.f32.mxu0 %v5004_v58  ;;  %8080 = vst [vmem:[#allocation84_spill] sm:$0xff] %v5034_v0  ;;  %8082 = vst [vmem:[#allocation86_spill] sm:$0xff] %v5063_v41  ;;  %v5075_v58 = vsel %vm354_vm0, 0.0, %v5034_v0  ;;  %v113_v15 = vmul.f32 %v4929_v60, %v41_v12  ;;  %v114_v39 = vmul.f32 %v4929_v60, %v42_v18 }
  0x8c   :  { %1739 = vmatpush2.msra.mxu1 %v1195_v47  ;;  %3559 = vmatprep.mubr.msk.f32.mxu1 %vm4270_vm2, %v4212_v4  ;;  %v1215_v4 = vld [vmem:[%s7674_s1 + $0x220] sm:$0xff]  ;;  %v5071_v47 = vsel %vm683_vm1, %v729_v20, %v730_v42  ;;  %v5081_v19 = vsel %vm354_vm0, %v5034_v0, %v385_v14  ;;  %v246_v32 = vmax.f32 %v182_v43, 0.0  ;;  %v1257_v20 = vld [vmem:[%s7674_s1 + $0x370] sm:$0xff]  ;;  %v5099_v43 = vsel %vm683_vm1, %v730_v42, %v732_v8 }
  0x8d   :  { %3511 = vmatmul.mubr.msk.f32.gmra.mxu0 %vm4270_vm2, %v4901_v48  ;;  %1741 = vmatmul.mubr.f32.vlgmr.msra.gmra.mxu1 %v5024_v30  ;;  %8083 = vst [vmem:[#allocation87_spill] sm:$0xff] %v5071_v47  ;;  %8084 = vst [vmem:[#allocation88_spill] sm:$0xff] %v5081_v19  ;;  %v924_v12 = vrot.slane %v4305_v50, 2  ;;  %v734_v18 = vrot.slane %v5075_v58, 1  ;;  %v1213_v50 = vld [vmem:[%s7674_s1 + $0x210] sm:$0xff] }
  0x8e   :  { %2083 = vmatprep.subr.mxu0 %v8027_v16  ;;  %2446 = vmatprep.subr.mxu1 %v8027_v16  ;;  %8085 = vst [vmem:[#allocation89_spill] sm:$0xff] %v5099_v43  ;;  %v388_v8 = vrot.slane %v246_v32, 7 }
  0x8f   :  { %1440 = vmatprep.mubr.f32.mxu0 %v5040_v1  ;;  %1745 = vmatprep.mubr.f32.mxu1 %v4263_v31  ;;  %v245_v1 = vmax.f32 %v181_v56, 0.0  ;;  %v1214_v31 = vld [vmem:[%s7674_s1 + $0x218] sm:$0xff]  ;;  %v5096_v56 = vsel %vm915_vm3, %v921_v28, %v922_v7  ;;  %v184_v28 = vadd.f32 %v4968_v62, %v114_v39  ;;  %v5132_v32 = vsel %vm915_vm3, %v922_v7, %v924_v12 }
  0x90   :  { %2084 = vmatpush1.msra.mxu0 %v1215_v4  ;;  %2447 = vmatpush1.msra.mxu1 %v1258_v44  ;;  %v735_v4 = vrot.slane %v5081_v19, 1  ;;  %v5107_v44 = vsel %vm354_vm0, %v385_v14, 0.0  ;;  %v1256_v14 = vld [vmem:[%s7674_s1 + $0x368] sm:$0xff]  ;;  %8087 = vst [vmem:[#allocation91_spill] sm:$0xff] %v5132_v32  ;;  %v926_v39 = vrot.slane %v4343_v9, 2 }
  0x91   :  { %1441 = vmatmul.mubr.f32.gmra.mxu0 %v4942_v51  ;;  %1746 = vmatmul.mubr.f32.gmra.mxu1 %v5063_v41  ;;  %v5114_v42 = vrot.slane %v245_v1, 7  ;;  %v44_v1 = vld [vmem:[%s7675_s0 + $0xc8] sm:$0xff] }
  0x92   :  { %1445 = vmatprep.mubr.f32.mxu0 %v5071_v47  ;;  %3561 = vmatprep.mubr.msk.f32.mxu1 %vm4270_vm2, %v4310_v52  ;;  %v183_v52 = vadd.f32 %v4968_v62, %v113_v15  ;;  %v43_v15 = vld [vmem:[%s7675_s0 + $0xc0] sm:$0xff]  ;;  %v5139_v47 = vsel %vm683_vm1, %v734_v18, %v735_v4 }
  0x93   :  { %2085 = vmatprep.subr.mxu0 %v8027_v16  ;;  %2448 = vmatprep.subr.mxu1 %v8027_v16  ;;  %8086 = vst [vmem:[#allocation90_spill] sm:$0xff] %v5114_v42  ;;  %8088 = vst [vmem:[#allocation92_spill] sm:$0xff] %v5139_v47  ;;  %v5144_v7 = vsel %vm354_vm0, %v5114_v42, %v388_v8  ;;  %v5148_v9 = vsel %vm354_vm0, 0.0, %v5114_v42  ;;  %v115_v12 = vmul.f32 %v4929_v60, %v43_v15  ;;  %v1255_v18 = vld [vmem:[%s7674_s1 + $0x360] sm:$0xff] }
  0x94   :  { %2086 = vmatpush1.msra.mxu0 %v1214_v31  ;;  %2449 = vmatpush1.msra.mxu1 %v1257_v20  ;;  %v927_v31 = vrot.slane %v4374_v25, 2  ;;  %v737_v20 = vrot.slane %v5107_v44, 1  ;;  %v247_v41 = vmax.f32 %v183_v52, 0.0  ;;  %8089 = vst [vmem:[#allocation93_spill] sm:$0xff] %v5144_v7  ;;  %v1212_v52 = vld [vmem:[%s7674_s1 + $0x208] sm:$0xff]  ;;  %v739_v15 = vrot.slane %v5148_v9, 1 }
  0x95   :  { %3513 = vmatmul.mubr.msk.f32.gmra.mxu0 %vm4270_vm2, %v4963_v27  ;;  %1751 = vmatmul.mubr.f32.gmra.mxu1 %v5096_v56 }
  0x96   :  { %1450 = vmatprep.mubr.f32.mxu0 %v5099_v43  ;;  %1755 = vmatprep.mubr.f32.mxu1 %v4374_v25  ;;  %v248_v43 = vmax.f32 %v184_v28, 0.0  ;;  %v116_v25 = vmul.f32 %v4929_v60, %v44_v1  ;;  %v5165_v28 = vsel %vm915_vm3, %v926_v39, %v927_v31  ;;  %v740_v1 = vrot.slane %v5144_v7, 1 }
  0x97   :  { %2087 = vmatprep.subr.mxu0 %v8027_v16  ;;  %2450 = vmatprep.subr.mxu1 %v8027_v16  ;;  %8090 = vst [vmem:[#allocation94_spill] sm:$0xff] %v5165_v28  ;;  %v5178_v39 = vsel %vm354_vm0, %v388_v8, 0.0 }
  0x98   :  { %2088 = vmatpush1.msra.mxu0 %v1213_v50  ;;  %2451 = vmatpush1.msra.mxu1 %v1256_v14  ;;  %v5168_v50 = vsel %vm683_vm1, %v735_v4, %v737_v20  ;;  %v929_v14 = vrot.slane %v4407_v53, 2  ;;  %v185_v4 = vadd.f32 %v4968_v62, %v115_v12  ;;  %v186_v53 = vadd.f32 %v4968_v62, %v116_v25  ;;  %v45_v20 = vld [vmem:[%s7675_s0 + $0xd0] sm:$0xff]  ;;  %v46_v25 = vld [vmem:[%s7675_s0 + $0xd8] sm:$0xff] }
  0x99   :  { %1451 = vmatmul.mubr.f32.gmra.mxu0 %v5014_v59  ;;  %1756 = vmatmul.mubr.f32.gmra.mxu1 %v5132_v32  ;;  %8091 = vst [vmem:[#allocation95_spill] sm:$0xff] %v5168_v50  ;;  %v391_v32 = vrot.slane %v248_v43, 7  ;;  %v1254_v43 = vld [vmem:[%s7674_s1 + $0x358] sm:$0xff]  ;;  %v931_v12 = vrot.slane %v4449_v21, 2 }
  0x9a   :  { %1455 = vmatprep.mubr.f32.mxu0 %v5139_v47  ;;  %3563 = vmatprep.mubr.msk.f32.mxu1 %vm4270_vm2, %v4412_v55  ;;  %v5175_v47 = vrot.slane %v247_v41, 7  ;;  %v1211_v41 = vld [vmem:[%s7674_s1 + $0x200] sm:$0xff]  ;;  %v5201_v8 = vsel %vm915_vm3, %v927_v31, %v929_v14  ;;  %v742_v55 = vrot.slane %v5178_v39, 1  ;;  %v117_v31 = vmul.f32 %v4929_v60, %v45_v20  ;;  %v1253_v20 = vld [vmem:[%s7674_s1 + $0x350] sm:$0xff] }
  0x9b   :  { %2089 = vmatprep.subr.mxu0 %v8027_v16  ;;  %2452 = vmatprep.subr.mxu1 %v8027_v16  ;;  %8093 = vst [vmem:[#allocation97_spill] sm:$0xff] %v5201_v8  ;;  %v249_v14 = vmax.f32 %v185_v4, 0.0 }
  0x9c   :  { %8092 = vst [vmem:[#allocation96_spill] sm:$0xff] %v5175_v47  ;;  %2090 = vmatpush1.msra.mxu0 %v1212_v52  ;;  %2453 = vmatpush1.msra.mxu1 %v1255_v18  ;;  %v932_v52 = vrot.slane %v4454_v23, 2  ;;  %v5206_v18 = vsel %vm683_vm1, %v739_v15, %v740_v1  ;;  %v5218_v21 = vsel %vm354_vm0, 0.0, %v5175_v47  ;;  %v250_v15 = vmax.f32 %v186_v53, 0.0 }
  0x9d   :  { %3515 = vmatmul.mubr.msk.f32.gmra.mxu0 %vm4270_vm2, %v5034_v0  ;;  %1761 = vmatmul.mubr.f32.gmra.mxu1 %v5165_v28  ;;  %8094 = vst [vmem:[#allocation98_spill] sm:$0xff] %v5206_v18  ;;  %v5212_v28 = vsel %vm354_vm0, %v5175_v47, %v391_v32  ;;  %v934_v53 = vrot.slane %v4488_v63, 2 }
  0x9e   :  { %1460 = vmatprep.mubr.f32.mxu0 %v5168_v50  ;;  %1765 = vmatprep.mubr.f32.mxu1 %v4454_v23  ;;  %8095 = vst [vmem:[#allocation99_spill] sm:$0xff] %v5212_v28  ;;  %v118_v23 = vmul.f32 %v4929_v60, %v46_v25  ;;  %v1242_v50 = vld [vmem:[%s7674_s1 + $0x2f8] sm:$0xff]  ;;  %v5234_v4 = vsel %vm915_vm3, %v931_v12, %v932_v52  ;;  %v745_v25 = vrot.slane %v5212_v28, 1  ;;  %v5248_v12 = vrot.slane %v249_v14, 7 }
  0x9f   :  { %2091 = vmatprep.subr.mxu0 %v8027_v16  ;;  %2454 = vmatprep.subr.mxu1 %v8027_v16  ;;  %8096 = vst [vmem:[#allocation100_spill] sm:$0xff] %v5234_v4  ;;  %v394_v63 = vrot.slane %v250_v15, 7  ;;  %v936_v14 = vrot.slane %v4538_v3, 2  ;;  %v937_v15 = vrot.slane %v4552_v11, 2 }
  0xa0   :  { %2092 = vmatpush1.msra.mxu0 %v1211_v41  ;;  %2455 = vmatpush1.msra.mxu1 %v1254_v43  ;;  %v5238_v41 = vsel %vm683_vm1, %v740_v1, %v742_v55  ;;  %v744_v43 = vrot.slane %v5218_v21, 1  ;;  %8098 = vst [vmem:[#allocation102_spill] sm:$0xff] %v5248_v12  ;;  %v188_v55 = vadd.f32 %v4968_v62, %v118_v23  ;;  %v47_v1 = vld [vmem:[%s7675_s0 + $0xe0] sm:$0xff]  ;;  %v48_v23 = vld [vmem:[%s7675_s0 + $0xe8] sm:$0xff]  ;;  %v5287_v3 = vsel %vm354_vm0, 0.0, %v5248_v12 }
  0xa1   :  { %1461 = vmatmul.mubr.f32.gmra.mxu0 %v5081_v19  ;;  %1766 = vmatmul.mubr.f32.gmra.mxu1 %v5201_v8  ;;  %8097 = vst [vmem:[#allocation101_spill] sm:$0xff] %v5238_v41 }
  0xa2   :  { %1465 = vmatprep.mubr.f32.mxu0 %v5206_v18  ;;  %3565 = vmatprep.mubr.msk.f32.mxu1 %vm4270_vm2, %v4504_v13  ;;  %v187_v18 = vadd.f32 %v4968_v62, %v117_v31  ;;  %v5246_v13 = vsel %vm354_vm0, %v391_v32, 0.0  ;;  %v1241_v32 = vld [vmem:[%s7674_s1 + $0x2f0] sm:$0xff]  ;;  %v5270_v31 = vsel %vm915_vm3, %v932_v52, %v934_v53  ;;  %v5283_v52 = vsel %vm354_vm0, %v5248_v12, %v394_v63 }
  0xa3   :  { %2093 = vmatprep.subr.mxu0 %v8027_v16  ;;  %2456 = vmatprep.subr.mxu1 %v8027_v16  ;;  %8099 = vst [vmem:[#allocation103_spill] sm:$0xff] %v5270_v31  ;;  %8101 = vst [vmem:[#allocation105_spill] sm:$0xff] %v5283_v52  ;;  %v252_v53 = vmax.f32 %v188_v55, 0.0  ;;  %v5303_v55 = vsel %vm915_vm3, %v936_v14, %v937_v15 }
  0xa4   :  { %2094 = vmatpush2.msra.mxu0 %v1242_v50  ;;  %2457 = vmatpush1.msra.mxu1 %v1253_v20  ;;  %v1252_v50 = vld [vmem:[%s7674_s1 + $0x348] sm:$0xff]  ;;  %v5275_v20 = vsel %vm683_vm1, %v744_v43, %v745_v25  ;;  %v251_v8 = vmax.f32 %v187_v18, 0.0  ;;  %v120_v43 = vmul.f32 %v4929_v60, %v48_v23  ;;  %8102 = vst [vmem:[#allocation106_spill] sm:$0xff] %v5303_v55  ;;  %v749_v23 = vrot.slane %v5287_v3, 1 }
  0xa5   :  { %3517 = vmatmul.mubr.msk.f32.gmra.mxu0 %vm4270_vm2, %v5114_v42  ;;  %1771 = vmatmul.mubr.f32.gmra.mxu1 %v5234_v4  ;;  %8100 = vst [vmem:[#allocation104_spill] sm:$0xff] %v5275_v20  ;;  %v747_v4 = vrot.slane %v5246_v13, 1  ;;  %v1240_v18 = vld [vmem:[%s7674_s1 + $0x2e8] sm:$0xff]  ;;  %v397_v14 = vrot.slane %v252_v53, 7  ;;  %v942_v53 = vrot.slane %v4676_v54, 2 }
  0xa6   :  { %1470 = vmatprep.mubr.f32.mxu0 %v5238_v41  ;;  %1775 = vmatprep.mubr.f32.mxu1 %v4552_v11  ;;  %v119_v41 = vmul.f32 %v4929_v60, %v47_v1  ;;  %v1251_v1 = vld [vmem:[%s7674_s1 + $0x340] sm:$0xff]  ;;  %v750_v11 = vrot.slane %v5283_v52, 1 }
  0xa7   :  { %2095 = vmatprep.subr.mxu0 %v8027_v16  ;;  %2458 = vmatprep.subr.mxu1 %v8027_v16 }
  0xa8   :  { %2096 = vmatpush2.msra.mxu0 %v1241_v32  ;;  %2459 = vmatpush1.msra.mxu1 %v1252_v50  ;;  %v939_v32 = vrot.slane %v4601_v17, 2  ;;  %v5307_v50 = vsel %vm683_vm1, %v745_v25, %v747_v4  ;;  %v189_v17 = vadd.f32 %v4968_v62, %v119_v41  ;;  %v190_v4 = vadd.f32 %v4968_v62, %v120_v43  ;;  %v1239_v25 = vld [vmem:[%s7674_s1 + $0x2e0] sm:$0xff] }
  0xa9   :  { %1471 = vmatmul.mubr.f32.gmra.mxu0 %v5144_v7  ;;  %1776 = vmatmul.mubr.f32.gmra.mxu1 %v5270_v31  ;;  %8103 = vst [vmem:[#allocation107_spill] sm:$0xff] %v5307_v50  ;;  %v5312_v31 = vsel %vm354_vm0, %v394_v63, 0.0  ;;  %v941_v63 = vrot.slane %v4680_v24, 2  ;;  %v5338_v43 = vsel %vm683_vm1, %v749_v23, %v750_v11  ;;  %v1238_v23 = vld [vmem:[%s7674_s1 + $0x2d8] sm:$0xff] }
  0xaa   :  { %1475 = vmatprep.mubr.f32.mxu0 %v5275_v20  ;;  %3567 = vmatprep.mubr.msk.f32.mxu1 %vm4270_vm2, %v4634_v2  ;;  %v5316_v2 = vrot.slane %v251_v8, 7  ;;  %v1250_v8 = vld [vmem:[%s7674_s1 + $0x338] sm:$0xff]  ;;  %v5333_v41 = vsel %vm915_vm3, %v937_v15, %v939_v32  ;;  %8106 = vst [vmem:[#allocation110_spill] sm:$0xff] %v5338_v43  ;;  %v253_v24 = vmax.f32 %v189_v17, 0.0  ;;  %v254_v32 = vmax.f32 %v190_v4, 0.0 }
  0xab   :  { %2097 = vmatprep.subr.mxu0 %v8027_v16  ;;  %2460 = vmatprep.subr.mxu1 %v8027_v16  ;;  %8105 = vst [vmem:[#allocation109_spill] sm:$0xff] %v5333_v41  ;;  %v5364_v17 = vsel %vm915_vm3, %v941_v63, %v942_v53  ;;  %v944_v4 = vrot.slane %v4699_v45, 2  ;;  %v51_v45 = vld [vmem:[%s7675_s0 + $0x100] sm:$0xff] }
  0xac   :  { %2098 = vmatpush2.msra.mxu0 %v1240_v18  ;;  %8104 = vst [vmem:[#allocation108_spill] sm:$0xff] %v5316_v2  ;;  %2461 = vmatpush1.msra.mxu1 %v1251_v1  ;;  %v752_v18 = vrot.slane %v5312_v31, 1  ;;  %v5345_v1 = vsel %vm354_vm0, %v5316_v2, %v397_v14  ;;  %v5349_v15 = vsel %vm354_vm0, 0.0, %v5316_v2  ;;  %8108 = vst [vmem:[#allocation112_spill] sm:$0xff] %v5364_v17  ;;  %v400_v63 = vrot.slane %v254_v32, 7 }
  0xad   :  { %3519 = vmatmul.mubr.msk.f32.gmra.mxu0 %vm4270_vm2, %v5175_v47  ;;  %1781 = vmatmul.mubr.f32.gmra.mxu1 %v5303_v55  ;;  %8107 = vst [vmem:[#allocation111_spill] sm:$0xff] %v5345_v1  ;;  %v947_v32 = vrot.slane %v4760_v10, 2 }
  0xae   :  { %1480 = vmatprep.mubr.f32.mxu0 %v5307_v50  ;;  %1785 = vmatprep.mubr.f32.mxu1 %v4676_v54  ;;  %v1249_v54 = vld [vmem:[%s7674_s1 + $0x330] sm:$0xff]  ;;  %v755_v50 = vrot.slane %v5345_v1, 1 }
  0xaf   :  { %2099 = vmatprep.subr.mxu0 %v8027_v16  ;;  %2462 = vmatprep.subr.mxu1 %v8027_v16 }
  0xb0   :  { %2100 = vmatpush2.msra.mxu0 %v1239_v25  ;;  %2463 = vmatpush1.msra.mxu1 %v1250_v8  ;;  %v5368_v25 = vsel %vm683_vm1, %v750_v11, %v752_v18  ;;  %v754_v8 = vrot.slane %v5349_v15, 1  ;;  %v1237_v11 = vld [vmem:[%s7674_s1 + $0x2d0] sm:$0xff]  ;;  %v1248_v18 = vld [vmem:[%s7674_s1 + $0x328] sm:$0xff] }
  0xb1   :  { %1481 = vmatmul.mubr.f32.gmra.mxu0 %v5212_v28  ;;  %1786 = vmatmul.mubr.f32.gmra.mxu1 %v5333_v41  ;;  %8109 = vst [vmem:[#allocation113_spill] sm:$0xff] %v5368_v25 }
  0xb2   :  { %1485 = vmatprep.mubr.f32.mxu0 %v5338_v43  ;;  %3569 = vmatprep.mubr.msk.f32.mxu1 %vm4270_vm2, %v4712_v57  ;;  %v5375_v43 = vsel %vm354_vm0, %v397_v14, 0.0  ;;  %v5377_v57 = vrot.slane %v253_v24, 7  ;;  %v52_v14 = vld [vmem:[%s7675_s0 + $0x108] sm:$0xff]  ;;  %v946_v24 = vrot.slane %v4746_v36, 2  ;;  %v123_v36 = vmul.f32 %v4929_v60, %v51_v45 }
  0xb3   :  { %2101 = vmatprep.subr.mxu0 %v8027_v16  ;;  %2464 = vmatprep.subr.mxu1 %v8027_v16  ;;  %v757_v20 = vrot.slane %v5375_v43, 1 }
  0xb4   :  { %8110 = vst [vmem:[#allocation114_spill] sm:$0xff] %v5377_v57  ;;  %2102 = vmatpush2.msra.mxu0 %v1238_v23  ;;  %2465 = vmatpush1.msra.mxu1 %v1249_v54  ;;  %v5398_v54 = vsel %vm915_vm3, %v942_v53, %v944_v4  ;;  %v5403_v23 = vsel %vm683_vm1, %v754_v8, %v755_v50  ;;  %v5414_v53 = vsel %vm354_vm0, 0.0, %v5377_v57  ;;  %v1236_v8 = vld [vmem:[%s7674_s1 + $0x2c8] sm:$0xff] }
  0xb5   :  { %3521 = vmatmul.mubr.msk.f32.gmra.mxu0 %vm4270_vm2, %v5248_v12  ;;  %1791 = vmatmul.mubr.f32.gmra.mxu1 %v5364_v17  ;;  %8111 = vst [vmem:[#allocation115_spill] sm:$0xff] %v5398_v54  ;;  %8112 = vst [vmem:[#allocation116_spill] sm:$0xff] %v5403_v23  ;;  %v124_v4 = vmul.f32 %v4929_v60, %v52_v14  ;;  %v5431_v45 = vsel %vm915_vm3, %v946_v24, %v947_v32 }
  0xb6   :  { %1490 = vmatprep.mubr.f32.mxu0 %v5368_v25  ;;  %1795 = vmatprep.mubr.f32.mxu1 %v4760_v10  ;;  %v5410_v25 = vsel %vm354_vm0, %v5377_v57, %v400_v63  ;;  %v1247_v10 = vld [vmem:[%s7674_s1 + $0x320] sm:$0xff]  ;;  %8114 = vst [vmem:[#allocation118_spill] sm:$0xff] %v5431_v45  ;;  %v5435_v14 = vsel %vm683_vm1, %v755_v50, %v757_v20  ;;  %v54_v50 = vld [vmem:[%s7675_s0 + $0x118] sm:$0xff] }
  0xb7   :  { %2103 = vmatprep.subr.mxu0 %v8027_v16  ;;  %2466 = vmatprep.subr.mxu1 %v8027_v16  ;;  %8113 = vst [vmem:[#allocation117_spill] sm:$0xff] %v5410_v25  ;;  %8115 = vst [vmem:[#allocation119_spill] sm:$0xff] %v5435_v14  ;;  %v193_v24 = vadd.f32 %v4968_v62, %v123_v36  ;;  %v1235_v20 = vld [vmem:[%s7674_s1 + $0x2c0] sm:$0xff]  ;;  %v951_v36 = vrot.slane %v4853_v61, 2  ;;  %v1234_v61 = vld [vmem:[%s7674_s1 + $0x2b8] sm:$0xff] }
  0xb8   :  { %2104 = vmatpush2.msra.mxu0 %v1237_v11  ;;  %2467 = vmatpush1.msra.mxu1 %v1248_v18  ;;  %v949_v11 = vrot.slane %v4809_v33, 2  ;;  %v759_v18 = vrot.slane %v5414_v53, 1  ;;  %v53_v33 = vld [vmem:[%s7675_s0 + $0x110] sm:$0xff] }
  0xb9   :  { %1491 = vmatmul.mubr.f32.gmra.mxu0 %v5283_v52  ;;  %1796 = vmatmul.mubr.f32.gmra.mxu1 %v5398_v54  ;;  %v760_v54 = vrot.slane %v5410_v25, 1  ;;  %v125_v17 = vmul.f32 %v4929_v60, %v53_v33 }
  0xba   :  { %1495 = vmatprep.mubr.f32.mxu0 %v5403_v23  ;;  %3571 = vmatprep.mubr.msk.f32.mxu1 %vm4270_vm2, %v4815_v40  ;;  %v5442_v23 = vsel %vm354_vm0, %v400_v63, 0.0  ;;  %v194_v40 = vadd.f32 %v4968_v62, %v124_v4  ;;  %v1246_v63 = vld [vmem:[%s7674_s1 + $0x318] sm:$0xff]  ;;  %v952_v4 = vrot.slane %v4849_v38, 2 }
  0xbb   :  { %2105 = vmatprep.subr.mxu0 %v8027_v16  ;;  %2468 = vmatprep.subr.mxu1 %v8027_v16  ;;  %v195_v33 = vadd.f32 %v4968_v62, %v125_v17  ;;  %v1244_v17 = vld [vmem:[%s7674_s1 + $0x308] sm:$0xff] }
  0xbc   :  { %2106 = vmatpush2.msra.mxu0 %v1236_v8  ;;  %2469 = vmatpush1.msra.mxu1 %v1247_v10  ;;  %v5465_v10 = vsel %vm915_vm3, %v947_v32, %v949_v11  ;;  %v5470_v8 = vsel %vm683_vm1, %v759_v18, %v760_v54  ;;  %v258_v41 = vmax.f32 %v194_v40, 0.0  ;;  %v126_v32 = vmul.f32 %v4929_v60, %v54_v50  ;;  %v1245_v11 = vld [vmem:[%s7674_s1 + $0x310] sm:$0xff] }
  0xbd   :  { %3523 = vmatmul.mubr.msk.f32.gmra.mxu0 %vm4270_vm2, %v5316_v2  ;;  %1801 = vmatmul.mubr.f32.gmra.mxu1 %v5431_v45  ;;  %8116 = vst [vmem:[#allocation120_spill] sm:$0xff] %v5465_v10  ;;  %8117 = vst [vmem:[#allocation121_spill] sm:$0xff] %v5470_v8  ;;  %v762_v45 = vrot.slane %v5442_v23, 1  ;;  %v5490_v40 = vsel %vm915_vm3, %v951_v36, %v952_v4  ;;  %v954_v18 = vrot.slane %v4886_v29, 2  ;;  %v55_v36 = vld [vmem:[%s7675_s0 + $0x120] sm:$0xff]  ;;  %v56_v29 = vld [vmem:[%s7675_s0 + $0x128] sm:$0xff] }
  0xbe   :  { %1500 = vmatprep.mubr.f32.mxu0 %v5435_v14  ;;  %1805 = vmatprep.mubr.f32.mxu1 %v4849_v38  ;;  %v257_v14 = vmax.f32 %v193_v24, 0.0  ;;  %8118 = vst [vmem:[#allocation122_spill] sm:$0xff] %v5490_v40  ;;  %v406_v50 = vrot.slane %v258_v41, 7  ;;  %v1233_v41 = vld [vmem:[%s7674_s1 + $0x2b0] sm:$0xff] }
  0xbf   :  { %2107 = vmatprep.subr.mxu0 %v8027_v16  ;;  %2470 = vmatprep.subr.mxu1 %v8027_v16  ;;  %v5494_v24 = vsel %vm683_vm1, %v760_v54, %v762_v45  ;;  %v5521_v54 = vsel %vm915_vm3, %v952_v4, %v954_v18  ;;  %v956_v45 = vrot.slane %v4946_v22, 2  ;;  %v128_v22 = vmul.f32 %v4929_v60, %v56_v29  ;;  %v1232_v18 = vld [vmem:[%s7674_s1 + $0x2a8] sm:$0xff] }
  0xc0   :  { %2108 = vmatpush2.msra.mxu0 %v1235_v20  ;;  %2471 = vmatpush1.msra.mxu1 %v1246_v63  ;;  %8119 = vst [vmem:[#allocation123_spill] sm:$0xff] %v5494_v24  ;;  %v5499_v20 = vrot.slane %v257_v14, 7  ;;  %v196_v63 = vadd.f32 %v4968_v62, %v126_v32  ;;  %8120 = vst [vmem:[#allocation124_spill] sm:$0xff] %v5521_v54  ;;  %v957_v14 = vrot.slane %v4942_v51, 2  ;;  %v259_v32 = vmax.f32 %v195_v33, 0.0  ;;  %v1243_v33 = vld [vmem:[%s7674_s1 + $0x300] sm:$0xff] }
  0xc1   :  { %1501 = vmatmul.mubr.f32.gmra.mxu0 %v5345_v1  ;;  %1806 = vmatmul.mubr.f32.gmra.mxu1 %v5465_v10 }
  0xc2   :  { %1505 = vmatprep.mubr.f32.mxu0 %v5470_v8  ;;  %3573 = vmatprep.mubr.msk.f32.mxu1 %vm4270_vm2, %v4901_v48  ;;  %v5534_v48 = vsel %vm354_vm0, 0.0, %v5499_v20  ;;  %v260_v4 = vmax.f32 %v196_v63, 0.0  ;;  %v5550_v63 = vsel %vm915_vm3, %v956_v45, %v957_v14  ;;  %v198_v45 = vadd.f32 %v4968_v62, %v128_v22 }
  0xc3   :  { %2109 = vmatprep.subr.mxu0 %v8027_v16  ;;  %2472 = vmatprep.subr.mxu1 %v8027_v16  ;;  %8121 = vst [vmem:[#allocation125_spill] sm:$0xff] %v5550_v63  ;;  %v769_v29 = vrot.slane %v5534_v48, 1  ;;  %v961_v22 = vrot.slane %v5009_v37, 2 }
  0xc4   :  { %2110 = vmatpush2.msra.mxu0 %v1234_v61  ;;  %2473 = vmatpush1.msra.mxu1 %v1245_v11  ;;  %v127_v61 = vmul.f32 %v4929_v60, %v55_v36  ;;  %v5530_v11 = vsel %vm354_vm0, %v5499_v20, %v406_v50  ;;  %v959_v36 = vrot.slane %v4978_v49, 2  ;;  %v57_v49 = vld [vmem:[%s7675_s0 + $0x130] sm:$0xff]  ;;  %v262_v37 = vmax.f32 %v198_v45, 0.0 }
  0xc5   :  { %3525 = vmatmul.mubr.msk.f32.gmra.mxu0 %vm4270_vm2, %v5377_v57  ;;  %1811 = vmatmul.mubr.f32.gmra.mxu1 %v5490_v40 }
  0xc6   :  { %1510 = vmatprep.mubr.f32.mxu0 %v5494_v24  ;;  %1815 = vmatprep.mubr.f32.mxu1 %v4942_v51  ;;  %v197_v51 = vadd.f32 %v4968_v62, %v127_v61  ;;  %v1274_v61 = vld [vmem:[%s7674_s1 + $0x3f8] sm:$0xff] }
  0xc7   :  { %2111 = vmatprep.subr.mxu0 %v8027_v16  ;;  %2474 = vmatprep.subr.mxu1 %v8027_v16 }
  0xc8   :  { %2112 = vmatpush2.msra.mxu0 %v1233_v41  ;;  %2475 = vmatpush1.msra.mxu1 %v1244_v17  ;;  %v770_v41 = vrot.slane %v5530_v11, 1  ;;  %v5555_v17 = vrot.slane %v259_v32, 7  ;;  %v1231_v32 = vld [vmem:[%s7674_s1 + $0x2a0] sm:$0xff]  ;;  %v261_v8 = vmax.f32 %v197_v51, 0.0  ;;  %v1230_v51 = vld [vmem:[%s7674_s1 + $0x298] sm:$0xff] }
  0xc9   :  { %1511 = vmatmul.mubr.f32.gmra.mxu0 %v5410_v25  ;;  %1816 = vmatmul.mubr.f32.gmra.mxu1 %v5521_v54 }
  0xca   :  { %1515 = vmatprep.mubr.f32.mxu0 %v4251_v26  ;;  %3575 = vmatprep.mubr.msk.f32.mxu1 %vm4270_vm2, %v4963_v27  ;;  %8122 = vst [vmem:[#allocation126_spill] sm:$0xff] %v5555_v17  ;;  %v5561_v26 = vsel %vm354_vm0, %v406_v50, 0.0  ;;  %v409_v27 = vrot.slane %v260_v4, 7  ;;  %v58_v50 = vld [vmem:[%s7675_s0 + $0x138] sm:$0xff]  ;;  %v5583_v4 = vsel %vm915_vm3, %v957_v14, %v959_v36  ;;  %v5593_v24 = vsel %vm354_vm0, 0.0, %v5555_v17 }
  0xcb   :  { %2113 = vmatprep.subr.mxu0 %v8027_v16  ;;  %2476 = vmatprep.subr.mxu1 %v8027_v16  ;;  %8123 = vst [vmem:[#allocation127_spill] sm:$0xff] %v5583_v4  ;;  %v772_v38 = vrot.slane %v5561_v26, 1  ;;  %v129_v36 = vmul.f32 %v4929_v60, %v57_v49  ;;  %v964_v49 = vrot.slane %v5032_v5, 2 }
  0xcc   :  { %2114 = vmatpush2.msra.mxu0 %v1232_v18  ;;  %2477 = vmatpush1.msra.mxu1 %v1243_v33  ;;  %v962_v18 = vrot.slane %v5014_v59, 2  ;;  %v5588_v33 = vsel %vm683_vm1, %v769_v29, %v770_v41  ;;  %v5599_v14 = vsel %vm354_vm0, %v5555_v17, %v409_v27  ;;  %v130_v29 = vmul.f32 %v4929_v60, %v58_v50 }
  0xcd   :  { %3527 = vmatmul.mubr.msk.f32.gmra.mxu0 %vm4270_vm2, %v4160_v46  ;;  %1821 = vmatmul.mubr.f32.gmra.mxu1 %v5550_v63  ;;  %8124 = vst [vmem:[#allocation128_spill] sm:$0xff] %v5588_v33  ;;  %8125 = vst [vmem:[#allocation129_spill] sm:$0xff] %v5599_v14  ;;  %v5620_v50 = vsel %vm683_vm1, %v770_v41, %v772_v38  ;;  %v59_v38 = vld [vmem:[%s7675_s0 + $0x140] sm:$0xff]  ;;  %v1272_v41 = vld [vmem:[%s7674_s1 + $0x3e8] sm:$0xff] }
  0xce   :  { %1520 = vmatprep.mubr.f32.mxu0 %v4275_v35  ;;  %1825 = vmatprep.mubr.f32.mxu1 %v5014_v59  ;;  %v1273_v35 = vld [vmem:[%s7674_s1 + $0x3f0] sm:$0xff]  ;;  %v5616_v45 = vsel %vm915_vm3, %v961_v22, %v962_v18  ;;  %8127 = vst [vmem:[#allocation131_spill] sm:$0xff] %v5620_v50  ;;  %v412_v22 = vrot.slane %v262_v37, 7  ;;  %v199_v59 = vadd.f32 %v4968_v62, %v129_v36  ;;  %v966_v37 = vrot.slane %v5075_v58, 2 }
  0xcf   :  { %2115 = vmatprep.subr.mxu0 %v8027_v16  ;;  %2478 = vmatprep.subr.mxu1 %v8027_v16  ;;  %8126 = vst [vmem:[#allocation130_spill] sm:$0xff] %v5616_v45  ;;  %v200_v5 = vadd.f32 %v4968_v62, %v130_v29  ;;  %v967_v36 = vrot.slane %v5081_v19, 2 }
  0xd0   :  { %2116 = vmatpush2.msra.mxu0 %v1231_v32  ;;  %2479 = vmatpush2.msra.mxu1 %v1274_v61  ;;  %v774_v32 = vrot.slane %v5593_v24, 1  ;;  %v775_v61 = vrot.slane %v5599_v14, 1 }
  0xd1   :  { %1521 = vmatmul.mubr.f32.gmra.mxu0 %v4160_v46  ;;  %1826 = vmatmul.mubr.f32.gmra.mxu1 %v5583_v4  ;;  %v5624_v46 = vrot.slane %v261_v8, 7  ;;  %v1229_v8 = vld [vmem:[%s7674_s1 + $0x290] sm:$0xff] }
  0xd2   :  { %1525 = vmatprep.mubr.f32.mxu0 %v5588_v33  ;;  %3577 = vmatprep.mubr.msk.f32.mxu1 %vm4270_vm2, %v5034_v0  ;;  %v5629_v0 = vsel %vm354_vm0, %v409_v27, 0.0  ;;  %v60_v27 = vld [vmem:[%s7675_s0 + $0x148] sm:$0xff]  ;;  %v5657_v29 = vsel %vm683_vm1, %v774_v32, %v775_v61 }
  0xd3   :  { %8128 = vst [vmem:[#allocation132_spill] sm:$0xff] %v5624_v46  ;;  %2117 = vmatprep.subr.mxu0 %v8027_v16  ;;  %2480 = vmatprep.subr.mxu1 %v8027_v16  ;;  %8130 = vst [vmem:[#allocation134_spill] sm:$0xff] %v5657_v29  ;;  %v5662_v33 = vsel %vm354_vm0, 0.0, %v5624_v46  ;;  %v5669_v58 = vsel %vm354_vm0, %v5624_v46, %v412_v22  ;;  %v132_v32 = vmul.f32 %v4929_v60, %v60_v27 }
  0xd4   :  { %2118 = vmatpush2.msra.mxu0 %v1230_v51  ;;  %2481 = vmatpush2.msra.mxu1 %v1273_v35  ;;  %v5652_v35 = vsel %vm915_vm3, %v962_v18, %v964_v49  ;;  %v777_v51 = vrot.slane %v5629_v0, 1  ;;  %8131 = vst [vmem:[#allocation135_spill] sm:$0xff] %v5669_v58  ;;  %v263_v18 = vmax.f32 %v199_v59, 0.0  ;;  %v264_v49 = vmax.f32 %v200_v5, 0.0 }
  0xd5   :  { %3529 = vmatmul.mubr.msk.f32.gmra.mxu0 %vm4270_vm2, %v5499_v20  ;;  %1831 = vmatmul.mubr.f32.gmra.mxu1 %v5616_v45  ;;  %8129 = vst [vmem:[#allocation133_spill] sm:$0xff] %v5652_v35  ;;  %v5685_v59 = vsel %vm915_vm3, %v966_v37, %v967_v36  ;;  %v969_v5 = vrot.slane %v5107_v44, 2  ;;  %v779_v27 = vrot.slane %v5662_v33, 1  ;;  %v202_v44 = vadd.f32 %v4968_v62, %v132_v32 }
  0xd6   :  { %1530 = vmatprep.mubr.f32.mxu0 %v5620_v50  ;;  %1835 = vmatprep.mubr.f32.mxu1 %v5081_v19  ;;  %v131_v50 = vmul.f32 %v4929_v60, %v59_v38  ;;  %v1228_v38 = vld [vmem:[%s7674_s1 + $0x288] sm:$0xff]  ;;  %v1271_v19 = vld [vmem:[%s7674_s1 + $0x3e0] sm:$0xff]  ;;  %8132 = vst [vmem:[#allocation136_spill] sm:$0xff] %v5685_v59  ;;  %v5699_v37 = vrot.slane %v263_v18, 7  ;;  %v971_v18 = vrot.slane %v5148_v9, 2 }
  0xd7   :  { %2119 = vmatprep.subr.mxu0 %v8027_v16  ;;  %2482 = vmatprep.subr.mxu1 %v8027_v16 }
  0xd8   :  { %2120 = vmatpush2.msra.mxu0 %v1229_v8  ;;  %2483 = vmatpush2.msra.mxu1 %v1272_v41  ;;  %v5690_v8 = vsel %vm683_vm1, %v775_v61, %v777_v51  ;;  %v780_v41 = vrot.slane %v5669_v58, 1  ;;  %8134 = vst [vmem:[#allocation138_spill] sm:$0xff] %v5699_v37  ;;  %v61_v61 = vld [vmem:[%s7675_s0 + $0x150] sm:$0xff]  ;;  %v1270_v51 = vld [vmem:[%s7674_s1 + $0x3d8] sm:$0xff]  ;;  %v5738_v9 = vsel %vm354_vm0, 0.0, %v5699_v37 }
  0xd9   :  { %1531 = vmatmul.mubr.f32.gmra.mxu0 %v5530_v11  ;;  %1836 = vmatmul.mubr.f32.gmra.mxu1 %v5652_v35  ;;  %8133 = vst [vmem:[#allocation137_spill] sm:$0xff] %v5690_v8  ;;  %v5694_v35 = vsel %vm354_vm0, %v412_v22, 0.0  ;;  %v1227_v22 = vld [vmem:[%s7674_s1 + $0x280] sm:$0xff]  ;;  %v133_v45 = vmul.f32 %v4929_v60, %v61_v61  ;;  %v974_v61 = vrot.slane %v5178_v39, 2 }
  0xda   :  { %1535 = vmatprep.mubr.f32.mxu0 %v5657_v29  ;;  %3579 = vmatprep.mubr.msk.f32.mxu1 %vm4270_vm2, %v5114_v42  ;;  %v201_v29 = vadd.f32 %v4968_v62, %v131_v50  ;;  %v415_v42 = vrot.slane %v264_v49, 7  ;;  %v62_v50 = vld [vmem:[%s7675_s0 + $0x158] sm:$0xff]  ;;  %v972_v49 = vrot.slane %v5144_v7, 2  ;;  %v782_v32 = vrot.slane %v5694_v35, 1  ;;  %v63_v39 = vld [vmem:[%s7675_s0 + $0x160] sm:$0xff] }
  0xdb   :  { %2121 = vmatprep.subr.mxu0 %v8027_v16  ;;  %2484 = vmatprep.subr.mxu1 %v8027_v16 }
  0xdc   :  { %2122 = vmatpush2.msra.mxu0 %v1228_v38  ;;  %2485 = vmatpush2.msra.mxu1 %v1271_v19  ;;  %v5721_v19 = vsel %vm915_vm3, %v967_v36, %v969_v5  ;;  %v5727_v38 = vsel %vm683_vm1, %v779_v27, %v780_v41  ;;  %v5734_v36 = vsel %vm354_vm0, %v5699_v37, %v415_v42  ;;  %v266_v5 = vmax.f32 %v202_v44, 0.0  ;;  %v1269_v27 = vld [vmem:[%s7674_s1 + $0x3d0] sm:$0xff] }
  0xdd   :  { %3531 = vmatmul.mubr.msk.f32.gmra.mxu0 %vm4270_vm2, %v5555_v17  ;;  %1841 = vmatmul.mubr.f32.gmra.mxu1 %v5685_v59  ;;  %8135 = vst [vmem:[#allocation139_spill] sm:$0xff] %v5721_v19  ;;  %8136 = vst [vmem:[#allocation140_spill] sm:$0xff] %v5727_v38  ;;  %v265_v59 = vmax.f32 %v201_v29, 0.0  ;;  %v5744_v29 = vld [vmem:[%s7674_s1 + $0x478] sm:$0xff]  ;;  %v5759_v44 = vsel %vm683_vm1, %v780_v41, %v782_v32 }
  0xde   :  { %1540 = vmatprep.mubr.f32.mxu0 %v5690_v8  ;;  %1845 = vmatprep.mubr.f32.mxu1 %v5144_v7  ;;  %8137 = vst [vmem:[#allocation141_spill] sm:$0xff] %v5734_v36  ;;  %v134_v7 = vmul.f32 %v4929_v60, %v62_v50  ;;  %v5756_v60 = vsel %vm915_vm3, %v971_v18, %v972_v49  ;;  %8139 = vst [vmem:[#allocation143_spill] sm:$0xff] %v5759_v44  ;;  %v784_v50 = vrot.slane %v5738_v9, 1 }
  0xdf   :  { %2123 = vmatprep.subr.mxu0 %v8027_v16  ;;  %2486 = vmatprep.subr.mxu1 %v8027_v16  ;;  %8138 = vst [vmem:[#allocation142_spill] sm:$0xff] %v5756_v60  ;;  %v5770_v18 = vsel %vm354_vm0, %v415_v42, 0.0  ;;  %v1268_v42 = vld [vmem:[%s7674_s1 + $0x3c8] sm:$0xff] }
  0xe0   :  { %2124 = vmatpush2.msra.mxu0 %v1227_v22  ;;  %2487 = vmatpush2.msra.mxu1 %v1270_v51  ;;  %v785_v22 = vrot.slane %v5734_v36, 1  ;;  %v5764_v51 = vrot.slane %v265_v59, 7  ;;  %v204_v41 = vadd.f32 %v4968_v62, %v134_v7  ;;  %v976_v7 = vrot.slane %v5218_v21, 2  ;;  %v5809_v21 = vld [vmem:[%s7676_s2] ss:$0 sm:$0xff] }
  0xe1   :  { %1541 = vmatmul.mubr.f32.gmra.mxu0 %v5599_v14  ;;  %1846 = vmatmul.mubr.f32.gmra.mxu1 %v5721_v19  ;;  %v977_v59 = vrot.slane %v5212_v28, 2 }
  0xe2   :  { %1545 = vmatprep.mubr.f32.mxu0 %v5727_v38  ;;  %3581 = vmatprep.mubr.msk.f32.mxu1 %vm4270_vm2, %v5175_v47  ;;  %8140 = vst [vmem:[#allocation144_spill] sm:$0xff] %v5764_v51  ;;  %v203_v38 = vadd.f32 %v4968_v62, %v133_v45  ;;  %v418_v47 = vrot.slane %v266_v5, 7  ;;  %v64_v45 = vld [vmem:[%s7675_s0 + $0x168] sm:$0xff]  ;;  %v5789_v62 = vsel %vm915_vm3, %v972_v49, %v974_v61  ;;  %v787_v5 = vrot.slane %v5770_v18, 1 }
  0xe3   :  { %3766 = vmatprep.subr.mxu0 %v5744_v29  ;;  %2488 = vmatprep.subr.mxu1 %v8027_v16  ;;  %8141 = vst [vmem:[#allocation145_spill] sm:$0xff] %v5789_v62  ;;  %v5794_v32 = vsel %vm683_vm1, %v784_v50, %v785_v22  ;;  %v268_v61 = vmax.f32 %v204_v41, 0.0  ;;  %v135_v50 = vmul.f32 %v5809_v21, %v63_v39  ;;  %v979_v39 = vrot.slane %v5246_v13, 2 }
  0xe4   :  { %2489 = vmatpush2.msra.mxu1 %v1269_v27  ;;  %8142 = vst [vmem:[#allocation146_spill] sm:$0xff] %v5794_v32  ;;  %v5799_v27 = vsel %vm354_vm0, 0.0, %v5764_v51  ;;  %v267_v8 = vmax.f32 %v203_v38, 0.0  ;;  %v5804_v49 = vsel %vm354_vm0, %v5764_v51, %v418_v47  ;;  %v1267_v38 = vld [vmem:[%s7674_s1 + $0x3c0] sm:$0xff]  ;;  %v5823_v41 = vsel %vm915_vm3, %v976_v7, %v977_v59 }
  0xe5   :  { %3533 = vmatmul.mubr.msk.f32.gmra.mxu0 %vm4270_vm2, %v5624_v46  ;;  %1851 = vmatmul.mubr.f32.gmra.mxu1 %v5756_v60  ;;  %8143 = vst [vmem:[#allocation147_spill] sm:$0xff] %v5804_v49  ;;  %8144 = vst [vmem:[#allocation148_spill] sm:$0xff] %v5823_v41  ;;  %v5840_v7 = vld [vmem:[%s7677_s3] ss:$0 sm:$0xff] }
  0xe6   :  { %1550 = vmatprep.mubr.f32.mxu0 %v5759_v44  ;;  %1855 = vmatprep.mubr.f32.mxu1 %v5212_v28  ;;  %v136_v28 = vmul.f32 %v5809_v21, %v64_v45  ;;  %v5827_v45 = vsel %vm683_vm1, %v785_v22, %v787_v5  ;;  %v790_v44 = vrot.slane %v5804_v49, 1  ;;  %v205_v13 = vadd.f32 %v5840_v7, %v135_v50 }
  0xe7   :  { %2490 = vmatprep.subr.mxu1 %v8027_v16  ;;  %8145 = vst [vmem:[#allocation149_spill] sm:$0xff] %v5827_v45  ;;  %v982_v5 = vrot.slane %v5283_v52, 2 }
  0xe8   :  { %2491 = vmatpush2.msra.mxu1 %v1268_v42  ;;  %v789_v42 = vrot.slane %v5799_v27, 1  ;;  %v206_v22 = vadd.f32 %v5840_v7, %v136_v28  ;;  %v981_v28 = vrot.slane %v5287_v3, 2 }
  0xe9   :  { %1551 = vmatmul.mubr.f32.gmra.mxu0 %v5669_v58  ;;  %1856 = vmatmul.mubr.f32.gmra.mxu1 %v5789_v62  ;;  %v5832_v62 = vsel %vm354_vm0, %v418_v47, 0.0  ;;  %v1266_v47 = vld [vmem:[%s7674_s1 + $0x3b8] sm:$0xff] }
  0xea   :  { %1555 = vmatprep.mubr.f32.mxu0 %v5794_v32  ;;  %3583 = vmatprep.mubr.msk.f32.mxu1 %vm4270_vm2, %v5248_v12  ;;  %v5835_v32 = vrot.slane %v267_v8, 7  ;;  %v421_v12 = vrot.slane %v268_v61, 7  ;;  %v5854_v8 = vsel %vm915_vm3, %v977_v59, %v979_v39  ;;  %v5859_v61 = vsel %vm683_vm1, %v789_v42, %v790_v44  ;;  %v50_v42 = vld [vmem:[%s7675_s0 + $0xf8] sm:$0xff] }
  0xeb   :  { %2492 = vmatprep.subr.mxu1 %v8027_v16  ;;  %8147 = vst [vmem:[#allocation151_spill] sm:$0xff] %v5854_v8  ;;  %8148 = vst [vmem:[#allocation152_spill] sm:$0xff] %v5859_v61  ;;  %v792_v50 = vrot.slane %v5832_v62, 1  ;;  %v269_v59 = vmax.f32 %v205_v13, 0.0  ;;  %v270_v39 = vmax.f32 %v206_v22, 0.0  ;;  %v5887_v13 = vsel %vm915_vm3, %v981_v28, %v982_v5 }
  0xec   :  { %8146 = vst [vmem:[#allocation150_spill] sm:$0xff] %v5835_v32  ;;  %2493 = vmatpush2.msra.mxu1 %v1267_v38  ;;  %v49_v38 = vld [vmem:[%s7675_s0 + $0xf0] sm:$0xff]  ;;  %v5872_v3 = vsel %vm354_vm0, 0.0, %v5835_v32  ;;  %8150 = vst [vmem:[#allocation154_spill] sm:$0xff] %v5887_v13  ;;  %v984_v22 = vrot.slane %v5312_v31, 2  ;;  %v1264_v31 = vld [vmem:[%s7674_s1 + $0x3a8] sm:$0xff] }
  0xed   :  { %3535 = vmatmul.mubr.msk.f32.gmra.mxu0 %vm4270_vm2, %v5699_v37  ;;  %1861 = vmatmul.mubr.f32.gmra.mxu1 %v5823_v41  ;;  %v5892_v41 = vsel %vm683_vm1, %v790_v44, %v792_v50  ;;  %v5901_v28 = vrot.slane %v269_v59, 7  ;;  %v424_v19 = vrot.slane %v270_v39, 7  ;;  %v986_v44 = vrot.slane %v5349_v15, 2 }
  0xee   :  { %1560 = vmatprep.mubr.f32.mxu0 %v5827_v45  ;;  %1865 = vmatprep.mubr.f32.mxu1 %v5283_v52  ;;  %v5868_v45 = vsel %vm354_vm0, %v5835_v32, %v421_v12  ;;  %v1265_v52 = vld [vmem:[%s7674_s1 + $0x3b0] sm:$0xff]  ;;  %8151 = vst [vmem:[#allocation155_spill] sm:$0xff] %v5892_v41 }
  0xef   :  { %2494 = vmatprep.subr.mxu1 %v8027_v16  ;;  %8149 = vst [vmem:[#allocation153_spill] sm:$0xff] %v5868_v45  ;;  %v795_v60 = vrot.slane %v5868_v45, 1  ;;  %8152 = vst [vmem:[#allocation156_spill] sm:$0xff] %v5901_v28  ;;  %v5930_v15 = vsel %vm354_vm0, 0.0, %v5901_v28 }
  0xf0   :  { %2495 = vmatpush2.msra.mxu1 %v1266_v47  ;;  %v121_v47 = vmul.f32 %v5809_v21, %v49_v38 }
  0xf1   :  { %1561 = vmatmul.mubr.f32.gmra.mxu0 %v5734_v36  ;;  %1866 = vmatmul.mubr.f32.gmra.mxu1 %v5854_v8  ;;  %v794_v8 = vrot.slane %v5872_v3, 1 }
  0xf2   :  { %1565 = vmatprep.mubr.f32.mxu0 %v5859_v61  ;;  %3585 = vmatprep.mubr.msk.f32.mxu1 %vm4270_vm2, %v5316_v2  ;;  %v122_v61 = vmul.f32 %v5809_v21, %v50_v42  ;;  %v5899_v2 = vsel %vm354_vm0, %v421_v12, 0.0  ;;  %v5913_v12 = vsel %vm915_vm3, %v982_v5, %v984_v22  ;;  %v191_v50 = vadd.f32 %v5840_v7, %v121_v47 }
  0xf3   :  { %2496 = vmatprep.subr.mxu1 %v8027_v16  ;;  %8153 = vst [vmem:[#allocation157_spill] sm:$0xff] %v5913_v12  ;;  %v5919_v38 = vsel %vm683_vm1, %v794_v8, %v795_v60  ;;  %v797_v59 = vrot.slane %v5899_v2, 1  ;;  %v5926_v42 = vsel %vm354_vm0, %v5901_v28, %v424_v19  ;;  %v1263_v8 = vld [vmem:[%s7674_s1 + $0x3a0] sm:$0xff] }
  0xf4   :  { %2497 = vmatpush2.msra.mxu1 %v1265_v52  ;;  %v987_v52 = vrot.slane %v5345_v1, 2  ;;  %8154 = vst [vmem:[#allocation158_spill] sm:$0xff] %v5919_v38  ;;  %v192_v39 = vadd.f32 %v5840_v7, %v122_v61  ;;  %8155 = vst [vmem:[#allocation159_spill] sm:$0xff] %v5926_v42  ;;  %v989_v61 = vrot.slane %v5375_v43, 2  ;;  %v255_v22 = vmax.f32 %v191_v50, 0.0  ;;  %v1262_v43 = vld [vmem:[%s7674_s1 + $0x398] sm:$0xff] }
  0xf5   :  { %3537 = vmatmul.mubr.msk.f32.gmra.mxu0 %vm4270_vm2, %v5764_v51  ;;  %1871 = vmatmul.mubr.f32.gmra.mxu1 %v5887_v13  ;;  %v5946_v47 = vsel %vm683_vm1, %v795_v60, %v797_v59  ;;  %v992_v50 = vrot.slane %v5410_v25, 2 }
  0xf6   :  { %1570 = vmatprep.mubr.f32.mxu0 %v5892_v41  ;;  %1875 = vmatprep.mubr.f32.mxu1 %v5345_v1  ;;  %v5942_v5 = vsel %vm915_vm3, %v986_v44, %v987_v52  ;;  %v800_v1 = vrot.slane %v5926_v42, 1  ;;  %v256_v41 = vmax.f32 %v192_v39, 0.0  ;;  %v5964_v60 = vsel %vm915_vm3, %v987_v52, %v989_v61 }
  0xf7   :  { %2498 = vmatprep.subr.mxu1 %v8027_v16  ;;  %8156 = vst [vmem:[#allocation160_spill] sm:$0xff] %v5942_v5  ;;  %8157 = vst [vmem:[#allocation161_spill] sm:$0xff] %v5964_v60  ;;  %v991_v44 = vrot.slane %v5414_v53, 2  ;;  %v1261_v53 = vld [vmem:[%s7674_s1 + $0x390] sm:$0xff]  ;;  %v994_v52 = vrot.slane %v5442_v23, 2 }
  0xf8   :  { %2499 = vmatpush2.msra.mxu1 %v1264_v31  ;;  %v799_v31 = vrot.slane %v5930_v15, 1 }
  0xf9   :  { %1571 = vmatmul.mubr.f32.gmra.mxu0 %v5804_v49  ;;  %1876 = vmatmul.mubr.f32.gmra.mxu1 %v5913_v12  ;;  %v6013_v23 = vsel %vm915_vm3, %v992_v50, %v994_v52 }
  0xfa   :  { %1575 = vmatprep.mubr.f32.mxu0 %v5919_v38  ;;  %3587 = vmatprep.mubr.msk.f32.mxu1 %vm4270_vm2, %v5377_v57  ;;  %v5952_v38 = vsel %vm354_vm0, %v424_v19, 0.0  ;;  %v5966_v19 = vrot.slane %v255_v22, 7  ;;  %v5971_v59 = vsel %vm683_vm1, %v799_v31, %v800_v1  ;;  %8165 = vst [vmem:[#allocation169_spill] sm:$0xff] %v6013_v23 }
  0xfb   :  { %2500 = vmatprep.subr.mxu1 %v8027_v16  ;;  %8159 = vst [vmem:[#allocation163_spill] sm:$0xff] %v5971_v59  ;;  %v802_v39 = vrot.slane %v5952_v38, 1 }
  0xfc   :  { %2501 = vmatpush2.msra.mxu1 %v1263_v8  ;;  %8158 = vst [vmem:[#allocation162_spill] sm:$0xff] %v5966_v19  ;;  %v5974_v8 = vrot.slane %v256_v41, 7  ;;  %v5987_v41 = vsel %vm915_vm3, %v991_v44, %v992_v50 }
  0xfd   :  { %3539 = vmatmul.mubr.msk.f32.gmra.mxu0 %vm4270_vm2, %v5835_v32  ;;  %1881 = vmatmul.mubr.f32.gmra.mxu1 %v5942_v5  ;;  %8160 = vst [vmem:[#allocation164_spill] sm:$0xff] %v5987_v41  ;;  %v5995_v31 = vsel %vm683_vm1, %v800_v1, %v802_v39  ;;  %v1260_v1 = vld [vmem:[%s7674_s1 + $0x388] sm:$0xff] }
  0xfe   :  { %1580 = vmatprep.mubr.f32.mxu0 %v5946_v47  ;;  %1885 = vmatprep.mubr.f32.mxu1 %v5410_v25  ;;  %8163 = vst [vmem:[#allocation167_spill] sm:$0xff] %v5995_v31 }
  0xff   :  { %2502 = vmatprep.subr.mxu1 %v8027_v16 }
 0x100   :  { %2503 = vmatpush2.msra.mxu1 %v1262_v43  ;;  %v6000_v43 = vsel %vm354_vm0, %v5966_v19, %v5974_v8 }
 0x101   :  { %1581 = vmatmul.mubr.f32.gmra.mxu0 %v5868_v45  ;;  %1886 = vmatmul.mubr.f32.gmra.mxu1 %v5964_v60  ;;  %8164 = vst [vmem:[#allocation168_spill] sm:$0xff] %v6000_v43 }
 0x102   :  { %1585 = vmatprep.mubr.f32.mxu0 %v5971_v59  ;;  %3589 = vmatprep.mubr.msk.f32.mxu1 %vm4270_vm2, %v5966_v19  ;;  %v5990_v61 = vpop.f32.mrf.mxu0  ;;  %v5992_v22 = vpop.f32.mrf.mxu1 }
 0x103   :  { %8161 = vst [vmem:[#allocation165_spill] sm:$0xff] %v5990_v61  ;;  %8162 = vst [vmem:[#allocation166_spill] sm:$0xff] %v5992_v22  ;;  %2504 = vmatprep.subr.mxu1 %v8027_v16  ;;  %v8252_v61 = vld [vmem:[#allocation21_spill] sm:$0xff] }
 0x104   :  { %v1359_v25 = vpop.f32.mrf.mxu0  ;;  %v1599_v57 = vpop.f32.mrf.mxu1  ;;  %2505 = vmatpush2.msra.mxu1 %v1261_v53  ;;  %v1259_v53 = vld [vmem:[%s7674_s1 + $0x380] sm:$0xff] }
 0x105   :  { %3541 = vmatmul.mubr.msk.f32.gmra.mxu0 %vm4270_vm2, %v5901_v28  ;;  %1891 = vmatmul.mubr.f32.gmra.mxu1 %v5987_v41 }
 0x106   :  { %1590 = vmatprep.mubr.f32.mxu0 %v5995_v31  ;;  %1895 = vmatprep.mubr.f32.mxu1 %v6000_v43 }
 0x107   :  { %v6015_v25 = vpop.f32.mrf.mxu0  ;;  %v6017_v57 = vpop.f32.mrf.mxu1  ;;  %2506 = vmatprep.subr.mxu1 %v8027_v16 }
 0x108   :  { %8166 = vst [vmem:[#allocation170_spill] sm:$0xff] %v6015_v25  ;;  %8167 = vst [vmem:[#allocation171_spill] sm:$0xff] %v6017_v57  ;;  %2507 = vmatpush2.msra.mxu1 %v1260_v1  ;;  %v1289_v1 = vld [vmem:[%s7674_s1 + $0x470] sm:$0xff] }
 0x109   :  { %1591 = vmatmul.mubr.f32.gmra.mxu0 %v5926_v42  ;;  %1896 = vmatmul.mubr.f32.gmra.mxu1 %v6013_v23  ;;  %v1364_v44 = vpop.f32.mrf.mxu0  ;;  %v1604_v39 = vpop.f32.mrf.mxu1 }
 0x10a   :  { %3591 = vmatprep.mubr.msk.f32.mxu1 %vm4270_vm2, %v5499_v20  ;;  %2125 = vmatprep.mubr.f32.mxu0 %v5096_v56  ;;  %v1001_v56 = vrot.slane %v5534_v48, 2  ;;  %v8170_v39 = vld [vmem:[#allocation91_spill] sm:$0xff]  ;;  %v8175_v48 = vld [vmem:[#allocation94_spill] sm:$0xff] }
 0x10b   :  { %2508 = vmatprep.subr.mxu1 %v8027_v16  ;;  %v1002_v16 = vrot.slane %v5530_v11, 2 }
 0x10c   :  { %v6030_v50 = vpop.f32.mrf.mxu0  ;;  %v6032_v52 = vpop.f32.mrf.mxu1  ;;  %2509 = vmatpush2.msra.mxu1 %v1259_v53  ;;  %v8172_v53 = vld [vmem:[#allocation86_spill] sm:$0xff] }
 0x10d   :  { %8168 = vst [vmem:[#allocation172_spill] sm:$0xff] %v6030_v50  ;;  %8169 = vst [vmem:[#allocation173_spill] sm:$0xff] %v6032_v52  ;;  %1901 = vmatmul.mubr.f32.gmra.mxu1 %v5024_v30  ;;  %2126 = vmatmul.mubr.f32.vlgmr.msra.gmra.mxu0 %v4337_v6  ;;  %v1288_v6 = vld [vmem:[%s7674_s1 + $0x468] sm:$0xff]  ;;  %v1286_v30 = vld [vmem:[%s7674_s1 + $0x458] sm:$0xff] }
 0x10e   :  { %3767 = vmatpush3.msra.mxu0 %v5744_v29  ;;  %1905 = vmatprep.mubr.f32.mxu1 %v5530_v11  ;;  %v1369_v20 = vpop.f32.mrf.mxu0  ;;  %v1609_v44 = vpop.f32.mrf.mxu1  ;;  %v8173_v29 = vld [vmem:[#allocation19_spill] sm:$0xff]  ;;  %v6058_v11 = vsel %vm915_vm3, %v1001_v56, %v1002_v16  ;;  %v8179_v56 = vld [vmem:[#allocation97_spill] sm:$0xff] }
 0x10f   :  { %2130 = vmatprep.mubr.f32.mxu0 %v8170_v39  ;;  %3768 = vmatprep.subr.mxu0 %v1289_v1  ;;  %v1287_v39 = vld [vmem:[%s7674_s1 + $0x460] sm:$0xff] }
 0x110   :  { %v6044_v52 = vpop.f32.mrf.mxu0  ;;  %3769 = vmatpush3.msra.mxu0 %v1289_v1  ;;  %v1004_v1 = vrot.slane %v5561_v26, 2 }
 0x111   :  { %8171 = vst [vmem:[#allocation91_spill] sm:$0xff] %v6044_v52  ;;  %1906 = vmatmul.mubr.f32.gmra.mxu1 %v8172_v53  ;;  %2131 = vmatmul.mubr.f32.gmra.mxu0 %v8173_v29  ;;  %v6051_v57 = vpop.f32.mrf.mxu1  ;;  %v8176_v29 = vld [vmem:[#allocation26_spill] sm:$0xff] }
 0x112   :  { %8174 = vst [vmem:[#allocation19_spill] sm:$0xff] %v6051_v57  ;;  %3593 = vmatprep.mubr.msk.f32.mxu1 %vm4270_vm2, %v5555_v17  ;;  %2135 = vmatprep.mubr.f32.mxu0 %v8175_v48  ;;  %v1374_v20 = vpop.f32.mrf.mxu0  ;;  %v6073_v26 = vsel %vm915_vm3, %v1002_v16, %v1004_v1  ;;  %v8181_v16 = vld [vmem:[#allocation100_spill] sm:$0xff]  ;;  %v1284_v17 = vld [vmem:[%s7674_s1 + $0x448] sm:$0xff] }
 0x113   :  { %v1614_v44 = vpop.f32.mrf.mxu1  ;;  %3770 = vmatprep.subr.mxu0 %v1288_v6  ;;  %v1007_v20 = vrot.slane %v5599_v14, 2 }
 0x114   :  { %3771 = vmatpush3.msra.mxu0 %v1288_v6  ;;  %v1006_v6 = vrot.slane %v5593_v24, 2 }
 0x115   :  { %1911 = vmatmul.mubr.f32.gmra.mxu1 %v6058_v11  ;;  %2136 = vmatmul.mubr.f32.gmra.mxu0 %v8176_v29  ;;  %v6066_v57 = vpop.f32.mrf.mxu0  ;;  %v6068_v22 = vpop.f32.mrf.mxu1 }
 0x116   :  { %8177 = vst [vmem:[#allocation26_spill] sm:$0xff] %v6066_v57  ;;  %8178 = vst [vmem:[#allocation174_spill] sm:$0xff] %v6068_v22  ;;  %1915 = vmatprep.mubr.f32.mxu1 %v5599_v14  ;;  %2140 = vmatprep.mubr.f32.mxu0 %v8179_v56  ;;  %v8180_v22 = vld [vmem:[#allocation29_spill] sm:$0xff]  ;;  %v6087_v24 = vsel %vm915_vm3, %v1006_v6, %v1007_v20  ;;  %v1285_v56 = vld [vmem:[%s7674_s1 + $0x450] sm:$0xff] }
 0x117   :  { %v1379_v44 = vpop.f32.mrf.mxu0  ;;  %v1619_v53 = vpop.f32.mrf.mxu1  ;;  %3772 = vmatprep.subr.mxu0 %v1287_v39  ;;  %8182 = vst [vmem:[#allocation29_spill] sm:$0xff] %v6087_v24  ;;  %v8186_v6 = vld [vmem:[#allocation103_spill] sm:$0xff] }
 0x118   :  { %3773 = vmatpush3.msra.mxu0 %v1287_v39  ;;  %v1009_v39 = vrot.slane %v5629_v0, 2 }
 0x119   :  { %1916 = vmatmul.mubr.f32.gmra.mxu1 %v6073_v26  ;;  %2141 = vmatmul.mubr.f32.gmra.mxu0 %v8180_v22 }
 0x11a   :  { %3595 = vmatprep.mubr.msk.f32.mxu1 %vm4270_vm2, %v5624_v46  ;;  %2145 = vmatprep.mubr.f32.mxu0 %v8181_v16  ;;  %v6089_v53 = vpop.f32.mrf.mxu0  ;;  %v6091_v1 = vpop.f32.mrf.mxu1  ;;  %v8185_v46 = vld [vmem:[#allocation34_spill] sm:$0xff] }
 0x11b   :  { %8183 = vst [vmem:[#allocation175_spill] sm:$0xff] %v6089_v53  ;;  %8184 = vst [vmem:[#allocation176_spill] sm:$0xff] %v6091_v1  ;;  %3774 = vmatprep.subr.mxu0 %v1286_v30  ;;  %v6102_v1 = vsel %vm915_vm3, %v1007_v20, %v1009_v39 }
 0x11c   :  { %v1384_v44 = vpop.f32.mrf.mxu0  ;;  %v1624_v14 = vpop.f32.mrf.mxu1  ;;  %3775 = vmatpush3.msra.mxu0 %v1286_v30  ;;  %8187 = vst [vmem:[#allocation34_spill] sm:$0xff] %v6102_v1  ;;  %v1012_v30 = vrot.slane %v5669_v58, 2 }
 0x11d   :  { %1921 = vmatmul.mubr.f32.gmra.mxu1 %v6087_v24  ;;  %2146 = vmatmul.mubr.f32.gmra.mxu0 %v8185_v46  ;;  %v1011_v14 = vrot.slane %v5662_v33, 2 }
 0x11e   :  { %1925 = vmatprep.mubr.f32.mxu1 %v5669_v58  ;;  %2150 = vmatprep.mubr.f32.mxu0 %v8186_v6  ;;  %v6104_v0 = vpop.f32.mrf.mxu0  ;;  %v8190_v6 = vld [vmem:[#allocation39_spill] sm:$0xff] }
 0x11f   :  { %8188 = vst [vmem:[#allocation177_spill] sm:$0xff] %v6104_v0  ;;  %v6108_v44 = vpop.f32.mrf.mxu1  ;;  %3776 = vmatprep.subr.mxu0 %v1285_v56  ;;  %v6120_v33 = vsel %vm915_vm3, %v1011_v14, %v1012_v30  ;;  %v8195_v14 = vld [vmem:[#allocation109_spill] sm:$0xff] }
 0x120   :  { %8189 = vst [vmem:[#allocation178_spill] sm:$0xff] %v6108_v44  ;;  %v1389_v16 = vpop.f32.mrf.mxu0  ;;  %3777 = vmatpush3.msra.mxu0 %v1285_v56  ;;  %8191 = vst [vmem:[#allocation39_spill] sm:$0xff] %v6120_v33  ;;  %v1014_v56 = vrot.slane %v5694_v35, 2  ;;  %v8194_v44 = vld [vmem:[#allocation44_spill] sm:$0xff]  ;;  %v8241_v0 = vld [vmem:[#allocation133_spill] sm:$0xff] }
 0x121   :  { %1926 = vmatmul.mubr.f32.gmra.mxu1 %v6102_v1  ;;  %2151 = vmatmul.mubr.f32.gmra.mxu0 %v8190_v6  ;;  %v1629_v20 = vpop.f32.mrf.mxu1 }
 0x122   :  { %3597 = vmatprep.mubr.msk.f32.mxu1 %vm4270_vm2, %v5699_v37  ;;  %2155 = vmatprep.mubr.f32.mxu0 %v5303_v55  ;;  %v1283_v20 = vld [vmem:[%s7674_s1 + $0x440] sm:$0xff]  ;;  %v6135_v35 = vsel %vm915_vm3, %v1012_v30, %v1014_v56 }
 0x123   :  { %v6123_v16 = vpop.f32.mrf.mxu0  ;;  %v6125_v39 = vpop.f32.mrf.mxu1  ;;  %3778 = vmatprep.subr.mxu0 %v1284_v17  ;;  %8196 = vst [vmem:[#allocation44_spill] sm:$0xff] %v6135_v35 }
 0x124   :  { %8192 = vst [vmem:[#allocation179_spill] sm:$0xff] %v6123_v16  ;;  %8193 = vst [vmem:[#allocation180_spill] sm:$0xff] %v6125_v39  ;;  %3779 = vmatpush3.msra.mxu0 %v1284_v17  ;;  %v1016_v39 = vrot.slane %v5738_v9, 2  ;;  %v1017_v17 = vrot.slane %v5734_v36, 2  ;;  %v8200_v9 = vld [vmem:[#allocation112_spill] sm:$0xff]  ;;  %v8239_v16 = vld [vmem:[#allocation87_spill] sm:$0xff] }
 0x125   :  { %1931 = vmatmul.mubr.f32.gmra.mxu1 %v6120_v33  ;;  %2156 = vmatmul.mubr.f32.gmra.mxu0 %v8194_v44  ;;  %v1394_v37 = vpop.f32.mrf.mxu0  ;;  %v1634_v58 = vpop.f32.mrf.mxu1 }
 0x126   :  { %1935 = vmatprep.mubr.f32.mxu1 %v5734_v36  ;;  %2160 = vmatprep.mubr.f32.mxu0 %v8195_v14  ;;  %v1282_v58 = vld [vmem:[%s7674_s1 + $0x438] sm:$0xff]  ;;  %v8199_v37 = vld [vmem:[#allocation48_spill] sm:$0xff]  ;;  %v6153_v30 = vsel %vm915_vm3, %v1016_v39, %v1017_v17  ;;  %v8205_v39 = vld [vmem:[#allocation115_spill] sm:$0xff] }
 0x127   :  { %3780 = vmatprep.subr.mxu0 %v1283_v20  ;;  %8201 = vst [vmem:[#allocation48_spill] sm:$0xff] %v6153_v30  ;;  %v1281_v14 = vld [vmem:[%s7674_s1 + $0x430] sm:$0xff] }
 0x128   :  { %v6139_v55 = vpop.f32.mrf.mxu0  ;;  %v6141_v48 = vpop.f32.mrf.mxu1  ;;  %3781 = vmatpush3.msra.mxu0 %v1283_v20  ;;  %v1019_v20 = vrot.slane %v5770_v18, 2 }
 0x129   :  { %8197 = vst [vmem:[#allocation181_spill] sm:$0xff] %v6139_v55  ;;  %8198 = vst [vmem:[#allocation182_spill] sm:$0xff] %v6141_v48  ;;  %1936 = vmatmul.mubr.f32.gmra.mxu1 %v6135_v35  ;;  %2161 = vmatmul.mubr.f32.gmra.mxu0 %v8199_v37  ;;  %v1280_v55 = vld [vmem:[%s7674_s1 + $0x428] sm:$0xff] }
 0x12a   :  { %3599 = vmatprep.mubr.msk.f32.mxu1 %vm4270_vm2, %v5764_v51  ;;  %2165 = vmatprep.mubr.f32.mxu0 %v8200_v9  ;;  %v1399_v56 = vpop.f32.mrf.mxu0  ;;  %v1639_v48 = vpop.f32.mrf.mxu1  ;;  %v8203_v51 = vld [vmem:[#allocation56_spill] sm:$0xff]  ;;  %v6168_v18 = vsel %vm915_vm3, %v1017_v17, %v1019_v20 }
 0x12b   :  { %3782 = vmatprep.subr.mxu0 %v1282_v58  ;;  %8206 = vst [vmem:[#allocation184_spill] sm:$0xff] %v6168_v18  ;;  %v1022_v56 = vrot.slane %v5804_v49, 2 }
 0x12c   :  { %v6156_v36 = vpop.f32.mrf.mxu0  ;;  %3783 = vmatpush3.msra.mxu0 %v1282_v58  ;;  %v1021_v58 = vrot.slane %v5799_v27, 2  ;;  %v8210_v27 = vld [vmem:[#allocation118_spill] sm:$0xff] }
 0x12d   :  { %8202 = vst [vmem:[#allocation183_spill] sm:$0xff] %v6156_v36  ;;  %1941 = vmatmul.mubr.f32.gmra.mxu1 %v6153_v30  ;;  %2166 = vmatmul.mubr.f32.gmra.mxu0 %v8203_v51  ;;  %v6163_v9 = vpop.f32.mrf.mxu1 }
 0x12e   :  { %8204 = vst [vmem:[#allocation56_spill] sm:$0xff] %v6163_v9  ;;  %1945 = vmatprep.mubr.f32.mxu1 %v5804_v49  ;;  %2170 = vmatprep.mubr.f32.mxu0 %v8205_v39  ;;  %v1404_v48 = vpop.f32.mrf.mxu0  ;;  %v8207_v9 = vld [vmem:[#allocation59_spill] sm:$0xff]  ;;  %v8212_v49 = vld [vmem:[#allocation66_spill] sm:$0xff] }
 0x12f   :  { %v1644_v36 = vpop.f32.mrf.mxu1  ;;  %3784 = vmatprep.subr.mxu0 %v1281_v14 }
 0x130   :  { %3785 = vmatpush3.msra.mxu0 %v1281_v14  ;;  %v6186_v36 = vsel %vm915_vm3, %v1021_v58, %v1022_v56  ;;  %v1024_v14 = vrot.slane %v5832_v62, 2  ;;  %v1026_v62 = vrot.slane %v5872_v3, 2  ;;  %v1029_v3 = vrot.slane %v5899_v2, 2  ;;  %v1279_v2 = vld [vmem:[%s7674_s1 + $0x420] sm:$0xff] }
 0x131   :  { %1946 = vmatmul.mubr.f32.gmra.mxu1 %v6168_v18  ;;  %2171 = vmatmul.mubr.f32.gmra.mxu0 %v8207_v9  ;;  %v6177_v39 = vpop.f32.mrf.mxu0  ;;  %v6179_v17 = vpop.f32.mrf.mxu1  ;;  %8211 = vst [vmem:[#allocation186_spill] sm:$0xff] %v6186_v36 }
 0x132   :  { %8208 = vst [vmem:[#allocation59_spill] sm:$0xff] %v6177_v39  ;;  %8209 = vst [vmem:[#allocation185_spill] sm:$0xff] %v6179_v17  ;;  %3601 = vmatprep.mubr.msk.f32.mxu1 %vm4270_vm2, %v5835_v32  ;;  %2175 = vmatprep.mubr.f32.mxu0 %v8210_v27  ;;  %v6198_v58 = vsel %vm915_vm3, %v1022_v56, %v1024_v14  ;;  %v8216_v27 = vld [vmem:[#allocation71_spill] sm:$0xff] }
 0x133   :  { %v1409_v20 = vpop.f32.mrf.mxu0  ;;  %v1649_v48 = vpop.f32.mrf.mxu1  ;;  %3786 = vmatprep.subr.mxu0 %v1280_v55  ;;  %8215 = vst [vmem:[#allocation188_spill] sm:$0xff] %v6198_v58 }
 0x134   :  { %3787 = vmatpush3.msra.mxu0 %v1280_v55  ;;  %v1027_v20 = vrot.slane %v5868_v45, 2 }
 0x135   :  { %1951 = vmatmul.mubr.f32.gmra.mxu1 %v6186_v36  ;;  %2176 = vmatmul.mubr.f32.gmra.mxu0 %v8212_v49 }
 0x136   :  { %1955 = vmatprep.mubr.f32.mxu1 %v5868_v45  ;;  %2180 = vmatprep.mubr.f32.mxu0 %v5465_v10  ;;  %v6193_v17 = vpop.f32.mrf.mxu0  ;;  %v6195_v32 = vpop.f32.mrf.mxu1  ;;  %v6211_v56 = vsel %vm915_vm3, %v1026_v62, %v1027_v20  ;;  %v1031_v62 = vrot.slane %v5930_v15, 2  ;;  %v8228_v10 = vld [vmem:[#allocation81_spill] sm:$0xff] }
 0x137   :  { %8213 = vst [vmem:[#allocation66_spill] sm:$0xff] %v6193_v17  ;;  %8214 = vst [vmem:[#allocation187_spill] sm:$0xff] %v6195_v32  ;;  %3788 = vmatprep.subr.mxu0 %v1279_v2  ;;  %v8233_v17 = vld [vmem:[#allocation85_spill] sm:$0xff] }
 0x138   :  { %v1414_v55 = vpop.f32.mrf.mxu0  ;;  %v1654_v48 = vpop.f32.mrf.mxu1  ;;  %8218 = vst [vmem:[#allocation189_spill] sm:$0xff] %v6211_v56  ;;  %3789 = vmatpush3.msra.mxu0 %v1279_v2 }
 0x139   :  { %1956 = vmatmul.mubr.f32.gmra.mxu1 %v6198_v58  ;;  %2181 = vmatmul.mubr.f32.gmra.mxu0 %v8216_v27  ;;  %v8220_v48 = vld [vmem:[#allocation75_spill] sm:$0xff] }
 0x13a   :  { %3603 = vmatprep.mubr.msk.f32.mxu1 %vm4270_vm2, %v5901_v28  ;;  %2185 = vmatprep.mubr.f32.mxu0 %v5490_v40  ;;  %v6208_v32 = vpop.f32.mrf.mxu0  ;;  %v6221_v28 = vsel %vm915_vm3, %v1027_v20, %v1029_v3  ;;  %v1032_v40 = vrot.slane %v5926_v42, 2 }
 0x13b   :  { %8217 = vst [vmem:[#allocation71_spill] sm:$0xff] %v6208_v32  ;;  %v6214_v14 = vpop.f32.mrf.mxu1  ;;  %8221 = vst [vmem:[#allocation75_spill] sm:$0xff] %v6221_v28 }
 0x13c   :  { %8219 = vst [vmem:[#allocation190_spill] sm:$0xff] %v6214_v14  ;;  %v1419_v55 = vpop.f32.mrf.mxu0  ;;  %v6239_v15 = vsel %vm915_vm3, %v1031_v62, %v1032_v40  ;;  %v8231_v62 = vld [vmem:[#allocation5_spill] sm:$0xff] }
 0x13d   :  { %1961 = vmatmul.mubr.f32.gmra.mxu1 %v6211_v56  ;;  %2186 = vmatmul.mubr.f32.gmra.mxu0 %v8220_v48  ;;  %v1659_v45 = vpop.f32.mrf.mxu1 }
 0x13e   :  { %1965 = vmatprep.mubr.f32.mxu1 %v5926_v42  ;;  %2190 = vmatprep.mubr.f32.mxu0 %v5521_v54  ;;  %v8224_v45 = vld [vmem:[#allocation78_spill] sm:$0xff]  ;;  %v8225_v54 = vld [vmem:[#allocation3_spill] sm:$0xff]  ;;  %v1034_v42 = vrot.slane %v5952_v38, 2 }
 0x13f   :  { %v6228_v55 = vpop.f32.mrf.mxu0  ;;  %v6230_v14 = vpop.f32.mrf.mxu1  ;;  %8226 = vst [vmem:[#allocation78_spill] sm:$0xff] %v6239_v15 }
 0x140   :  { %8222 = vst [vmem:[#allocation191_spill] sm:$0xff] %v6228_v55  ;;  %8223 = vst [vmem:[#allocation192_spill] sm:$0xff] %v6230_v14  ;;  %v8229_v55 = vld [vmem:[#allocation4_spill] sm:$0xff] }
 0x141   :  { %1966 = vmatmul.mubr.f32.gmra.mxu1 %v6221_v28  ;;  %2191 = vmatmul.mubr.f32.gmra.mxu0 %v8224_v45  ;;  %v1424_v20 = vpop.f32.mrf.mxu0  ;;  %v1664_v3 = vpop.f32.mrf.mxu1  ;;  %v1037_v38 = vrot.slane %v8229_v55, 2 }
 0x142   :  { %3605 = vmatprep.mubr.msk.f32.mxu1 %vm4270_vm2, %v8225_v54  ;;  %2195 = vmatprep.mubr.f32.mxu0 %v5550_v63  ;;  %v6251_v54 = vsel %vm915_vm3, %v1032_v40, %v1034_v42  ;;  %v1036_v63 = vrot.slane %v8231_v62, 2  ;;  %v8237_v42 = vld [vmem:[#allocation6_spill] sm:$0xff] }
 0x143   :  { %8230 = vst [vmem:[#allocation81_spill] sm:$0xff] %v6251_v54  ;;  %v1039_v62 = vrot.slane %v8237_v42, 2 }
 0x144   :  { %v6242_v14 = vpop.f32.mrf.mxu0  ;;  %v6244_v2 = vpop.f32.mrf.mxu1  ;;  %v6266_v40 = vsel %vm915_vm3, %v1036_v63, %v1037_v38  ;;  %v8243_v63 = vld [vmem:[#allocation12_spill] sm:$0xff] }
 0x145   :  { %8227 = vst [vmem:[#allocation193_spill] sm:$0xff] %v6244_v2  ;;  %1971 = vmatmul.mubr.f32.gmra.mxu1 %v6239_v15  ;;  %2196 = vmatmul.mubr.f32.gmra.mxu0 %v8228_v10  ;;  %8236 = vst [vmem:[#allocation194_spill] sm:$0xff] %v6266_v40 }
 0x146   :  { %v1429_v20 = vpop.f32.mrf.mxu0  ;;  %v1669_v3 = vpop.f32.mrf.mxu1  ;;  %1975 = vmatprep.mubr.f32.mxu1 %v8229_v55  ;;  %2200 = vmatprep.mubr.f32.mxu0 %v5583_v4  ;;  %v8235_v4 = vld [vmem:[#allocation130_spill] sm:$0xff] }
 0x147   :  { %v8234_v3 = vld [vmem:[#allocation7_spill] sm:$0xff] }
 0x148   :  { %v6255_v32 = vpop.f32.mrf.mxu0 }
 0x149   :  { %v6257_v2 = vpop.f32.mrf.mxu1  ;;  %1976 = vmatmul.mubr.f32.gmra.mxu1 %v6251_v54  ;;  %2201 = vmatmul.mubr.f32.gmra.mxu0 %v8233_v17 }
 0x14a   :  { %8232 = vst [vmem:[#allocation5_spill] sm:$0xff] %v6257_v2  ;;  %v1434_v20 = vpop.f32.mrf.mxu0  ;;  %3607 = vmatprep.mubr.msk.f32.mxu1 %vm4270_vm2, %v8234_v3  ;;  %2205 = vmatprep.mubr.f32.mxu0 %v8235_v4  ;;  %v6278_v3 = vsel %vm915_vm3, %v1037_v38, %v1039_v62  ;;  %v1041_v4 = vrot.slane %v8243_v63, 2  ;;  %v8245_v38 = vld [vmem:[#allocation89_spill] sm:$0xff]  ;;  %v8246_v62 = vld [vmem:[#allocation16_spill] sm:$0xff] }
 0x14b   :  { %v1674_v55 = vpop.f32.mrf.mxu1  ;;  %v8240_v20 = vld [vmem:[#allocation11_spill] sm:$0xff]  ;;  %8242 = vst [vmem:[#allocation195_spill] sm:$0xff] %v6278_v3  ;;  %v8247_v63 = vld [vmem:[#allocation136_spill] sm:$0xff] }
 0x14c   :  { %v1042_v42 = vrot.slane %v8240_v20, 2  ;;  %v1278_v55 = vld [vmem:[%s7674_s1 + $0x418] sm:$0xff] }
 0x14d   :  { %v6269_v39 = vpop.f32.mrf.mxu0  ;;  %v6271_v2 = vpop.f32.mrf.mxu1  ;;  %1981 = vmatmul.mubr.f32.gmra.mxu1 %v6266_v40  ;;  %2206 = vmatmul.mubr.f32.gmra.mxu0 %v8239_v16 }
 0x14e   :  { %8238 = vst [vmem:[#allocation6_spill] sm:$0xff] %v6271_v2  ;;  %1985 = vmatprep.mubr.f32.mxu1 %v8240_v20  ;;  %2210 = vmatprep.mubr.f32.mxu0 %v8241_v0  ;;  %v6296_v20 = vsel %vm915_vm3, %v1041_v4, %v1042_v42  ;;  %v8251_v2 = vld [vmem:[#allocation92_spill] sm:$0xff]  ;;  %v8255_v4 = vld [vmem:[#allocation22_spill] sm:$0xff] }
 0x14f   :  { %v1439_v53 = vpop.f32.mrf.mxu0  ;;  %v1744_v57 = vpop.f32.mrf.mxu1  ;;  %3790 = vmatprep.subr.mxu0 %v1278_v55  ;;  %8248 = vst [vmem:[#allocation196_spill] sm:$0xff] %v6296_v20 }
 0x150   :  { %3791 = vmatpush3.msra.mxu0 %v1278_v55  ;;  %v8249_v57 = vld [vmem:[#allocation13_spill] sm:$0xff] }
 0x151   :  { %v6285_v52 = vpop.f32.mrf.mxu0  ;;  %v6287_v50 = vpop.f32.mrf.mxu1  ;;  %1986 = vmatmul.mubr.f32.gmra.mxu1 %v6278_v3  ;;  %2211 = vmatmul.mubr.f32.gmra.mxu0 %v8245_v38  ;;  %v1044_v53 = vrot.slane %v8249_v57, 2  ;;  %v1046_v38 = vrot.slane %v8255_v4, 2  ;;  %v1047_v57 = vrot.slane %v8252_v61, 2  ;;  %v8261_v4 = vld [vmem:[#allocation23_spill] sm:$0xff] }
 0x152   :  { %8244 = vst [vmem:[#allocation12_spill] sm:$0xff] %v6287_v50  ;;  %3609 = vmatprep.mubr.msk.f32.mxu1 %vm4270_vm2, %v8246_v62  ;;  %2215 = vmatprep.mubr.f32.mxu0 %v8247_v63  ;;  %v8253_v62 = vld [vmem:[#allocation139_spill] sm:$0xff] }
 0x153   :  { %v1444_v55 = vpop.f32.mrf.mxu0  ;;  %v1749_v0 = vpop.f32.mrf.mxu1  ;;  %v6308_v63 = vsel %vm915_vm3, %v1042_v42, %v1044_v53  ;;  %v8259_v42 = vld [vmem:[#allocation142_spill] sm:$0xff]  ;;  %v6323_v53 = vsel %vm915_vm3, %v1046_v38, %v1047_v57  ;;  %v8267_v38 = vld [vmem:[#allocation31_spill] sm:$0xff] }
 0x154   :  { %8254 = vst [vmem:[#allocation197_spill] sm:$0xff] %v6308_v63  ;;  %8260 = vst [vmem:[#allocation198_spill] sm:$0xff] %v6323_v53  ;;  %v1051_v16 = vrot.slane %v8267_v38, 2  ;;  %v8271_v38 = vld [vmem:[#allocation148_spill] sm:$0xff] }
 0x155   :  { %v6299_v25 = vpop.f32.mrf.mxu0  ;;  %v6301_v50 = vpop.f32.mrf.mxu1  ;;  %1991 = vmatmul.mubr.f32.gmra.mxu1 %v6296_v20  ;;  %2216 = vmatmul.mubr.f32.gmra.mxu0 %v8251_v2  ;;  %v8257_v2 = vld [vmem:[#allocation95_spill] sm:$0xff]  ;;  %v8258_v20 = vld [vmem:[#allocation25_spill] sm:$0xff] }
 0x156   :  { %8250 = vst [vmem:[#allocation13_spill] sm:$0xff] %v6301_v50  ;;  %1995 = vmatprep.mubr.f32.mxu1 %v8252_v61  ;;  %2220 = vmatprep.mubr.f32.mxu0 %v8253_v62 }
 0x157   :  { %v1449_v0 = vpop.f32.mrf.mxu0  ;;  %v1754_v55 = vpop.f32.mrf.mxu1 }
 0x158   :  { %v1049_v0 = vrot.slane %v8261_v4, 2 }
 0x159   :  { %v6312_v3 = vpop.f32.mrf.mxu0  ;;  %v6314_v50 = vpop.f32.mrf.mxu1  ;;  %1996 = vmatmul.mubr.f32.gmra.mxu1 %v6308_v63  ;;  %2221 = vmatmul.mubr.f32.gmra.mxu0 %v8257_v2  ;;  %v8263_v2 = vld [vmem:[#allocation98_spill] sm:$0xff] }
 0x15a   :  { %8256 = vst [vmem:[#allocation22_spill] sm:$0xff] %v6314_v50  ;;  %3611 = vmatprep.mubr.msk.f32.mxu1 %vm4270_vm2, %v8258_v20  ;;  %2225 = vmatprep.mubr.f32.mxu0 %v8259_v42  ;;  %v8264_v63 = vld [vmem:[#allocation30_spill] sm:$0xff]  ;;  %v8265_v20 = vld [vmem:[#allocation145_spill] sm:$0xff]  ;;  %v6335_v42 = vsel %vm915_vm3, %v1047_v57, %v1049_v0  ;;  %v8270_v0 = vld [vmem:[#allocation36_spill] sm:$0xff] }
 0x15b   :  { %v1454_v55 = vpop.f32.mrf.mxu0  ;;  %v1759_v61 = vpop.f32.mrf.mxu1  ;;  %8266 = vst [vmem:[#allocation199_spill] sm:$0xff] %v6335_v42  ;;  %v1052_v4 = vrot.slane %v8264_v63, 2  ;;  %v8269_v57 = vld [vmem:[#allocation101_spill] sm:$0xff] }
 0x15c   :  { %v1277_v61 = vld [vmem:[%s7674_s1 + $0x410] sm:$0xff] }
 0x15d   :  { %v6326_v62 = vpop.f32.mrf.mxu0  ;;  %v6328_v50 = vpop.f32.mrf.mxu1  ;;  %2001 = vmatmul.mubr.f32.gmra.mxu1 %v6323_v53  ;;  %2226 = vmatmul.mubr.f32.gmra.mxu0 %v8263_v2 }
 0x15e   :  { %8262 = vst [vmem:[#allocation23_spill] sm:$0xff] %v6328_v50  ;;  %2005 = vmatprep.mubr.f32.mxu1 %v8264_v63  ;;  %2230 = vmatprep.mubr.f32.mxu0 %v8265_v20  ;;  %v6353_v63 = vsel %vm915_vm3, %v1051_v16, %v1052_v4  ;;  %v8279_v16 = vld [vmem:[#allocation41_spill] sm:$0xff] }
 0x15f   :  { %v1459_v55 = vpop.f32.mrf.mxu0  ;;  %v1764_v50 = vpop.f32.mrf.mxu1  ;;  %3792 = vmatprep.subr.mxu0 %v1277_v61  ;;  %8272 = vst [vmem:[#allocation200_spill] sm:$0xff] %v6353_v63  ;;  %v1056_v31 = vrot.slane %v8279_v16, 2 }
 0x160   :  { %3793 = vmatpush3.msra.mxu0 %v1277_v61  ;;  %v8273_v50 = vld [vmem:[#allocation35_spill] sm:$0xff] }
 0x161   :  { %v6342_v2 = vpop.f32.mrf.mxu0  ;;  %v6344_v53 = vpop.f32.mrf.mxu1  ;;  %2006 = vmatmul.mubr.f32.gmra.mxu1 %v6335_v42  ;;  %2231 = vmatmul.mubr.f32.gmra.mxu0 %v8269_v57  ;;  %v1054_v55 = vrot.slane %v8273_v50, 2  ;;  %v8275_v57 = vld [vmem:[#allocation104_spill] sm:$0xff] }
 0x162   :  { %8268 = vst [vmem:[#allocation31_spill] sm:$0xff] %v6344_v53  ;;  %3613 = vmatprep.mubr.msk.f32.mxu1 %vm4270_vm2, %v8270_v0  ;;  %2235 = vmatprep.mubr.f32.mxu0 %v8271_v38  ;;  %v8276_v42 = vld [vmem:[#allocation40_spill] sm:$0xff]  ;;  %v8277_v0 = vld [vmem:[#allocation151_spill] sm:$0xff] }
 0x163   :  { %v1464_v61 = vpop.f32.mrf.mxu0  ;;  %v1769_v20 = vpop.f32.mrf.mxu1  ;;  %v6365_v38 = vsel %vm915_vm3, %v1052_v4, %v1054_v55  ;;  %v1057_v50 = vrot.slane %v8276_v42, 2  ;;  %v8284_v55 = vld [vmem:[#allocation42_spill] sm:$0xff] }
 0x164   :  { %8278 = vst [vmem:[#allocation201_spill] sm:$0xff] %v6365_v38  ;;  %v1059_v16 = vrot.slane %v8284_v55, 2 }
 0x165   :  { %v6356_v40 = vpop.f32.mrf.mxu0  ;;  %v6358_v53 = vpop.f32.mrf.mxu1  ;;  %2011 = vmatmul.mubr.f32.gmra.mxu1 %v6353_v63  ;;  %2236 = vmatmul.mubr.f32.gmra.mxu0 %v8275_v57  ;;  %v8281_v57 = vld [vmem:[#allocation107_spill] sm:$0xff]  ;;  %v8282_v63 = vld [vmem:[#allocation46_spill] sm:$0xff]  ;;  %v6380_v4 = vsel %vm915_vm3, %v1056_v31, %v1057_v50  ;;  %v8289_v31 = vld [vmem:[#allocation52_spill] sm:$0xff] }
 0x166   :  { %8274 = vst [vmem:[#allocation35_spill] sm:$0xff] %v6358_v53  ;;  %2015 = vmatprep.mubr.f32.mxu1 %v8276_v42  ;;  %2240 = vmatprep.mubr.f32.mxu0 %v8277_v0  ;;  %8283 = vst [vmem:[#allocation202_spill] sm:$0xff] %v6380_v4 }
 0x167   :  { %v1469_v20 = vpop.f32.mrf.mxu0  ;;  %v1774_v61 = vpop.f32.mrf.mxu1 }
 0x169   :  { %v6369_v17 = vpop.f32.mrf.mxu0  ;;  %v6371_v53 = vpop.f32.mrf.mxu1  ;;  %2016 = vmatmul.mubr.f32.gmra.mxu1 %v6365_v38  ;;  %2241 = vmatmul.mubr.f32.gmra.mxu0 %v8281_v57  ;;  %v8287_v57 = vld [vmem:[#allocation51_spill] sm:$0xff] }
 0x16a   :  { %8280 = vst [vmem:[#allocation41_spill] sm:$0xff] %v6371_v53  ;;  %3615 = vmatprep.mubr.msk.f32.mxu1 %vm4270_vm2, %v8282_v63  ;;  %2245 = vmatprep.mubr.f32.mxu0 %v5887_v13  ;;  %v8286_v53 = vld [vmem:[#allocation110_spill] sm:$0xff]  ;;  %v6392_v63 = vsel %vm915_vm3, %v1057_v50, %v1059_v16  ;;  %v1061_v13 = vrot.slane %v8289_v31, 2  ;;  %v1062_v55 = vrot.slane %v8287_v57, 2  ;;  %v82_v50 = vld [vmem:[%s7675_s0 + $0x1f8] sm:$0xff] }
 0x16b   :  { %v1474_v20 = vpop.f32.mrf.mxu0  ;;  %v1779_v61 = vpop.f32.mrf.mxu1  ;;  %8288 = vst [vmem:[#allocation203_spill] sm:$0xff] %v6392_v63 }
 0x16c   :  { %v1276_v20 = vld [vmem:[%s7674_s1 + $0x408] sm:$0xff] }
 0x16d   :  { %v6383_v42 = vpop.f32.mrf.mxu0  ;;  %v6385_v0 = vpop.f32.mrf.mxu1  ;;  %2021 = vmatmul.mubr.f32.gmra.mxu1 %v6380_v4  ;;  %2246 = vmatmul.mubr.f32.gmra.mxu0 %v8286_v53  ;;  %v81_v53 = vld [vmem:[%s7675_s0 + $0x1f0] sm:$0xff] }
 0x16e   :  { %8285 = vst [vmem:[#allocation42_spill] sm:$0xff] %v6385_v0  ;;  %2025 = vmatprep.mubr.f32.mxu1 %v8287_v57  ;;  %2250 = vmatprep.mubr.f32.mxu0 %v5913_v12  ;;  %v8291_v57 = vld [vmem:[#allocation113_spill] sm:$0xff]  ;;  %v8294_v12 = vld [vmem:[#allocation54_spill] sm:$0xff] }
 0x16f   :  { %v1479_v61 = vpop.f32.mrf.mxu0  ;;  %v1784_v0 = vpop.f32.mrf.mxu1  ;;  %3794 = vmatprep.subr.mxu0 %v1276_v20  ;;  %v1064_v4 = vrot.slane %v8294_v12, 2  ;;  %v8299_v12 = vld [vmem:[#allocation61_spill] sm:$0xff] }
 0x170   :  { %3795 = vmatpush3.msra.mxu0 %v1276_v20  ;;  %v8292_v61 = vld [vmem:[#allocation55_spill] sm:$0xff]  ;;  %v6416_v0 = vsel %vm915_vm3, %v1061_v13, %v1062_v55  ;;  %v153_v20 = vmul.f32 %v5809_v21, %v81_v53  ;;  %v1066_v53 = vrot.slane %v8299_v12, 2 }
 0x171   :  { %v6405_v16 = vpop.f32.mrf.mxu0  ;;  %v6407_v31 = vpop.f32.mrf.mxu1  ;;  %2026 = vmatmul.mubr.f32.gmra.mxu1 %v6392_v63  ;;  %2251 = vmatmul.mubr.f32.gmra.mxu0 %v8291_v57  ;;  %8293 = vst [vmem:[#allocation204_spill] sm:$0xff] %v6416_v0  ;;  %v6430_v13 = vsel %vm915_vm3, %v1062_v55, %v1064_v4  ;;  %v8301_v4 = vld [vmem:[#allocation119_spill] sm:$0xff] }
 0x172   :  { %8290 = vst [vmem:[#allocation52_spill] sm:$0xff] %v6407_v31  ;;  %3617 = vmatprep.mubr.msk.f32.mxu1 %vm4270_vm2, %v8292_v61  ;;  %2255 = vmatprep.mubr.f32.mxu0 %v5942_v5  ;;  %v154_v31 = vmul.f32 %v5809_v21, %v82_v50  ;;  %v8296_v61 = vld [vmem:[#allocation116_spill] sm:$0xff]  ;;  %8298 = vst [vmem:[#allocation205_spill] sm:$0xff] %v6430_v13  ;;  %v223_v21 = vadd.f32 %v5840_v7, %v153_v20  ;;  %v8302_v55 = vld [vmem:[#allocation63_spill] sm:$0xff] }
 0x173   :  { %v1484_v38 = vpop.f32.mrf.mxu0  ;;  %v1789_v54 = vpop.f32.mrf.mxu1  ;;  %v8297_v5 = vld [vmem:[#allocation60_spill] sm:$0xff]  ;;  %v1069_v12 = vrot.slane %v8302_v55, 2  ;;  %v765_v55 = vrot.slane %v6000_v43, 1 }
 0x174   :  { %v1067_v54 = vrot.slane %v8297_v5, 2 }
 0x175   :  { %v6421_v63 = vpop.f32.mrf.mxu0  ;;  %v6423_v57 = vpop.f32.mrf.mxu1  ;;  %2031 = vmatmul.mubr.f32.gmra.mxu1 %v6416_v0  ;;  %2256 = vmatmul.mubr.f32.gmra.mxu0 %v8296_v61  ;;  %v567_v61 = vsel %vm354_vm0, 0.0, %v5966_v19 }
 0x176   :  { %8295 = vst [vmem:[#allocation54_spill] sm:$0xff] %v6423_v57  ;;  %2035 = vmatprep.mubr.f32.mxu1 %v8297_v5  ;;  %2260 = vmatprep.mubr.f32.mxu0 %v5964_v60  ;;  %v224_v57 = vadd.f32 %v5840_v7, %v154_v31  ;;  %v8303_v5 = vld [vmem:[#allocation65_spill] sm:$0xff]  ;;  %v6450_v7 = vsel %vm915_vm3, %v1066_v53, %v1067_v54  ;;  %v287_v31 = vmax.f32 %v223_v21, 0.0  ;;  %v997_v60 = vrot.slane %v6000_v43, 2 }
 0x177   :  { %v1489_v38 = vpop.f32.mrf.mxu0  ;;  %v1794_v50 = vpop.f32.mrf.mxu1  ;;  %8304 = vst [vmem:[#allocation63_spill] sm:$0xff] %v6450_v7  ;;  %v8306_v53 = vld [vmem:[#allocation121_spill] sm:$0xff]  ;;  %v6463_v21 = vsel %vm915_vm3, %v1067_v54, %v1069_v12  ;;  %v764_v43 = vrot.slane %v567_v61, 1 }
 0x178   :  { %v996_v50 = vrot.slane %v567_v61, 2  ;;  %v288_v19 = vmax.f32 %v224_v57, 0.0  ;;  %8307 = vst [vmem:[#allocation207_spill] sm:$0xff] %v6463_v21  ;;  %v6467_v57 = vrot.slane %v287_v31, 7  ;;  %v8313_v61 = vld [vmem:[#allocation123_spill] sm:$0xff] }
 0x179   :  { %v6438_v0 = vpop.f32.mrf.mxu0  ;;  %v6440_v59 = vpop.f32.mrf.mxu1  ;;  %2036 = vmatmul.mubr.f32.gmra.mxu1 %v6430_v13  ;;  %2261 = vmatmul.mubr.f32.gmra.mxu0 %v8301_v4 }
 0x17a   :  { %8300 = vst [vmem:[#allocation61_spill] sm:$0xff] %v6440_v59  ;;  %3619 = vmatprep.mubr.msk.f32.mxu1 %vm4270_vm2, %v8303_v5  ;;  %2265 = vmatprep.mubr.f32.mxu0 %v5987_v41  ;;  %v600_v59 = vsel %vm354_vm0, %v5974_v8, 0.0  ;;  %8309 = vst [vmem:[#allocation208_spill] sm:$0xff] %v6467_v57  ;;  %v8310_v8 = vld [vmem:[#allocation69_spill] sm:$0xff]  ;;  %v6475_v54 = vsel %vm915_vm3, %v996_v50, %v997_v60  ;;  %v6477_v12 = vrot.slane %v288_v19, 7 }
 0x17b   :  { %v1494_v20 = vpop.f32.mrf.mxu0  ;;  %v1799_v38 = vpop.f32.mrf.mxu1  ;;  %8311 = vst [vmem:[#allocation69_spill] sm:$0xff] %v6475_v54  ;;  %v999_v13 = vrot.slane %v600_v59, 2 }
 0x17c   :  { %v8308_v20 = vld [vmem:[#allocation70_spill] sm:$0xff]  ;;  %v1071_v38 = vrot.slane %v8310_v8, 2 }
 0x17d   :  { %v6456_v4 = vpop.f32.mrf.mxu0  ;;  %v6458_v5 = vpop.f32.mrf.mxu1  ;;  %2041 = vmatmul.mubr.f32.gmra.mxu1 %v6450_v7  ;;  %2266 = vmatmul.mubr.f32.gmra.mxu0 %v8306_v53  ;;  %v1072_v41 = vrot.slane %v8308_v20, 2 }
 0x17e   :  { %8305 = vst [vmem:[#allocation206_spill] sm:$0xff] %v6458_v5  ;;  %2045 = vmatprep.mubr.f32.mxu1 %v8308_v20  ;;  %2270 = vmatprep.mubr.f32.mxu0 %v6013_v23  ;;  %v1275_v5 = vld [vmem:[%s7674_s1 + $0x400] sm:$0xff] }
 0x17f   :  { %v1499_v7 = vpop.f32.mrf.mxu0  ;;  %v1804_v53 = vpop.f32.mrf.mxu1  ;;  %3796 = vmatprep.subr.mxu0 %v1275_v5  ;;  %v6490_v19 = vsel %vm915_vm3, %v1071_v38, %v1072_v41 }
 0x180   :  { %3797 = vmatpush3.msra.mxu0 %v1275_v5  ;;  %8314 = vst [vmem:[#allocation210_spill] sm:$0xff] %v6490_v19  ;;  %v6493_v7 = vsel %vm683_vm1, %v764_v43, %v765_v55  ;;  %v8315_v5 = vld [vmem:[#allocation73_spill] sm:$0xff]  ;;  %v767_v53 = vrot.slane %v600_v59, 1 }
 0x181   :  { %v6479_v31 = vpop.f32.mrf.mxu0  ;;  %v6481_v8 = vpop.f32.mrf.mxu1  ;;  %2046 = vmatmul.mubr.f32.gmra.mxu1 %v6463_v21  ;;  %2271 = vmatmul.mubr.f32.gmra.mxu0 %v8313_v61  ;;  %v1074_v50 = vrot.slane %v8315_v5, 2  ;;  %v6502_v61 = vsel %vm915_vm3, %v997_v60, %v999_v13 }
 0x182   :  { %8312 = vst [vmem:[#allocation209_spill] sm:$0xff] %v6481_v8  ;;  %3621 = vmatprep.mubr.msk.f32.mxu1 %vm4270_vm2, %v6467_v57  ;;  %2275 = vmatprep.mubr.f32.mxu0 %v6475_v54  ;;  %v6499_v8 = vsel %vm354_vm0, %v6467_v57, %v6477_v12  ;;  %8317 = vst [vmem:[#allocation211_spill] sm:$0xff] %v6502_v61  ;;  %v6517_v60 = vsel %vm683_vm1, %v765_v55, %v767_v53 }
 0x183   :  { %v1504_v20 = vpop.f32.mrf.mxu0  ;;  %v1809_v23 = vpop.f32.mrf.mxu1  ;;  %8316 = vst [vmem:[#allocation73_spill] sm:$0xff] %v6499_v8  ;;  %v6514_v59 = vsel %vm915_vm3, %v1072_v41, %v1074_v50 }
 0x185   :  { %v6504_v54 = vpop.f32.mrf.mxu0  ;;  %v1812_v38 = vpop.f32.mrf.mxu1  ;;  %2051 = vmatmul.mubr.f32.gmra.mxu1 %v6490_v19  ;;  %2276 = vmatmul.mubr.f32.gmra.mxu0 %v6493_v7 }
 0x186   :  { %v6509_v43 = vadd.f32 %v1812_v38, %v6242_v14  ;;  %2055 = vmatprep.mubr.f32.mxu1 %v6499_v8  ;;  %2280 = vmatprep.mubr.f32.mxu0 %v6502_v61  ;;  %v8318_v38 = vld [vmem:[#allocation128_spill] sm:$0xff] }
 0x187   :  { %v1509_v23 = vpop.f32.mrf.mxu0  ;;  %v1814_v13 = vpop.f32.mrf.mxu1 }
 0x188   :  { %v8319_v23 = vld [vmem:[#allocation14_spill] sm:$0xff] }
 0x189   :  { %v6519_v20 = vpop.f32.mrf.mxu0  ;;  %v1817_v5 = vpop.f32.mrf.mxu1  ;;  %2056 = vmatmul.mubr.f32.gmra.mxu1 %v6514_v59  ;;  %2281 = vmatmul.mubr.f32.gmra.mxu0 %v6517_v60 }
 0x18a   :  { %v6524_v14 = vadd.f32 %v1817_v5, %v6255_v32  ;;  %2285 = vmatprep.mubr.f32.mxu0 %v6058_v11  ;;  %2510 = vmatprep.mubr.f32.mxu1 %v8176_v29 }
 0x18b   :  { %v1514_v41 = vpop.f32.mrf.mxu0  ;;  %v1819_v50 = vpop.f32.mrf.mxu1 }
 0x18c   :  { %v8320_v41 = vld [vmem:[#allocation131_spill] sm:$0xff]  ;;  %v8321_v50 = vld [vmem:[#allocation18_spill] sm:$0xff] }
 0x18d   :  { %v6528_v55 = vpop.f32.mrf.mxu0  ;;  %v1822_v53 = vpop.f32.mrf.mxu1  ;;  %2286 = vmatmul.mubr.f32.gmra.mxu0 %v8318_v38  ;;  %3623 = vmatmul.mubr.msk.f32.vlgmr.msra.gmra.mxu1 %vm4270_vm2, %v8319_v23  ;;  %v8322_v23 = vld [vmem:[#allocation134_spill] sm:$0xff] }
 0x18e   :  { %v6535_v13 = vadd.f32 %v1822_v53, %v6269_v39  ;;  %2290 = vmatprep.mubr.f32.mxu0 %v6073_v26  ;;  %2515 = vmatprep.mubr.f32.mxu1 %v8180_v22 }
 0x18f   :  { %v1519_v32 = vpop.f32.mrf.mxu0  ;;  %v1824_v11 = vpop.f32.mrf.mxu1 }
 0x190   :  { %v8323_v32 = vld [vmem:[#allocation24_spill] sm:$0xff] }
 0x191   :  { %v6539_v29 = vpop.f32.mrf.mxu0  ;;  %v1827_v5 = vpop.f32.mrf.mxu1  ;;  %2291 = vmatmul.mubr.f32.gmra.mxu0 %v8320_v41  ;;  %2516 = vmatmul.mubr.f32.gmra.mxu1 %v8321_v50  ;;  %v8324_v50 = vld [vmem:[#allocation137_spill] sm:$0xff] }
 0x192   :  { %v6544_v38 = vadd.f32 %v1827_v5, %v6285_v52  ;;  %2295 = vmatprep.mubr.f32.mxu0 %v6087_v24  ;;  %2520 = vmatprep.mubr.f32.mxu1 %v8185_v46 }
 0x193   :  { %v1524_v39 = vpop.f32.mrf.mxu0  ;;  %v1829_v26 = vpop.f32.mrf.mxu1 }
 0x194   :  { %v8325_v39 = vld [vmem:[#allocation27_spill] sm:$0xff] }
 0x195   :  { %v6548_v53 = vpop.f32.mrf.mxu0  ;;  %v1832_v22 = vpop.f32.mrf.mxu1  ;;  %2296 = vmatmul.mubr.f32.gmra.mxu0 %v8322_v23  ;;  %3625 = vmatmul.mubr.msk.f32.gmra.mxu1 %vm4270_vm2, %v8323_v32 }
 0x196   :  { %v6555_v11 = vadd.f32 %v1832_v22, %v6299_v25  ;;  %2300 = vmatprep.mubr.f32.mxu0 %v6102_v1  ;;  %2525 = vmatprep.mubr.f32.mxu1 %v8190_v6 }
 0x197   :  { %v1529_v52 = vpop.f32.mrf.mxu0  ;;  %v1834_v46 = vpop.f32.mrf.mxu1 }
 0x198   :  { %v8326_v52 = vld [vmem:[#allocation140_spill] sm:$0xff]  ;;  %v8327_v46 = vld [vmem:[#allocation33_spill] sm:$0xff] }
 0x199   :  { %v6559_v5 = vpop.f32.mrf.mxu0  ;;  %v1837_v41 = vpop.f32.mrf.mxu1  ;;  %2301 = vmatmul.mubr.f32.gmra.mxu0 %v8324_v50  ;;  %2526 = vmatmul.mubr.f32.gmra.mxu1 %v8325_v39 }
 0x19a   :  { %v6564_v26 = vadd.f32 %v1837_v41, %v6312_v3  ;;  %2305 = vmatprep.mubr.f32.mxu0 %v6120_v33  ;;  %2530 = vmatprep.mubr.f32.mxu1 %v8194_v44  ;;  %v8329_v33 = vld [vmem:[#allocation38_spill] sm:$0xff] }
 0x19b   :  { %v1534_v25 = vpop.f32.mrf.mxu0  ;;  %v1839_v22 = vpop.f32.mrf.mxu1 }
 0x19c   :  { %v8328_v22 = vld [vmem:[#allocation143_spill] sm:$0xff] }
 0x19d   :  { %v6568_v32 = vpop.f32.mrf.mxu0  ;;  %v1842_v6 = vpop.f32.mrf.mxu1  ;;  %2306 = vmatmul.mubr.f32.gmra.mxu0 %v8326_v52  ;;  %3627 = vmatmul.mubr.msk.f32.gmra.mxu1 %vm4270_vm2, %v8327_v46 }
 0x19e   :  { %v6575_v39 = vadd.f32 %v1842_v6, %v6326_v62  ;;  %2310 = vmatprep.mubr.f32.mxu0 %v6135_v35  ;;  %2535 = vmatprep.mubr.f32.mxu1 %v8199_v37 }
 0x19f   :  { %v1539_v3 = vpop.f32.mrf.mxu0  ;;  %v1844_v44 = vpop.f32.mrf.mxu1 }
 0x1a0   :  { %v8330_v3 = vld [vmem:[#allocation146_spill] sm:$0xff]  ;;  %v8331_v44 = vld [vmem:[#allocation45_spill] sm:$0xff] }
 0x1a1   :  { %v6579_v41 = vpop.f32.mrf.mxu0  ;;  %v1847_v25 = vpop.f32.mrf.mxu1  ;;  %2311 = vmatmul.mubr.f32.gmra.mxu0 %v8328_v22  ;;  %2536 = vmatmul.mubr.f32.gmra.mxu1 %v8329_v33 }
 0x1a2   :  { %v6584_v1 = vadd.f32 %v1847_v25, %v6342_v2  ;;  %2315 = vmatprep.mubr.f32.mxu0 %v6153_v30  ;;  %2540 = vmatprep.mubr.f32.mxu1 %v8203_v51  ;;  %v8333_v30 = vld [vmem:[#allocation50_spill] sm:$0xff] }
 0x1a3   :  { %v1544_v62 = vpop.f32.mrf.mxu0  ;;  %v1849_v6 = vpop.f32.mrf.mxu1 }
 0x1a4   :  { %v8332_v6 = vld [vmem:[#allocation149_spill] sm:$0xff] }
 0x1a5   :  { %v6588_v46 = vpop.f32.mrf.mxu0  ;;  %v1852_v37 = vpop.f32.mrf.mxu1  ;;  %2316 = vmatmul.mubr.f32.gmra.mxu0 %v8330_v3  ;;  %3629 = vmatmul.mubr.msk.f32.gmra.mxu1 %vm4270_vm2, %v8331_v44 }
 0x1a6   :  { %v6595_v33 = vadd.f32 %v1852_v37, %v6356_v40  ;;  %2320 = vmatprep.mubr.f32.mxu0 %v6168_v18  ;;  %2545 = vmatprep.mubr.f32.mxu1 %v8207_v9 }
 0x1a7   :  { %v1549_v2 = vpop.f32.mrf.mxu0  ;;  %v1854_v51 = vpop.f32.mrf.mxu1 }
 0x1a8   :  { %v8334_v2 = vld [vmem:[#allocation152_spill] sm:$0xff]  ;;  %v8335_v51 = vld [vmem:[#allocation53_spill] sm:$0xff] }
 0x1a9   :  { %v6599_v25 = vpop.f32.mrf.mxu0  ;;  %v1857_v62 = vpop.f32.mrf.mxu1  ;;  %2321 = vmatmul.mubr.f32.gmra.mxu0 %v8332_v6  ;;  %2546 = vmatmul.mubr.f32.gmra.mxu1 %v8333_v30 }
 0x1aa   :  { %v6604_v35 = vadd.f32 %v1857_v62, %v6369_v17  ;;  %2325 = vmatprep.mubr.f32.mxu0 %v6186_v36  ;;  %2550 = vmatprep.mubr.f32.mxu1 %v8212_v49  ;;  %v8337_v36 = vld [vmem:[#allocation58_spill] sm:$0xff] }
 0x1ab   :  { %v1554_v40 = vpop.f32.mrf.mxu0  ;;  %v1859_v37 = vpop.f32.mrf.mxu1 }
 0x1ac   :  { %v8336_v37 = vld [vmem:[#allocation155_spill] sm:$0xff] }
 0x1ad   :  { %v6608_v44 = vpop.f32.mrf.mxu0  ;;  %v1862_v9 = vpop.f32.mrf.mxu1  ;;  %2326 = vmatmul.mubr.f32.gmra.mxu0 %v8334_v2  ;;  %3631 = vmatmul.mubr.msk.f32.gmra.mxu1 %vm4270_vm2, %v8335_v51 }
 0x1ae   :  { %v6615_v30 = vadd.f32 %v1862_v9, %v6383_v42  ;;  %2330 = vmatprep.mubr.f32.mxu0 %v6198_v58  ;;  %2555 = vmatprep.mubr.f32.mxu1 %v8216_v27  ;;  %v8349_v58 = vld [vmem:[#allocation77_spill] sm:$0xff] }
 0x1af   :  { %v1559_v17 = vpop.f32.mrf.mxu0  ;;  %v1864_v49 = vpop.f32.mrf.mxu1 }
 0x1b0   :  { %v8338_v17 = vld [vmem:[#allocation158_spill] sm:$0xff]  ;;  %v8339_v49 = vld [vmem:[#allocation64_spill] sm:$0xff] }
 0x1b1   :  { %v6619_v62 = vpop.f32.mrf.mxu0  ;;  %v1867_v40 = vpop.f32.mrf.mxu1  ;;  %2331 = vmatmul.mubr.f32.gmra.mxu0 %v8336_v37  ;;  %2556 = vmatmul.mubr.f32.gmra.mxu1 %v8337_v36 }
 0x1b2   :  { %v6624_v18 = vadd.f32 %v1867_v40, %v6405_v16  ;;  %2335 = vmatprep.mubr.f32.mxu0 %v6211_v56  ;;  %2560 = vmatprep.mubr.f32.mxu1 %v8220_v48 }
 0x1b3   :  { %v1564_v42 = vpop.f32.mrf.mxu0  ;;  %v1869_v9 = vpop.f32.mrf.mxu1 }
 0x1b4   :  { %v8341_v9 = vld [vmem:[#allocation68_spill] sm:$0xff] }
 0x1b5   :  { %v6628_v51 = vpop.f32.mrf.mxu0  ;;  %v1872_v27 = vpop.f32.mrf.mxu1  ;;  %2336 = vmatmul.mubr.f32.gmra.mxu0 %v8338_v17  ;;  %3633 = vmatmul.mubr.msk.f32.gmra.mxu1 %vm4270_vm2, %v8339_v49 }
 0x1b6   :  { %v6635_v36 = vadd.f32 %v1872_v27, %v6421_v63  ;;  %2340 = vmatprep.mubr.f32.mxu0 %v6221_v28  ;;  %2565 = vmatprep.mubr.f32.mxu1 %v8224_v45  ;;  %v8348_v28 = vld [vmem:[#allocation167_spill] sm:$0xff] }
 0x1b7   :  { %v1569_v16 = vpop.f32.mrf.mxu0  ;;  %v1874_v48 = vpop.f32.mrf.mxu1 }
 0x1b8   :  { %8340 = vst [vmem:[#allocation128_spill] sm:$0xff] %v6635_v36  ;;  %v8343_v16 = vld [vmem:[#allocation163_spill] sm:$0xff]  ;;  %v8344_v48 = vld [vmem:[#allocation74_spill] sm:$0xff]  ;;  %v8366_v36 = vld [vmem:[#allocation84_spill] sm:$0xff] }
 0x1b9   :  { %v6639_v40 = vpop.f32.mrf.mxu0  ;;  %v1877_v42 = vpop.f32.mrf.mxu1  ;;  %2341 = vmatmul.mubr.f32.gmra.mxu0 %v5946_v47  ;;  %2566 = vmatmul.mubr.f32.gmra.mxu1 %v8341_v9 }
 0x1ba   :  { %v6644_v56 = vadd.f32 %v1877_v42, %v6438_v0  ;;  %2345 = vmatprep.mubr.f32.mxu0 %v6239_v15  ;;  %2570 = vmatprep.mubr.f32.mxu1 %v8228_v10  ;;  %v8346_v0 = vld [vmem:[#allocation81_spill] sm:$0xff] }
 0x1bb   :  { %v1574_v63 = vpop.f32.mrf.mxu0  ;;  %v1879_v27 = vpop.f32.mrf.mxu1  ;;  %v8347_v42 = vld [vmem:[#allocation85_spill] sm:$0xff] }
 0x1bc   :  { %8342 = vst [vmem:[#allocation14_spill] sm:$0xff] %v6644_v56 }
 0x1bd   :  { %v6648_v49 = vpop.f32.mrf.mxu0  ;;  %v1882_v45 = vpop.f32.mrf.mxu1  ;;  %2346 = vmatmul.mubr.f32.gmra.mxu0 %v8343_v16  ;;  %3635 = vmatmul.mubr.msk.f32.gmra.mxu1 %vm4270_vm2, %v8344_v48  ;;  %v8351_v48 = vld [vmem:[#allocation194_spill] sm:$0xff]  ;;  %v8374_v16 = vld [vmem:[#allocation88_spill] sm:$0xff] }
 0x1be   :  { %v6655_v9 = vadd.f32 %v1882_v45, %v6456_v4  ;;  %2350 = vmatprep.mubr.f32.mxu0 %v8346_v0  ;;  %2575 = vmatprep.mubr.f32.mxu1 %v8347_v42  ;;  %v8352_v4 = vld [vmem:[#allocation87_spill] sm:$0xff]  ;;  %v8353_v42 = vld [vmem:[#allocation9_spill] sm:$0xff] }
 0x1bf   :  { %v1579_v15 = vpop.f32.mrf.mxu0  ;;  %v1884_v10 = vpop.f32.mrf.mxu1 }
 0x1c0   :  { %8345 = vst [vmem:[#allocation131_spill] sm:$0xff] %v6655_v9  ;;  %v8354_v10 = vld [vmem:[#allocation80_spill] sm:$0xff]  ;;  %v8359_v9 = vld [vmem:[#allocation82_spill] sm:$0xff] }
 0x1c1   :  { %v6659_v63 = vpop.f32.mrf.mxu0  ;;  %v1887_v27 = vpop.f32.mrf.mxu1  ;;  %2351 = vmatmul.mubr.f32.gmra.mxu0 %v8348_v28  ;;  %2576 = vmatmul.mubr.f32.gmra.mxu1 %v8349_v58  ;;  %v8365_v28 = vld [vmem:[#allocation17_spill] sm:$0xff] }
 0x1c2   :  { %v6664_v24 = vadd.f32 %v1887_v27, %v6479_v31  ;;  %2355 = vmatprep.mubr.f32.mxu0 %v8351_v48  ;;  %2580 = vmatprep.mubr.f32.mxu1 %v8352_v4  ;;  %v8356_v31 = vld [vmem:[#allocation195_spill] sm:$0xff]  ;;  %v8357_v27 = vld [vmem:[#allocation89_spill] sm:$0xff] }
 0x1c3   :  { %v1584_v45 = vpop.f32.mrf.mxu0  ;;  %v1889_v0 = vpop.f32.mrf.mxu1 }
 0x1c4   :  { %8350 = vst [vmem:[#allocation18_spill] sm:$0xff] %v6664_v24  ;;  %v8358_v24 = vld [vmem:[#allocation15_spill] sm:$0xff] }
 0x1c5   :  { %v6668_v61 = vpop.f32.mrf.mxu0  ;;  %v1892_v15 = vpop.f32.mrf.mxu1  ;;  %2356 = vmatmul.mubr.f32.gmra.mxu0 %v8353_v42  ;;  %3637 = vmatmul.mubr.msk.f32.gmra.mxu1 %vm4270_vm2, %v8354_v10  ;;  %v8361_v10 = vld [vmem:[#allocation196_spill] sm:$0xff] }
 0x1c6   :  { %v6675_v58 = vadd.f32 %v1892_v15, %v6504_v54  ;;  %2360 = vmatprep.mubr.f32.mxu0 %v8356_v31  ;;  %2585 = vmatprep.mubr.f32.mxu1 %v8357_v27  ;;  %v8362_v54 = vld [vmem:[#allocation92_spill] sm:$0xff]  ;;  %v8364_v27 = vld [vmem:[#allocation6_spill] sm:$0xff] }
 0x1c7   :  { %v1589_v48 = vpop.f32.mrf.mxu0  ;;  %v1894_v4 = vpop.f32.mrf.mxu1 }
 0x1c8   :  { %8355 = vst [vmem:[#allocation134_spill] sm:$0xff] %v6675_v58  ;;  %v8363_v58 = vld [vmem:[#allocation165_spill] sm:$0xff] }
 0x1c9   :  { %v6679_v45 = vpop.f32.mrf.mxu0  ;;  %v1897_v0 = vpop.f32.mrf.mxu1  ;;  %2361 = vmatmul.mubr.f32.gmra.mxu0 %v8358_v24  ;;  %2586 = vmatmul.mubr.f32.gmra.mxu1 %v8359_v9  ;;  %v1743_v48 = vadd.f32 %v8364_v27, %v8363_v58  ;;  %v8371_v58 = vld [vmem:[#allocation170_spill] sm:$0xff]  ;;  %v8372_v27 = vld [vmem:[#allocation12_spill] sm:$0xff] }
 0x1ca   :  { %v6684_v42 = vadd.f32 %v1897_v0, %v6519_v20  ;;  %2365 = vmatprep.mubr.f32.mxu0 %v8361_v10  ;;  %2590 = vmatprep.mubr.f32.mxu1 %v8362_v54  ;;  %v8369_v0 = vld [vmem:[#allocation197_spill] sm:$0xff]  ;;  %v8370_v54 = vld [vmem:[#allocation95_spill] sm:$0xff]  ;;  %v1748_v10 = vadd.f32 %v8372_v27, %v8371_v58  ;;  %v8373_v24 = vld [vmem:[#allocation20_spill] sm:$0xff] }
 0x1cb   :  { %v1594_v15 = vpop.f32.mrf.mxu0  ;;  %v1899_v31 = vpop.f32.mrf.mxu1 }
 0x1cc   :  { %8360 = vst [vmem:[#allocation24_spill] sm:$0xff] %v6684_v42 }
 0x1cd   :  { %v1902_v4 = vpop.f32.mrf.mxu1  ;;  %v2127_v56 = vpop.f32.mrf.mxu0  ;;  %2366 = vmatmul.mubr.f32.gmra.mxu0 %v8365_v28  ;;  %3639 = vmatmul.mubr.msk.f32.gmra.mxu1 %vm4270_vm2, %v8366_v36  ;;  %v8377_v36 = vld [vmem:[#allocation198_spill] sm:$0xff] }
 0x1ce   :  { %v6695_v20 = vadd.f32 %v1902_v4, %v6528_v55  ;;  %v6697_v9 = vadd.f32 %v2127_v56, %v1743_v48  ;;  %2370 = vmatprep.mubr.f32.mxu0 %v8369_v0  ;;  %2595 = vmatprep.mubr.f32.mxu1 %v8370_v54  ;;  %v8378_v48 = vld [vmem:[#allocation98_spill] sm:$0xff] }
 0x1cf   :  { %v1904_v31 = vpop.f32.mrf.mxu1  ;;  %v2129_v15 = vpop.f32.mrf.mxu0 }
 0x1d0   :  { %8367 = vst [vmem:[#allocation137_spill] sm:$0xff] %v6695_v20  ;;  %8368 = vst [vmem:[#allocation27_spill] sm:$0xff] %v6697_v9  ;;  %v8379_v31 = vld [vmem:[#allocation172_spill] sm:$0xff]  ;;  %v8380_v15 = vld [vmem:[#allocation13_spill] sm:$0xff] }
 0x1d1   :  { %v1907_v42 = vpop.f32.mrf.mxu1  ;;  %v2132_v28 = vpop.f32.mrf.mxu0  ;;  %2371 = vmatmul.mubr.f32.gmra.mxu0 %v8373_v24  ;;  %2596 = vmatmul.mubr.f32.gmra.mxu1 %v8374_v16  ;;  %v1753_v58 = vadd.f32 %v8380_v15, %v8379_v31  ;;  %v8381_v9 = vld [vmem:[#allocation28_spill] sm:$0xff]  ;;  %v8382_v20 = vld [vmem:[#allocation90_spill] sm:$0xff]  ;;  %v8385_v16 = vld [vmem:[#allocation199_spill] sm:$0xff] }
 0x1d2   :  { %v6706_v55 = vadd.f32 %v1907_v42, %v6539_v29  ;;  %v6708_v56 = vadd.f32 %v2132_v28, %v1748_v10  ;;  %2375 = vmatprep.mubr.f32.mxu0 %v8377_v36  ;;  %2600 = vmatprep.mubr.f32.mxu1 %v8378_v48  ;;  %v8386_v42 = vld [vmem:[#allocation101_spill] sm:$0xff] }
 0x1d3   :  { %v1909_v4 = vpop.f32.mrf.mxu1  ;;  %v2134_v54 = vpop.f32.mrf.mxu0 }
 0x1d4   :  { %8375 = vst [vmem:[#allocation140_spill] sm:$0xff] %v6706_v55  ;;  %8376 = vst [vmem:[#allocation33_spill] sm:$0xff] %v6708_v56  ;;  %v8387_v4 = vld [vmem:[#allocation91_spill] sm:$0xff]  ;;  %v8388_v54 = vld [vmem:[#allocation22_spill] sm:$0xff] }
 0x1d5   :  { %v1912_v27 = vpop.f32.mrf.mxu1  ;;  %v2137_v0 = vpop.f32.mrf.mxu0  ;;  %2376 = vmatmul.mubr.f32.gmra.mxu0 %v8381_v9  ;;  %3641 = vmatmul.mubr.msk.f32.gmra.mxu1 %vm4270_vm2, %v8382_v20  ;;  %v1758_v31 = vadd.f32 %v8388_v54, %v8387_v4  ;;  %v8389_v56 = vld [vmem:[#allocation32_spill] sm:$0xff]  ;;  %v8390_v55 = vld [vmem:[#allocation93_spill] sm:$0xff] }
 0x1d6   :  { %v6719_v28 = vadd.f32 %v1912_v27, %v6548_v53  ;;  %v6721_v29 = vadd.f32 %v2137_v0, %v1753_v58  ;;  %2380 = vmatprep.mubr.f32.mxu0 %v8385_v16  ;;  %2605 = vmatprep.mubr.f32.mxu1 %v8386_v42  ;;  %v8393_v0 = vld [vmem:[#allocation200_spill] sm:$0xff] }
 0x1d7   :  { %v1914_v10 = vpop.f32.mrf.mxu1  ;;  %v2139_v48 = vpop.f32.mrf.mxu0  ;;  %v8394_v58 = vld [vmem:[#allocation104_spill] sm:$0xff] }
 0x1d8   :  { %8383 = vst [vmem:[#allocation143_spill] sm:$0xff] %v6719_v28  ;;  %8384 = vst [vmem:[#allocation38_spill] sm:$0xff] %v6721_v29  ;;  %v8395_v10 = vld [vmem:[#allocation26_spill] sm:$0xff]  ;;  %v8396_v48 = vld [vmem:[#allocation23_spill] sm:$0xff] }
 0x1d9   :  { %v1917_v15 = vpop.f32.mrf.mxu1  ;;  %v2142_v36 = vpop.f32.mrf.mxu0  ;;  %2381 = vmatmul.mubr.f32.gmra.mxu0 %v8389_v56  ;;  %2606 = vmatmul.mubr.f32.gmra.mxu1 %v8390_v55  ;;  %v1763_v4 = vadd.f32 %v8396_v48, %v8395_v10  ;;  %v8397_v29 = vld [vmem:[#allocation37_spill] sm:$0xff]  ;;  %v8398_v28 = vld [vmem:[#allocation96_spill] sm:$0xff] }
 0x1da   :  { %v6730_v53 = vadd.f32 %v1917_v15, %v6559_v5  ;;  %v6732_v20 = vadd.f32 %v2142_v36, %v1758_v31  ;;  %2385 = vmatprep.mubr.f32.mxu0 %v8393_v0  ;;  %2610 = vmatprep.mubr.f32.mxu1 %v8394_v58  ;;  %v8401_v36 = vld [vmem:[#allocation201_spill] sm:$0xff]  ;;  %v8402_v31 = vld [vmem:[#allocation107_spill] sm:$0xff] }
 0x1db   :  { %v1919_v27 = vpop.f32.mrf.mxu1  ;;  %v2144_v42 = vpop.f32.mrf.mxu0 }
 0x1dc   :  { %8391 = vst [vmem:[#allocation146_spill] sm:$0xff] %v6730_v53  ;;  %8392 = vst [vmem:[#allocation45_spill] sm:$0xff] %v6732_v20  ;;  %v8403_v27 = vld [vmem:[#allocation175_spill] sm:$0xff] }
 0x1dd   :  { %v1922_v54 = vpop.f32.mrf.mxu1  ;;  %v2147_v16 = vpop.f32.mrf.mxu0  ;;  %2386 = vmatmul.mubr.f32.gmra.mxu0 %v8397_v29  ;;  %3643 = vmatmul.mubr.msk.f32.gmra.mxu1 %vm4270_vm2, %v8398_v28  ;;  %v8404_v42 = vld [vmem:[#allocation31_spill] sm:$0xff] }
 0x1de   :  { %v6743_v5 = vadd.f32 %v1922_v54, %v6568_v32  ;;  %v6745_v55 = vadd.f32 %v2147_v16, %v1763_v4  ;;  %2390 = vmatprep.mubr.f32.mxu0 %v8401_v36  ;;  %2615 = vmatprep.mubr.f32.mxu1 %v8402_v31  ;;  %v1768_v10 = vadd.f32 %v8404_v42, %v8403_v27  ;;  %v8405_v20 = vld [vmem:[#allocation43_spill] sm:$0xff]  ;;  %v8409_v16 = vld [vmem:[#allocation202_spill] sm:$0xff] }
 0x1df   :  { %v1924_v15 = vpop.f32.mrf.mxu1  ;;  %v2149_v58 = vpop.f32.mrf.mxu0  ;;  %v8406_v53 = vld [vmem:[#allocation99_spill] sm:$0xff]  ;;  %v8410_v4 = vld [vmem:[#allocation110_spill] sm:$0xff] }
 0x1e0   :  { %8399 = vst [vmem:[#allocation149_spill] sm:$0xff] %v6743_v5  ;;  %8400 = vst [vmem:[#allocation50_spill] sm:$0xff] %v6745_v55  ;;  %v8411_v15 = vld [vmem:[#allocation177_spill] sm:$0xff]  ;;  %v8412_v58 = vld [vmem:[#allocation35_spill] sm:$0xff] }
 0x1e1   :  { %v1927_v48 = vpop.f32.mrf.mxu1  ;;  %v2152_v0 = vpop.f32.mrf.mxu0  ;;  %2391 = vmatmul.mubr.f32.gmra.mxu0 %v8405_v20  ;;  %2616 = vmatmul.mubr.f32.gmra.mxu1 %v8406_v53  ;;  %v1773_v27 = vadd.f32 %v8412_v58, %v8411_v15  ;;  %v8413_v55 = vld [vmem:[#allocation47_spill] sm:$0xff]  ;;  %v8414_v5 = vld [vmem:[#allocation102_spill] sm:$0xff] }
 0x1e2   :  { %v6754_v32 = vadd.f32 %v1927_v48, %v6579_v41  ;;  %v6756_v28 = vadd.f32 %v2152_v0, %v1768_v10  ;;  %2395 = vmatprep.mubr.f32.mxu0 %v8409_v16  ;;  %2620 = vmatprep.mubr.f32.mxu1 %v8410_v4  ;;  %v8417_v0 = vld [vmem:[#allocation203_spill] sm:$0xff]  ;;  %v8418_v10 = vld [vmem:[#allocation113_spill] sm:$0xff] }
 0x1e3   :  { %v1929_v54 = vpop.f32.mrf.mxu1  ;;  %v2154_v31 = vpop.f32.mrf.mxu0 }
 0x1e4   :  { %8407 = vst [vmem:[#allocation152_spill] sm:$0xff] %v6754_v32  ;;  %8408 = vst [vmem:[#allocation53_spill] sm:$0xff] %v6756_v28  ;;  %v8419_v54 = vld [vmem:[#allocation179_spill] sm:$0xff]  ;;  %v8420_v31 = vld [vmem:[#allocation41_spill] sm:$0xff] }
 0x1e5   :  { %v1932_v42 = vpop.f32.mrf.mxu1  ;;  %v2157_v36 = vpop.f32.mrf.mxu0  ;;  %2396 = vmatmul.mubr.f32.gmra.mxu0 %v8413_v55  ;;  %3645 = vmatmul.mubr.msk.f32.gmra.mxu1 %vm4270_vm2, %v8414_v5  ;;  %v1778_v15 = vadd.f32 %v8420_v31, %v8419_v54  ;;  %v8421_v28 = vld [vmem:[#allocation49_spill] sm:$0xff] }
 0x1e6   :  { %v6767_v41 = vadd.f32 %v1932_v42, %v6588_v46  ;;  %v6769_v53 = vadd.f32 %v2157_v36, %v1773_v27  ;;  %2400 = vmatprep.mubr.f32.mxu0 %v8417_v0  ;;  %2625 = vmatprep.mubr.f32.mxu1 %v8418_v10  ;;  %v8422_v32 = vld [vmem:[#allocation105_spill] sm:$0xff]  ;;  %v8425_v36 = vld [vmem:[#allocation204_spill] sm:$0xff] }
 0x1e7   :  { %v1934_v48 = vpop.f32.mrf.mxu1  ;;  %v2159_v4 = vpop.f32.mrf.mxu0  ;;  %v8426_v27 = vld [vmem:[#allocation116_spill] sm:$0xff] }
 0x1e8   :  { %8415 = vst [vmem:[#allocation155_spill] sm:$0xff] %v6767_v41  ;;  %8416 = vst [vmem:[#allocation58_spill] sm:$0xff] %v6769_v53  ;;  %v8427_v48 = vld [vmem:[#allocation181_spill] sm:$0xff]  ;;  %v8428_v4 = vld [vmem:[#allocation42_spill] sm:$0xff] }
 0x1e9   :  { %v1937_v58 = vpop.f32.mrf.mxu1  ;;  %v2162_v16 = vpop.f32.mrf.mxu0  ;;  %2401 = vmatmul.mubr.f32.gmra.mxu0 %v8421_v28  ;;  %2626 = vmatmul.mubr.f32.gmra.mxu1 %v8422_v32  ;;  %v1783_v54 = vadd.f32 %v8428_v4, %v8427_v48  ;;  %v8429_v53 = vld [vmem:[#allocation57_spill] sm:$0xff]  ;;  %v8430_v41 = vld [vmem:[#allocation108_spill] sm:$0xff] }
 0x1ea   :  { %v6778_v46 = vadd.f32 %v1937_v58, %v6599_v25  ;;  %v6780_v5 = vadd.f32 %v2162_v16, %v1778_v15  ;;  %2405 = vmatprep.mubr.f32.mxu0 %v8425_v36  ;;  %2630 = vmatprep.mubr.f32.mxu1 %v8426_v27  ;;  %v8433_v16 = vld [vmem:[#allocation205_spill] sm:$0xff]  ;;  %v8434_v15 = vld [vmem:[#allocation119_spill] sm:$0xff] }
 0x1eb   :  { %v1939_v42 = vpop.f32.mrf.mxu1  ;;  %v2164_v10 = vpop.f32.mrf.mxu0 }
 0x1ec   :  { %8423 = vst [vmem:[#allocation158_spill] sm:$0xff] %v6778_v46  ;;  %8424 = vst [vmem:[#allocation64_spill] sm:$0xff] %v6780_v5  ;;  %v8435_v42 = vld [vmem:[#allocation183_spill] sm:$0xff]  ;;  %v8436_v10 = vld [vmem:[#allocation52_spill] sm:$0xff] }
 0x1ed   :  { %v1942_v31 = vpop.f32.mrf.mxu1  ;;  %v2167_v0 = vpop.f32.mrf.mxu0  ;;  %2406 = vmatmul.mubr.f32.gmra.mxu0 %v8429_v53  ;;  %3647 = vmatmul.mubr.msk.f32.gmra.mxu1 %vm4270_vm2, %v8430_v41  ;;  %v1788_v48 = vadd.f32 %v8436_v10, %v8435_v42  ;;  %v8437_v5 = vld [vmem:[#allocation62_spill] sm:$0xff]  ;;  %v8438_v46 = vld [vmem:[#allocation111_spill] sm:$0xff] }
 0x1ee   :  { %v6791_v25 = vadd.f32 %v1942_v31, %v6608_v44  ;;  %v6793_v32 = vadd.f32 %v2167_v0, %v1783_v54  ;;  %2410 = vmatprep.mubr.f32.mxu0 %v8433_v16  ;;  %2635 = vmatprep.mubr.f32.mxu1 %v8434_v15  ;;  %v8439_v0 = vld [vmem:[#allocation63_spill] sm:$0xff]  ;;  %v8440_v54 = vld [vmem:[#allocation121_spill] sm:$0xff] }
 0x1ef   :  { %v1944_v58 = vpop.f32.mrf.mxu1  ;;  %v2169_v27 = vpop.f32.mrf.mxu0 }
 0x1f0   :  { %8431 = vst [vmem:[#allocation68_spill] sm:$0xff] %v6791_v25  ;;  %8432 = vst [vmem:[#allocation74_spill] sm:$0xff] %v6793_v32  ;;  %v8441_v58 = vld [vmem:[#allocation59_spill] sm:$0xff]  ;;  %v8442_v27 = vld [vmem:[#allocation54_spill] sm:$0xff] }
 0x1f1   :  { %v1947_v4 = vpop.f32.mrf.mxu1  ;;  %v2172_v36 = vpop.f32.mrf.mxu0  ;;  %2411 = vmatmul.mubr.f32.gmra.mxu0 %v8437_v5  ;;  %2636 = vmatmul.mubr.f32.gmra.mxu1 %v8438_v46  ;;  %v1793_v42 = vadd.f32 %v8442_v27, %v8441_v58  ;;  %v8443_v32 = vld [vmem:[#allocation67_spill] sm:$0xff]  ;;  %v8444_v25 = vld [vmem:[#allocation114_spill] sm:$0xff]  ;;  %v583_v58 = vsel %vm354_vm0, 0.0, %v6467_v57 }
 0x1f2   :  { %v6802_v44 = vadd.f32 %v1947_v4, %v6619_v62  ;;  %v6804_v41 = vadd.f32 %v2172_v36, %v1788_v48  ;;  %2415 = vmatprep.mubr.f32.mxu0 %v8439_v0  ;;  %2640 = vmatprep.mubr.f32.mxu1 %v8440_v54  ;;  %v8446_v36 = vld [vmem:[#allocation123_spill] sm:$0xff]  ;;  %v8447_v54 = vld [vmem:[#allocation66_spill] sm:$0xff] }
 0x1f3   :  { %v1949_v31 = vpop.f32.mrf.mxu1  ;;  %v2174_v15 = vpop.f32.mrf.mxu0 }
 0x1f4   :  { %v8448_v31 = vld [vmem:[#allocation61_spill] sm:$0xff] }
 0x1f5   :  { %v1952_v10 = vpop.f32.mrf.mxu1  ;;  %v2177_v16 = vpop.f32.mrf.mxu0  ;;  %2416 = vmatmul.mubr.f32.gmra.mxu0 %v8443_v32  ;;  %3649 = vmatmul.mubr.msk.f32.gmra.mxu1 %vm4270_vm2, %v8444_v25  ;;  %v1798_v15 = vadd.f32 %v8448_v31, %v8447_v54  ;;  %v8449_v25 = vld [vmem:[#allocation72_spill] sm:$0xff]  ;;  %v8453_v54 = vld [vmem:[#allocation71_spill] sm:$0xff]  ;;  %v8454_v31 = vld [vmem:[#allocation206_spill] sm:$0xff] }
 0x1f6   :  { %v6815_v62 = vadd.f32 %v1952_v10, %v6628_v51  ;;  %v6817_v46 = vadd.f32 %v2177_v16, %v1793_v42  ;;  %2420 = vmatprep.mubr.f32.mxu0 %v6463_v21  ;;  %2645 = vmatprep.mubr.f32.mxu1 %v8446_v36  ;;  %v8450_v51 = vld [vmem:[#allocation117_spill] sm:$0xff]  ;;  %v1803_v21 = vadd.f32 %v8454_v31, %v8453_v54 }
 0x1f7   :  { %v1954_v48 = vpop.f32.mrf.mxu1  ;;  %v2179_v4 = vpop.f32.mrf.mxu0 }
 0x1f8   :  { %8445 = vst [vmem:[#allocation85_spill] sm:$0xff] %v6817_v46  ;;  %v1076_v48 = vrot.slane %v583_v58, 2  ;;  %v1077_v4 = vrot.slane %v6499_v8, 2 }
 0x1f9   :  { %v1957_v27 = vpop.f32.mrf.mxu1  ;;  %v2182_v0 = vpop.f32.mrf.mxu0  ;;  %2421 = vmatmul.mubr.f32.gmra.mxu0 %v8449_v25  ;;  %2646 = vmatmul.mubr.f32.gmra.mxu1 %v8450_v51  ;;  %v616_v51 = vsel %vm354_vm0, %v6477_v12, 0.0  ;;  %v844_v12 = vrot.slane %v583_v58, 1  ;;  %v8461_v58 = vld [vmem:[#allocation8_spill] sm:$0xff] }
 0x1fa   :  { %v6828_v16 = vadd.f32 %v1957_v27, %v6639_v40  ;;  %v6830_v42 = vadd.f32 %v2182_v0, %v1798_v15  ;;  %2425 = vmatprep.mubr.f32.mxu0 %v6490_v19  ;;  %2650 = vmatprep.mubr.f32.mxu1 %v6493_v7  ;;  %v8455_v27 = vld [vmem:[#allocation76_spill] sm:$0xff]  ;;  %v8456_v0 = vld [vmem:[#allocation162_spill] sm:$0xff]  ;;  %v845_v7 = vrot.slane %v6499_v8, 1  ;;  %v6852_v31 = vsel %vm915_vm3, %v1076_v48, %v1077_v4 }
 0x1fb   :  { %v1959_v10 = vpop.f32.mrf.mxu1  ;;  %v2184_v36 = vpop.f32.mrf.mxu0  ;;  %v1079_v19 = vrot.slane %v616_v51, 2 }
 0x1fc   :  { %8451 = vst [vmem:[#allocation77_spill] sm:$0xff] %v6828_v16  ;;  %8452 = vst [vmem:[#allocation87_spill] sm:$0xff] %v6830_v42  ;;  %v8457_v42 = vld [vmem:[#allocation191_spill] sm:$0xff]  ;;  %v6866_v48 = vsel %vm683_vm1, %v844_v12, %v845_v7 }
 0x1fd   :  { %v1962_v57 = vpop.f32.mrf.mxu1  ;;  %v2187_v40 = vpop.f32.mrf.mxu0  ;;  %2426 = vmatmul.mubr.f32.gmra.mxu0 %v8455_v27  ;;  %3651 = vmatmul.mubr.msk.f32.gmra.mxu1 %vm4270_vm2, %v8456_v0  ;;  %v8458_v0 = vld [vmem:[#allocation209_spill] sm:$0xff] }
 0x1fe   :  { %v6845_v15 = vadd.f32 %v1962_v57, %v6648_v49  ;;  %v6847_v10 = vadd.f32 %v2187_v40, %v1803_v21  ;;  %2430 = vmatprep.mubr.f32.mxu0 %v6514_v59  ;;  %2655 = vmatprep.mubr.f32.mxu1 %v6517_v60  ;;  %v1808_v16 = vadd.f32 %v8458_v0, %v8457_v42  ;;  %v8459_v57 = vld [vmem:[#allocation79_spill] sm:$0xff]  ;;  %v8460_v21 = vld [vmem:[#allocation168_spill] sm:$0xff]  ;;  %v847_v40 = vrot.slane %v616_v51, 1 }
 0x1ff   :  { %v1964_v36 = vpop.f32.mrf.mxu1  ;;  %v2189_v54 = vpop.f32.mrf.mxu0 }
 0x200   :  { %v6869_v54 = vsel %vm915_vm3, %v1077_v4, %v1079_v19  ;;  %v6884_v19 = vsel %vm683_vm1, %v845_v7, %v847_v40 }
 0x201   :  { %v1967_v8 = vpop.f32.mrf.mxu1  ;;  %v2192_v46 = vpop.f32.mrf.mxu0  ;;  %2431 = vmatmul.mubr.f32.gmra.mxu0 %v8459_v57  ;;  %2656 = vmatmul.mubr.f32.gmra.mxu1 %v8460_v21 }
 0x202   :  { %v6859_v49 = vadd.f32 %v1967_v8, %v6659_v63  ;;  %v6861_v60 = vadd.f32 %v2192_v46, %v1808_v16  ;;  %2435 = vmatprep.mubr.f32.mxu0 %v6852_v31  ;;  %2660 = vmatprep.mubr.f32.mxu1 %v8461_v58  ;;  %v8462_v8 = vld [vmem:[#allocation2_spill] sm:$0xff] }
 0x203   :  { %v1969_v42 = vpop.f32.mrf.mxu1  ;;  %v2194_v36 = vpop.f32.mrf.mxu0  ;;  %v8463_v16 = vld [vmem:[#allocation10_spill] sm:$0xff] }
 0x204   :  { %v8464_v36 = vld [vmem:[#allocation94_spill] sm:$0xff] }
 0x205   :  { %v1972_v0 = vpop.f32.mrf.mxu1  ;;  %v2197_v21 = vpop.f32.mrf.mxu0  ;;  %2436 = vmatmul.mubr.f32.gmra.mxu0 %v6866_v48  ;;  %3653 = vmatmul.mubr.msk.f32.gmra.mxu1 %vm4270_vm2, %v8462_v8 }
 0x206   :  { %v6876_v63 = vadd.f32 %v1972_v0, %v6668_v61  ;;  %v6879_v46 = vadd.f32 %v2197_v21, %v6509_v43  ;;  %2440 = vmatprep.mubr.f32.mxu0 %v6869_v54  ;;  %2665 = vmatprep.mubr.f32.mxu1 %v8463_v16 }
 0x207   :  { %v1974_v4 = vpop.f32.mrf.mxu1  ;;  %v2199_v51 = vpop.f32.mrf.mxu0 }
 0x208   :  { %v8465_v4 = vld [vmem:[#allocation126_spill] sm:$0xff]  ;;  %v8466_v51 = vld [vmem:[#allocation97_spill] sm:$0xff] }
 0x209   :  { %v1977_v12 = vpop.f32.mrf.mxu1  ;;  %v2202_v42 = vpop.f32.mrf.mxu0  ;;  %2441 = vmatmul.mubr.f32.gmra.mxu0 %v6884_v19  ;;  %2666 = vmatmul.mubr.f32.gmra.mxu1 %v8462_v8 }
 0x20a   :  { %v6889_v61 = vadd.f32 %v1977_v12, %v6679_v45  ;;  %v6892_v43 = vadd.f32 %v2202_v42, %v6524_v14  ;;  %2670 = vmatprep.mubr.f32.mxu1 %v8322_v23  ;;  %3798 = vmatprep.mubr.f32.mxu0 %v8464_v36  ;;  %v8467_v14 = vld [vmem:[#allocation100_spill] sm:$0xff] }
 0x20b   :  { %v1979_v7 = vpop.f32.mrf.mxu1  ;;  %v2204_v40 = vpop.f32.mrf.mxu0 }
 0x20c   :  { %v8468_v7 = vld [vmem:[#allocation129_spill] sm:$0xff]  ;;  %v8469_v40 = vld [vmem:[#allocation103_spill] sm:$0xff] }
 0x20d   :  { %v6896_v0 = vpop.f32.mrf.mxu1  ;;  %v2207_v21 = vpop.f32.mrf.mxu0  ;;  %3655 = vmatmul.mubr.msk.f32.gmra.mxu1 %vm4270_vm2, %v8465_v4  ;;  %3799 = vmatmul.mubr.f32.vlgmr.msra.gmra.mxu0 %v8466_v51 }
 0x20e   :  { %v6903_v45 = vadd.f32 %v2207_v21, %v6535_v13  ;;  %2675 = vmatprep.mubr.f32.mxu1 %v8324_v50  ;;  %3801 = vmatprep.mubr.f32.mxu0 %v8467_v14  ;;  %v8470_v13 = vld [vmem:[#allocation106_spill] sm:$0xff] }
 0x20f   :  { %v1984_v23 = vpop.f32.mrf.mxu1  ;;  %v2209_v12 = vpop.f32.mrf.mxu0 }
 0x210   :  { %v8471_v23 = vld [vmem:[#allocation132_spill] sm:$0xff]  ;;  %v8472_v12 = vld [vmem:[#allocation109_spill] sm:$0xff] }
 0x211   :  { %v6907_v42 = vpop.f32.mrf.mxu1  ;;  %v2212_v36 = vpop.f32.mrf.mxu0  ;;  %2676 = vmatmul.mubr.f32.gmra.mxu1 %v8468_v7  ;;  %3802 = vmatmul.mubr.f32.gmra.mxu0 %v8469_v40 }
 0x212   :  { %v6912_v4 = vadd.f32 %v2212_v36, %v6544_v38  ;;  %2680 = vmatprep.mubr.f32.mxu1 %v8326_v52  ;;  %3804 = vmatprep.mubr.f32.mxu0 %v8470_v13  ;;  %v8473_v38 = vld [vmem:[#allocation112_spill] sm:$0xff] }
 0x213   :  { %v1989_v21 = vpop.f32.mrf.mxu1  ;;  %v2214_v50 = vpop.f32.mrf.mxu0 }
 0x214   :  { %v8474_v21 = vld [vmem:[#allocation135_spill] sm:$0xff] }
 0x215   :  { %v6916_v51 = vpop.f32.mrf.mxu1  ;;  %v2217_v14 = vpop.f32.mrf.mxu0  ;;  %3657 = vmatmul.mubr.msk.f32.gmra.mxu1 %vm4270_vm2, %v8471_v23  ;;  %3805 = vmatmul.mubr.f32.gmra.mxu0 %v8472_v12  ;;  %v8475_v50 = vld [vmem:[#allocation115_spill] sm:$0xff] }
 0x216   :  { %v6923_v7 = vadd.f32 %v2217_v14, %v6555_v11  ;;  %2685 = vmatprep.mubr.f32.mxu1 %v8328_v22  ;;  %3807 = vmatprep.mubr.f32.mxu0 %v8473_v38  ;;  %v8476_v11 = vld [vmem:[#allocation118_spill] sm:$0xff] }
 0x217   :  { %v1994_v52 = vpop.f32.mrf.mxu1  ;;  %v2219_v36 = vpop.f32.mrf.mxu0 }
 0x218   :  { %v8477_v52 = vld [vmem:[#allocation138_spill] sm:$0xff]  ;;  %v8478_v36 = vld [vmem:[#allocation120_spill] sm:$0xff] }
 0x219   :  { %v6927_v40 = vpop.f32.mrf.mxu1  ;;  %v2222_v13 = vpop.f32.mrf.mxu0  ;;  %2686 = vmatmul.mubr.f32.gmra.mxu1 %v8474_v21  ;;  %3808 = vmatmul.mubr.f32.gmra.mxu0 %v8475_v50 }
 0x21a   :  { %v6932_v23 = vadd.f32 %v2222_v13, %v6564_v26  ;;  %2690 = vmatprep.mubr.f32.mxu1 %v8330_v3  ;;  %3810 = vmatprep.mubr.f32.mxu0 %v8476_v11  ;;  %v8479_v26 = vld [vmem:[#allocation122_spill] sm:$0xff] }
 0x21b   :  { %v1999_v14 = vpop.f32.mrf.mxu1  ;;  %v2224_v22 = vpop.f32.mrf.mxu0 }
 0x21c   :  { %v8480_v14 = vld [vmem:[#allocation141_spill] sm:$0xff]  ;;  %v8481_v22 = vld [vmem:[#allocation124_spill] sm:$0xff] }
 0x21d   :  { %v6936_v12 = vpop.f32.mrf.mxu1  ;;  %v2227_v38 = vpop.f32.mrf.mxu0  ;;  %3659 = vmatmul.mubr.msk.f32.gmra.mxu1 %vm4270_vm2, %v8477_v52  ;;  %3811 = vmatmul.mubr.f32.gmra.mxu0 %v8478_v36 }
 0x21e   :  { %v6943_v21 = vadd.f32 %v2227_v38, %v6575_v39  ;;  %2695 = vmatprep.mubr.f32.mxu1 %v8332_v6  ;;  %3813 = vmatprep.mubr.f32.mxu0 %v8479_v26  ;;  %v8482_v39 = vld [vmem:[#allocation125_spill] sm:$0xff] }
 0x21f   :  { %v2004_v3 = vpop.f32.mrf.mxu1  ;;  %v2229_v13 = vpop.f32.mrf.mxu0 }
 0x220   :  { %v8483_v3 = vld [vmem:[#allocation144_spill] sm:$0xff]  ;;  %v8484_v13 = vld [vmem:[#allocation127_spill] sm:$0xff] }
 0x221   :  { %v6947_v50 = vpop.f32.mrf.mxu1  ;;  %v2232_v11 = vpop.f32.mrf.mxu0  ;;  %2696 = vmatmul.mubr.f32.gmra.mxu1 %v8480_v14  ;;  %3814 = vmatmul.mubr.f32.gmra.mxu0 %v8481_v22 }
 0x222   :  { %v6952_v52 = vadd.f32 %v2232_v11, %v6584_v1  ;;  %2700 = vmatprep.mubr.f32.mxu1 %v8334_v2  ;;  %3816 = vmatprep.mubr.f32.mxu0 %v8482_v39  ;;  %v8485_v1 = vld [vmem:[#allocation130_spill] sm:$0xff] }
 0x223   :  { %v2009_v38 = vpop.f32.mrf.mxu1  ;;  %v2234_v6 = vpop.f32.mrf.mxu0 }
 0x224   :  { %v8486_v38 = vld [vmem:[#allocation147_spill] sm:$0xff]  ;;  %v8487_v6 = vld [vmem:[#allocation133_spill] sm:$0xff] }
 0x225   :  { %v6956_v36 = vpop.f32.mrf.mxu1  ;;  %v2237_v26 = vpop.f32.mrf.mxu0  ;;  %3661 = vmatmul.mubr.msk.f32.gmra.mxu1 %vm4270_vm2, %v8483_v3  ;;  %3817 = vmatmul.mubr.f32.gmra.mxu0 %v8484_v13 }
 0x226   :  { %v6963_v14 = vadd.f32 %v2237_v26, %v6595_v33  ;;  %2705 = vmatprep.mubr.f32.mxu1 %v8336_v37  ;;  %3819 = vmatprep.mubr.f32.mxu0 %v8485_v1  ;;  %v8488_v33 = vld [vmem:[#allocation136_spill] sm:$0xff] }
 0x227   :  { %v2014_v2 = vpop.f32.mrf.mxu1  ;;  %v2239_v11 = vpop.f32.mrf.mxu0 }
 0x228   :  { %v8490_v2 = vld [vmem:[#allocation150_spill] sm:$0xff]  ;;  %v8491_v11 = vld [vmem:[#allocation139_spill] sm:$0xff] }
 0x229   :  { %v6967_v22 = vpop.f32.mrf.mxu1  ;;  %v2242_v39 = vpop.f32.mrf.mxu0  ;;  %2706 = vmatmul.mubr.f32.gmra.mxu1 %v8486_v38  ;;  %3820 = vmatmul.mubr.f32.gmra.mxu0 %v8487_v6 }
 0x22a   :  { %v6972_v3 = vadd.f32 %v2242_v39, %v6604_v35  ;;  %2710 = vmatprep.mubr.f32.mxu1 %v8338_v17  ;;  %3822 = vmatprep.mubr.f32.mxu0 %v8488_v33  ;;  %v8493_v35 = vld [vmem:[#allocation142_spill] sm:$0xff] }
 0x22b   :  { %v2019_v26 = vpop.f32.mrf.mxu1  ;;  %v2244_v37 = vpop.f32.mrf.mxu0 }
 0x22c   :  { %v8495_v26 = vld [vmem:[#allocation153_spill] sm:$0xff] }
 0x22d   :  { %v6976_v13 = vpop.f32.mrf.mxu1  ;;  %v2247_v1 = vpop.f32.mrf.mxu0  ;;  %3663 = vmatmul.mubr.msk.f32.gmra.mxu1 %vm4270_vm2, %v8490_v2  ;;  %3823 = vmatmul.mubr.f32.gmra.mxu0 %v8491_v11  ;;  %v8496_v37 = vld [vmem:[#allocation145_spill] sm:$0xff]  ;;  %v8498_v11 = vld [vmem:[#allocation163_spill] sm:$0xff] }
 0x22e   :  { %8489 = vst [vmem:[#allocation80_spill] sm:$0xff] %v6976_v13  ;;  %v6983_v38 = vadd.f32 %v2247_v1, %v6615_v30  ;;  %2715 = vmatprep.mubr.f32.mxu1 %v5946_v47  ;;  %3825 = vmatprep.mubr.f32.mxu0 %v8493_v35  ;;  %v8499_v30 = vld [vmem:[#allocation148_spill] sm:$0xff] }
 0x22f   :  { %v2024_v17 = vpop.f32.mrf.mxu1  ;;  %v2249_v39 = vpop.f32.mrf.mxu0  ;;  %v8547_v13 = vld [vmem:[#allocation44_spill] sm:$0xff] }
 0x230   :  { %8492 = vst [vmem:[#allocation89_spill] sm:$0xff] %v6983_v38  ;;  %v8501_v17 = vld [vmem:[#allocation156_spill] sm:$0xff]  ;;  %v8502_v39 = vld [vmem:[#allocation151_spill] sm:$0xff] }
 0x231   :  { %v6987_v6 = vpop.f32.mrf.mxu1  ;;  %v2252_v33 = vpop.f32.mrf.mxu0  ;;  %2716 = vmatmul.mubr.f32.gmra.mxu1 %v8495_v26  ;;  %3826 = vmatmul.mubr.f32.gmra.mxu0 %v8496_v37  ;;  %v8503_v26 = vld [vmem:[#allocation128_spill] sm:$0xff] }
 0x232   :  { %8494 = vst [vmem:[#allocation82_spill] sm:$0xff] %v6987_v6  ;;  %v6992_v2 = vadd.f32 %v2252_v33, %v6624_v18  ;;  %2720 = vmatprep.mubr.f32.mxu1 %v8498_v11  ;;  %3828 = vmatprep.mubr.f32.mxu0 %v8499_v30  ;;  %v8505_v18 = vld [vmem:[#allocation167_spill] sm:$0xff]  ;;  %v8506_v33 = vld [vmem:[#allocation154_spill] sm:$0xff] }
 0x233   :  { %v2029_v1 = vpop.f32.mrf.mxu1  ;;  %v2254_v47 = vpop.f32.mrf.mxu0  ;;  %v8510_v6 = vld [vmem:[#allocation14_spill] sm:$0xff] }
 0x234   :  { %8497 = vst [vmem:[#allocation92_spill] sm:$0xff] %v6992_v2  ;;  %v8509_v2 = vld [vmem:[#allocation157_spill] sm:$0xff] }
 0x235   :  { %v6996_v38 = vpop.f32.mrf.mxu1  ;;  %v2257_v35 = vpop.f32.mrf.mxu0  ;;  %3665 = vmatmul.mubr.msk.f32.gmra.mxu1 %vm4270_vm2, %v8501_v17  ;;  %3829 = vmatmul.mubr.f32.gmra.mxu0 %v8502_v39  ;;  %v8512_v39 = vld [vmem:[#allocation9_spill] sm:$0xff] }
 0x236   :  { %8500 = vst [vmem:[#allocation165_spill] sm:$0xff] %v6996_v38  ;;  %v7003_v37 = vadd.f32 %v2257_v35, %v8503_v26  ;;  %2725 = vmatprep.mubr.f32.mxu1 %v8505_v18  ;;  %3831 = vmatprep.mubr.f32.mxu0 %v8506_v33  ;;  %v8508_v38 = vld [vmem:[#allocation159_spill] sm:$0xff]  ;;  %v8513_v35 = vld [vmem:[#allocation160_spill] sm:$0xff] }
 0x237   :  { %v2034_v11 = vpop.f32.mrf.mxu1  ;;  %v2259_v30 = vpop.f32.mrf.mxu0 }
 0x238   :  { %8504 = vst [vmem:[#allocation6_spill] sm:$0xff] %v7003_v37  ;;  %v8515_v11 = vld [vmem:[#allocation3_spill] sm:$0xff]  ;;  %v8516_v30 = vld [vmem:[#allocation161_spill] sm:$0xff] }
 0x239   :  { %v7007_v1 = vpop.f32.mrf.mxu1  ;;  %v2262_v47 = vpop.f32.mrf.mxu0  ;;  %2726 = vmatmul.mubr.f32.gmra.mxu1 %v8508_v38  ;;  %3832 = vmatmul.mubr.f32.gmra.mxu0 %v8509_v2  ;;  %v8517_v38 = vld [vmem:[#allocation131_spill] sm:$0xff] }
 0x23a   :  { %8507 = vst [vmem:[#allocation84_spill] sm:$0xff] %v7007_v1  ;;  %v7012_v17 = vadd.f32 %v2262_v47, %v8510_v6  ;;  %2730 = vmatprep.mubr.f32.mxu1 %v8512_v39  ;;  %3834 = vmatprep.mubr.f32.mxu0 %v8513_v35  ;;  %v8519_v6 = vld [vmem:[#allocation15_spill] sm:$0xff]  ;;  %v8520_v47 = vld [vmem:[#allocation164_spill] sm:$0xff]  ;;  %v8524_v1 = vld [vmem:[#allocation18_spill] sm:$0xff] }
 0x23b   :  { %v2039_v26 = vpop.f32.mrf.mxu1  ;;  %v2264_v18 = vpop.f32.mrf.mxu0 }
 0x23c   :  { %8511 = vst [vmem:[#allocation95_spill] sm:$0xff] %v7012_v17  ;;  %v8523_v17 = vld [vmem:[#allocation169_spill] sm:$0xff] }
 0x23d   :  { %v7016_v37 = vpop.f32.mrf.mxu1  ;;  %v2267_v33 = vpop.f32.mrf.mxu0  ;;  %3667 = vmatmul.mubr.msk.f32.gmra.mxu1 %vm4270_vm2, %v8515_v11  ;;  %3835 = vmatmul.mubr.f32.gmra.mxu0 %v8516_v30  ;;  %v8526_v30 = vld [vmem:[#allocation17_spill] sm:$0xff] }
 0x23e   :  { %8514 = vst [vmem:[#allocation170_spill] sm:$0xff] %v7016_v37  ;;  %v7023_v2 = vadd.f32 %v2267_v33, %v8517_v38  ;;  %2735 = vmatprep.mubr.f32.mxu1 %v8519_v6  ;;  %3837 = vmatprep.mubr.f32.mxu0 %v8520_v47  ;;  %v8522_v37 = vld [vmem:[#allocation4_spill] sm:$0xff]  ;;  %v8527_v33 = vld [vmem:[#allocation69_spill] sm:$0xff] }
 0x23f   :  { %v2044_v39 = vpop.f32.mrf.mxu1  ;;  %v2269_v35 = vpop.f32.mrf.mxu0 }
 0x240   :  { %8518 = vst [vmem:[#allocation12_spill] sm:$0xff] %v7023_v2  ;;  %v8529_v39 = vld [vmem:[#allocation7_spill] sm:$0xff] }
 0x241   :  { %v7027_v26 = vpop.f32.mrf.mxu1  ;;  %v2272_v18 = vpop.f32.mrf.mxu0  ;;  %2736 = vmatmul.mubr.f32.gmra.mxu1 %v8522_v37  ;;  %3838 = vmatmul.mubr.f32.gmra.mxu0 %v8523_v17  ;;  %v8530_v35 = vld [vmem:[#allocation211_spill] sm:$0xff]  ;;  %v8531_v37 = vld [vmem:[#allocation134_spill] sm:$0xff] }
 0x242   :  { %8521 = vst [vmem:[#allocation20_spill] sm:$0xff] %v7027_v26  ;;  %v7032_v11 = vadd.f32 %v2272_v18, %v8524_v1  ;;  %2740 = vmatprep.mubr.f32.mxu1 %v8526_v30  ;;  %3840 = vmatprep.mubr.f32.mxu0 %v8527_v33  ;;  %v8533_v1 = vld [vmem:[#allocation83_spill] sm:$0xff] }
 0x243   :  { %v2049_v38 = vpop.f32.mrf.mxu1  ;;  %v2274_v6 = vpop.f32.mrf.mxu0  ;;  %v8543_v26 = vld [vmem:[#allocation27_spill] sm:$0xff] }
 0x244   :  { %8525 = vst [vmem:[#allocation88_spill] sm:$0xff] %v7032_v11  ;;  %v8535_v6 = vld [vmem:[#allocation11_spill] sm:$0xff]  ;;  %v8537_v11 = vld [vmem:[#allocation24_spill] sm:$0xff] }
 0x245   :  { %v7036_v2 = vpop.f32.mrf.mxu1  ;;  %v2277_v47 = vpop.f32.mrf.mxu0  ;;  %3669 = vmatmul.mubr.msk.f32.gmra.mxu1 %vm4270_vm2, %v8529_v39  ;;  %3841 = vmatmul.mubr.f32.gmra.mxu0 %v8530_v35 }
 0x246   :  { %8528 = vst [vmem:[#allocation98_spill] sm:$0xff] %v7036_v2  ;;  %v7043_v17 = vadd.f32 %v2277_v47, %v8531_v37  ;;  %2745 = vmatprep.mubr.f32.mxu1 %v8373_v24  ;;  %3843 = vmatprep.mubr.f32.mxu0 %v8533_v1  ;;  %v8536_v2 = vld [vmem:[#allocation86_spill] sm:$0xff]  ;;  %v8539_v47 = vld [vmem:[#allocation29_spill] sm:$0xff] }
 0x247   :  { %v2054_v18 = vpop.f32.mrf.mxu1  ;;  %v2279_v30 = vpop.f32.mrf.mxu0 }
 0x248   :  { %8532 = vst [vmem:[#allocation172_spill] sm:$0xff] %v7043_v17  ;;  %v8540_v18 = vld [vmem:[#allocation16_spill] sm:$0xff]  ;;  %v8541_v30 = vld [vmem:[#allocation34_spill] sm:$0xff] }
 0x249   :  { %v7047_v33 = vpop.f32.mrf.mxu1  ;;  %v2282_v38 = vpop.f32.mrf.mxu0  ;;  %2746 = vmatmul.mubr.f32.gmra.mxu1 %v8535_v6  ;;  %3844 = vmatmul.mubr.f32.gmra.mxu0 %v8536_v2  ;;  %v8542_v6 = vld [vmem:[#allocation137_spill] sm:$0xff] }
 0x24a   :  { %8534 = vst [vmem:[#allocation13_spill] sm:$0xff] %v7047_v33  ;;  %v7052_v39 = vadd.f32 %v2282_v38, %v8537_v11  ;;  %2750 = vmatprep.mubr.f32.mxu1 %v8381_v9  ;;  %3846 = vmatprep.mubr.f32.mxu0 %v8539_v47  ;;  %v8545_v9 = vld [vmem:[#allocation39_spill] sm:$0xff] }
 0x24b   :  { %v2059_v35 = vpop.f32.mrf.mxu1  ;;  %v2284_v24 = vpop.f32.mrf.mxu0 }
 0x24c   :  { %8538 = vst [vmem:[#allocation28_spill] sm:$0xff] %v7052_v39  ;;  %v8546_v39 = vld [vmem:[#allocation21_spill] sm:$0xff] }
 0x24d   :  { %v2287_v37 = vpop.f32.mrf.mxu0  ;;  %v2512_v17 = vpop.f32.mrf.mxu1  ;;  %3671 = vmatmul.mubr.msk.f32.gmra.mxu1 %vm4270_vm2, %v8540_v18  ;;  %3847 = vmatmul.mubr.f32.gmra.mxu0 %v8541_v30  ;;  %v8548_v18 = vld [vmem:[#allocation140_spill] sm:$0xff] }
 0x24e   :  { %v7061_v33 = vadd.f32 %v2287_v37, %v8542_v6  ;;  %v7064_v11 = vadd.f32 %v2512_v17, %v8543_v26  ;;  %2755 = vmatprep.mubr.f32.mxu1 %v8389_v56  ;;  %3849 = vmatprep.mubr.f32.mxu0 %v8545_v9  ;;  %v8550_v37 = vld [vmem:[#allocation33_spill] sm:$0xff]  ;;  %v8551_v26 = vld [vmem:[#allocation48_spill] sm:$0xff] }
 0x24f   :  { %v2289_v38 = vpop.f32.mrf.mxu0  ;;  %v2514_v47 = vpop.f32.mrf.mxu1 }
 0x250   :  { %8544 = vst [vmem:[#allocation90_spill] sm:$0xff] %v7064_v11  ;;  %v8552_v47 = vld [vmem:[#allocation25_spill] sm:$0xff]  ;;  %v8559_v11 = vld [vmem:[#allocation188_spill] sm:$0xff] }
 0x251   :  { %v2292_v35 = vpop.f32.mrf.mxu0  ;;  %v2517_v24 = vpop.f32.mrf.mxu1  ;;  %2756 = vmatmul.mubr.f32.gmra.mxu1 %v8546_v39  ;;  %3850 = vmatmul.mubr.f32.gmra.mxu0 %v8547_v13  ;;  %v8553_v39 = vld [vmem:[#allocation184_spill] sm:$0xff]  ;;  %v8554_v13 = vld [vmem:[#allocation143_spill] sm:$0xff] }
 0x252   :  { %v7071_v30 = vadd.f32 %v2292_v35, %v8548_v18  ;;  %v7074_v6 = vadd.f32 %v2517_v24, %v8550_v37  ;;  %2760 = vmatprep.mubr.f32.mxu1 %v8397_v29  ;;  %3852 = vmatprep.mubr.f32.mxu0 %v8551_v26  ;;  %v8556_v18 = vld [vmem:[#allocation38_spill] sm:$0xff] }
 0x253   :  { %v2294_v56 = vpop.f32.mrf.mxu0  ;;  %v2519_v17 = vpop.f32.mrf.mxu1  ;;  %v8557_v29 = vld [vmem:[#allocation186_spill] sm:$0xff] }
 0x254   :  { %8549 = vst [vmem:[#allocation101_spill] sm:$0xff] %v7071_v30  ;;  %v8558_v30 = vld [vmem:[#allocation30_spill] sm:$0xff] }
 0x255   :  { %v2297_v9 = vpop.f32.mrf.mxu0  ;;  %v2522_v38 = vpop.f32.mrf.mxu1  ;;  %3673 = vmatmul.mubr.msk.f32.gmra.mxu1 %vm4270_vm2, %v8552_v47  ;;  %3853 = vmatmul.mubr.f32.gmra.mxu0 %v8553_v39  ;;  %v8560_v47 = vld [vmem:[#allocation146_spill] sm:$0xff] }
 0x256   :  { %v7083_v35 = vadd.f32 %v2297_v9, %v8554_v13  ;;  %v7086_v24 = vadd.f32 %v2522_v38, %v8556_v18  ;;  %2765 = vmatprep.mubr.f32.mxu1 %v8405_v20  ;;  %3855 = vmatprep.mubr.f32.mxu0 %v8557_v29  ;;  %v8562_v9 = vld [vmem:[#allocation45_spill] sm:$0xff] }
 0x257   :  { %v2299_v37 = vpop.f32.mrf.mxu0  ;;  %v2524_v26 = vpop.f32.mrf.mxu1  ;;  %v8563_v38 = vld [vmem:[#allocation189_spill] sm:$0xff] }
 0x258   :  { %8555 = vst [vmem:[#allocation91_spill] sm:$0xff] %v7083_v35  ;;  %v8564_v26 = vld [vmem:[#allocation36_spill] sm:$0xff] }
 0x259   :  { %v2302_v56 = vpop.f32.mrf.mxu0  ;;  %v2527_v17 = vpop.f32.mrf.mxu1  ;;  %2766 = vmatmul.mubr.f32.gmra.mxu1 %v8558_v30  ;;  %3856 = vmatmul.mubr.f32.gmra.mxu0 %v8559_v11  ;;  %v8565_v30 = vld [vmem:[#allocation75_spill] sm:$0xff]  ;;  %v8566_v11 = vld [vmem:[#allocation149_spill] sm:$0xff]  ;;  %v8570_v35 = vld [vmem:[#allocation40_spill] sm:$0xff] }
 0x25a   :  { %v7093_v39 = vadd.f32 %v2302_v56, %v8560_v47  ;;  %v7096_v13 = vadd.f32 %v2527_v17, %v8562_v9  ;;  %2770 = vmatprep.mubr.f32.mxu1 %v8413_v55  ;;  %3858 = vmatprep.mubr.f32.mxu0 %v8563_v38  ;;  %v8568_v47 = vld [vmem:[#allocation50_spill] sm:$0xff] }
 0x25b   :  { %v2304_v20 = vpop.f32.mrf.mxu0  ;;  %v2529_v18 = vpop.f32.mrf.mxu1  ;;  %v8569_v55 = vld [vmem:[#allocation78_spill] sm:$0xff] }
 0x25c   :  { %8561 = vst [vmem:[#allocation22_spill] sm:$0xff] %v7093_v39  ;;  %v8571_v39 = vld [vmem:[#allocation81_spill] sm:$0xff] }
 0x25d   :  { %v2307_v29 = vpop.f32.mrf.mxu0  ;;  %v2532_v37 = vpop.f32.mrf.mxu1  ;;  %3675 = vmatmul.mubr.msk.f32.gmra.mxu1 %vm4270_vm2, %v8564_v26  ;;  %3859 = vmatmul.mubr.f32.gmra.mxu0 %v8565_v30  ;;  %v8572_v26 = vld [vmem:[#allocation152_spill] sm:$0xff] }
 0x25e   :  { %v7105_v56 = vadd.f32 %v2307_v29, %v8566_v11  ;;  %v7108_v17 = vadd.f32 %v2532_v37, %v8568_v47  ;;  %2775 = vmatprep.mubr.f32.mxu1 %v8421_v28  ;;  %3861 = vmatprep.mubr.f32.mxu0 %v8569_v55  ;;  %v8574_v29 = vld [vmem:[#allocation53_spill] sm:$0xff]  ;;  %v8575_v37 = vld [vmem:[#allocation194_spill] sm:$0xff] }
 0x25f   :  { %v2309_v9 = vpop.f32.mrf.mxu0  ;;  %v2534_v38 = vpop.f32.mrf.mxu1 }
 0x260   :  { %8567 = vst [vmem:[#allocation32_spill] sm:$0xff] %v7105_v56  ;;  %v8576_v38 = vld [vmem:[#allocation46_spill] sm:$0xff]  ;;  %v8582_v56 = vld [vmem:[#allocation51_spill] sm:$0xff] }
 0x261   :  { %v2312_v20 = vpop.f32.mrf.mxu0  ;;  %v2537_v18 = vpop.f32.mrf.mxu1  ;;  %2776 = vmatmul.mubr.f32.gmra.mxu1 %v8570_v35  ;;  %3862 = vmatmul.mubr.f32.gmra.mxu0 %v8571_v39  ;;  %v8577_v35 = vld [vmem:[#allocation195_spill] sm:$0xff] }
 0x262   :  { %v7115_v30 = vadd.f32 %v2312_v20, %v8572_v26  ;;  %v7118_v11 = vadd.f32 %v2537_v18, %v8574_v29  ;;  %2780 = vmatprep.mubr.f32.mxu1 %v8429_v53  ;;  %3864 = vmatprep.mubr.f32.mxu0 %v8575_v37  ;;  %v8578_v39 = vld [vmem:[#allocation155_spill] sm:$0xff]  ;;  %v8580_v26 = vld [vmem:[#allocation58_spill] sm:$0xff]  ;;  %v8581_v53 = vld [vmem:[#allocation196_spill] sm:$0xff] }
 0x263   :  { %v2314_v28 = vpop.f32.mrf.mxu0  ;;  %v2539_v47 = vpop.f32.mrf.mxu1 }
 0x264   :  { %8573 = vst [vmem:[#allocation93_spill] sm:$0xff] %v7115_v30  ;;  %v8583_v30 = vld [vmem:[#allocation197_spill] sm:$0xff] }
 0x265   :  { %v2317_v55 = vpop.f32.mrf.mxu0  ;;  %v2542_v9 = vpop.f32.mrf.mxu1  ;;  %3677 = vmatmul.mubr.msk.f32.gmra.mxu1 %vm4270_vm2, %v8576_v38  ;;  %3865 = vmatmul.mubr.f32.gmra.mxu0 %v8577_v35  ;;  %v8584_v38 = vld [vmem:[#allocation158_spill] sm:$0xff] }
 0x266   :  { %v7127_v20 = vadd.f32 %v2317_v55, %v8578_v39  ;;  %v7130_v18 = vadd.f32 %v2542_v9, %v8580_v26  ;;  %2785 = vmatprep.mubr.f32.mxu1 %v8437_v5  ;;  %3867 = vmatprep.mubr.f32.mxu0 %v8581_v53  ;;  %v8586_v55 = vld [vmem:[#allocation64_spill] sm:$0xff]  ;;  %v8587_v9 = vld [vmem:[#allocation198_spill] sm:$0xff] }
 0x267   :  { %v2319_v29 = vpop.f32.mrf.mxu0  ;;  %v2544_v37 = vpop.f32.mrf.mxu1 }
 0x268   :  { %8579 = vst [vmem:[#allocation104_spill] sm:$0xff] %v7127_v20  ;;  %v8588_v37 = vld [vmem:[#allocation55_spill] sm:$0xff]  ;;  %v8593_v20 = vld [vmem:[#allocation60_spill] sm:$0xff] }
 0x269   :  { %v2322_v28 = vpop.f32.mrf.mxu0  ;;  %v2547_v47 = vpop.f32.mrf.mxu1  ;;  %2786 = vmatmul.mubr.f32.gmra.mxu1 %v8582_v56  ;;  %3868 = vmatmul.mubr.f32.gmra.mxu0 %v8583_v30  ;;  %v8589_v56 = vld [vmem:[#allocation199_spill] sm:$0xff]  ;;  %v8590_v30 = vld [vmem:[#allocation68_spill] sm:$0xff] }
 0x26a   :  { %v7137_v35 = vadd.f32 %v2322_v28, %v8584_v38  ;;  %v7140_v39 = vadd.f32 %v2547_v47, %v8586_v55  ;;  %2790 = vmatprep.mubr.f32.mxu1 %v8443_v32  ;;  %3870 = vmatprep.mubr.f32.mxu0 %v8587_v9  ;;  %v8591_v38 = vld [vmem:[#allocation74_spill] sm:$0xff]  ;;  %v8592_v32 = vld [vmem:[#allocation200_spill] sm:$0xff] }
 0x26b   :  { %v2324_v5 = vpop.f32.mrf.mxu0  ;;  %v2549_v26 = vpop.f32.mrf.mxu1 }
 0x26c   :  { %8585 = vst [vmem:[#allocation26_spill] sm:$0xff] %v7137_v35  ;;  %v8594_v35 = vld [vmem:[#allocation201_spill] sm:$0xff] }
 0x26d   :  { %v2327_v53 = vpop.f32.mrf.mxu0  ;;  %v2552_v29 = vpop.f32.mrf.mxu1  ;;  %3679 = vmatmul.mubr.msk.f32.gmra.mxu1 %vm4270_vm2, %v8588_v37  ;;  %3871 = vmatmul.mubr.f32.gmra.mxu0 %v8589_v56 }
 0x26e   :  { %v7149_v28 = vadd.f32 %v2327_v53, %v8590_v30  ;;  %v7152_v47 = vadd.f32 %v2552_v29, %v8591_v38  ;;  %2795 = vmatprep.mubr.f32.mxu1 %v8449_v25  ;;  %3873 = vmatprep.mubr.f32.mxu0 %v8592_v32  ;;  %v8595_v29 = vld [vmem:[#allocation202_spill] sm:$0xff]  ;;  %v8596_v32 = vld [vmem:[#allocation65_spill] sm:$0xff] }
 0x26f   :  { %v2329_v55 = vpop.f32.mrf.mxu0  ;;  %v2554_v9 = vpop.f32.mrf.mxu1 }
 0x271   :  { %v2332_v5 = vpop.f32.mrf.mxu0  ;;  %v2557_v26 = vpop.f32.mrf.mxu1  ;;  %2796 = vmatmul.mubr.f32.gmra.mxu1 %v8593_v20  ;;  %3874 = vmatmul.mubr.f32.gmra.mxu0 %v8594_v35  ;;  %v8597_v20 = vld [vmem:[#allocation203_spill] sm:$0xff]  ;;  %v8598_v35 = vld [vmem:[#allocation85_spill] sm:$0xff] }
 0x272   :  { %v7159_v37 = vadd.f32 %v2332_v5, %v6802_v44  ;;  %v7162_v53 = vadd.f32 %v2557_v26, %v6804_v41  ;;  %2800 = vmatprep.mubr.f32.mxu1 %v8455_v27  ;;  %3876 = vmatprep.mubr.f32.mxu0 %v8595_v29  ;;  %v8599_v27 = vld [vmem:[#allocation204_spill] sm:$0xff]  ;;  %v8600_v29 = vld [vmem:[#allocation70_spill] sm:$0xff] }
 0x273   :  { %v2334_v25 = vpop.f32.mrf.mxu0  ;;  %v2559_v56 = vpop.f32.mrf.mxu1 }
 0x274   :  { %v8601_v25 = vld [vmem:[#allocation205_spill] sm:$0xff] }
 0x275   :  { %v2337_v30 = vpop.f32.mrf.mxu0  ;;  %v2562_v38 = vpop.f32.mrf.mxu1  ;;  %3681 = vmatmul.mubr.msk.f32.gmra.mxu1 %vm4270_vm2, %v8596_v32  ;;  %3877 = vmatmul.mubr.f32.gmra.mxu0 %v8597_v20  ;;  %v8602_v56 = vld [vmem:[#allocation77_spill] sm:$0xff] }
 0x276   :  { %v7171_v44 = vadd.f32 %v2337_v30, %v6815_v62  ;;  %v7174_v41 = vadd.f32 %v2562_v38, %v8598_v35  ;;  %2805 = vmatprep.mubr.f32.mxu1 %v8459_v57  ;;  %3879 = vmatprep.mubr.f32.mxu0 %v8599_v27  ;;  %v8603_v62 = vld [vmem:[#allocation87_spill] sm:$0xff] }
 0x277   :  { %v2339_v55 = vpop.f32.mrf.mxu0  ;;  %v2564_v9 = vpop.f32.mrf.mxu1  ;;  %v8604_v38 = vld [vmem:[#allocation63_spill] sm:$0xff] }
 0x278   :  { %v8605_v55 = vld [vmem:[#allocation208_spill] sm:$0xff]  ;;  %v8606_v9 = vld [vmem:[#allocation207_spill] sm:$0xff] }
 0x279   :  { %v2342_v5 = vpop.f32.mrf.mxu0  ;;  %v2567_v26 = vpop.f32.mrf.mxu1  ;;  %2806 = vmatmul.mubr.f32.gmra.mxu1 %v8600_v29  ;;  %3880 = vmatmul.mubr.f32.gmra.mxu0 %v8601_v25 }
 0x27a   :  { %v7181_v32 = vadd.f32 %v2342_v5, %v8602_v56  ;;  %v7184_v30 = vadd.f32 %v2567_v26, %v8603_v62  ;;  %2810 = vmatprep.mubr.f32.mxu1 %v6866_v48  ;;  %3882 = vmatprep.mubr.f32.mxu0 %v8604_v38  ;;  %v8607_v48 = vld [vmem:[#allocation210_spill] sm:$0xff]  ;;  %v8608_v38 = vld [vmem:[#allocation73_spill] sm:$0xff] }
 0x27b   :  { %v2344_v57 = vpop.f32.mrf.mxu0  ;;  %v2569_v20 = vpop.f32.mrf.mxu1 }
 0x27d   :  { %v2347_v35 = vpop.f32.mrf.mxu0  ;;  %v2572_v27 = vpop.f32.mrf.mxu1  ;;  %3683 = vmatmul.mubr.msk.f32.gmra.mxu1 %vm4270_vm2, %v8605_v55  ;;  %3883 = vmatmul.mubr.f32.gmra.mxu0 %v8606_v9  ;;  %v8609_v55 = vld [vmem:[#allocation166_spill] sm:$0xff] }
 0x27e   :  { %v7193_v5 = vadd.f32 %v2347_v35, %v6845_v15  ;;  %v7196_v26 = vadd.f32 %v2572_v27, %v6847_v10  ;;  %2815 = vmatprep.mubr.f32.mxu1 %v6884_v19  ;;  %3885 = vmatprep.mubr.f32.mxu0 %v8607_v48 }
 0x27f   :  { %v2349_v29 = vpop.f32.mrf.mxu0  ;;  %v2574_v25 = vpop.f32.mrf.mxu1 }
 0x280   :  { %v8610_v25 = vld [vmem:[#allocation171_spill] sm:$0xff] }
 0x281   :  { %v2352_v56 = vpop.f32.mrf.mxu0  ;;  %v2577_v62 = vpop.f32.mrf.mxu1  ;;  %2816 = vmatmul.mubr.f32.gmra.mxu1 %v8608_v38  ;;  %3886 = vmatmul.mubr.f32.gmra.mxu0 %v6514_v59 }
 0x282   :  { %v7203_v57 = vadd.f32 %v2352_v56, %v6859_v49  ;;  %v7206_v15 = vadd.f32 %v2577_v62, %v6861_v60  ;;  %2820 = vmatprep.mubr.f32.mxu1 %v8461_v58  ;;  %3888 = vmatprep.mubr.f32.mxu0 %v6852_v31 }
 0x283   :  { %v2354_v10 = vpop.f32.mrf.mxu0  ;;  %v2579_v19 = vpop.f32.mrf.mxu1 }
 0x284   :  { %v8611_v19 = vld [vmem:[#allocation173_spill] sm:$0xff] }
 0x285   :  { %v2357_v20 = vpop.f32.mrf.mxu0  ;;  %v2582_v35 = vpop.f32.mrf.mxu1  ;;  %3685 = vmatmul.mubr.msk.f32.gmra.mxu1 %vm4270_vm2, %v8462_v8  ;;  %3889 = vmatmul.mubr.f32.gmra.mxu0 %v6869_v54 }
 0x286   :  { %v7215_v59 = vadd.f32 %v2357_v20, %v6876_v63  ;;  %v7218_v49 = vadd.f32 %v2582_v35, %v6879_v46  ;;  %2825 = vmatprep.mubr.f32.mxu1 %v8463_v16  ;;  %3891 = vmatprep.mubr.f32.mxu0 %v8533_v1  ;;  %v1983_v16 = vadd.f32 %v6896_v0, %v8609_v55 }
 0x287   :  { %v2359_v31 = vpop.f32.mrf.mxu0  ;;  %v2584_v60 = vpop.f32.mrf.mxu1  ;;  %v1993_v20 = vadd.f32 %v6916_v51, %v8611_v19 }
 0x289   :  { %v2362_v58 = vpop.f32.mrf.mxu0  ;;  %v2587_v27 = vpop.f32.mrf.mxu1  ;;  %2826 = vmatmul.mubr.f32.gmra.mxu1 %v8462_v8  ;;  %3892 = vmatmul.mubr.f32.gmra.mxu0 %v8536_v2 }
 0x28a   :  { %v7225_v34 = vadd.f32 %v2362_v58, %v6889_v61  ;;  %v7228_v54 = vadd.f32 %v2587_v27, %v6892_v43  ;;  %v1988_v61 = vadd.f32 %v6907_v42, %v8610_v25  ;;  %v8612_v27 = vld [vmem:[#allocation19_spill] sm:$0xff] }
 0x28b   :  { %v2364_v63 = vpop.f32.mrf.mxu0  ;;  %v2589_v46 = vpop.f32.mrf.mxu1 }
 0x28c   :  { %v1998_v63 = vadd.f32 %v6927_v40, %v8612_v27 }
 0x28d   :  { %v2367_v1 = vpop.f32.mrf.mxu0  ;;  %v2592_v9 = vpop.f32.mrf.mxu1 }
 0x28e   :  { %v7232_v48 = vadd.f32 %v2367_v1, %v1983_v16  ;;  %v7235_v29 = vadd.f32 %v2592_v9, %v6903_v45  ;;  %v8613_v9 = vld [vmem:[#allocation174_spill] sm:$0xff] }
 0x28f   :  { %v2369_v8 = vpop.f32.mrf.mxu0  ;;  %v2594_v2 = vpop.f32.mrf.mxu1 }
 0x290   :  { %v2003_v8 = vadd.f32 %v6936_v12, %v8613_v9 }
 0x291   :  { %v2372_v56 = vpop.f32.mrf.mxu0  ;;  %v2597_v43 = vpop.f32.mrf.mxu1 }
 0x292   :  { %v7239_v62 = vadd.f32 %v2372_v56, %v1988_v61  ;;  %v7242_v38 = vadd.f32 %v2597_v43, %v6912_v4  ;;  %v8614_v43 = vld [vmem:[#allocation176_spill] sm:$0xff] }
 0x293   :  { %v2374_v0 = vpop.f32.mrf.mxu0  ;;  %v2599_v10 = vpop.f32.mrf.mxu1 }
 0x294   :  { %v2008_v0 = vadd.f32 %v6947_v50, %v8614_v43 }
 0x295   :  { %v2377_v35 = vpop.f32.mrf.mxu0  ;;  %v2602_v45 = vpop.f32.mrf.mxu1 }
 0x296   :  { %v7246_v31 = vadd.f32 %v2377_v35, %v1993_v20  ;;  %v7249_v60 = vadd.f32 %v2602_v45, %v6923_v7  ;;  %v8615_v45 = vld [vmem:[#allocation178_spill] sm:$0xff] }
 0x297   :  { %v2379_v42 = vpop.f32.mrf.mxu0  ;;  %v2604_v58 = vpop.f32.mrf.mxu1 }
 0x298   :  { %v2013_v42 = vadd.f32 %v6956_v36, %v8615_v45  ;;  %v8623_v45 = vld [vmem:[#allocation82_spill] sm:$0xff] }
 0x299   :  { %v2382_v46 = vpop.f32.mrf.mxu0  ;;  %v2607_v4 = vpop.f32.mrf.mxu1 }
 0x29a   :  { %v7253_v55 = vadd.f32 %v2382_v46, %v1998_v63  ;;  %v7256_v16 = vadd.f32 %v2607_v4, %v6932_v23  ;;  %v8617_v4 = vld [vmem:[#allocation180_spill] sm:$0xff] }
 0x29b   :  { %v2384_v51 = vpop.f32.mrf.mxu0  ;;  %v2609_v1 = vpop.f32.mrf.mxu1 }
 0x29c   :  { %v2018_v51 = vadd.f32 %v6967_v22, %v8617_v4 }
 0x29d   :  { %v2387_v2 = vpop.f32.mrf.mxu0  ;;  %v2612_v7 = vpop.f32.mrf.mxu1 }
 0x29e   :  { %v7260_v25 = vadd.f32 %v2387_v2, %v2003_v8  ;;  %v7263_v61 = vadd.f32 %v2612_v7, %v6943_v21  ;;  %v8618_v7 = vld [vmem:[#allocation182_spill] sm:$0xff] }
 0x29f   :  { %v2389_v40 = vpop.f32.mrf.mxu0  ;;  %v2614_v56 = vpop.f32.mrf.mxu1 }
 0x2a0   :  { %v8619_v40 = vld [vmem:[#allocation80_spill] sm:$0xff] }
 0x2a1   :  { %v2392_v10 = vpop.f32.mrf.mxu0  ;;  %v2617_v23 = vpop.f32.mrf.mxu1  ;;  %v2023_v56 = vadd.f32 %v8619_v40, %v8618_v7 }
 0x2a2   :  { %v7267_v19 = vadd.f32 %v2392_v10, %v2008_v0  ;;  %v7270_v20 = vadd.f32 %v2617_v23, %v6952_v52  ;;  %v8621_v10 = vld [vmem:[#allocation89_spill] sm:$0xff] }
 0x2a3   :  { %v2394_v12 = vpop.f32.mrf.mxu0  ;;  %v2619_v35 = vpop.f32.mrf.mxu1 }
 0x2a4   :  { %v8622_v35 = vld [vmem:[#allocation56_spill] sm:$0xff] }
 0x2a5   :  { %v2397_v58 = vpop.f32.mrf.mxu0  ;;  %v2622_v21 = vpop.f32.mrf.mxu1 }
 0x2a6   :  { %v7274_v27 = vadd.f32 %v2397_v58, %v2013_v42  ;;  %v7277_v63 = vadd.f32 %v2622_v21, %v6963_v14  ;;  %v2028_v42 = vadd.f32 %v8623_v45, %v8622_v35 }
 0x2a7   :  { %v2399_v50 = vpop.f32.mrf.mxu0  ;;  %v2624_v46 = vpop.f32.mrf.mxu1 }
 0x2a8   :  { %8616 = vst [vmem:[#allocation23_spill] sm:$0xff] %v7274_v27  ;;  %v8625_v50 = vld [vmem:[#allocation92_spill] sm:$0xff] }
 0x2a9   :  { %v2402_v1 = vpop.f32.mrf.mxu0  ;;  %v2627_v52 = vpop.f32.mrf.mxu1 }
 0x2aa   :  { %v7281_v9 = vadd.f32 %v2402_v1, %v2018_v51  ;;  %v7284_v8 = vadd.f32 %v2627_v52, %v6972_v3  ;;  %v8626_v1 = vld [vmem:[#allocation185_spill] sm:$0xff] }
 0x2ab   :  { %v2404_v36 = vpop.f32.mrf.mxu0  ;;  %v2629_v2 = vpop.f32.mrf.mxu1  ;;  %v8627_v52 = vld [vmem:[#allocation165_spill] sm:$0xff] }
 0x2ac   :  { %v2033_v36 = vadd.f32 %v8627_v52, %v8626_v1  ;;  %v8634_v1 = vld [vmem:[#allocation190_spill] sm:$0xff] }
 0x2ad   :  { %v2407_v43 = vpop.f32.mrf.mxu0  ;;  %v2632_v14 = vpop.f32.mrf.mxu1  ;;  %v8635_v52 = vld [vmem:[#allocation170_spill] sm:$0xff] }
 0x2ae   :  { %v7288_v0 = vadd.f32 %v2407_v43, %v2023_v56  ;;  %v7291_v23 = vadd.f32 %v2632_v14, %v8621_v10  ;;  %v8629_v56 = vld [vmem:[#allocation6_spill] sm:$0xff] }
 0x2af   :  { %v2409_v22 = vpop.f32.mrf.mxu0  ;;  %v2634_v12 = vpop.f32.mrf.mxu1 }
 0x2b0   :  { %8620 = vst [vmem:[#allocation37_spill] sm:$0xff] %v7288_v0  ;;  %v8630_v22 = vld [vmem:[#allocation187_spill] sm:$0xff]  ;;  %v8631_v12 = vld [vmem:[#allocation84_spill] sm:$0xff]  ;;  %v8642_v0 = vld [vmem:[#allocation193_spill] sm:$0xff] }
 0x2b1   :  { %v2412_v58 = vpop.f32.mrf.mxu0  ;;  %v2637_v3 = vpop.f32.mrf.mxu1  ;;  %v2038_v35 = vadd.f32 %v8631_v12, %v8630_v22 }
 0x2b2   :  { %v7295_v21 = vadd.f32 %v2412_v58, %v2028_v42  ;;  %v7298_v46 = vadd.f32 %v2637_v3, %v8625_v50  ;;  %v8633_v3 = vld [vmem:[#allocation95_spill] sm:$0xff] }
 0x2b3   :  { %v2414_v4 = vpop.f32.mrf.mxu0  ;;  %v2639_v51 = vpop.f32.mrf.mxu1 }
 0x2b4   :  { %8624 = vst [vmem:[#allocation96_spill] sm:$0xff] %v7295_v21  ;;  %v8646_v21 = vld [vmem:[#allocation5_spill] sm:$0xff] }
 0x2b5   :  { %v2417_v2 = vpop.f32.mrf.mxu0  ;;  %v2642_v7 = vpop.f32.mrf.mxu1 }
 0x2b6   :  { %v7302_v40 = vadd.f32 %v2417_v2, %v2033_v36  ;;  %v7305_v43 = vadd.f32 %v2642_v7, %v8629_v56  ;;  %v2043_v36 = vadd.f32 %v8635_v52, %v8634_v1 }
 0x2b7   :  { %v2419_v14 = vpop.f32.mrf.mxu0  ;;  %v2644_v10 = vpop.f32.mrf.mxu1 }
 0x2b8   :  { %8628 = vst [vmem:[#allocation107_spill] sm:$0xff] %v7302_v40  ;;  %v8637_v14 = vld [vmem:[#allocation12_spill] sm:$0xff] }
 0x2b9   :  { %v2422_v45 = vpop.f32.mrf.mxu0  ;;  %v2647_v42 = vpop.f32.mrf.mxu1  ;;  %v8638_v40 = vld [vmem:[#allocation192_spill] sm:$0xff] }
 0x2ba   :  { %v7309_v58 = vadd.f32 %v2422_v45, %v2038_v35  ;;  %v7312_v50 = vadd.f32 %v2647_v42, %v8633_v3  ;;  %v8639_v35 = vld [vmem:[#allocation20_spill] sm:$0xff] }
 0x2bb   :  { %v2424_v4 = vpop.f32.mrf.mxu0  ;;  %v2649_v51 = vpop.f32.mrf.mxu1  ;;  %v2048_v45 = vadd.f32 %v8639_v35, %v8638_v40 }
 0x2bc   :  { %8632 = vst [vmem:[#allocation175_spill] sm:$0xff] %v7309_v58  ;;  %v8641_v4 = vld [vmem:[#allocation88_spill] sm:$0xff] }
 0x2bd   :  { %v2427_v2 = vpop.f32.mrf.mxu0  ;;  %v2652_v7 = vpop.f32.mrf.mxu1 }
 0x2be   :  { %v7316_v56 = vadd.f32 %v2427_v2, %v2043_v36  ;;  %v7319_v10 = vadd.f32 %v2652_v7, %v8637_v14  ;;  %v8643_v36 = vld [vmem:[#allocation98_spill] sm:$0xff] }
 0x2bf   :  { %v2429_v22 = vpop.f32.mrf.mxu0  ;;  %v2654_v12 = vpop.f32.mrf.mxu1  ;;  %v2053_v2 = vadd.f32 %v8643_v36, %v8642_v0 }
 0x2c0   :  { %8636 = vst [vmem:[#allocation31_spill] sm:$0xff] %v7316_v56  ;;  %v8645_v22 = vld [vmem:[#allocation172_spill] sm:$0xff] }
 0x2c1   :  { %v2432_v58 = vpop.f32.mrf.mxu0  ;;  %v2657_v42 = vpop.f32.mrf.mxu1 }
 0x2c2   :  { %v7323_v3 = vadd.f32 %v2432_v58, %v2048_v45  ;;  %v7326_v51 = vadd.f32 %v2657_v42, %v8641_v4  ;;  %v8647_v58 = vld [vmem:[#allocation13_spill] sm:$0xff] }
 0x2c3   :  { %v2434_v1 = vpop.f32.mrf.mxu0  ;;  %v2659_v52 = vpop.f32.mrf.mxu1  ;;  %v2058_v45 = vadd.f32 %v8647_v58, %v8646_v21  ;;  %v8649_v21 = vld [vmem:[#allocation90_spill] sm:$0xff] }
 0x2c4   :  { %8640 = vst [vmem:[#allocation43_spill] sm:$0xff] %v7323_v3 }
 0x2c5   :  { %v2437_v56 = vpop.f32.mrf.mxu0  ;;  %v2662_v7 = vpop.f32.mrf.mxu1 }
 0x2c6   :  { %v7330_v14 = vadd.f32 %v2437_v56, %v2053_v2  ;;  %v7333_v12 = vadd.f32 %v2662_v7, %v8645_v22 }
 0x2c7   :  { %v2439_v40 = vpop.f32.mrf.mxu0  ;;  %v2664_v35 = vpop.f32.mrf.mxu1 }
 0x2c8   :  { %8644 = vst [vmem:[#allocation99_spill] sm:$0xff] %v7330_v14 }
 0x2c9   :  { %v2442_v3 = vpop.f32.mrf.mxu0  ;;  %v7337_v42 = vpop.f32.mrf.mxu1 }
 0x2ca   :  { %v7339_v4 = vadd.f32 %v2442_v3, %v2058_v45 }
 0x2cb   :  { %v2444_v1 = vpop.f32.mrf.mxu0  ;;  %v2669_v52 = vpop.f32.mrf.mxu1 }
 0x2cc   :  { %8648 = vst [vmem:[#allocation110_spill] sm:$0xff] %v7339_v4 }
 0x2cd   :  { %v2672_v0 = vpop.f32.mrf.mxu1  ;;  %v3800_v36 = vpop.f32.mrf.mxu0 }
 0x2ce   :  { %v7342_v56 = vadd.f32 %v2672_v0, %v7061_v33  ;;  %v2903_v2 = vadd.f32 %v3800_v36, %v7074_v6 }
 0x2cf   :  { %v2674_v7 = vpop.f32.mrf.mxu1  ;;  %v2897_v22 = vpop.f32.mrf.mxu0 }
 0x2d0   :  { %3421 = vst [vmem:[%s7678_s4 + $0x8] sm:$0xff] %v2903_v2  ;;  %v2898_v40 = vadd.f32 %v2897_v22, %v8649_v21  ;;  %v3286_v58 = vmul.f32 %v2903_v2, %v2903_v2 }
 0x2d1   :  { %v7349_v35 = vpop.f32.mrf.mxu1  ;;  %v3803_v3 = vpop.f32.mrf.mxu0 }
 0x2d2   :  { %v3216_v45 = vadd.f32 %v2903_v2, %v2898_v40  ;;  %v3285_v1 = vmul.f32 %v2898_v40, %v2898_v40  ;;  %3420 = vst [vmem:[%s7678_s4] sm:$0xff] %v2898_v40  ;;  %v2913_v33 = vadd.f32 %v3803_v3, %v7096_v13 }
 0x2d3   :  { %v2679_v6 = vpop.f32.mrf.mxu1  ;;  %v2907_v52 = vpop.f32.mrf.mxu0 }
 0x2d4   :  { %v3349_v0 = vadd.f32 %v3286_v58, %v3285_v1  ;;  %3423 = vst [vmem:[%s7678_s4 + $0x18] sm:$0xff] %v2913_v33  ;;  %v2908_v36 = vadd.f32 %v2907_v52, %v7086_v24  ;;  %v3288_v58 = vmul.f32 %v2913_v33, %v2913_v33 }
 0x2d5   :  { %v7359_v7 = vpop.f32.mrf.mxu1  ;;  %v3806_v22 = vpop.f32.mrf.mxu0 }
 0x2d6   :  { %v3217_v2 = vadd.f32 %v3216_v45, %v2908_v36  ;;  %v3287_v21 = vmul.f32 %v2908_v36, %v2908_v36  ;;  %3422 = vst [vmem:[%s7678_s4 + $0x10] sm:$0xff] %v2908_v36  ;;  %v2923_v13 = vadd.f32 %v3806_v22, %v7118_v11 }
 0x2d7   :  { %v2684_v40 = vpop.f32.mrf.mxu1  ;;  %v2917_v3 = vpop.f32.mrf.mxu0 }
 0x2d8   :  { %v3350_v1 = vadd.f32 %v3349_v0, %v3287_v21  ;;  %3425 = vst [vmem:[%s7678_s4 + $0x28] sm:$0xff] %v2923_v13  ;;  %v2918_v24 = vadd.f32 %v2917_v3, %v7108_v17  ;;  %v3218_v6 = vadd.f32 %v3217_v2, %v2913_v33  ;;  %v3290_v22 = vmul.f32 %v2923_v13, %v2923_v13 }
 0x2d9   :  { %v7369_v52 = vpop.f32.mrf.mxu1  ;;  %v3809_v45 = vpop.f32.mrf.mxu0 }
 0x2da   :  { %v3219_v4 = vadd.f32 %v3218_v6, %v2918_v24  ;;  %v3289_v14 = vmul.f32 %v2918_v24, %v2918_v24  ;;  %v3351_v27 = vadd.f32 %v3350_v1, %v3288_v58  ;;  %3424 = vst [vmem:[%s7678_s4 + $0x20] sm:$0xff] %v2918_v24  ;;  %v2933_v11 = vadd.f32 %v3809_v45, %v7140_v39 }
 0x2db   :  { %v2689_v0 = vpop.f32.mrf.mxu1  ;;  %v2927_v36 = vpop.f32.mrf.mxu0 }
 0x2dc   :  { %v3352_v21 = vadd.f32 %v3351_v27, %v3289_v14  ;;  %v2928_v40 = vadd.f32 %v2927_v36, %v7130_v18  ;;  %v3220_v17 = vadd.f32 %v3219_v4, %v2923_v13  ;;  %3427 = vst [vmem:[%s7678_s4 + $0x38] sm:$0xff] %v2933_v11  ;;  %v3292_v18 = vmul.f32 %v2933_v11, %v2933_v11 }
 0x2dd   :  { %v7379_v33 = vpop.f32.mrf.mxu1  ;;  %v3812_v2 = vpop.f32.mrf.mxu0 }
 0x2de   :  { %v3221_v3 = vadd.f32 %v3220_v17, %v2928_v40  ;;  %v3291_v58 = vmul.f32 %v2928_v40, %v2928_v40  ;;  %v3353_v1 = vadd.f32 %v3352_v21, %v3290_v22  ;;  %3426 = vst [vmem:[%s7678_s4 + $0x30] sm:$0xff] %v2928_v40  ;;  %v2943_v39 = vadd.f32 %v3812_v2, %v7162_v53 }
 0x2df   :  { %v2694_v27 = vpop.f32.mrf.mxu1  ;;  %v2937_v14 = vpop.f32.mrf.mxu0 }
 0x2e0   :  { %v3354_v4 = vadd.f32 %v3353_v1, %v3291_v58  ;;  %v2938_v13 = vadd.f32 %v2937_v14, %v7152_v47  ;;  %v3222_v24 = vadd.f32 %v3221_v3, %v2933_v11  ;;  %3429 = vst [vmem:[%s7678_s4 + $0x48] sm:$0xff] %v2943_v39  ;;  %v3294_v47 = vmul.f32 %v2943_v39, %v2943_v39 }
 0x2e1   :  { %v7389_v6 = vpop.f32.mrf.mxu1  ;;  %v3815_v45 = vpop.f32.mrf.mxu0 }
 0x2e2   :  { %v3223_v0 = vadd.f32 %v3222_v24, %v2938_v13  ;;  %v3293_v36 = vmul.f32 %v2938_v13, %v2938_v13  ;;  %v3355_v22 = vadd.f32 %v3354_v4, %v3292_v18  ;;  %3428 = vst [vmem:[%s7678_s4 + $0x40] sm:$0xff] %v2938_v13  ;;  %v2953_v53 = vadd.f32 %v3815_v45, %v7184_v30 }
 0x2e3   :  { %v2699_v21 = vpop.f32.mrf.mxu1  ;;  %v2947_v40 = vpop.f32.mrf.mxu0 }
 0x2e4   :  { %v3356_v11 = vadd.f32 %v3355_v22, %v3293_v36  ;;  %v2948_v17 = vadd.f32 %v2947_v40, %v7174_v41  ;;  %v3224_v2 = vadd.f32 %v3223_v0, %v2943_v39  ;;  %3431 = vst [vmem:[%s7678_s4 + $0x58] sm:$0xff] %v2953_v53  ;;  %v3296_v41 = vmul.f32 %v2953_v53, %v2953_v53 }
 0x2e5   :  { %v7399_v3 = vpop.f32.mrf.mxu1  ;;  %v3818_v58 = vpop.f32.mrf.mxu0 }
 0x2e6   :  { %v3225_v1 = vadd.f32 %v3224_v2, %v2948_v17  ;;  %v3295_v27 = vmul.f32 %v2948_v17, %v2948_v17  ;;  %v3357_v14 = vadd.f32 %v3356_v11, %v3294_v47  ;;  %3430 = vst [vmem:[%s7678_s4 + $0x50] sm:$0xff] %v2948_v17  ;;  %v2963_v30 = vadd.f32 %v3818_v58, %v7206_v15 }
 0x2e7   :  { %v2704_v18 = vpop.f32.mrf.mxu1  ;;  %v2957_v4 = vpop.f32.mrf.mxu0 }
 0x2e8   :  { %v3358_v39 = vadd.f32 %v3357_v14, %v3295_v27  ;;  %v2958_v13 = vadd.f32 %v2957_v4, %v7196_v26  ;;  %v3226_v24 = vadd.f32 %v3225_v1, %v2953_v53  ;;  %3433 = vst [vmem:[%s7678_s4 + $0x68] sm:$0xff] %v2963_v30  ;;  %v3298_v26 = vmul.f32 %v2963_v30, %v2963_v30 }
 0x2e9   :  { %v7409_v45 = vpop.f32.mrf.mxu1  ;;  %v3821_v0 = vpop.f32.mrf.mxu0 }
 0x2ea   :  { %v3227_v36 = vadd.f32 %v3226_v24, %v2958_v13  ;;  %v3297_v22 = vmul.f32 %v2958_v13, %v2958_v13  ;;  %v3359_v21 = vadd.f32 %v3358_v39, %v3296_v41  ;;  %3432 = vst [vmem:[%s7678_s4 + $0x60] sm:$0xff] %v2958_v13  ;;  %v2973_v15 = vadd.f32 %v3821_v0, %v7228_v54 }
 0x2eb   :  { %v2709_v40 = vpop.f32.mrf.mxu1  ;;  %v2967_v47 = vpop.f32.mrf.mxu0 }
 0x2ec   :  { %v3360_v53 = vadd.f32 %v3359_v21, %v3297_v22  ;;  %v2968_v11 = vadd.f32 %v2967_v47, %v7218_v49  ;;  %v3228_v17 = vadd.f32 %v3227_v36, %v2963_v30  ;;  %3435 = vst [vmem:[%s7678_s4 + $0x78] sm:$0xff] %v2973_v15  ;;  %v3300_v49 = vmul.f32 %v2973_v15, %v2973_v15 }
 0x2ed   :  { %v7419_v2 = vpop.f32.mrf.mxu1  ;;  %v3824_v58 = vpop.f32.mrf.mxu0 }
 0x2ee   :  { %v3229_v1 = vadd.f32 %v3228_v17, %v2968_v11  ;;  %v3299_v27 = vmul.f32 %v2968_v11, %v2968_v11  ;;  %v3361_v14 = vadd.f32 %v3360_v53, %v3298_v26  ;;  %3434 = vst [vmem:[%s7678_s4 + $0x70] sm:$0xff] %v2968_v11  ;;  %v2983_v54 = vadd.f32 %v3824_v58, %v7242_v38 }
 0x2ef   :  { %v2714_v18 = vpop.f32.mrf.mxu1  ;;  %v2977_v4 = vpop.f32.mrf.mxu0 }
 0x2f0   :  { %v3362_v30 = vadd.f32 %v3361_v14, %v3299_v27  ;;  %v2978_v41 = vadd.f32 %v2977_v4, %v7235_v29  ;;  %v3230_v39 = vadd.f32 %v3229_v1, %v2973_v15  ;;  %3437 = vst [vmem:[%s7678_s4 + $0x88] sm:$0xff] %v2983_v54  ;;  %v3302_v29 = vmul.f32 %v2983_v54, %v2983_v54 }
 0x2f1   :  { %v7429_v13 = vpop.f32.mrf.mxu1  ;;  %v3827_v24 = vpop.f32.mrf.mxu0 }
 0x2f2   :  { %v3231_v0 = vadd.f32 %v3230_v39, %v2978_v41  ;;  %v3301_v36 = vmul.f32 %v2978_v41, %v2978_v41  ;;  %v3363_v22 = vadd.f32 %v3362_v30, %v3300_v49  ;;  %3436 = vst [vmem:[%s7678_s4 + $0x80] sm:$0xff] %v2978_v41  ;;  %v2993_v38 = vadd.f32 %v3827_v24, %v7256_v16 }
 0x2f3   :  { %v2719_v21 = vpop.f32.mrf.mxu1  ;;  %v2987_v40 = vpop.f32.mrf.mxu0 }
 0x2f4   :  { %v3364_v15 = vadd.f32 %v3363_v22, %v3301_v36  ;;  %v2988_v47 = vadd.f32 %v2987_v40, %v7249_v60  ;;  %v3232_v26 = vadd.f32 %v3231_v0, %v2983_v54  ;;  %3439 = vst [vmem:[%s7678_s4 + $0x98] sm:$0xff] %v2993_v38  ;;  %v3304_v60 = vmul.f32 %v2993_v38, %v2993_v38 }
 0x2f5   :  { %v7439_v53 = vpop.f32.mrf.mxu1  ;;  %v3830_v11 = vpop.f32.mrf.mxu0 }
 0x2f6   :  { %v3233_v17 = vadd.f32 %v3232_v26, %v2988_v47  ;;  %v3303_v58 = vmul.f32 %v2988_v47, %v2988_v47  ;;  %v3365_v1 = vadd.f32 %v3364_v15, %v3302_v29  ;;  %3438 = vst [vmem:[%s7678_s4 + $0x90] sm:$0xff] %v2988_v47  ;;  %v3003_v16 = vadd.f32 %v3830_v11, %v7270_v20 }
 0x2f7   :  { %v2724_v27 = vpop.f32.mrf.mxu1  ;;  %v2997_v14 = vpop.f32.mrf.mxu0 }
 0x2f8   :  { %v3366_v54 = vadd.f32 %v3365_v1, %v3303_v58  ;;  %v2998_v18 = vadd.f32 %v2997_v14, %v7263_v61  ;;  %v3234_v4 = vadd.f32 %v3233_v17, %v2993_v38  ;;  %3441 = vst [vmem:[%s7678_s4 + $0xa8] sm:$0xff] %v3003_v16  ;;  %v3306_v61 = vmul.f32 %v3003_v16, %v3003_v16 }
 0x2f9   :  { %v7449_v49 = vpop.f32.mrf.mxu1  ;;  %v3833_v30 = vpop.f32.mrf.mxu0 }
 0x2fa   :  { %v3235_v41 = vadd.f32 %v3234_v4, %v2998_v18  ;;  %v3305_v39 = vmul.f32 %v2998_v18, %v2998_v18  ;;  %v3367_v24 = vadd.f32 %v3366_v54, %v3304_v60  ;;  %3440 = vst [vmem:[%s7678_s4 + $0xa0] sm:$0xff] %v2998_v18  ;;  %v3013_v20 = vadd.f32 %v3833_v30, %v7284_v8 }
 0x2fb   :  { %v2729_v0 = vpop.f32.mrf.mxu1  ;;  %v3007_v36 = vpop.f32.mrf.mxu0 }
 0x2fc   :  { %v3368_v22 = vadd.f32 %v3367_v24, %v3305_v39  ;;  %v3008_v38 = vadd.f32 %v3007_v36, %v7277_v63  ;;  %v3236_v21 = vadd.f32 %v3235_v41, %v3003_v16  ;;  %3443 = vst [vmem:[%s7678_s4 + $0xb8] sm:$0xff] %v3013_v20  ;;  %v3308_v63 = vmul.f32 %v3013_v20, %v3013_v20 }
 0x2fd   :  { %v7459_v40 = vpop.f32.mrf.mxu1  ;;  %v3836_v29 = vpop.f32.mrf.mxu0 }
 0x2fe   :  { %v3237_v15 = vadd.f32 %v3236_v21, %v3008_v38  ;;  %v3307_v47 = vmul.f32 %v3008_v38, %v3008_v38  ;;  %v3369_v26 = vadd.f32 %v3368_v22, %v3306_v61  ;;  %3442 = vst [vmem:[%s7678_s4 + $0xb0] sm:$0xff] %v3008_v38  ;;  %v3023_v8 = vadd.f32 %v3836_v29, %v7298_v46 }
 0x2ff   :  { %v2734_v11 = vpop.f32.mrf.mxu1  ;;  %v3017_v17 = vpop.f32.mrf.mxu0 }
 0x300   :  { %v3370_v58 = vadd.f32 %v3369_v26, %v3307_v47  ;;  %v3018_v1 = vadd.f32 %v3017_v17, %v7291_v23  ;;  %v3238_v16 = vadd.f32 %v3237_v15, %v3013_v20  ;;  %3445 = vst [vmem:[%s7678_s4 + $0xc8] sm:$0xff] %v3023_v8  ;;  %v3310_v23 = vmul.f32 %v3023_v8, %v3023_v8  ;;  %v8650_v26 = vld [vmem:[#allocation28_spill] sm:$0xff] }
 0x301   :  { %v7469_v27 = vpop.f32.mrf.mxu1  ;;  %v3839_v14 = vpop.f32.mrf.mxu0 }
 0x302   :  { %v3239_v60 = vadd.f32 %v3238_v16, %v3018_v1  ;;  %v3309_v54 = vmul.f32 %v3018_v1, %v3018_v1  ;;  %v3371_v18 = vadd.f32 %v3370_v58, %v3308_v63  ;;  %3444 = vst [vmem:[%s7678_s4 + $0xc0] sm:$0xff] %v3018_v1  ;;  %v3033_v46 = vadd.f32 %v3839_v14, %v7312_v50 }
 0x303   :  { %v2739_v4 = vpop.f32.mrf.mxu1  ;;  %v3027_v30 = vpop.f32.mrf.mxu0 }
 0x304   :  { %v3372_v41 = vadd.f32 %v3371_v18, %v3309_v54  ;;  %v3028_v39 = vadd.f32 %v3027_v30, %v7305_v43  ;;  %v3240_v24 = vadd.f32 %v3239_v60, %v3023_v8  ;;  %3447 = vst [vmem:[%s7678_s4 + $0xd8] sm:$0xff] %v3033_v46  ;;  %v3312_v43 = vmul.f32 %v3033_v46, %v3033_v46  ;;  %v8651_v18 = vld [vmem:[#allocation101_spill] sm:$0xff] }
 0x305   :  { %v7479_v20 = vpop.f32.mrf.mxu1  ;;  %v3842_v0 = vpop.f32.mrf.mxu0  ;;  %v2668_v8 = vadd.f32 %v7337_v42, %v8650_v26 }
 0x306   :  { %v3241_v36 = vadd.f32 %v3240_v24, %v3028_v39  ;;  %v3311_v61 = vmul.f32 %v3028_v39, %v3028_v39  ;;  %v3373_v22 = vadd.f32 %v3372_v41, %v3310_v23  ;;  %3446 = vst [vmem:[%s7678_s4 + $0xd0] sm:$0xff] %v3028_v39  ;;  %v3043_v50 = vadd.f32 %v3842_v0, %v7326_v51 }
 0x307   :  { %v2744_v38 = vpop.f32.mrf.mxu1  ;;  %v3037_v21 = vpop.f32.mrf.mxu0 }
 0x308   :  { %v3374_v29 = vadd.f32 %v3373_v22, %v3311_v61  ;;  %v3038_v15 = vadd.f32 %v3037_v21, %v7319_v10  ;;  %v3242_v47 = vadd.f32 %v3241_v36, %v3033_v46  ;;  %3449 = vst [vmem:[%s7678_s4 + $0xe8] sm:$0xff] %v3043_v50  ;;  %v3314_v14 = vmul.f32 %v3043_v50, %v3043_v50 }
 0x309   :  { %v7491_v11 = vpop.f32.mrf.mxu1  ;;  %v3845_v17 = vpop.f32.mrf.mxu0  ;;  %v2678_v46 = vadd.f32 %v7349_v35, %v8651_v18 }
 0x30a   :  { %v3243_v63 = vadd.f32 %v3242_v47, %v3038_v15  ;;  %v3313_v58 = vmul.f32 %v3038_v15, %v3038_v15  ;;  %v3375_v51 = vadd.f32 %v3374_v29, %v3312_v43  ;;  %3448 = vst [vmem:[%s7678_s4 + $0xe0] sm:$0xff] %v3038_v15  ;;  %v3053_v1 = vadd.f32 %v3845_v17, %v2668_v8  ;;  %v8653_v29 = vld [vmem:[#allocation91_spill] sm:$0xff] }
 0x30b   :  { %v2749_v10 = vpop.f32.mrf.mxu1  ;;  %v3047_v16 = vpop.f32.mrf.mxu0  ;;  %v2683_v15 = vadd.f32 %v7359_v7, %v8653_v29 }
 0x30c   :  { %v3376_v60 = vadd.f32 %v3375_v51, %v3313_v58  ;;  %v3048_v42 = vadd.f32 %v3047_v16, %v7333_v12  ;;  %v3244_v54 = vadd.f32 %v3243_v63, %v3043_v50  ;;  %3451 = vst [vmem:[%s7678_s4 + $0xf8] sm:$0xff] %v3053_v1  ;;  %v3316_v36 = vmul.f32 %v3053_v1, %v3053_v1  ;;  %v8652_v50 = vld [vmem:[#allocation22_spill] sm:$0xff]  ;;  %v8654_v10 = vld [vmem:[#allocation93_spill] sm:$0xff] }
 0x30d   :  { %v7502_v4 = vpop.f32.mrf.mxu1  ;;  %v3848_v30 = vpop.f32.mrf.mxu0  ;;  %v2688_v38 = vadd.f32 %v7369_v52, %v8652_v50  ;;  %v2698_v16 = vadd.f32 %v7389_v6, %v8654_v10 }
 0x30e   :  { %v3245_v23 = vadd.f32 %v3244_v54, %v3048_v42  ;;  %v3315_v41 = vmul.f32 %v3048_v42, %v3048_v42  ;;  %v3377_v39 = vadd.f32 %v3376_v60, %v3314_v14  ;;  %3450 = vst [vmem:[%s7678_s4 + $0xf0] sm:$0xff] %v3048_v42  ;;  %v3063_v24 = vadd.f32 %v3848_v30, %v2678_v46  ;;  %v8655_v60 = vld [vmem:[#allocation32_spill] sm:$0xff] }
 0x30f   :  { %v2754_v12 = vpop.f32.mrf.mxu1  ;;  %v3057_v0 = vpop.f32.mrf.mxu0  ;;  %v2693_v42 = vadd.f32 %v7379_v33, %v8655_v60 }
 0x310   :  { %v3378_v61 = vadd.f32 %v3377_v39, %v3315_v41  ;;  %v3058_v35 = vadd.f32 %v3057_v0, %v7342_v56  ;;  %v3246_v22 = vadd.f32 %v3245_v23, %v3053_v1  ;;  %3453 = vst [vmem:[%s7678_s4 + $0x108] sm:$0xff] %v3063_v24  ;;  %v3318_v63 = vmul.f32 %v3063_v24, %v3063_v24  ;;  %v8656_v0 = vld [vmem:[#allocation26_spill] sm:$0xff] }
 0x311   :  { %v7513_v21 = vpop.f32.mrf.mxu1  ;;  %v3851_v43 = vpop.f32.mrf.mxu0 }
 0x312   :  { %v3247_v47 = vadd.f32 %v3246_v22, %v3058_v35  ;;  %v3317_v26 = vmul.f32 %v3058_v35, %v3058_v35  ;;  %v3379_v8 = vadd.f32 %v3378_v61, %v3316_v36  ;;  %3452 = vst [vmem:[%s7678_s4 + $0x100] sm:$0xff] %v3058_v35  ;;  %v3073_v56 = vadd.f32 %v3851_v43, %v2688_v38  ;;  %v8657_v35 = vld [vmem:[#allocation104_spill] sm:$0xff] }
 0x313   :  { %v2759_v17 = vpop.f32.mrf.mxu1  ;;  %v3067_v52 = vpop.f32.mrf.mxu0  ;;  %v2708_v36 = vadd.f32 %v7409_v45, %v8656_v0  ;;  %v2703_v22 = vadd.f32 %v7399_v3, %v8657_v35  ;;  %v2738_v0 = vadd.f32 %v7469_v27, %v7203_v57 }
 0x314   :  { %v3380_v58 = vadd.f32 %v3379_v8, %v3317_v26  ;;  %v3068_v51 = vadd.f32 %v3067_v52, %v2683_v15  ;;  %v3248_v1 = vadd.f32 %v3247_v47, %v3063_v24  ;;  %3455 = vst [vmem:[%s7678_s4 + $0x118] sm:$0xff] %v3073_v56  ;;  %v3320_v41 = vmul.f32 %v3073_v56, %v3073_v56 }
 0x315   :  { %v7525_v7 = vpop.f32.mrf.mxu1  ;;  %v3854_v14 = vpop.f32.mrf.mxu0  ;;  %v2718_v17 = vadd.f32 %v7429_v13, %v7159_v37 }
 0x316   :  { %v3249_v54 = vadd.f32 %v3248_v1, %v3068_v51  ;;  %v3319_v18 = vmul.f32 %v3068_v51, %v3068_v51  ;;  %v3381_v46 = vadd.f32 %v3380_v58, %v3318_v63  ;;  %3454 = vst [vmem:[%s7678_s4 + $0x110] sm:$0xff] %v3068_v51  ;;  %v3083_v30 = vadd.f32 %v3854_v14, %v2698_v16 }
 0x317   :  { %v2764_v23 = vpop.f32.mrf.mxu1  ;;  %v3077_v6 = vpop.f32.mrf.mxu0  ;;  %v2713_v63 = vadd.f32 %v7419_v2, %v7149_v28 }
 0x318   :  { %v3382_v39 = vadd.f32 %v3381_v46, %v3319_v18  ;;  %v3078_v24 = vadd.f32 %v3077_v6, %v2693_v42  ;;  %v3250_v12 = vadd.f32 %v3249_v54, %v3073_v56  ;;  %3457 = vst [vmem:[%s7678_s4 + $0x128] sm:$0xff] %v3083_v30  ;;  %v3322_v47 = vmul.f32 %v3083_v30, %v3083_v30 }
 0x319   :  { %v7537_v33 = vpop.f32.mrf.mxu1  ;;  %v3857_v61 = vpop.f32.mrf.mxu0  ;;  %v2728_v54 = vadd.f32 %v7449_v49, %v7181_v32  ;;  %v2723_v18 = vadd.f32 %v7439_v53, %v7171_v44 }
 0x31a   :  { %v3251_v50 = vadd.f32 %v3250_v12, %v3078_v24  ;;  %v3321_v38 = vmul.f32 %v3078_v24, %v3078_v24  ;;  %v3383_v43 = vadd.f32 %v3382_v39, %v3320_v41  ;;  %3456 = vst [vmem:[%s7678_s4 + $0x120] sm:$0xff] %v3078_v24  ;;  %v3093_v29 = vadd.f32 %v3857_v61, %v2708_v36 }
 0x31b   :  { %v2769_v15 = vpop.f32.mrf.mxu1  ;;  %v3087_v45 = vpop.f32.mrf.mxu0  ;;  %v2733_v36 = vadd.f32 %v7459_v40, %v7193_v5 }
 0x31c   :  { %v3384_v26 = vadd.f32 %v3383_v43, %v3321_v38  ;;  %v3088_v8 = vadd.f32 %v3087_v45, %v2703_v22  ;;  %v3252_v56 = vadd.f32 %v3251_v50, %v3083_v30  ;;  %3459 = vst [vmem:[%s7678_s4 + $0x138] sm:$0xff] %v3093_v29  ;;  %v3324_v13 = vmul.f32 %v3093_v29, %v3093_v29 }
 0x31d   :  { %v7549_v3 = vpop.f32.mrf.mxu1  ;;  %v3860_v52 = vpop.f32.mrf.mxu0  ;;  %v2748_v45 = vadd.f32 %v7491_v11, %v7225_v34 }
 0x31e   :  { %v3253_v58 = vadd.f32 %v3252_v56, %v3088_v8  ;;  %v3323_v51 = vmul.f32 %v3088_v8, %v3088_v8  ;;  %v3385_v1 = vadd.f32 %v3384_v26, %v3322_v47  ;;  %3458 = vst [vmem:[%s7678_s4 + $0x130] sm:$0xff] %v3088_v8  ;;  %v3103_v10 = vadd.f32 %v3860_v52, %v2718_v17 }
 0x31f   :  { %v2774_v16 = vpop.f32.mrf.mxu1  ;;  %v3097_v37 = vpop.f32.mrf.mxu0  ;;  %v2743_v47 = vadd.f32 %v7479_v20, %v7215_v59 }
 0x320   :  { %v3386_v14 = vadd.f32 %v3385_v1, %v3323_v51  ;;  %v3098_v60 = vadd.f32 %v3097_v37, %v2713_v63  ;;  %v3254_v42 = vadd.f32 %v3253_v58, %v3093_v29  ;;  %3461 = vst [vmem:[%s7678_s4 + $0x148] sm:$0xff] %v3103_v10  ;;  %v3326_v49 = vmul.f32 %v3103_v10, %v3103_v10 }
 0x321   :  { %v7561_v28 = vpop.f32.mrf.mxu1  ;;  %v3863_v2 = vpop.f32.mrf.mxu0  ;;  %v2758_v1 = vadd.f32 %v7513_v21, %v7239_v62 }
 0x322   :  { %v3255_v46 = vadd.f32 %v3254_v42, %v3098_v60  ;;  %v3325_v30 = vmul.f32 %v3098_v60, %v3098_v60  ;;  %v3387_v23 = vadd.f32 %v3386_v14, %v3324_v13  ;;  %3460 = vst [vmem:[%s7678_s4 + $0x140] sm:$0xff] %v3098_v60  ;;  %v3113_v6 = vadd.f32 %v3863_v2, %v2728_v54 }
 0x323   :  { %v2779_v41 = vpop.f32.mrf.mxu1  ;;  %v3107_v32 = vpop.f32.mrf.mxu0 }
 0x324   :  { %v3388_v39 = vadd.f32 %v3387_v23, %v3325_v30  ;;  %v3108_v24 = vadd.f32 %v3107_v32, %v2723_v18  ;;  %v3256_v12 = vadd.f32 %v3255_v46, %v3103_v10  ;;  %3463 = vst [vmem:[%s7678_s4 + $0x158] sm:$0xff] %v3113_v6  ;;  %v3328_v27 = vmul.f32 %v3113_v6, %v3113_v6 }
 0x325   :  { %v7573_v44 = vpop.f32.mrf.mxu1  ;;  %v3866_v53 = vpop.f32.mrf.mxu0  ;;  %v2753_v10 = vadd.f32 %v7502_v4, %v7232_v48  ;;  %v2768_v18 = vadd.f32 %v7537_v33, %v7253_v55  ;;  %v2763_v46 = vadd.f32 %v7525_v7, %v7246_v31 }
 0x326   :  { %v3257_v61 = vadd.f32 %v3256_v12, %v3108_v24  ;;  %v3327_v35 = vmul.f32 %v3108_v24, %v3108_v24  ;;  %v3389_v22 = vadd.f32 %v3388_v39, %v3326_v49  ;;  %3462 = vst [vmem:[%s7678_s4 + $0x150] sm:$0xff] %v3108_v24  ;;  %v3123_v50 = vadd.f32 %v3866_v53, %v2738_v0 }
 0x327   :  { %v2784_v38 = vpop.f32.mrf.mxu1  ;;  %v3117_v57 = vpop.f32.mrf.mxu0  ;;  %v2778_v12 = vadd.f32 %v7561_v28, %v7267_v19  ;;  %v2773_v0 = vadd.f32 %v7549_v3, %v7260_v25 }
 0x328   :  { %v3390_v43 = vadd.f32 %v3389_v22, %v3327_v35  ;;  %v3118_v29 = vadd.f32 %v3117_v57, %v2733_v36  ;;  %v3258_v15 = vadd.f32 %v3257_v61, %v3113_v6  ;;  %3465 = vst [vmem:[%s7678_s4 + $0x168] sm:$0xff] %v3123_v50  ;;  %v3330_v34 = vmul.f32 %v3123_v50, %v3123_v50 }
 0x329   :  { %v2787_v5 = vpop.f32.mrf.mxu1  ;;  %v3869_v40 = vpop.f32.mrf.mxu0 }
 0x32a   :  { %v3259_v26 = vadd.f32 %v3258_v15, %v3118_v29  ;;  %v3329_v8 = vmul.f32 %v3118_v29, %v3118_v29  ;;  %v3391_v56 = vadd.f32 %v3390_v43, %v3328_v27  ;;  %3464 = vst [vmem:[%s7678_s4 + $0x160] sm:$0xff] %v3118_v29  ;;  %v3133_v17 = vadd.f32 %v3869_v40, %v2748_v45  ;;  %v8658_v43 = vld [vmem:[#allocation23_spill] sm:$0xff] }
 0x32b   :  { %v2789_v52 = vpop.f32.mrf.mxu1  ;;  %v3127_v63 = vpop.f32.mrf.mxu0  ;;  %v2788_v27 = vadd.f32 %v2787_v5, %v7281_v9  ;;  %v2783_v29 = vadd.f32 %v7573_v44, %v8658_v43 }
 0x32c   :  { %v3392_v11 = vadd.f32 %v3391_v56, %v3329_v8  ;;  %v3128_v58 = vadd.f32 %v3127_v63, %v2743_v47  ;;  %v3260_v51 = vadd.f32 %v3259_v26, %v3123_v50  ;;  %3467 = vst [vmem:[%s7678_s4 + $0x178] sm:$0xff] %v3133_v17  ;;  %v3332_v21 = vmul.f32 %v3133_v17, %v3133_v17  ;;  %v8659_v52 = vld [vmem:[#allocation96_spill] sm:$0xff] }
 0x32d   :  { %v7595_v59 = vpop.f32.mrf.mxu1  ;;  %v3872_v20 = vpop.f32.mrf.mxu0 }
 0x32e   :  { %v3261_v16 = vadd.f32 %v3260_v51, %v3128_v58  ;;  %v3331_v37 = vmul.f32 %v3128_v58, %v3128_v58  ;;  %v3393_v13 = vadd.f32 %v3392_v11, %v3330_v34  ;;  %3466 = vst [vmem:[%s7678_s4 + $0x170] sm:$0xff] %v3128_v58  ;;  %v3143_v14 = vadd.f32 %v3872_v20, %v2758_v1  ;;  %v8660_v11 = vld [vmem:[#allocation37_spill] sm:$0xff] }
 0x32f   :  { %v2794_v60 = vpop.f32.mrf.mxu1  ;;  %v3137_v62 = vpop.f32.mrf.mxu0  ;;  %v2793_v58 = vadd.f32 %v7595_v59, %v8660_v11 }
 0x330   :  { %v3394_v42 = vadd.f32 %v3393_v13, %v3331_v37  ;;  %v3138_v54 = vadd.f32 %v3137_v62, %v2753_v10  ;;  %v3262_v2 = vadd.f32 %v3261_v16, %v3133_v17  ;;  %3469 = vst [vmem:[%s7678_s4 + $0x188] sm:$0xff] %v3143_v14  ;;  %v3334_v55 = vmul.f32 %v3143_v14, %v3143_v14 }
 0x331   :  { %v2797_v48 = vpop.f32.mrf.mxu1  ;;  %v3875_v4 = vpop.f32.mrf.mxu0 }
 0x332   :  { %v3263_v30 = vadd.f32 %v3262_v2, %v3138_v54  ;;  %v3333_v23 = vmul.f32 %v3138_v54, %v3138_v54  ;;  %v3395_v6 = vadd.f32 %v3394_v42, %v3332_v21  ;;  %3468 = vst [vmem:[%s7678_s4 + $0x180] sm:$0xff] %v3138_v54  ;;  %v3153_v41 = vadd.f32 %v3875_v4, %v2768_v18  ;;  %v8661_v21 = vld [vmem:[#allocation175_spill] sm:$0xff] }
 0x333   :  { %v2799_v32 = vpop.f32.mrf.mxu1  ;;  %v3147_v49 = vpop.f32.mrf.mxu0  ;;  %v2798_v63 = vadd.f32 %v2797_v48, %v8659_v52  ;;  %v8662_v2 = vld [vmem:[#allocation107_spill] sm:$0xff] }
 0x334   :  { %v3396_v33 = vadd.f32 %v3395_v6, %v3333_v23  ;;  %v3148_v39 = vadd.f32 %v3147_v49, %v2763_v46  ;;  %v3264_v24 = vadd.f32 %v3263_v30, %v3143_v14  ;;  %3471 = vst [vmem:[%s7678_s4 + $0x198] sm:$0xff] %v3153_v41  ;;  %v3336_v19 = vmul.f32 %v3153_v41, %v3153_v41 }
 0x335   :  { %v2802_v31 = vpop.f32.mrf.mxu1  ;;  %v3878_v7 = vpop.f32.mrf.mxu0 }
 0x336   :  { %v3265_v53 = vadd.f32 %v3264_v24, %v3148_v39  ;;  %v3335_v36 = vmul.f32 %v3148_v39, %v3148_v39  ;;  %v3397_v61 = vadd.f32 %v3396_v33, %v3334_v55  ;;  %3470 = vst [vmem:[%s7678_s4 + $0x190] sm:$0xff] %v3148_v39  ;;  %v3163_v35 = vadd.f32 %v3878_v7, %v2778_v12  ;;  %v8663_v33 = vld [vmem:[#allocation43_spill] sm:$0xff] }
 0x337   :  { %v2804_v22 = vpop.f32.mrf.mxu1  ;;  %v3157_v50 = vpop.f32.mrf.mxu0  ;;  %v2803_v18 = vadd.f32 %v2802_v31, %v8662_v2  ;;  %v8664_v31 = vld [vmem:[#allocation31_spill] sm:$0xff] }
 0x338   :  { %v3398_v28 = vadd.f32 %v3397_v61, %v3335_v36  ;;  %v3158_v38 = vadd.f32 %v3157_v50, %v2773_v0  ;;  %v3266_v57 = vadd.f32 %v3265_v53, %v3153_v41  ;;  %3473 = vst [vmem:[%s7678_s4 + $0x1a8] sm:$0xff] %v3163_v35  ;;  %v3338_v9 = vmul.f32 %v3163_v35, %v3163_v35 }
 0x339   :  { %v2807_v25 = vpop.f32.mrf.mxu1  ;;  %v3881_v3 = vpop.f32.mrf.mxu0 }
 0x33a   :  { %v3267_v15 = vadd.f32 %v3266_v57, %v3158_v38  ;;  %v3337_v45 = vmul.f32 %v3158_v38, %v3158_v38  ;;  %v3399_v40 = vadd.f32 %v3398_v28, %v3336_v19  ;;  %3472 = vst [vmem:[%s7678_s4 + $0x1a0] sm:$0xff] %v3158_v38  ;;  %v3173_v47 = vadd.f32 %v3881_v3, %v2788_v27  ;;  %v8665_v57 = vld [vmem:[#allocation99_spill] sm:$0xff] }
 0x33b   :  { %v2809_v26 = vpop.f32.mrf.mxu1  ;;  %v3167_v8 = vpop.f32.mrf.mxu0  ;;  %v2808_v42 = vadd.f32 %v2807_v25, %v8661_v21 }
 0x33c   :  { %v3400_v5 = vadd.f32 %v3399_v40, %v3337_v45  ;;  %v3168_v56 = vadd.f32 %v3167_v8, %v2783_v29  ;;  %v3268_v17 = vadd.f32 %v3267_v15, %v3163_v35  ;;  %3475 = vst [vmem:[%s7678_s4 + $0x1b8] sm:$0xff] %v3173_v47  ;;  %v3340_v13 = vmul.f32 %v3173_v47, %v3173_v47  ;;  %v8666_v45 = vld [vmem:[#allocation110_spill] sm:$0xff] }
 0x33d   :  { %v2812_v44 = vpop.f32.mrf.mxu1  ;;  %v3884_v34 = vpop.f32.mrf.mxu0 }
 0x33e   :  { %v3269_v51 = vadd.f32 %v3268_v17, %v3168_v56  ;;  %v3339_v1 = vmul.f32 %v3168_v56, %v3168_v56  ;;  %v3401_v20 = vadd.f32 %v3400_v5, %v3338_v9  ;;  %3474 = vst [vmem:[%s7678_s4 + $0x1b0] sm:$0xff] %v3168_v56  ;;  %v3183_v10 = vadd.f32 %v3884_v34, %v2798_v63 }
 0x33f   :  { %v2814_v16 = vpop.f32.mrf.mxu1  ;;  %v3177_v37 = vpop.f32.mrf.mxu0  ;;  %v2813_v7 = vadd.f32 %v2812_v44, %v8664_v31 }
 0x340   :  { %v3402_v14 = vadd.f32 %v3401_v20, %v3339_v1  ;;  %v3178_v60 = vadd.f32 %v3177_v37, %v2793_v58  ;;  %v3270_v62 = vadd.f32 %v3269_v51, %v3173_v47  ;;  %3477 = vst [vmem:[%s7678_s4 + $0x1c8] sm:$0xff] %v3183_v10  ;;  %v3342_v41 = vmul.f32 %v3183_v10, %v3183_v10 }
 0x341   :  { %v2817_v59 = vpop.f32.mrf.mxu1  ;;  %v3887_v54 = vpop.f32.mrf.mxu0 }
 0x342   :  { %v3271_v48 = vadd.f32 %v3270_v62, %v3178_v60  ;;  %v3341_v4 = vmul.f32 %v3178_v60, %v3178_v60  ;;  %v3403_v46 = vadd.f32 %v3402_v14, %v3340_v13  ;;  %3476 = vst [vmem:[%s7678_s4 + $0x1c0] sm:$0xff] %v3178_v60  ;;  %v3193_v30 = vadd.f32 %v3887_v54, %v2808_v42 }
 0x343   :  { %v2819_v23 = vpop.f32.mrf.mxu1  ;;  %v3187_v6 = vpop.f32.mrf.mxu0  ;;  %v2818_v39 = vadd.f32 %v2817_v59, %v8663_v33 }
 0x344   :  { %v3404_v32 = vadd.f32 %v3403_v46, %v3341_v4  ;;  %v3188_v49 = vadd.f32 %v3187_v6, %v2803_v18  ;;  %v3272_v55 = vadd.f32 %v3271_v48, %v3183_v10  ;;  %3479 = vst [vmem:[%s7678_s4 + $0x1d8] sm:$0xff] %v3193_v30  ;;  %v3344_v50 = vmul.f32 %v3193_v30, %v3193_v30 }
 0x345   :  { %v2822_v24 = vpop.f32.mrf.mxu1  ;;  %v3890_v12 = vpop.f32.mrf.mxu0 }
 0x346   :  { %v3273_v0 = vadd.f32 %v3272_v55, %v3188_v49  ;;  %v3343_v53 = vmul.f32 %v3188_v49, %v3188_v49  ;;  %v3405_v36 = vadd.f32 %v3404_v32, %v3342_v41  ;;  %3478 = vst [vmem:[%s7678_s4 + $0x1d0] sm:$0xff] %v3188_v49  ;;  %v3203_v61 = vadd.f32 %v3890_v12, %v2818_v39 }
 0x347   :  { %v2824_v35 = vpop.f32.mrf.mxu1  ;;  %v3197_v22 = vpop.f32.mrf.mxu0  ;;  %v2823_v27 = vadd.f32 %v2822_v24, %v8665_v57 }
 0x348   :  { %v3406_v19 = vadd.f32 %v3405_v36, %v3343_v53  ;;  %v3198_v28 = vadd.f32 %v3197_v22, %v2813_v7  ;;  %v3274_v38 = vadd.f32 %v3273_v0, %v3193_v30  ;;  %3481 = vst [vmem:[%s7678_s4 + $0x1e8] sm:$0xff] %v3203_v61  ;;  %v3346_v47 = vmul.f32 %v3203_v61, %v3203_v61 }
 0x349   :  { %v2827_v25 = vpop.f32.mrf.mxu1  ;;  %v3893_v3 = vpop.f32.mrf.mxu0 }
 0x34a   :  { %v3275_v43 = vadd.f32 %v3274_v38, %v3198_v28  ;;  %v3345_v29 = vmul.f32 %v3198_v28, %v3198_v28  ;;  %v3407_v15 = vadd.f32 %v3406_v19, %v3344_v50  ;;  %3480 = vst [vmem:[%s7678_s4 + $0x1e0] sm:$0xff] %v3198_v28  ;;  %v2828_v40 = vadd.f32 %v2827_v25, %v8666_v45 }
 0x34b   :  { %v3207_v26 = vpop.f32.mrf.mxu0  ;;  %v2829_v8 = vpop.f32.mrf.mxu1 }
 0x34c   :  { %v3408_v9 = vadd.f32 %v3407_v15, %v3345_v29  ;;  %v3213_v5 = vadd.f32 %v3893_v3, %v2828_v40  ;;  %v3208_v56 = vadd.f32 %v3207_v26, %v2823_v27  ;;  %v3276_v17 = vadd.f32 %v3275_v43, %v3203_v61 }
 0x34e   :  { %3483 = vst [vmem:[%s7678_s4 + $0x1f8] sm:$0xff] %v3213_v5  ;;  %v3277_v52 = vadd.f32 %v3276_v17, %v3208_v56  ;;  %v3347_v63 = vmul.f32 %v3208_v56, %v3208_v56  ;;  %v3409_v44 = vadd.f32 %v3408_v9, %v3346_v47  ;;  %3482 = vst [vmem:[%s7678_s4 + $0x1f0] sm:$0xff] %v3208_v56 }
 0x34f   :  { %v3348_v34 = vmul.f32 %v3213_v5, %v3213_v5 }
 0x350   :  { %v3278_v11 = vadd.f32 %v3277_v52, %v3213_v5  ;;  %v3410_v58 = vadd.f32 %v3409_v44, %v3347_v63 }
 0x352   :  { %v3279_v51 = vrot.slane %v3278_v11, 4  ;;  %v3411_v1 = vadd.f32 %v3410_v58, %v3348_v34 }
 0x354   :  { %v3280_v20 = vadd.f32 %v3279_v51, %v3278_v11  ;;  %v3412_v10 = vrot.slane %v3411_v1, 4 }
 0x356   :  { %v3281_v16 = vrot.slane %v3280_v20, 2  ;;  %v3413_v37 = vadd.f32 %v3412_v10, %v3411_v1 }
 0x358   :  { %v3282_v13 = vadd.f32 %v3281_v16, %v3280_v20  ;;  %v3414_v14 = vrot.slane %v3413_v37, 2 }
 0x35a   :  { %v3283_v60 = vrot.slane %v3282_v13, 1  ;;  %v3415_v62 = vadd.f32 %v3414_v14, %v3413_v37 }
 0x35c   :  { %v3416_v21 = vrot.slane %v3415_v62, 1  ;;  %v3284_v42 = vadd.f32 %v3283_v60, %v3282_v13 }
 0x35e   :  { %v3417_v59 = vadd.f32 %v3416_v21, %v3415_v62 }
 0x360   :  { %v3418_v54 = vsel %vm354_vm0, %v3284_v42, %v3417_v59 }
 0x361   :  { %3419 = vst [vmem:[%s7679_s5] sm:$0x3] %v3418_v54 }

</bundles_post_ra>
